<compile_context>
chip_gen: v5e
topology: v5e:2x2
jax: 0.10.0
libtpu: 0.0.40
codegen_flags: <defaults>
</compile_context>

<pallas_src>
import functools

import jax
import jax.numpy as jnp
import numpy as np
from jax import lax
from jax.experimental import pallas as pl
from jax.experimental.pallas import tpu as pltpu


_S = 24  # per-image stride of the pooled-H index inside the flat pool-1/conv-2 layouts


# ---------------------------------------------------------------------------
# Kernel 1: whole conv stack for a block of B images, everything VMEM-resident.
# ---------------------------------------------------------------------------
def _fused_conv_kernel(x_ref, w1_ref, b1_ref, w2_ref, b2_ref, o_ref,
                       lhs_ref, p1f_ref, acc_ref, ptmp_ref, *, block_b):
    f32 = jnp.float32
    B = block_b
    m_all = B * 48            # rows of the input block (b*48 + h_in)
    blk = _S * B              # rows per pooled-W column block (b*24 + i)
    n_p1 = 23 * blk           # valid flat pool-1 rows
    n_acc = 21 * blk          # conv-2 (pre-pool) rows

    # Zero the few rows that may be read but never written (keeps junk finite).
    lhs_ref[pl.ds(blk - 8, 8), :] = jnp.zeros((8, 144), lhs_ref.dtype)
    lhs_ref[pl.ds(2 * blk - 8, 8), :] = jnp.zeros((8, 144), lhs_ref.dtype)
    p1f_ref[pl.ds(n_p1, 8), :] = jnp.zeros((8, 96), p1f_ref.dtype)

    # ---- stage conv1 lhs: even conv rows (h=2i) then odd rows (h=2i+1), with
    # the three dy-shifted copies side by side in lanes (K = 3*48 = 144).
    for parity in range(2):
        for dy in range(3):
            cnt = blk if (parity + dy) < 2 else blk - 1
            lhs_ref[pl.ds(parity * blk, cnt), dy * 48:(dy + 1) * 48] = (
                x_ref[pl.ds(parity + dy, cnt, stride=2), :].astype(lhs_ref.dtype))

    # ---- conv1 (banded matmuls) + bias + relu + 2x2 maxpool ------------------
    # One (2*blk,144)@(144,128) matmul covers two pooled output columns j.
    b1v = jnp.broadcast_to(b1_ref[...], (blk, 32))
    for jj in range(12):
        y = jnp.dot(lhs_ref[...], w1_ref[jj], preferred_element_type=f32)
        for g in range(2):
            j = 2 * jj + g
            if j >= 23:
                continue
            # H-pool: max over the even/odd conv-row blocks.
            hmax = jnp.maximum(y[0:blk, g * 64:(g + 1) * 64],
                               y[blk:2 * blk, g * 64:(g + 1) * 64])
            # W-pool: max over the two lane halves (w = 2j / 2j+1).
            pooled = jnp.maximum(hmax[:, 0:32], hmax[:, 32:64])
            pooled = jnp.maximum(pooled + b1v, 0.0)
            p1f_ref[pl.ds(j * blk, blk), 0:32] = pooled.astype(p1f_ref.dtype)

    # ---- replicate pool-1 at +1/+2 row shifts into lane groups (conv2 K=96) --
    p1f_ref[pl.ds(0, n_p1), 32:64] = p1f_ref[pl.ds(1, n_p1), 0:32]
    p1f_ref[pl.ds(0, n_p1), 64:96] = p1f_ref[pl.ds(2, n_p1), 0:32]

    # ---- conv2: 3 chained big-M matmuls, K = 96 ------------------------------
    acc = jnp.dot(p1f_ref[pl.ds(0, n_acc), :], w2_ref[0],
                  preferred_element_type=f32)
    acc = acc + jnp.dot(p1f_ref[pl.ds(blk, n_acc), :], w2_ref[1],
                        preferred_element_type=f32)
    acc = acc + jnp.dot(p1f_ref[pl.ds(2 * blk, n_acc), :], w2_ref[2],
                        preferred_element_type=f32)
    acc_ref[...] = acc

    # ---- bias + relu + 2x2 maxpool of conv2, (w, h, c)-ordered feature store -
    b2v = jnp.broadcast_to(b2_ref[...], (blk // 2, 64))
    for qo in range(10):                              # pooled W index
        s0 = acc_ref[pl.ds((2 * qo) * blk, blk), :]
        s1 = acc_ref[pl.ds((2 * qo + 1) * blk, blk), :]
        ptmp_ref[...] = jnp.maximum(s0, s1)
        e = ptmp_ref[pl.ds(0, blk // 2, stride=2), :]  # rows b*12 + po (p even)
        o = ptmp_ref[pl.ds(1, blk // 2, stride=2), :]
        v = jnp.maximum(jnp.maximum(e, o) + b2v, 0.0)  # (12*B, 64)
        for b in range(B):
            o_ref[b, pl.ds(qo * 10, 10), :] = (
                v[b * 12:b * 12 + 10, :].astype(o_ref.dtype))


def conv_features(xall, w1band, b1, w2r, b2, *, block_b, out_dtype):
    """xall: (N*48, 48) f32 -> pooled conv2 features (N, 100, 64), row = w*10+h."""
    n = xall.shape[0] // 48
    steps = n // block_b
    blk = _S * block_b
    kern = functools.partial(_fused_conv_kernel, block_b=block_b)
    return pl.pallas_call(
        kern,
        out_shape=jax.ShapeDtypeStruct((n, 100, 64), out_dtype),
        grid=(steps,),
        in_specs=[
            pl.BlockSpec((block_b * 48, 48), lambda i: (i, 0)),
            pl.BlockSpec((12, 144, 128), lambda i: (0, 0, 0)),   # conv1 band
            pl.BlockSpec((1, 32), lambda i: (0, 0)),
            pl.BlockSpec((3, 96, 64), lambda i: (0, 0, 0)),      # conv2 (K=96)
            pl.BlockSpec((1, 64), lambda i: (0, 0)),
        ],
        out_specs=pl.BlockSpec((block_b, 100, 64), lambda i: (i, 0, 0)),
        scratch_shapes=[
            pltpu.VMEM((2 * blk, 144), out_dtype),       # staged conv1 lhs (even|odd)
            pltpu.VMEM((23 * blk + 8, 96), out_dtype),   # pool-1, dy-replicated lanes
            pltpu.VMEM((21 * blk, 64), jnp.float32),     # conv2 output (pre-pool)
            pltpu.VMEM((blk, 64), jnp.float32),          # pool-2 staging
        ],
        compiler_params=pltpu.CompilerParams(
            dimension_semantics=("parallel",),
            vmem_limit_bytes=32 * 1024 * 1024),
    )(xall, w1band, b1, w2r, b2)


# ---------------------------------------------------------------------------
# Kernel 2: batch-tiled classifier head, weights resident across grid steps.
# ---------------------------------------------------------------------------
def _mlp_kernel(x_ref, w1_ref, b1_ref, w2_ref, b2_ref, o_ref):
    h = jnp.dot(x_ref[...], w1_ref[...],
                preferred_element_type=jnp.float32) + b1_ref[...]
    h = jnp.maximum(h, 0.0)
    o_ref[...] = jnp.dot(h.astype(w2_ref.dtype), w2_ref[...],
                         preferred_element_type=jnp.float32) + b2_ref[...]


def mlp_head(x2d, w1, b1, w2p, b2p, *, block_m):
    npad, k = x2d.shape
    return pl.pallas_call(
        _mlp_kernel,
        out_shape=jax.ShapeDtypeStruct((npad, 128), jnp.float32),
        grid=(npad // block_m,),
        in_specs=[
            pl.BlockSpec((block_m, k), lambda i: (i, 0)),
            pl.BlockSpec((k, 128), lambda i: (0, 0)),     # fc1 weight, resident
            pl.BlockSpec((1, 128), lambda i: (0, 0)),
            pl.BlockSpec((128, 128), lambda i: (0, 0)),   # fc2 weight (padded)
            pl.BlockSpec((1, 128), lambda i: (0, 0)),
        ],
        out_specs=pl.BlockSpec((block_m, 128), lambda i: (i, 0)),
        compiler_params=pltpu.CompilerParams(
            dimension_semantics=("parallel",),
            vmem_limit_bytes=32 * 1024 * 1024),
    )(x2d, w1, b1, w2p, b2p)


# ---------------------------------------------------------------------------
# Parameter prep (one-time layout plumbing) and full forward pass.
# ---------------------------------------------------------------------------
def prepare_params(params, mxu_dtype=jnp.float32):
    cw1, cb1, cw2, cb2, fw1, fb1, fw2, fb2 = params
    # conv1 (HWIO) -> banded matrices, one (144,128) block per pair of pooled-W
    # columns: band[jj, dy*48 + k, g*64 + par*32 + c] = w1[dy, k-(2*(2jj+g)+par), c]
    w1np = np.asarray(jax.device_get(cw1), dtype=np.float32)     # (3,3,1,32)
    band = np.zeros((12, 144, 128), np.float32)
    for j in range(23):
        jj, g = divmod(j, 2)
        for par in range(2):
            w = 2 * j + par
            for dy in range(3):
                for dx in range(3):
                    col = g * 64 + par * 32
                    band[jj, dy * 48 + w + dx, col:col + 32] = w1np[dy, dx, 0, :]
    w1band = jnp.asarray(band, mxu_dtype)
    b1 = cb1.reshape(1, 32).astype(jnp.float32)
    # conv2 (3,3,32,64) [dy,dx,c,c2] -> (dx, dy*32+c, c2): 3 accumulated K=96 matmuls.
    w2r = jnp.transpose(cw2, (1, 0, 2, 3)).reshape(3, 96, 64).astype(mxu_dtype)
    b2 = cb2.reshape(1, 64).astype(jnp.float32)
    # fc1 rows: torch flatten order (c, h, w) -> kernel feature order (w, h, c).
    fw1_whc = (fw1.reshape(64, 10, 10, 128)
                  .transpose(2, 1, 0, 3)
                  .reshape(6400, 128)).astype(mxu_dtype)
    fb1p = fb1.reshape(1, 128).astype(jnp.float32)
    # fc2 padded to 128 output lanes (lane-dense stores); sliced back to 7 later.
    fw2p = jnp.zeros((128, 128), mxu_dtype).at[:, :7].set(fw2.astype(mxu_dtype))
    fb2p = jnp.zeros((1, 128), jnp.float32).at[:, :7].set(fb2.reshape(1, 7))
    return (w1band, b1, w2r, b2, fw1_whc, fb1p, fw2p, fb2p)


def _round_up(v, m):
    return (v + m - 1) // m * m


def _pick_block_b(n):
    # Keep >=2 grid steps where possible (v7x has 2 TensorCores).
    if n >= 16:
        return 8
    if n >= 8:
        return 4
    if n >= 4:
        return 2
    return 1


@jax.jit
def emotion_cnn_forward(x_nchw, kparams):
    (w1band, b1, w2r, b2, fw1_whc, fb1p, fw2p, fb2p) = kparams
    n = x_nchw.shape[0]
    mxu_dtype = w2r.dtype
    block_b = _pick_block_b(n)
    n_conv = _round_up(n, block_b)
    x = x_nchw[:, 0, :, :]
    if n_conv != n:
        x = jnp.pad(x, ((0, n_conv - n), (0, 0), (0, 0)))
    xall = x.reshape(n_conv * 48, 48)                    # rows = b*48 + h, lanes = w
    feats = conv_features(xall, w1band, b1, w2r, b2,
                          block_b=block_b, out_dtype=mxu_dtype)
    feats2d = feats.reshape(n_conv, 64 * 10 * 10)[:n]    # contiguous, no transpose
    block_m = min(128, _round_up(n, 8))
    n_head = _round_up(n, block_m)
    if n_head != n:
        feats2d = jnp.pad(feats2d, ((0, n_head - n), (0, 0)))
    logits = mlp_head(feats2d, fw1_whc, fb1p, fw2p, fb2p, block_m=block_m)
    return logits[:n, :7]


# ---------------------------------------------------------------------------
# Pure-JAX reference (PyTorch-equivalent semantics) for validation.
# ---------------------------------------------------------------------------
def _reference_forward(x_nchw, params):
    (cw1, cb1, cw2, cb2, fw1, fb1, fw2, fb2) = params
    hi = lax.Precision.HIGHEST

    def conv(x, w, b):
        y = lax.conv_general_dilated(
            x, w, (1, 1), "VALID",
            dimension_numbers=("NHWC", "HWIO", "NHWC"), precision=hi)
        return jnp.maximum(y + b, 0.0)

    def pool(y):
        n, h, w, c = y.shape
        y = y[:, : h // 2 * 2, : w // 2 * 2, :]
        y = y.reshape(n, h // 2, 2, w // 2, 2, c)
        return y.max(axis=(2, 4))

    x = jnp.transpose(x_nchw, (0, 2, 3, 1))
    x = pool(conv(x, cw1, cb1))
    x = pool(conv(x, cw2, cb2))
    n = x.shape[0]
    feats = jnp.transpose(x, (0, 3, 1, 2)).reshape(n, -1)   # (C,H,W) flatten
    h = jnp.maximum(jnp.dot(feats, fw1, precision=hi) + fb1, 0.0)
    return jnp.dot(h, fw2, precision=hi) + fb2


if __name__ == "__main__":
    key = jax.random.PRNGKey(0)
    ks = jax.random.split(key, 9)
    scale = 0.05
    # Weights are generated directly in the kernel-friendly convention:
    # convs are HWIO, linears are (in, out).  Real torch weights would be
    # permuted the same way (conv: OIHW->HWIO, linear: transpose).
    params = (
        jax.random.normal(ks[0], (3, 3, 1, 32), jnp.float32) * scale,   # conv1.w
        jax.random.normal(ks[1], (1, 32), jnp.float32) * scale,         # conv1.b
        jax.random.normal(ks[2], (3, 3, 32, 64), jnp.float32) * scale,  # conv2.w
        jax.random.normal(ks[3], (1, 64), jnp.float32) * scale,         # conv2.b
        jax.random.normal(ks[4], (6400, 128), jnp.float32) * scale,     # fc1.w^T
        jax.random.normal(ks[5], (1, 128), jnp.float32) * scale,        # fc1.b
        jax.random.normal(ks[6], (128, 7), jnp.float32) * scale,        # fc2.w^T
        jax.random.normal(ks[7], (1, 7), jnp.float32) * scale,          # fc2.b
    )
    # 48x48 grayscale input is implied by the 64*10*10 flatten in the module.
    x = jax.random.normal(ks[8], (2, 1, 48, 48), jnp.float32)

    ref = jax.block_until_ready(_reference_forward(x, params))

    # Full-f32 path (tight check).
    kp32 = prepare_params(params, jnp.float32)
    out32 = jax.block_until_ready(emotion_cnn_forward(x, kp32))
    assert out32.shape == (2, 7), out32.shape
    err32 = float(jnp.max(jnp.abs(out32 - ref)))
    assert err32 < 1e-2, f"f32 mismatch vs reference: max abs err = {err32}"

    # bf16 MXU-operand path (v6e/v7x fast path), f32 accumulation.
    kp16 = prepare_params(params, jnp.bfloat16)
    out16 = jax.block_until_ready(emotion_cnn_forward(x, kp16))
    err16 = float(jnp.max(jnp.abs(out16 - ref)))
    assert err16 < 7.5e-2, f"bf16 mismatch vs reference: max abs err = {err16}"

    print("KERNEL_OK")
</pallas_src>

<mosaic_0001>
module attributes {stable_mosaic.version = 11 : i64} {
  func.func @_fused_conv_kernel(%arg0: i32, %arg1: memref<48x48xf32, #tpu.memory_space<vmem>>, %arg2: memref<12x144x128xf32, #tpu.memory_space<vmem>>, %arg3: memref<1x32xf32, #tpu.memory_space<vmem>>, %arg4: memref<3x96x64xf32, #tpu.memory_space<vmem>>, %arg5: memref<1x64xf32, #tpu.memory_space<vmem>>, %arg6: memref<1x100x64xf32, #tpu.memory_space<vmem>>, %arg7: memref<48x144xf32, #tpu.memory_space<vmem>>, %arg8: memref<560x96xf32, #tpu.memory_space<vmem>>, %arg9: memref<504x64xf32, #tpu.memory_space<vmem>>, %arg10: memref<24x64xf32, #tpu.memory_space<vmem>>) attributes {dimension_semantics = [#tpu.dimension_semantics<parallel>], iteration_bounds = array<i64: 2>, scalar_prefetch = 0 : i64, scratch_operands = 4 : i64, tpu.core_type = #tpu.core_type<tc>, window_params = [{transform_indices = @transform_0, window_bounds = array<i64: 48, 48>}, {pipeline_mode = #tpu.pipeline_mode<synchronous>, transform_indices = @transform_1, window_bounds = array<i64: 12, 144, 128>}, {pipeline_mode = #tpu.pipeline_mode<synchronous>, transform_indices = @transform_2, window_bounds = array<i64: 1, 32>}, {pipeline_mode = #tpu.pipeline_mode<synchronous>, transform_indices = @transform_3, window_bounds = array<i64: 3, 96, 64>}, {pipeline_mode = #tpu.pipeline_mode<synchronous>, transform_indices = @transform_4, window_bounds = array<i64: 1, 64>}, {transform_indices = @transform_5, window_bounds = array<i64: 1, 100, 64>}]} {
    %cst = arith.constant 0.000000e+00 : f32
    %0 = vector.broadcast %cst : f32 to vector<8x144xf32>
    %c16 = arith.constant 16 : index
    %c0 = arith.constant 0 : index
    %1 = vector.load %arg7[%c16, %c0] : memref<48x144xf32, #tpu.memory_space<vmem>>, vector<8x144xf32>
    tpu.vector_store %arg7[%c16, %c0], %0 {strides = array<i32>} : memref<48x144xf32, #tpu.memory_space<vmem>>, vector<8x144xf32>,
    %cst_0 = arith.constant 0.000000e+00 : f32
    %2 = vector.broadcast %cst_0 : f32 to vector<8x144xf32>
    %c40 = arith.constant 40 : index
    %c0_1 = arith.constant 0 : index
    %3 = vector.load %arg7[%c40, %c0_1] : memref<48x144xf32, #tpu.memory_space<vmem>>, vector<8x144xf32>
    tpu.vector_store %arg7[%c40, %c0_1], %2 {strides = array<i32>} : memref<48x144xf32, #tpu.memory_space<vmem>>, vector<8x144xf32>,
    %cst_2 = arith.constant 0.000000e+00 : f32
    %4 = vector.broadcast %cst_2 : f32 to vector<8x96xf32>
    %c552 = arith.constant 552 : index
    %c0_3 = arith.constant 0 : index
    %5 = vector.load %arg8[%c552, %c0_3] : memref<560x96xf32, #tpu.memory_space<vmem>>, vector<8x96xf32>
    tpu.vector_store %arg8[%c552, %c0_3], %4 {strides = array<i32>} : memref<560x96xf32, #tpu.memory_space<vmem>>, vector<8x96xf32>,
    %c0_4 = arith.constant 0 : index
    %c0_5 = arith.constant 0 : index
    %6 = tpu.strided_load %arg1[%c0_4, %c0_5] {strides = array<i32: 2, 1>} : memref<48x48xf32, #tpu.memory_space<vmem>>, vector<24x48xf32>
    %c0_6 = arith.constant 0 : index
    %c0_7 = arith.constant 0 : index
    %7 = vector.load %arg7[%c0_6, %c0_7] : memref<48x144xf32, #tpu.memory_space<vmem>>, vector<24x48xf32>
    tpu.vector_store %arg7[%c0_6, %c0_7], %6 {strides = array<i32>} : memref<48x144xf32, #tpu.memory_space<vmem>>, vector<24x48xf32>,
    %c1 = arith.constant 1 : index
    %c0_8 = arith.constant 0 : index
    %8 = tpu.strided_load %arg1[%c1, %c0_8] {strides = array<i32: 2, 1>} : memref<48x48xf32, #tpu.memory_space<vmem>>, vector<24x48xf32>
    %c0_9 = arith.constant 0 : index
    %c48 = arith.constant 48 : index
    %9 = vector.load %arg7[%c0_9, %c48] : memref<48x144xf32, #tpu.memory_space<vmem>>, vector<24x48xf32>
    tpu.vector_store %arg7[%c0_9, %c48], %8 {strides = array<i32>} : memref<48x144xf32, #tpu.memory_space<vmem>>, vector<24x48xf32>,
    %c2 = arith.constant 2 : index
    %c0_10 = arith.constant 0 : index
    %10 = tpu.strided_load %arg1[%c2, %c0_10] {strides = array<i32: 2, 1>} : memref<48x48xf32, #tpu.memory_space<vmem>>, vector<23x48xf32>
    %c0_11 = arith.constant 0 : index
    %c96 = arith.constant 96 : index
    %11 = vector.load %arg7[%c0_11, %c96] : memref<48x144xf32, #tpu.memory_space<vmem>>, vector<23x48xf32>
    tpu.vector_store %arg7[%c0_11, %c96], %10 {strides = array<i32>} : memref<48x144xf32, #tpu.memory_space<vmem>>, vector<23x48xf32>,
    %c1_12 = arith.constant 1 : index
    %c0_13 = arith.constant 0 : index
    %12 = tpu.strided_load %arg1[%c1_12, %c0_13] {strides = array<i32: 2, 1>} : memref<48x48xf32, #tpu.memory_space<vmem>>, vector<24x48xf32>
    %c24 = arith.constant 24 : index
    %c0_14 = arith.constant 0 : index
    %13 = vector.load %arg7[%c24, %c0_14] : memref<48x144xf32, #tpu.memory_space<vmem>>, vector<24x48xf32>
    tpu.vector_store %arg7[%c24, %c0_14], %12 {strides = array<i32>} : memref<48x144xf32, #tpu.memory_space<vmem>>, vector<24x48xf32>,
    %c2_15 = arith.constant 2 : index
    %c0_16 = arith.constant 0 : index
    %14 = tpu.strided_load %arg1[%c2_15, %c0_16] {strides = array<i32: 2, 1>} : memref<48x48xf32, #tpu.memory_space<vmem>>, vector<23x48xf32>
    %c24_17 = arith.constant 24 : index
    %c48_18 = arith.constant 48 : index
    %15 = vector.load %arg7[%c24_17, %c48_18] : memref<48x144xf32, #tpu.memory_space<vmem>>, vector<23x48xf32>
    tpu.vector_store %arg7[%c24_17, %c48_18], %14 {strides = array<i32>} : memref<48x144xf32, #tpu.memory_space<vmem>>, vector<23x48xf32>,
    %c3 = arith.constant 3 : index
    %c0_19 = arith.constant 0 : index
    %16 = tpu.strided_load %arg1[%c3, %c0_19] {strides = array<i32: 2, 1>} : memref<48x48xf32, #tpu.memory_space<vmem>>, vector<23x48xf32>
    %c24_20 = arith.constant 24 : index
    %c96_21 = arith.constant 96 : index
    %17 = vector.load %arg7[%c24_20, %c96_21] : memref<48x144xf32, #tpu.memory_space<vmem>>, vector<23x48xf32>
    tpu.vector_store %arg7[%c24_20, %c96_21], %16 {strides = array<i32>} : memref<48x144xf32, #tpu.memory_space<vmem>>, vector<23x48xf32>,
    %c0_22 = arith.constant 0 : index
    %c0_23 = arith.constant 0 : index
    %18 = vector.load %arg3[%c0_22, %c0_23] : memref<1x32xf32, #tpu.memory_space<vmem>>, vector<1x32xf32>
    %19 = vector.shape_cast %18 : vector<1x32xf32> to vector<1x32xf32>
    %20 = vector.broadcast %19 : vector<1x32xf32> to vector<24x32xf32>
    %c0_24 = arith.constant 0 : index
    %c0_25 = arith.constant 0 : index
    %21 = vector.load %arg7[%c0_24, %c0_25] : memref<48x144xf32, #tpu.memory_space<vmem>>, vector<48x144xf32>
    %c0_26 = arith.constant 0 : index
    %c0_27 = arith.constant 0 : index
    %c0_28 = arith.constant 0 : index
    %22 = vector.load %arg2[%c0_26, %c0_27, %c0_28] : memref<12x144x128xf32, #tpu.memory_space<vmem>>, vector<1x144x128xf32>
    %23 = vector.shape_cast %22 : vector<1x144x128xf32> to vector<144x128xf32>
    %cst_29 = arith.constant dense<0.000000e+00> : vector<48x128xf32>
    %24 = tpu.matmul %21, %23, %cst_29 {dimension_numbers = #tpu.dot_dimension_numbers<[1], [0], [0], [1], [0, 0, 1, 1], [], []>} : vector<48x144xf32>, vector<144x128xf32>, vector<48x128xf32> -> vector<48x128xf32>
    %25 = vector.extract_strided_slice %24 {offsets = [0, 0], sizes = [24, 64], strides = [1, 1]} : vector<48x128xf32> to vector<24x64xf32>
    %26 = vector.extract_strided_slice %24 {offsets = [24, 0], sizes = [24, 64], strides = [1, 1]} : vector<48x128xf32> to vector<24x64xf32>
    %27 = arith.maximumf %25, %26 : vector<24x64xf32>
    %28 = vector.extract_strided_slice %27 {offsets = [0, 0], sizes = [24, 32], strides = [1, 1]} : vector<24x64xf32> to vector<24x32xf32>
    %29 = vector.extract_strided_slice %27 {offsets = [0, 32], sizes = [24, 32], strides = [1, 1]} : vector<24x64xf32> to vector<24x32xf32>
    %30 = arith.maximumf %28, %29 : vector<24x32xf32>
    %31 = arith.addf %30, %20 : vector<24x32xf32>
    %cst_30 = arith.constant 0.000000e+00 : f32
    %32 = vector.broadcast %cst_30 : f32 to vector<24x32xf32>
    %33 = arith.maximumf %31, %32 : vector<24x32xf32>
    %c0_31 = arith.constant 0 : index
    %c0_32 = arith.constant 0 : index
    %34 = vector.load %arg8[%c0_31, %c0_32] : memref<560x96xf32, #tpu.memory_space<vmem>>, vector<24x32xf32>
    tpu.vector_store %arg8[%c0_31, %c0_32], %33 {strides = array<i32>} : memref<560x96xf32, #tpu.memory_space<vmem>>, vector<24x32xf32>,
    %35 = vector.extract_strided_slice %24 {offsets = [0, 64], sizes = [24, 64], strides = [1, 1]} : vector<48x128xf32> to vector<24x64xf32>
    %36 = vector.extract_strided_slice %24 {offsets = [24, 64], sizes = [24, 64], strides = [1, 1]} : vector<48x128xf32> to vector<24x64xf32>
    %37 = arith.maximumf %35, %36 : vector<24x64xf32>
    %38 = vector.extract_strided_slice %37 {offsets = [0, 0], sizes = [24, 32], strides = [1, 1]} : vector<24x64xf32> to vector<24x32xf32>
    %39 = vector.extract_strided_slice %37 {offsets = [0, 32], sizes = [24, 32], strides = [1, 1]} : vector<24x64xf32> to vector<24x32xf32>
    %40 = arith.maximumf %38, %39 : vector<24x32xf32>
    %41 = arith.addf %40, %20 : vector<24x32xf32>
    %cst_33 = arith.constant 0.000000e+00 : f32
    %42 = vector.broadcast %cst_33 : f32 to vector<24x32xf32>
    %43 = arith.maximumf %41, %42 : vector<24x32xf32>
    %c24_34 = arith.constant 24 : index
    %c0_35 = arith.constant 0 : index
    %44 = vector.load %arg8[%c24_34, %c0_35] : memref<560x96xf32, #tpu.memory_space<vmem>>, vector<24x32xf32>
    tpu.vector_store %arg8[%c24_34, %c0_35], %43 {strides = array<i32>} : memref<560x96xf32, #tpu.memory_space<vmem>>, vector<24x32xf32>,
    %c0_36 = arith.constant 0 : index
    %c0_37 = arith.constant 0 : index
    %45 = vector.load %arg7[%c0_36, %c0_37] : memref<48x144xf32, #tpu.memory_space<vmem>>, vector<48x144xf32>
    %c1_38 = arith.constant 1 : index
    %c0_39 = arith.constant 0 : index
    %c0_40 = arith.constant 0 : index
    %46 = vector.load %arg2[%c1_38, %c0_39, %c0_40] : memref<12x144x128xf32, #tpu.memory_space<vmem>>, vector<1x144x128xf32>
    %47 = vector.shape_cast %46 : vector<1x144x128xf32> to vector<144x128xf32>
    %cst_41 = arith.constant dense<0.000000e+00> : vector<48x128xf32>
    %48 = tpu.matmul %45, %47, %cst_41 {dimension_numbers = #tpu.dot_dimension_numbers<[1], [0], [0], [1], [0, 0, 1, 1], [], []>} : vector<48x144xf32>, vector<144x128xf32>, vector<48x128xf32> -> vector<48x128xf32>
    %49 = vector.extract_strided_slice %48 {offsets = [0, 0], sizes = [24, 64], strides = [1, 1]} : vector<48x128xf32> to vector<24x64xf32>
    %50 = vector.extract_strided_slice %48 {offsets = [24, 0], sizes = [24, 64], strides = [1, 1]} : vector<48x128xf32> to vector<24x64xf32>
    %51 = arith.maximumf %49, %50 : vector<24x64xf32>
    %52 = vector.extract_strided_slice %51 {offsets = [0, 0], sizes = [24, 32], strides = [1, 1]} : vector<24x64xf32> to vector<24x32xf32>
    %53 = vector.extract_strided_slice %51 {offsets = [0, 32], sizes = [24, 32], strides = [1, 1]} : vector<24x64xf32> to vector<24x32xf32>
    %54 = arith.maximumf %52, %53 : vector<24x32xf32>
    %55 = arith.addf %54, %20 : vector<24x32xf32>
    %cst_42 = arith.constant 0.000000e+00 : f32
    %56 = vector.broadcast %cst_42 : f32 to vector<24x32xf32>
    %57 = arith.maximumf %55, %56 : vector<24x32xf32>
    %c48_43 = arith.constant 48 : index
    %c0_44 = arith.constant 0 : index
    %58 = vector.load %arg8[%c48_43, %c0_44] : memref<560x96xf32, #tpu.memory_space<vmem>>, vector<24x32xf32>
    tpu.vector_store %arg8[%c48_43, %c0_44], %57 {strides = array<i32>} : memref<560x96xf32, #tpu.memory_space<vmem>>, vector<24x32xf32>,
    %59 = vector.extract_strided_slice %48 {offsets = [0, 64], sizes = [24, 64], strides = [1, 1]} : vector<48x128xf32> to vector<24x64xf32>
    %60 = vector.extract_strided_slice %48 {offsets = [24, 64], sizes = [24, 64], strides = [1, 1]} : vector<48x128xf32> to vector<24x64xf32>
    %61 = arith.maximumf %59, %60 : vector<24x64xf32>
    %62 = vector.extract_strided_slice %61 {offsets = [0, 0], sizes = [24, 32], strides = [1, 1]} : vector<24x64xf32> to vector<24x32xf32>
    %63 = vector.extract_strided_slice %61 {offsets = [0, 32], sizes = [24, 32], strides = [1, 1]} : vector<24x64xf32> to vector<24x32xf32>
    %64 = arith.maximumf %62, %63 : vector<24x32xf32>
    %65 = arith.addf %64, %20 : vector<24x32xf32>
    %cst_45 = arith.constant 0.000000e+00 : f32
    %66 = vector.broadcast %cst_45 : f32 to vector<24x32xf32>
    %67 = arith.maximumf %65, %66 : vector<24x32xf32>
    %c72 = arith.constant 72 : index
    %c0_46 = arith.constant 0 : index
    %68 = vector.load %arg8[%c72, %c0_46] : memref<560x96xf32, #tpu.memory_space<vmem>>, vector<24x32xf32>
    tpu.vector_store %arg8[%c72, %c0_46], %67 {strides = array<i32>} : memref<560x96xf32, #tpu.memory_space<vmem>>, vector<24x32xf32>,
    %c0_47 = arith.constant 0 : index
    %c0_48 = arith.constant 0 : index
    %69 = vector.load %arg7[%c0_47, %c0_48] : memref<48x144xf32, #tpu.memory_space<vmem>>, vector<48x144xf32>
    %c2_49 = arith.constant 2 : index
    %c0_50 = arith.constant 0 : index
    %c0_51 = arith.constant 0 : index
    %70 = vector.load %arg2[%c2_49, %c0_50, %c0_51] : memref<12x144x128xf32, #tpu.memory_space<vmem>>, vector<1x144x128xf32>
    %71 = vector.shape_cast %70 : vector<1x144x128xf32> to vector<144x128xf32>
    %cst_52 = arith.constant dense<0.000000e+00> : vector<48x128xf32>
    %72 = tpu.matmul %69, %71, %cst_52 {dimension_numbers = #tpu.dot_dimension_numbers<[1], [0], [0], [1], [0, 0, 1, 1], [], []>} : vector<48x144xf32>, vector<144x128xf32>, vector<48x128xf32> -> vector<48x128xf32>
    %73 = vector.extract_strided_slice %72 {offsets = [0, 0], sizes = [24, 64], strides = [1, 1]} : vector<48x128xf32> to vector<24x64xf32>
    %74 = vector.extract_strided_slice %72 {offsets = [24, 0], sizes = [24, 64], strides = [1, 1]} : vector<48x128xf32> to vector<24x64xf32>
    %75 = arith.maximumf %73, %74 : vector<24x64xf32>
    %76 = vector.extract_strided_slice %75 {offsets = [0, 0], sizes = [24, 32], strides = [1, 1]} : vector<24x64xf32> to vector<24x32xf32>
    %77 = vector.extract_strided_slice %75 {offsets = [0, 32], sizes = [24, 32], strides = [1, 1]} : vector<24x64xf32> to vector<24x32xf32>
    %78 = arith.maximumf %76, %77 : vector<24x32xf32>
    %79 = arith.addf %78, %20 : vector<24x32xf32>
    %cst_53 = arith.constant 0.000000e+00 : f32
    %80 = vector.broadcast %cst_53 : f32 to vector<24x32xf32>
    %81 = arith.maximumf %79, %80 : vector<24x32xf32>
    %c96_54 = arith.constant 96 : index
    %c0_55 = arith.constant 0 : index
    %82 = vector.load %arg8[%c96_54, %c0_55] : memref<560x96xf32, #tpu.memory_space<vmem>>, vector<24x32xf32>
    tpu.vector_store %arg8[%c96_54, %c0_55], %81 {strides = array<i32>} : memref<560x96xf32, #tpu.memory_space<vmem>>, vector<24x32xf32>,
    %83 = vector.extract_strided_slice %72 {offsets = [0, 64], sizes = [24, 64], strides = [1, 1]} : vector<48x128xf32> to vector<24x64xf32>
    %84 = vector.extract_strided_slice %72 {offsets = [24, 64], sizes = [24, 64], strides = [1, 1]} : vector<48x128xf32> to vector<24x64xf32>
    %85 = arith.maximumf %83, %84 : vector<24x64xf32>
    %86 = vector.extract_strided_slice %85 {offsets = [0, 0], sizes = [24, 32], strides = [1, 1]} : vector<24x64xf32> to vector<24x32xf32>
    %87 = vector.extract_strided_slice %85 {offsets = [0, 32], sizes = [24, 32], strides = [1, 1]} : vector<24x64xf32> to vector<24x32xf32>
    %88 = arith.maximumf %86, %87 : vector<24x32xf32>
    %89 = arith.addf %88, %20 : vector<24x32xf32>
    %cst_56 = arith.constant 0.000000e+00 : f32
    %90 = vector.broadcast %cst_56 : f32 to vector<24x32xf32>
    %91 = arith.maximumf %89, %90 : vector<24x32xf32>
    %c120 = arith.constant 120 : index
    %c0_57 = arith.constant 0 : index
    %92 = vector.load %arg8[%c120, %c0_57] : memref<560x96xf32, #tpu.memory_space<vmem>>, vector<24x32xf32>
    tpu.vector_store %arg8[%c120, %c0_57], %91 {strides = array<i32>} : memref<560x96xf32, #tpu.memory_space<vmem>>, vector<24x32xf32>,
    %c0_58 = arith.constant 0 : index
    %c0_59 = arith.constant 0 : index
    %93 = vector.load %arg7[%c0_58, %c0_59] : memref<48x144xf32, #tpu.memory_space<vmem>>, vector<48x144xf32>
    %c3_60 = arith.constant 3 : index
    %c0_61 = arith.constant 0 : index
    %c0_62 = arith.constant 0 : index
    %94 = vector.load %arg2[%c3_60, %c0_61, %c0_62] : memref<12x144x128xf32, #tpu.memory_space<vmem>>, vector<1x144x128xf32>
    %95 = vector.shape_cast %94 : vector<1x144x128xf32> to vector<144x128xf32>
    %cst_63 = arith.constant dense<0.000000e+00> : vector<48x128xf32>
    %96 = tpu.matmul %93, %95, %cst_63 {dimension_numbers = #tpu.dot_dimension_numbers<[1], [0], [0], [1], [0, 0, 1, 1], [], []>} : vector<48x144xf32>, vector<144x128xf32>, vector<48x128xf32> -> vector<48x128xf32>
    %97 = vector.extract_strided_slice %96 {offsets = [0, 0], sizes = [24, 64], strides = [1, 1]} : vector<48x128xf32> to vector<24x64xf32>
    %98 = vector.extract_strided_slice %96 {offsets = [24, 0], sizes = [24, 64], strides = [1, 1]} : vector<48x128xf32> to vector<24x64xf32>
    %99 = arith.maximumf %97, %98 : vector<24x64xf32>
    %100 = vector.extract_strided_slice %99 {offsets = [0, 0], sizes = [24, 32], strides = [1, 1]} : vector<24x64xf32> to vector<24x32xf32>
    %101 = vector.extract_strided_slice %99 {offsets = [0, 32], sizes = [24, 32], strides = [1, 1]} : vector<24x64xf32> to vector<24x32xf32>
    %102 = arith.maximumf %100, %101 : vector<24x32xf32>
    %103 = arith.addf %102, %20 : vector<24x32xf32>
    %cst_64 = arith.constant 0.000000e+00 : f32
    %104 = vector.broadcast %cst_64 : f32 to vector<24x32xf32>
    %105 = arith.maximumf %103, %104 : vector<24x32xf32>
    %c144 = arith.constant 144 : index
    %c0_65 = arith.constant 0 : index
    %106 = vector.load %arg8[%c144, %c0_65] : memref<560x96xf32, #tpu.memory_space<vmem>>, vector<24x32xf32>
    tpu.vector_store %arg8[%c144, %c0_65], %105 {strides = array<i32>} : memref<560x96xf32, #tpu.memory_space<vmem>>, vector<24x32xf32>,
    %107 = vector.extract_strided_slice %96 {offsets = [0, 64], sizes = [24, 64], strides = [1, 1]} : vector<48x128xf32> to vector<24x64xf32>
    %108 = vector.extract_strided_slice %96 {offsets = [24, 64], sizes = [24, 64], strides = [1, 1]} : vector<48x128xf32> to vector<24x64xf32>
    %109 = arith.maximumf %107, %108 : vector<24x64xf32>
    %110 = vector.extract_strided_slice %109 {offsets = [0, 0], sizes = [24, 32], strides = [1, 1]} : vector<24x64xf32> to vector<24x32xf32>
    %111 = vector.extract_strided_slice %109 {offsets = [0, 32], sizes = [24, 32], strides = [1, 1]} : vector<24x64xf32> to vector<24x32xf32>
    %112 = arith.maximumf %110, %111 : vector<24x32xf32>
    %113 = arith.addf %112, %20 : vector<24x32xf32>
    %cst_66 = arith.constant 0.000000e+00 : f32
    %114 = vector.broadcast %cst_66 : f32 to vector<24x32xf32>
    %115 = arith.maximumf %113, %114 : vector<24x32xf32>
    %c168 = arith.constant 168 : index
    %c0_67 = arith.constant 0 : index
    %116 = vector.load %arg8[%c168, %c0_67] : memref<560x96xf32, #tpu.memory_space<vmem>>, vector<24x32xf32>
    tpu.vector_store %arg8[%c168, %c0_67], %115 {strides = array<i32>} : memref<560x96xf32, #tpu.memory_space<vmem>>, vector<24x32xf32>,
    %c0_68 = arith.constant 0 : index
    %c0_69 = arith.constant 0 : index
    %117 = vector.load %arg7[%c0_68, %c0_69] : memref<48x144xf32, #tpu.memory_space<vmem>>, vector<48x144xf32>
    %c4 = arith.constant 4 : index
    %c0_70 = arith.constant 0 : index
    %c0_71 = arith.constant 0 : index
    %118 = vector.load %arg2[%c4, %c0_70, %c0_71] : memref<12x144x128xf32, #tpu.memory_space<vmem>>, vector<1x144x128xf32>
    %119 = vector.shape_cast %118 : vector<1x144x128xf32> to vector<144x128xf32>
    %cst_72 = arith.constant dense<0.000000e+00> : vector<48x128xf32>
    %120 = tpu.matmul %117, %119, %cst_72 {dimension_numbers = #tpu.dot_dimension_numbers<[1], [0], [0], [1], [0, 0, 1, 1], [], []>} : vector<48x144xf32>, vector<144x128xf32>, vector<48x128xf32> -> vector<48x128xf32>
    %121 = vector.extract_strided_slice %120 {offsets = [0, 0], sizes = [24, 64], strides = [1, 1]} : vector<48x128xf32> to vector<24x64xf32>
    %122 = vector.extract_strided_slice %120 {offsets = [24, 0], sizes = [24, 64], strides = [1, 1]} : vector<48x128xf32> to vector<24x64xf32>
    %123 = arith.maximumf %121, %122 : vector<24x64xf32>
    %124 = vector.extract_strided_slice %123 {offsets = [0, 0], sizes = [24, 32], strides = [1, 1]} : vector<24x64xf32> to vector<24x32xf32>
    %125 = vector.extract_strided_slice %123 {offsets = [0, 32], sizes = [24, 32], strides = [1, 1]} : vector<24x64xf32> to vector<24x32xf32>
    %126 = arith.maximumf %124, %125 : vector<24x32xf32>
    %127 = arith.addf %126, %20 : vector<24x32xf32>
    %cst_73 = arith.constant 0.000000e+00 : f32
    %128 = vector.broadcast %cst_73 : f32 to vector<24x32xf32>
    %129 = arith.maximumf %127, %128 : vector<24x32xf32>
    %c192 = arith.constant 192 : index
    %c0_74 = arith.constant 0 : index
    %130 = vector.load %arg8[%c192, %c0_74] : memref<560x96xf32, #tpu.memory_space<vmem>>, vector<24x32xf32>
    tpu.vector_store %arg8[%c192, %c0_74], %129 {strides = array<i32>} : memref<560x96xf32, #tpu.memory_space<vmem>>, vector<24x32xf32>,
    %131 = vector.extract_strided_slice %120 {offsets = [0, 64], sizes = [24, 64], strides = [1, 1]} : vector<48x128xf32> to vector<24x64xf32>
    %132 = vector.extract_strided_slice %120 {offsets = [24, 64], sizes = [24, 64], strides = [1, 1]} : vector<48x128xf32> to vector<24x64xf32>
    %133 = arith.maximumf %131, %132 : vector<24x64xf32>
    %134 = vector.extract_strided_slice %133 {offsets = [0, 0], sizes = [24, 32], strides = [1, 1]} : vector<24x64xf32> to vector<24x32xf32>
    %135 = vector.extract_strided_slice %133 {offsets = [0, 32], sizes = [24, 32], strides = [1, 1]} : vector<24x64xf32> to vector<24x32xf32>
    %136 = arith.maximumf %134, %135 : vector<24x32xf32>
    %137 = arith.addf %136, %20 : vector<24x32xf32>
    %cst_75 = arith.constant 0.000000e+00 : f32
    %138 = vector.broadcast %cst_75 : f32 to vector<24x32xf32>
    %139 = arith.maximumf %137, %138 : vector<24x32xf32>
    %c216 = arith.constant 216 : index
    %c0_76 = arith.constant 0 : index
    %140 = vector.load %arg8[%c216, %c0_76] : memref<560x96xf32, #tpu.memory_space<vmem>>, vector<24x32xf32>
    tpu.vector_store %arg8[%c216, %c0_76], %139 {strides = array<i32>} : memref<560x96xf32, #tpu.memory_space<vmem>>, vector<24x32xf32>,
    %c0_77 = arith.constant 0 : index
    %c0_78 = arith.constant 0 : index
    %141 = vector.load %arg7[%c0_77, %c0_78] : memref<48x144xf32, #tpu.memory_space<vmem>>, vector<48x144xf32>
    %c5 = arith.constant 5 : index
    %c0_79 = arith.constant 0 : index
    %c0_80 = arith.constant 0 : index
    %142 = vector.load %arg2[%c5, %c0_79, %c0_80] : memref<12x144x128xf32, #tpu.memory_space<vmem>>, vector<1x144x128xf32>
    %143 = vector.shape_cast %142 : vector<1x144x128xf32> to vector<144x128xf32>
    %cst_81 = arith.constant dense<0.000000e+00> : vector<48x128xf32>
    %144 = tpu.matmul %141, %143, %cst_81 {dimension_numbers = #tpu.dot_dimension_numbers<[1], [0], [0], [1], [0, 0, 1, 1], [], []>} : vector<48x144xf32>, vector<144x128xf32>, vector<48x128xf32> -> vector<48x128xf32>
    %145 = vector.extract_strided_slice %144 {offsets = [0, 0], sizes = [24, 64], strides = [1, 1]} : vector<48x128xf32> to vector<24x64xf32>
    %146 = vector.extract_strided_slice %144 {offsets = [24, 0], sizes = [24, 64], strides = [1, 1]} : vector<48x128xf32> to vector<24x64xf32>
    %147 = arith.maximumf %145, %146 : vector<24x64xf32>
    %148 = vector.extract_strided_slice %147 {offsets = [0, 0], sizes = [24, 32], strides = [1, 1]} : vector<24x64xf32> to vector<24x32xf32>
    %149 = vector.extract_strided_slice %147 {offsets = [0, 32], sizes = [24, 32], strides = [1, 1]} : vector<24x64xf32> to vector<24x32xf32>
    %150 = arith.maximumf %148, %149 : vector<24x32xf32>
    %151 = arith.addf %150, %20 : vector<24x32xf32>
    %cst_82 = arith.constant 0.000000e+00 : f32
    %152 = vector.broadcast %cst_82 : f32 to vector<24x32xf32>
    %153 = arith.maximumf %151, %152 : vector<24x32xf32>
    %c240 = arith.constant 240 : index
    %c0_83 = arith.constant 0 : index
    %154 = vector.load %arg8[%c240, %c0_83] : memref<560x96xf32, #tpu.memory_space<vmem>>, vector<24x32xf32>
    tpu.vector_store %arg8[%c240, %c0_83], %153 {strides = array<i32>} : memref<560x96xf32, #tpu.memory_space<vmem>>, vector<24x32xf32>,
    %155 = vector.extract_strided_slice %144 {offsets = [0, 64], sizes = [24, 64], strides = [1, 1]} : vector<48x128xf32> to vector<24x64xf32>
    %156 = vector.extract_strided_slice %144 {offsets = [24, 64], sizes = [24, 64], strides = [1, 1]} : vector<48x128xf32> to vector<24x64xf32>
    %157 = arith.maximumf %155, %156 : vector<24x64xf32>
    %158 = vector.extract_strided_slice %157 {offsets = [0, 0], sizes = [24, 32], strides = [1, 1]} : vector<24x64xf32> to vector<24x32xf32>
    %159 = vector.extract_strided_slice %157 {offsets = [0, 32], sizes = [24, 32], strides = [1, 1]} : vector<24x64xf32> to vector<24x32xf32>
    %160 = arith.maximumf %158, %159 : vector<24x32xf32>
    %161 = arith.addf %160, %20 : vector<24x32xf32>
    %cst_84 = arith.constant 0.000000e+00 : f32
    %162 = vector.broadcast %cst_84 : f32 to vector<24x32xf32>
    %163 = arith.maximumf %161, %162 : vector<24x32xf32>
    %c264 = arith.constant 264 : index
    %c0_85 = arith.constant 0 : index
    %164 = vector.load %arg8[%c264, %c0_85] : memref<560x96xf32, #tpu.memory_space<vmem>>, vector<24x32xf32>
    tpu.vector_store %arg8[%c264, %c0_85], %163 {strides = array<i32>} : memref<560x96xf32, #tpu.memory_space<vmem>>, vector<24x32xf32>,
    %c0_86 = arith.constant 0 : index
    %c0_87 = arith.constant 0 : index
    %165 = vector.load %arg7[%c0_86, %c0_87] : memref<48x144xf32, #tpu.memory_space<vmem>>, vector<48x144xf32>
    %c6 = arith.constant 6 : index
    %c0_88 = arith.constant 0 : index
    %c0_89 = arith.constant 0 : index
    %166 = vector.load %arg2[%c6, %c0_88, %c0_89] : memref<12x144x128xf32, #tpu.memory_space<vmem>>, vector<1x144x128xf32>
    %167 = vector.shape_cast %166 : vector<1x144x128xf32> to vector<144x128xf32>
    %cst_90 = arith.constant dense<0.000000e+00> : vector<48x128xf32>
    %168 = tpu.matmul %165, %167, %cst_90 {dimension_numbers = #tpu.dot_dimension_numbers<[1], [0], [0], [1], [0, 0, 1, 1], [], []>} : vector<48x144xf32>, vector<144x128xf32>, vector<48x128xf32> -> vector<48x128xf32>
    %169 = vector.extract_strided_slice %168 {offsets = [0, 0], sizes = [24, 64], strides = [1, 1]} : vector<48x128xf32> to vector<24x64xf32>
    %170 = vector.extract_strided_slice %168 {offsets = [24, 0], sizes = [24, 64], strides = [1, 1]} : vector<48x128xf32> to vector<24x64xf32>
    %171 = arith.maximumf %169, %170 : vector<24x64xf32>
    %172 = vector.extract_strided_slice %171 {offsets = [0, 0], sizes = [24, 32], strides = [1, 1]} : vector<24x64xf32> to vector<24x32xf32>
    %173 = vector.extract_strided_slice %171 {offsets = [0, 32], sizes = [24, 32], strides = [1, 1]} : vector<24x64xf32> to vector<24x32xf32>
    %174 = arith.maximumf %172, %173 : vector<24x32xf32>
    %175 = arith.addf %174, %20 : vector<24x32xf32>
    %cst_91 = arith.constant 0.000000e+00 : f32
    %176 = vector.broadcast %cst_91 : f32 to vector<24x32xf32>
    %177 = arith.maximumf %175, %176 : vector<24x32xf32>
    %c288 = arith.constant 288 : index
    %c0_92 = arith.constant 0 : index
    %178 = vector.load %arg8[%c288, %c0_92] : memref<560x96xf32, #tpu.memory_space<vmem>>, vector<24x32xf32>
    tpu.vector_store %arg8[%c288, %c0_92], %177 {strides = array<i32>} : memref<560x96xf32, #tpu.memory_space<vmem>>, vector<24x32xf32>,
    %179 = vector.extract_strided_slice %168 {offsets = [0, 64], sizes = [24, 64], strides = [1, 1]} : vector<48x128xf32> to vector<24x64xf32>
    %180 = vector.extract_strided_slice %168 {offsets = [24, 64], sizes = [24, 64], strides = [1, 1]} : vector<48x128xf32> to vector<24x64xf32>
    %181 = arith.maximumf %179, %180 : vector<24x64xf32>
    %182 = vector.extract_strided_slice %181 {offsets = [0, 0], sizes = [24, 32], strides = [1, 1]} : vector<24x64xf32> to vector<24x32xf32>
    %183 = vector.extract_strided_slice %181 {offsets = [0, 32], sizes = [24, 32], strides = [1, 1]} : vector<24x64xf32> to vector<24x32xf32>
    %184 = arith.maximumf %182, %183 : vector<24x32xf32>
    %185 = arith.addf %184, %20 : vector<24x32xf32>
    %cst_93 = arith.constant 0.000000e+00 : f32
    %186 = vector.broadcast %cst_93 : f32 to vector<24x32xf32>
    %187 = arith.maximumf %185, %186 : vector<24x32xf32>
    %c312 = arith.constant 312 : index
    %c0_94 = arith.constant 0 : index
    %188 = vector.load %arg8[%c312, %c0_94] : memref<560x96xf32, #tpu.memory_space<vmem>>, vector<24x32xf32>
    tpu.vector_store %arg8[%c312, %c0_94], %187 {strides = array<i32>} : memref<560x96xf32, #tpu.memory_space<vmem>>, vector<24x32xf32>,
    %c0_95 = arith.constant 0 : index
    %c0_96 = arith.constant 0 : index
    %189 = vector.load %arg7[%c0_95, %c0_96] : memref<48x144xf32, #tpu.memory_space<vmem>>, vector<48x144xf32>
    %c7 = arith.constant 7 : index
    %c0_97 = arith.constant 0 : index
    %c0_98 = arith.constant 0 : index
    %190 = vector.load %arg2[%c7, %c0_97, %c0_98] : memref<12x144x128xf32, #tpu.memory_space<vmem>>, vector<1x144x128xf32>
    %191 = vector.shape_cast %190 : vector<1x144x128xf32> to vector<144x128xf32>
    %cst_99 = arith.constant dense<0.000000e+00> : vector<48x128xf32>
    %192 = tpu.matmul %189, %191, %cst_99 {dimension_numbers = #tpu.dot_dimension_numbers<[1], [0], [0], [1], [0, 0, 1, 1], [], []>} : vector<48x144xf32>, vector<144x128xf32>, vector<48x128xf32> -> vector<48x128xf32>
    %193 = vector.extract_strided_slice %192 {offsets = [0, 0], sizes = [24, 64], strides = [1, 1]} : vector<48x128xf32> to vector<24x64xf32>
    %194 = vector.extract_strided_slice %192 {offsets = [24, 0], sizes = [24, 64], strides = [1, 1]} : vector<48x128xf32> to vector<24x64xf32>
    %195 = arith.maximumf %193, %194 : vector<24x64xf32>
    %196 = vector.extract_strided_slice %195 {offsets = [0, 0], sizes = [24, 32], strides = [1, 1]} : vector<24x64xf32> to vector<24x32xf32>
    %197 = vector.extract_strided_slice %195 {offsets = [0, 32], sizes = [24, 32], strides = [1, 1]} : vector<24x64xf32> to vector<24x32xf32>
    %198 = arith.maximumf %196, %197 : vector<24x32xf32>
    %199 = arith.addf %198, %20 : vector<24x32xf32>
    %cst_100 = arith.constant 0.000000e+00 : f32
    %200 = vector.broadcast %cst_100 : f32 to vector<24x32xf32>
    %201 = arith.maximumf %199, %200 : vector<24x32xf32>
    %c336 = arith.constant 336 : index
    %c0_101 = arith.constant 0 : index
    %202 = vector.load %arg8[%c336, %c0_101] : memref<560x96xf32, #tpu.memory_space<vmem>>, vector<24x32xf32>
    tpu.vector_store %arg8[%c336, %c0_101], %201 {strides = array<i32>} : memref<560x96xf32, #tpu.memory_space<vmem>>, vector<24x32xf32>,
    %203 = vector.extract_strided_slice %192 {offsets = [0, 64], sizes = [24, 64], strides = [1, 1]} : vector<48x128xf32> to vector<24x64xf32>
    %204 = vector.extract_strided_slice %192 {offsets = [24, 64], sizes = [24, 64], strides = [1, 1]} : vector<48x128xf32> to vector<24x64xf32>
    %205 = arith.maximumf %203, %204 : vector<24x64xf32>
    %206 = vector.extract_strided_slice %205 {offsets = [0, 0], sizes = [24, 32], strides = [1, 1]} : vector<24x64xf32> to vector<24x32xf32>
    %207 = vector.extract_strided_slice %205 {offsets = [0, 32], sizes = [24, 32], strides = [1, 1]} : vector<24x64xf32> to vector<24x32xf32>
    %208 = arith.maximumf %206, %207 : vector<24x32xf32>
    %209 = arith.addf %208, %20 : vector<24x32xf32>
    %cst_102 = arith.constant 0.000000e+00 : f32
    %210 = vector.broadcast %cst_102 : f32 to vector<24x32xf32>
    %211 = arith.maximumf %209, %210 : vector<24x32xf32>
    %c360 = arith.constant 360 : index
    %c0_103 = arith.constant 0 : index
    %212 = vector.load %arg8[%c360, %c0_103] : memref<560x96xf32, #tpu.memory_space<vmem>>, vector<24x32xf32>
    tpu.vector_store %arg8[%c360, %c0_103], %211 {strides = array<i32>} : memref<560x96xf32, #tpu.memory_space<vmem>>, vector<24x32xf32>,
    %c0_104 = arith.constant 0 : index
    %c0_105 = arith.constant 0 : index
    %213 = vector.load %arg7[%c0_104, %c0_105] : memref<48x144xf32, #tpu.memory_space<vmem>>, vector<48x144xf32>
    %c8 = arith.constant 8 : index
    %c0_106 = arith.constant 0 : index
    %c0_107 = arith.constant 0 : index
    %214 = vector.load %arg2[%c8, %c0_106, %c0_107] : memref<12x144x128xf32, #tpu.memory_space<vmem>>, vector<1x144x128xf32>
    %215 = vector.shape_cast %214 : vector<1x144x128xf32> to vector<144x128xf32>
    %cst_108 = arith.constant dense<0.000000e+00> : vector<48x128xf32>
    %216 = tpu.matmul %213, %215, %cst_108 {dimension_numbers = #tpu.dot_dimension_numbers<[1], [0], [0], [1], [0, 0, 1, 1], [], []>} : vector<48x144xf32>, vector<144x128xf32>, vector<48x128xf32> -> vector<48x128xf32>
    %217 = vector.extract_strided_slice %216 {offsets = [0, 0], sizes = [24, 64], strides = [1, 1]} : vector<48x128xf32> to vector<24x64xf32>
    %218 = vector.extract_strided_slice %216 {offsets = [24, 0], sizes = [24, 64], strides = [1, 1]} : vector<48x128xf32> to vector<24x64xf32>
    %219 = arith.maximumf %217, %218 : vector<24x64xf32>
    %220 = vector.extract_strided_slice %219 {offsets = [0, 0], sizes = [24, 32], strides = [1, 1]} : vector<24x64xf32> to vector<24x32xf32>
    %221 = vector.extract_strided_slice %219 {offsets = [0, 32], sizes = [24, 32], strides = [1, 1]} : vector<24x64xf32> to vector<24x32xf32>
    %222 = arith.maximumf %220, %221 : vector<24x32xf32>
    %223 = arith.addf %222, %20 : vector<24x32xf32>
    %cst_109 = arith.constant 0.000000e+00 : f32
    %224 = vector.broadcast %cst_109 : f32 to vector<24x32xf32>
    %225 = arith.maximumf %223, %224 : vector<24x32xf32>
    %c384 = arith.constant 384 : index
    %c0_110 = arith.constant 0 : index
    %226 = vector.load %arg8[%c384, %c0_110] : memref<560x96xf32, #tpu.memory_space<vmem>>, vector<24x32xf32>
    tpu.vector_store %arg8[%c384, %c0_110], %225 {strides = array<i32>} : memref<560x96xf32, #tpu.memory_space<vmem>>, vector<24x32xf32>,
    %227 = vector.extract_strided_slice %216 {offsets = [0, 64], sizes = [24, 64], strides = [1, 1]} : vector<48x128xf32> to vector<24x64xf32>
    %228 = vector.extract_strided_slice %216 {offsets = [24, 64], sizes = [24, 64], strides = [1, 1]} : vector<48x128xf32> to vector<24x64xf32>
    %229 = arith.maximumf %227, %228 : vector<24x64xf32>
    %230 = vector.extract_strided_slice %229 {offsets = [0, 0], sizes = [24, 32], strides = [1, 1]} : vector<24x64xf32> to vector<24x32xf32>
    %231 = vector.extract_strided_slice %229 {offsets = [0, 32], sizes = [24, 32], strides = [1, 1]} : vector<24x64xf32> to vector<24x32xf32>
    %232 = arith.maximumf %230, %231 : vector<24x32xf32>
    %233 = arith.addf %232, %20 : vector<24x32xf32>
    %cst_111 = arith.constant 0.000000e+00 : f32
    %234 = vector.broadcast %cst_111 : f32 to vector<24x32xf32>
    %235 = arith.maximumf %233, %234 : vector<24x32xf32>
    %c408 = arith.constant 408 : index
    %c0_112 = arith.constant 0 : index
    %236 = vector.load %arg8[%c408, %c0_112] : memref<560x96xf32, #tpu.memory_space<vmem>>, vector<24x32xf32>
    tpu.vector_store %arg8[%c408, %c0_112], %235 {strides = array<i32>} : memref<560x96xf32, #tpu.memory_space<vmem>>, vector<24x32xf32>,
    %c0_113 = arith.constant 0 : index
    %c0_114 = arith.constant 0 : index
    %237 = vector.load %arg7[%c0_113, %c0_114] : memref<48x144xf32, #tpu.memory_space<vmem>>, vector<48x144xf32>
    %c9 = arith.constant 9 : index
    %c0_115 = arith.constant 0 : index
    %c0_116 = arith.constant 0 : index
    %238 = vector.load %arg2[%c9, %c0_115, %c0_116] : memref<12x144x128xf32, #tpu.memory_space<vmem>>, vector<1x144x128xf32>
    %239 = vector.shape_cast %238 : vector<1x144x128xf32> to vector<144x128xf32>
    %cst_117 = arith.constant dense<0.000000e+00> : vector<48x128xf32>
    %240 = tpu.matmul %237, %239, %cst_117 {dimension_numbers = #tpu.dot_dimension_numbers<[1], [0], [0], [1], [0, 0, 1, 1], [], []>} : vector<48x144xf32>, vector<144x128xf32>, vector<48x128xf32> -> vector<48x128xf32>
    %241 = vector.extract_strided_slice %240 {offsets = [0, 0], sizes = [24, 64], strides = [1, 1]} : vector<48x128xf32> to vector<24x64xf32>
    %242 = vector.extract_strided_slice %240 {offsets = [24, 0], sizes = [24, 64], strides = [1, 1]} : vector<48x128xf32> to vector<24x64xf32>
    %243 = arith.maximumf %241, %242 : vector<24x64xf32>
    %244 = vector.extract_strided_slice %243 {offsets = [0, 0], sizes = [24, 32], strides = [1, 1]} : vector<24x64xf32> to vector<24x32xf32>
    %245 = vector.extract_strided_slice %243 {offsets = [0, 32], sizes = [24, 32], strides = [1, 1]} : vector<24x64xf32> to vector<24x32xf32>
    %246 = arith.maximumf %244, %245 : vector<24x32xf32>
    %247 = arith.addf %246, %20 : vector<24x32xf32>
    %cst_118 = arith.constant 0.000000e+00 : f32
    %248 = vector.broadcast %cst_118 : f32 to vector<24x32xf32>
    %249 = arith.maximumf %247, %248 : vector<24x32xf32>
    %c432 = arith.constant 432 : index
    %c0_119 = arith.constant 0 : index
    %250 = vector.load %arg8[%c432, %c0_119] : memref<560x96xf32, #tpu.memory_space<vmem>>, vector<24x32xf32>
    tpu.vector_store %arg8[%c432, %c0_119], %249 {strides = array<i32>} : memref<560x96xf32, #tpu.memory_space<vmem>>, vector<24x32xf32>,
    %251 = vector.extract_strided_slice %240 {offsets = [0, 64], sizes = [24, 64], strides = [1, 1]} : vector<48x128xf32> to vector<24x64xf32>
    %252 = vector.extract_strided_slice %240 {offsets = [24, 64], sizes = [24, 64], strides = [1, 1]} : vector<48x128xf32> to vector<24x64xf32>
    %253 = arith.maximumf %251, %252 : vector<24x64xf32>
    %254 = vector.extract_strided_slice %253 {offsets = [0, 0], sizes = [24, 32], strides = [1, 1]} : vector<24x64xf32> to vector<24x32xf32>
    %255 = vector.extract_strided_slice %253 {offsets = [0, 32], sizes = [24, 32], strides = [1, 1]} : vector<24x64xf32> to vector<24x32xf32>
    %256 = arith.maximumf %254, %255 : vector<24x32xf32>
    %257 = arith.addf %256, %20 : vector<24x32xf32>
    %cst_120 = arith.constant 0.000000e+00 : f32
    %258 = vector.broadcast %cst_120 : f32 to vector<24x32xf32>
    %259 = arith.maximumf %257, %258 : vector<24x32xf32>
    %c456 = arith.constant 456 : index
    %c0_121 = arith.constant 0 : index
    %260 = vector.load %arg8[%c456, %c0_121] : memref<560x96xf32, #tpu.memory_space<vmem>>, vector<24x32xf32>
    tpu.vector_store %arg8[%c456, %c0_121], %259 {strides = array<i32>} : memref<560x96xf32, #tpu.memory_space<vmem>>, vector<24x32xf32>,
    %c0_122 = arith.constant 0 : index
    %c0_123 = arith.constant 0 : index
    %261 = vector.load %arg7[%c0_122, %c0_123] : memref<48x144xf32, #tpu.memory_space<vmem>>, vector<48x144xf32>
    %c10 = arith.constant 10 : index
    %c0_124 = arith.constant 0 : index
    %c0_125 = arith.constant 0 : index
    %262 = vector.load %arg2[%c10, %c0_124, %c0_125] : memref<12x144x128xf32, #tpu.memory_space<vmem>>, vector<1x144x128xf32>
    %263 = vector.shape_cast %262 : vector<1x144x128xf32> to vector<144x128xf32>
    %cst_126 = arith.constant dense<0.000000e+00> : vector<48x128xf32>
    %264 = tpu.matmul %261, %263, %cst_126 {dimension_numbers = #tpu.dot_dimension_numbers<[1], [0], [0], [1], [0, 0, 1, 1], [], []>} : vector<48x144xf32>, vector<144x128xf32>, vector<48x128xf32> -> vector<48x128xf32>
    %265 = vector.extract_strided_slice %264 {offsets = [0, 0], sizes = [24, 64], strides = [1, 1]} : vector<48x128xf32> to vector<24x64xf32>
    %266 = vector.extract_strided_slice %264 {offsets = [24, 0], sizes = [24, 64], strides = [1, 1]} : vector<48x128xf32> to vector<24x64xf32>
    %267 = arith.maximumf %265, %266 : vector<24x64xf32>
    %268 = vector.extract_strided_slice %267 {offsets = [0, 0], sizes = [24, 32], strides = [1, 1]} : vector<24x64xf32> to vector<24x32xf32>
    %269 = vector.extract_strided_slice %267 {offsets = [0, 32], sizes = [24, 32], strides = [1, 1]} : vector<24x64xf32> to vector<24x32xf32>
    %270 = arith.maximumf %268, %269 : vector<24x32xf32>
    %271 = arith.addf %270, %20 : vector<24x32xf32>
    %cst_127 = arith.constant 0.000000e+00 : f32
    %272 = vector.broadcast %cst_127 : f32 to vector<24x32xf32>
    %273 = arith.maximumf %271, %272 : vector<24x32xf32>
    %c480 = arith.constant 480 : index
    %c0_128 = arith.constant 0 : index
    %274 = vector.load %arg8[%c480, %c0_128] : memref<560x96xf32, #tpu.memory_space<vmem>>, vector<24x32xf32>
    tpu.vector_store %arg8[%c480, %c0_128], %273 {strides = array<i32>} : memref<560x96xf32, #tpu.memory_space<vmem>>, vector<24x32xf32>,
    %275 = vector.extract_strided_slice %264 {offsets = [0, 64], sizes = [24, 64], strides = [1, 1]} : vector<48x128xf32> to vector<24x64xf32>
    %276 = vector.extract_strided_slice %264 {offsets = [24, 64], sizes = [24, 64], strides = [1, 1]} : vector<48x128xf32> to vector<24x64xf32>
    %277 = arith.maximumf %275, %276 : vector<24x64xf32>
    %278 = vector.extract_strided_slice %277 {offsets = [0, 0], sizes = [24, 32], strides = [1, 1]} : vector<24x64xf32> to vector<24x32xf32>
    %279 = vector.extract_strided_slice %277 {offsets = [0, 32], sizes = [24, 32], strides = [1, 1]} : vector<24x64xf32> to vector<24x32xf32>
    %280 = arith.maximumf %278, %279 : vector<24x32xf32>
    %281 = arith.addf %280, %20 : vector<24x32xf32>
    %cst_129 = arith.constant 0.000000e+00 : f32
    %282 = vector.broadcast %cst_129 : f32 to vector<24x32xf32>
    %283 = arith.maximumf %281, %282 : vector<24x32xf32>
    %c504 = arith.constant 504 : index
    %c0_130 = arith.constant 0 : index
    %284 = vector.load %arg8[%c504, %c0_130] : memref<560x96xf32, #tpu.memory_space<vmem>>, vector<24x32xf32>
    tpu.vector_store %arg8[%c504, %c0_130], %283 {strides = array<i32>} : memref<560x96xf32, #tpu.memory_space<vmem>>, vector<24x32xf32>,
    %c0_131 = arith.constant 0 : index
    %c0_132 = arith.constant 0 : index
    %285 = vector.load %arg7[%c0_131, %c0_132] : memref<48x144xf32, #tpu.memory_space<vmem>>, vector<48x144xf32>
    %c11 = arith.constant 11 : index
    %c0_133 = arith.constant 0 : index
    %c0_134 = arith.constant 0 : index
    %286 = vector.load %arg2[%c11, %c0_133, %c0_134] : memref<12x144x128xf32, #tpu.memory_space<vmem>>, vector<1x144x128xf32>
    %287 = vector.shape_cast %286 : vector<1x144x128xf32> to vector<144x128xf32>
    %cst_135 = arith.constant dense<0.000000e+00> : vector<48x128xf32>
    %288 = tpu.matmul %285, %287, %cst_135 {dimension_numbers = #tpu.dot_dimension_numbers<[1], [0], [0], [1], [0, 0, 1, 1], [], []>} : vector<48x144xf32>, vector<144x128xf32>, vector<48x128xf32> -> vector<48x128xf32>
    %289 = vector.extract_strided_slice %288 {offsets = [0, 0], sizes = [24, 64], strides = [1, 1]} : vector<48x128xf32> to vector<24x64xf32>
    %290 = vector.extract_strided_slice %288 {offsets = [24, 0], sizes = [24, 64], strides = [1, 1]} : vector<48x128xf32> to vector<24x64xf32>
    %291 = arith.maximumf %289, %290 : vector<24x64xf32>
    %292 = vector.extract_strided_slice %291 {offsets = [0, 0], sizes = [24, 32], strides = [1, 1]} : vector<24x64xf32> to vector<24x32xf32>
    %293 = vector.extract_strided_slice %291 {offsets = [0, 32], sizes = [24, 32], strides = [1, 1]} : vector<24x64xf32> to vector<24x32xf32>
    %294 = arith.maximumf %292, %293 : vector<24x32xf32>
    %295 = arith.addf %294, %20 : vector<24x32xf32>
    %cst_136 = arith.constant 0.000000e+00 : f32
    %296 = vector.broadcast %cst_136 : f32 to vector<24x32xf32>
    %297 = arith.maximumf %295, %296 : vector<24x32xf32>
    %c528 = arith.constant 528 : index
    %c0_137 = arith.constant 0 : index
    %298 = vector.load %arg8[%c528, %c0_137] : memref<560x96xf32, #tpu.memory_space<vmem>>, vector<24x32xf32>
    tpu.vector_store %arg8[%c528, %c0_137], %297 {strides = array<i32>} : memref<560x96xf32, #tpu.memory_space<vmem>>, vector<24x32xf32>,
    %c1_138 = arith.constant 1 : index
    %c0_139 = arith.constant 0 : index
    %299 = vector.load %arg8[%c1_138, %c0_139] : memref<560x96xf32, #tpu.memory_space<vmem>>, vector<552x32xf32>
    %c0_140 = arith.constant 0 : index
    %c32 = arith.constant 32 : index
    %300 = vector.load %arg8[%c0_140, %c32] : memref<560x96xf32, #tpu.memory_space<vmem>>, vector<552x32xf32>
    tpu.vector_store %arg8[%c0_140, %c32], %299 {strides = array<i32>} : memref<560x96xf32, #tpu.memory_space<vmem>>, vector<552x32xf32>,
    %c2_141 = arith.constant 2 : index
    %c0_142 = arith.constant 0 : index
    %301 = vector.load %arg8[%c2_141, %c0_142] : memref<560x96xf32, #tpu.memory_space<vmem>>, vector<552x32xf32>
    %c0_143 = arith.constant 0 : index
    %c64 = arith.constant 64 : index
    %302 = vector.load %arg8[%c0_143, %c64] : memref<560x96xf32, #tpu.memory_space<vmem>>, vector<552x32xf32>
    tpu.vector_store %arg8[%c0_143, %c64], %301 {strides = array<i32>} : memref<560x96xf32, #tpu.memory_space<vmem>>, vector<552x32xf32>,
    %c0_144 = arith.constant 0 : index
    %c0_145 = arith.constant 0 : index
    %303 = vector.load %arg8[%c0_144, %c0_145] : memref<560x96xf32, #tpu.memory_space<vmem>>, vector<504x96xf32>
    %c0_146 = arith.constant 0 : index
    %c0_147 = arith.constant 0 : index
    %c0_148 = arith.constant 0 : index
    %304 = vector.load %arg4[%c0_146, %c0_147, %c0_148] : memref<3x96x64xf32, #tpu.memory_space<vmem>>, vector<1x96x64xf32>
    %305 = vector.shape_cast %304 : vector<1x96x64xf32> to vector<96x64xf32>
    %cst_149 = arith.constant dense<0.000000e+00> : vector<504x64xf32>
    %306 = tpu.matmul %303, %305, %cst_149 {dimension_numbers = #tpu.dot_dimension_numbers<[1], [0], [0], [1], [0, 0, 1, 1], [], []>} : vector<504x96xf32>, vector<96x64xf32>, vector<504x64xf32> -> vector<504x64xf32>
    %c24_150 = arith.constant 24 : index
    %c0_151 = arith.constant 0 : index
    %307 = vector.load %arg8[%c24_150, %c0_151] : memref<560x96xf32, #tpu.memory_space<vmem>>, vector<504x96xf32>
    %c1_152 = arith.constant 1 : index
    %c0_153 = arith.constant 0 : index
    %c0_154 = arith.constant 0 : index
    %308 = vector.load %arg4[%c1_152, %c0_153, %c0_154] : memref<3x96x64xf32, #tpu.memory_space<vmem>>, vector<1x96x64xf32>
    %309 = vector.shape_cast %308 : vector<1x96x64xf32> to vector<96x64xf32>
    %cst_155 = arith.constant dense<0.000000e+00> : vector<504x64xf32>
    %310 = tpu.matmul %307, %309, %cst_155 {dimension_numbers = #tpu.dot_dimension_numbers<[1], [0], [0], [1], [0, 0, 1, 1], [], []>} : vector<504x96xf32>, vector<96x64xf32>, vector<504x64xf32> -> vector<504x64xf32>
    %311 = arith.addf %306, %310 : vector<504x64xf32>
    %c48_156 = arith.constant 48 : index
    %c0_157 = arith.constant 0 : index
    %312 = vector.load %arg8[%c48_156, %c0_157] : memref<560x96xf32, #tpu.memory_space<vmem>>, vector<504x96xf32>
    %c2_158 = arith.constant 2 : index
    %c0_159 = arith.constant 0 : index
    %c0_160 = arith.constant 0 : index
    %313 = vector.load %arg4[%c2_158, %c0_159, %c0_160] : memref<3x96x64xf32, #tpu.memory_space<vmem>>, vector<1x96x64xf32>
    %314 = vector.shape_cast %313 : vector<1x96x64xf32> to vector<96x64xf32>
    %cst_161 = arith.constant dense<0.000000e+00> : vector<504x64xf32>
    %315 = tpu.matmul %312, %314, %cst_161 {dimension_numbers = #tpu.dot_dimension_numbers<[1], [0], [0], [1], [0, 0, 1, 1], [], []>} : vector<504x96xf32>, vector<96x64xf32>, vector<504x64xf32> -> vector<504x64xf32>
    %316 = arith.addf %311, %315 : vector<504x64xf32>
    %c0_162 = arith.constant 0 : index
    %c0_163 = arith.constant 0 : index
    %317 = vector.load %arg9[%c0_162, %c0_163] : memref<504x64xf32, #tpu.memory_space<vmem>>, vector<504x64xf32>
    tpu.vector_store %arg9[%c0_162, %c0_163], %316 {strides = array<i32>} : memref<504x64xf32, #tpu.memory_space<vmem>>, vector<504x64xf32>,
    %c0_164 = arith.constant 0 : index
    %c0_165 = arith.constant 0 : index
    %318 = vector.load %arg5[%c0_164, %c0_165] : memref<1x64xf32, #tpu.memory_space<vmem>>, vector<1x64xf32>
    %319 = vector.shape_cast %318 : vector<1x64xf32> to vector<1x64xf32>
    %320 = vector.broadcast %319 : vector<1x64xf32> to vector<12x64xf32>
    %c0_166 = arith.constant 0 : index
    %c0_167 = arith.constant 0 : index
    %321 = vector.load %arg9[%c0_166, %c0_167] : memref<504x64xf32, #tpu.memory_space<vmem>>, vector<24x64xf32>
    %c24_168 = arith.constant 24 : index
    %c0_169 = arith.constant 0 : index
    %322 = vector.load %arg9[%c24_168, %c0_169] : memref<504x64xf32, #tpu.memory_space<vmem>>, vector<24x64xf32>
    %323 = arith.maximumf %321, %322 : vector<24x64xf32>
    %c0_170 = arith.constant 0 : index
    %c0_171 = arith.constant 0 : index
    %324 = vector.load %arg10[%c0_170, %c0_171] : memref<24x64xf32, #tpu.memory_space<vmem>>, vector<24x64xf32>
    tpu.vector_store %arg10[%c0_170, %c0_171], %323 {strides = array<i32>} : memref<24x64xf32, #tpu.memory_space<vmem>>, vector<24x64xf32>,
    %c0_172 = arith.constant 0 : index
    %c0_173 = arith.constant 0 : index
    %325 = tpu.strided_load %arg10[%c0_172, %c0_173] {strides = array<i32: 2, 1>} : memref<24x64xf32, #tpu.memory_space<vmem>>, vector<12x64xf32>
    %c1_174 = arith.constant 1 : index
    %c0_175 = arith.constant 0 : index
    %326 = tpu.strided_load %arg10[%c1_174, %c0_175] {strides = array<i32: 2, 1>} : memref<24x64xf32, #tpu.memory_space<vmem>>, vector<12x64xf32>
    %327 = arith.maximumf %325, %326 : vector<12x64xf32>
    %328 = arith.addf %327, %320 : vector<12x64xf32>
    %cst_176 = arith.constant 0.000000e+00 : f32
    %329 = vector.broadcast %cst_176 : f32 to vector<12x64xf32>
    %330 = arith.maximumf %328, %329 : vector<12x64xf32>
    %331 = vector.extract_strided_slice %330 {offsets = [0, 0], sizes = [10, 64], strides = [1, 1]} : vector<12x64xf32> to vector<10x64xf32>
    %c0_177 = arith.constant 0 : index
    %c0_178 = arith.constant 0 : index
    %c0_179 = arith.constant 0 : index
    %332 = vector.load %arg6[%c0_177, %c0_178, %c0_179] : memref<1x100x64xf32, #tpu.memory_space<vmem>>, vector<1x10x64xf32>
    %333 = vector.shape_cast %332 : vector<1x10x64xf32> to vector<10x64xf32>
    %334 = vector.shape_cast %331 : vector<10x64xf32> to vector<1x10x64xf32>
    tpu.vector_store %arg6[%c0_177, %c0_178, %c0_179], %334 {strides = array<i32>} : memref<1x100x64xf32, #tpu.memory_space<vmem>>, vector<1x10x64xf32>,
    %c48_180 = arith.constant 48 : index
    %c0_181 = arith.constant 0 : index
    %335 = vector.load %arg9[%c48_180, %c0_181] : memref<504x64xf32, #tpu.memory_space<vmem>>, vector<24x64xf32>
    %c72_182 = arith.constant 72 : index
    %c0_183 = arith.constant 0 : index
    %336 = vector.load %arg9[%c72_182, %c0_183] : memref<504x64xf32, #tpu.memory_space<vmem>>, vector<24x64xf32>
    %337 = arith.maximumf %335, %336 : vector<24x64xf32>
    %c0_184 = arith.constant 0 : index
    %c0_185 = arith.constant 0 : index
    %338 = vector.load %arg10[%c0_184, %c0_185] : memref<24x64xf32, #tpu.memory_space<vmem>>, vector<24x64xf32>
    tpu.vector_store %arg10[%c0_184, %c0_185], %337 {strides = array<i32>} : memref<24x64xf32, #tpu.memory_space<vmem>>, vector<24x64xf32>,
    %c0_186 = arith.constant 0 : index
    %c0_187 = arith.constant 0 : index
    %339 = tpu.strided_load %arg10[%c0_186, %c0_187] {strides = array<i32: 2, 1>} : memref<24x64xf32, #tpu.memory_space<vmem>>, vector<12x64xf32>
    %c1_188 = arith.constant 1 : index
    %c0_189 = arith.constant 0 : index
    %340 = tpu.strided_load %arg10[%c1_188, %c0_189] {strides = array<i32: 2, 1>} : memref<24x64xf32, #tpu.memory_space<vmem>>, vector<12x64xf32>
    %341 = arith.maximumf %339, %340 : vector<12x64xf32>
    %342 = arith.addf %341, %320 : vector<12x64xf32>
    %cst_190 = arith.constant 0.000000e+00 : f32
    %343 = vector.broadcast %cst_190 : f32 to vector<12x64xf32>
    %344 = arith.maximumf %342, %343 : vector<12x64xf32>
    %345 = vector.extract_strided_slice %344 {offsets = [0, 0], sizes = [10, 64], strides = [1, 1]} : vector<12x64xf32> to vector<10x64xf32>
    %c0_191 = arith.constant 0 : index
    %c10_192 = arith.constant 10 : index
    %c0_193 = arith.constant 0 : index
    %346 = vector.load %arg6[%c0_191, %c10_192, %c0_193] : memref<1x100x64xf32, #tpu.memory_space<vmem>>, vector<1x10x64xf32>
    %347 = vector.shape_cast %346 : vector<1x10x64xf32> to vector<10x64xf32>
    %348 = vector.shape_cast %345 : vector<10x64xf32> to vector<1x10x64xf32>
    tpu.vector_store %arg6[%c0_191, %c10_192, %c0_193], %348 {strides = array<i32>} : memref<1x100x64xf32, #tpu.memory_space<vmem>>, vector<1x10x64xf32>,
    %c96_194 = arith.constant 96 : index
    %c0_195 = arith.constant 0 : index
    %349 = vector.load %arg9[%c96_194, %c0_195] : memref<504x64xf32, #tpu.memory_space<vmem>>, vector<24x64xf32>
    %c120_196 = arith.constant 120 : index
    %c0_197 = arith.constant 0 : index
    %350 = vector.load %arg9[%c120_196, %c0_197] : memref<504x64xf32, #tpu.memory_space<vmem>>, vector<24x64xf32>
    %351 = arith.maximumf %349, %350 : vector<24x64xf32>
    %c0_198 = arith.constant 0 : index
    %c0_199 = arith.constant 0 : index
    %352 = vector.load %arg10[%c0_198, %c0_199] : memref<24x64xf32, #tpu.memory_space<vmem>>, vector<24x64xf32>
    tpu.vector_store %arg10[%c0_198, %c0_199], %351 {strides = array<i32>} : memref<24x64xf32, #tpu.memory_space<vmem>>, vector<24x64xf32>,
    %c0_200 = arith.constant 0 : index
    %c0_201 = arith.constant 0 : index
    %353 = tpu.strided_load %arg10[%c0_200, %c0_201] {strides = array<i32: 2, 1>} : memref<24x64xf32, #tpu.memory_space<vmem>>, vector<12x64xf32>
    %c1_202 = arith.constant 1 : index
    %c0_203 = arith.constant 0 : index
    %354 = tpu.strided_load %arg10[%c1_202, %c0_203] {strides = array<i32: 2, 1>} : memref<24x64xf32, #tpu.memory_space<vmem>>, vector<12x64xf32>
    %355 = arith.maximumf %353, %354 : vector<12x64xf32>
    %356 = arith.addf %355, %320 : vector<12x64xf32>
    %cst_204 = arith.constant 0.000000e+00 : f32
    %357 = vector.broadcast %cst_204 : f32 to vector<12x64xf32>
    %358 = arith.maximumf %356, %357 : vector<12x64xf32>
    %359 = vector.extract_strided_slice %358 {offsets = [0, 0], sizes = [10, 64], strides = [1, 1]} : vector<12x64xf32> to vector<10x64xf32>
    %c0_205 = arith.constant 0 : index
    %c20 = arith.constant 20 : index
    %c0_206 = arith.constant 0 : index
    %360 = vector.load %arg6[%c0_205, %c20, %c0_206] : memref<1x100x64xf32, #tpu.memory_space<vmem>>, vector<1x10x64xf32>
    %361 = vector.shape_cast %360 : vector<1x10x64xf32> to vector<10x64xf32>
    %362 = vector.shape_cast %359 : vector<10x64xf32> to vector<1x10x64xf32>
    tpu.vector_store %arg6[%c0_205, %c20, %c0_206], %362 {strides = array<i32>} : memref<1x100x64xf32, #tpu.memory_space<vmem>>, vector<1x10x64xf32>,
    %c144_207 = arith.constant 144 : index
    %c0_208 = arith.constant 0 : index
    %363 = vector.load %arg9[%c144_207, %c0_208] : memref<504x64xf32, #tpu.memory_space<vmem>>, vector<24x64xf32>
    %c168_209 = arith.constant 168 : index
    %c0_210 = arith.constant 0 : index
    %364 = vector.load %arg9[%c168_209, %c0_210] : memref<504x64xf32, #tpu.memory_space<vmem>>, vector<24x64xf32>
    %365 = arith.maximumf %363, %364 : vector<24x64xf32>
    %c0_211 = arith.constant 0 : index
    %c0_212 = arith.constant 0 : index
    %366 = vector.load %arg10[%c0_211, %c0_212] : memref<24x64xf32, #tpu.memory_space<vmem>>, vector<24x64xf32>
    tpu.vector_store %arg10[%c0_211, %c0_212], %365 {strides = array<i32>} : memref<24x64xf32, #tpu.memory_space<vmem>>, vector<24x64xf32>,
    %c0_213 = arith.constant 0 : index
    %c0_214 = arith.constant 0 : index
    %367 = tpu.strided_load %arg10[%c0_213, %c0_214] {strides = array<i32: 2, 1>} : memref<24x64xf32, #tpu.memory_space<vmem>>, vector<12x64xf32>
    %c1_215 = arith.constant 1 : index
    %c0_216 = arith.constant 0 : index
    %368 = tpu.strided_load %arg10[%c1_215, %c0_216] {strides = array<i32: 2, 1>} : memref<24x64xf32, #tpu.memory_space<vmem>>, vector<12x64xf32>
    %369 = arith.maximumf %367, %368 : vector<12x64xf32>
    %370 = arith.addf %369, %320 : vector<12x64xf32>
    %cst_217 = arith.constant 0.000000e+00 : f32
    %371 = vector.broadcast %cst_217 : f32 to vector<12x64xf32>
    %372 = arith.maximumf %370, %371 : vector<12x64xf32>
    %373 = vector.extract_strided_slice %372 {offsets = [0, 0], sizes = [10, 64], strides = [1, 1]} : vector<12x64xf32> to vector<10x64xf32>
    %c0_218 = arith.constant 0 : index
    %c30 = arith.constant 30 : index
    %c0_219 = arith.constant 0 : index
    %374 = vector.load %arg6[%c0_218, %c30, %c0_219] : memref<1x100x64xf32, #tpu.memory_space<vmem>>, vector<1x10x64xf32>
    %375 = vector.shape_cast %374 : vector<1x10x64xf32> to vector<10x64xf32>
    %376 = vector.shape_cast %373 : vector<10x64xf32> to vector<1x10x64xf32>
    tpu.vector_store %arg6[%c0_218, %c30, %c0_219], %376 {strides = array<i32>} : memref<1x100x64xf32, #tpu.memory_space<vmem>>, vector<1x10x64xf32>,
    %c192_220 = arith.constant 192 : index
    %c0_221 = arith.constant 0 : index
    %377 = vector.load %arg9[%c192_220, %c0_221] : memref<504x64xf32, #tpu.memory_space<vmem>>, vector<24x64xf32>
    %c216_222 = arith.constant 216 : index
    %c0_223 = arith.constant 0 : index
    %378 = vector.load %arg9[%c216_222, %c0_223] : memref<504x64xf32, #tpu.memory_space<vmem>>, vector<24x64xf32>
    %379 = arith.maximumf %377, %378 : vector<24x64xf32>
    %c0_224 = arith.constant 0 : index
    %c0_225 = arith.constant 0 : index
    %380 = vector.load %arg10[%c0_224, %c0_225] : memref<24x64xf32, #tpu.memory_space<vmem>>, vector<24x64xf32>
    tpu.vector_store %arg10[%c0_224, %c0_225], %379 {strides = array<i32>} : memref<24x64xf32, #tpu.memory_space<vmem>>, vector<24x64xf32>,
    %c0_226 = arith.constant 0 : index
    %c0_227 = arith.constant 0 : index
    %381 = tpu.strided_load %arg10[%c0_226, %c0_227] {strides = array<i32: 2, 1>} : memref<24x64xf32, #tpu.memory_space<vmem>>, vector<12x64xf32>
    %c1_228 = arith.constant 1 : index
    %c0_229 = arith.constant 0 : index
    %382 = tpu.strided_load %arg10[%c1_228, %c0_229] {strides = array<i32: 2, 1>} : memref<24x64xf32, #tpu.memory_space<vmem>>, vector<12x64xf32>
    %383 = arith.maximumf %381, %382 : vector<12x64xf32>
    %384 = arith.addf %383, %320 : vector<12x64xf32>
    %cst_230 = arith.constant 0.000000e+00 : f32
    %385 = vector.broadcast %cst_230 : f32 to vector<12x64xf32>
    %386 = arith.maximumf %384, %385 : vector<12x64xf32>
    %387 = vector.extract_strided_slice %386 {offsets = [0, 0], sizes = [10, 64], strides = [1, 1]} : vector<12x64xf32> to vector<10x64xf32>
    %c0_231 = arith.constant 0 : index
    %c40_232 = arith.constant 40 : index
    %c0_233 = arith.constant 0 : index
    %388 = vector.load %arg6[%c0_231, %c40_232, %c0_233] : memref<1x100x64xf32, #tpu.memory_space<vmem>>, vector<1x10x64xf32>
    %389 = vector.shape_cast %388 : vector<1x10x64xf32> to vector<10x64xf32>
    %390 = vector.shape_cast %387 : vector<10x64xf32> to vector<1x10x64xf32>
    tpu.vector_store %arg6[%c0_231, %c40_232, %c0_233], %390 {strides = array<i32>} : memref<1x100x64xf32, #tpu.memory_space<vmem>>, vector<1x10x64xf32>,
    %c240_234 = arith.constant 240 : index
    %c0_235 = arith.constant 0 : index
    %391 = vector.load %arg9[%c240_234, %c0_235] : memref<504x64xf32, #tpu.memory_space<vmem>>, vector<24x64xf32>
    %c264_236 = arith.constant 264 : index
    %c0_237 = arith.constant 0 : index
    %392 = vector.load %arg9[%c264_236, %c0_237] : memref<504x64xf32, #tpu.memory_space<vmem>>, vector<24x64xf32>
    %393 = arith.maximumf %391, %392 : vector<24x64xf32>
    %c0_238 = arith.constant 0 : index
    %c0_239 = arith.constant 0 : index
    %394 = vector.load %arg10[%c0_238, %c0_239] : memref<24x64xf32, #tpu.memory_space<vmem>>, vector<24x64xf32>
    tpu.vector_store %arg10[%c0_238, %c0_239], %393 {strides = array<i32>} : memref<24x64xf32, #tpu.memory_space<vmem>>, vector<24x64xf32>,
    %c0_240 = arith.constant 0 : index
    %c0_241 = arith.constant 0 : index
    %395 = tpu.strided_load %arg10[%c0_240, %c0_241] {strides = array<i32: 2, 1>} : memref<24x64xf32, #tpu.memory_space<vmem>>, vector<12x64xf32>
    %c1_242 = arith.constant 1 : index
    %c0_243 = arith.constant 0 : index
    %396 = tpu.strided_load %arg10[%c1_242, %c0_243] {strides = array<i32: 2, 1>} : memref<24x64xf32, #tpu.memory_space<vmem>>, vector<12x64xf32>
    %397 = arith.maximumf %395, %396 : vector<12x64xf32>
    %398 = arith.addf %397, %320 : vector<12x64xf32>
    %cst_244 = arith.constant 0.000000e+00 : f32
    %399 = vector.broadcast %cst_244 : f32 to vector<12x64xf32>
    %400 = arith.maximumf %398, %399 : vector<12x64xf32>
    %401 = vector.extract_strided_slice %400 {offsets = [0, 0], sizes = [10, 64], strides = [1, 1]} : vector<12x64xf32> to vector<10x64xf32>
    %c0_245 = arith.constant 0 : index
    %c50 = arith.constant 50 : index
    %c0_246 = arith.constant 0 : index
    %402 = vector.load %arg6[%c0_245, %c50, %c0_246] : memref<1x100x64xf32, #tpu.memory_space<vmem>>, vector<1x10x64xf32>
    %403 = vector.shape_cast %402 : vector<1x10x64xf32> to vector<10x64xf32>
    %404 = vector.shape_cast %401 : vector<10x64xf32> to vector<1x10x64xf32>
    tpu.vector_store %arg6[%c0_245, %c50, %c0_246], %404 {strides = array<i32>} : memref<1x100x64xf32, #tpu.memory_space<vmem>>, vector<1x10x64xf32>,
    %c288_247 = arith.constant 288 : index
    %c0_248 = arith.constant 0 : index
    %405 = vector.load %arg9[%c288_247, %c0_248] : memref<504x64xf32, #tpu.memory_space<vmem>>, vector<24x64xf32>
    %c312_249 = arith.constant 312 : index
    %c0_250 = arith.constant 0 : index
    %406 = vector.load %arg9[%c312_249, %c0_250] : memref<504x64xf32, #tpu.memory_space<vmem>>, vector<24x64xf32>
    %407 = arith.maximumf %405, %406 : vector<24x64xf32>
    %c0_251 = arith.constant 0 : index
    %c0_252 = arith.constant 0 : index
    %408 = vector.load %arg10[%c0_251, %c0_252] : memref<24x64xf32, #tpu.memory_space<vmem>>, vector<24x64xf32>
    tpu.vector_store %arg10[%c0_251, %c0_252], %407 {strides = array<i32>} : memref<24x64xf32, #tpu.memory_space<vmem>>, vector<24x64xf32>,
    %c0_253 = arith.constant 0 : index
    %c0_254 = arith.constant 0 : index
    %409 = tpu.strided_load %arg10[%c0_253, %c0_254] {strides = array<i32: 2, 1>} : memref<24x64xf32, #tpu.memory_space<vmem>>, vector<12x64xf32>
    %c1_255 = arith.constant 1 : index
    %c0_256 = arith.constant 0 : index
    %410 = tpu.strided_load %arg10[%c1_255, %c0_256] {strides = array<i32: 2, 1>} : memref<24x64xf32, #tpu.memory_space<vmem>>, vector<12x64xf32>
    %411 = arith.maximumf %409, %410 : vector<12x64xf32>
    %412 = arith.addf %411, %320 : vector<12x64xf32>
    %cst_257 = arith.constant 0.000000e+00 : f32
    %413 = vector.broadcast %cst_257 : f32 to vector<12x64xf32>
    %414 = arith.maximumf %412, %413 : vector<12x64xf32>
    %415 = vector.extract_strided_slice %414 {offsets = [0, 0], sizes = [10, 64], strides = [1, 1]} : vector<12x64xf32> to vector<10x64xf32>
    %c0_258 = arith.constant 0 : index
    %c60 = arith.constant 60 : index
    %c0_259 = arith.constant 0 : index
    %416 = vector.load %arg6[%c0_258, %c60, %c0_259] : memref<1x100x64xf32, #tpu.memory_space<vmem>>, vector<1x10x64xf32>
    %417 = vector.shape_cast %416 : vector<1x10x64xf32> to vector<10x64xf32>
    %418 = vector.shape_cast %415 : vector<10x64xf32> to vector<1x10x64xf32>
    tpu.vector_store %arg6[%c0_258, %c60, %c0_259], %418 {strides = array<i32>} : memref<1x100x64xf32, #tpu.memory_space<vmem>>, vector<1x10x64xf32>,
    %c336_260 = arith.constant 336 : index
    %c0_261 = arith.constant 0 : index
    %419 = vector.load %arg9[%c336_260, %c0_261] : memref<504x64xf32, #tpu.memory_space<vmem>>, vector<24x64xf32>
    %c360_262 = arith.constant 360 : index
    %c0_263 = arith.constant 0 : index
    %420 = vector.load %arg9[%c360_262, %c0_263] : memref<504x64xf32, #tpu.memory_space<vmem>>, vector<24x64xf32>
    %421 = arith.maximumf %419, %420 : vector<24x64xf32>
    %c0_264 = arith.constant 0 : index
    %c0_265 = arith.constant 0 : index
    %422 = vector.load %arg10[%c0_264, %c0_265] : memref<24x64xf32, #tpu.memory_space<vmem>>, vector<24x64xf32>
    tpu.vector_store %arg10[%c0_264, %c0_265], %421 {strides = array<i32>} : memref<24x64xf32, #tpu.memory_space<vmem>>, vector<24x64xf32>,
    %c0_266 = arith.constant 0 : index
    %c0_267 = arith.constant 0 : index
    %423 = tpu.strided_load %arg10[%c0_266, %c0_267] {strides = array<i32: 2, 1>} : memref<24x64xf32, #tpu.memory_space<vmem>>, vector<12x64xf32>
    %c1_268 = arith.constant 1 : index
    %c0_269 = arith.constant 0 : index
    %424 = tpu.strided_load %arg10[%c1_268, %c0_269] {strides = array<i32: 2, 1>} : memref<24x64xf32, #tpu.memory_space<vmem>>, vector<12x64xf32>
    %425 = arith.maximumf %423, %424 : vector<12x64xf32>
    %426 = arith.addf %425, %320 : vector<12x64xf32>
    %cst_270 = arith.constant 0.000000e+00 : f32
    %427 = vector.broadcast %cst_270 : f32 to vector<12x64xf32>
    %428 = arith.maximumf %426, %427 : vector<12x64xf32>
    %429 = vector.extract_strided_slice %428 {offsets = [0, 0], sizes = [10, 64], strides = [1, 1]} : vector<12x64xf32> to vector<10x64xf32>
    %c0_271 = arith.constant 0 : index
    %c70 = arith.constant 70 : index
    %c0_272 = arith.constant 0 : index
    %430 = vector.load %arg6[%c0_271, %c70, %c0_272] : memref<1x100x64xf32, #tpu.memory_space<vmem>>, vector<1x10x64xf32>
    %431 = vector.shape_cast %430 : vector<1x10x64xf32> to vector<10x64xf32>
    %432 = vector.shape_cast %429 : vector<10x64xf32> to vector<1x10x64xf32>
    tpu.vector_store %arg6[%c0_271, %c70, %c0_272], %432 {strides = array<i32>} : memref<1x100x64xf32, #tpu.memory_space<vmem>>, vector<1x10x64xf32>,
    %c384_273 = arith.constant 384 : index
    %c0_274 = arith.constant 0 : index
    %433 = vector.load %arg9[%c384_273, %c0_274] : memref<504x64xf32, #tpu.memory_space<vmem>>, vector<24x64xf32>
    %c408_275 = arith.constant 408 : index
    %c0_276 = arith.constant 0 : index
    %434 = vector.load %arg9[%c408_275, %c0_276] : memref<504x64xf32, #tpu.memory_space<vmem>>, vector<24x64xf32>
    %435 = arith.maximumf %433, %434 : vector<24x64xf32>
    %c0_277 = arith.constant 0 : index
    %c0_278 = arith.constant 0 : index
    %436 = vector.load %arg10[%c0_277, %c0_278] : memref<24x64xf32, #tpu.memory_space<vmem>>, vector<24x64xf32>
    tpu.vector_store %arg10[%c0_277, %c0_278], %435 {strides = array<i32>} : memref<24x64xf32, #tpu.memory_space<vmem>>, vector<24x64xf32>,
    %c0_279 = arith.constant 0 : index
    %c0_280 = arith.constant 0 : index
    %437 = tpu.strided_load %arg10[%c0_279, %c0_280] {strides = array<i32: 2, 1>} : memref<24x64xf32, #tpu.memory_space<vmem>>, vector<12x64xf32>
    %c1_281 = arith.constant 1 : index
    %c0_282 = arith.constant 0 : index
    %438 = tpu.strided_load %arg10[%c1_281, %c0_282] {strides = array<i32: 2, 1>} : memref<24x64xf32, #tpu.memory_space<vmem>>, vector<12x64xf32>
    %439 = arith.maximumf %437, %438 : vector<12x64xf32>
    %440 = arith.addf %439, %320 : vector<12x64xf32>
    %cst_283 = arith.constant 0.000000e+00 : f32
    %441 = vector.broadcast %cst_283 : f32 to vector<12x64xf32>
    %442 = arith.maximumf %440, %441 : vector<12x64xf32>
    %443 = vector.extract_strided_slice %442 {offsets = [0, 0], sizes = [10, 64], strides = [1, 1]} : vector<12x64xf32> to vector<10x64xf32>
    %c0_284 = arith.constant 0 : index
    %c80 = arith.constant 80 : index
    %c0_285 = arith.constant 0 : index
    %444 = vector.load %arg6[%c0_284, %c80, %c0_285] : memref<1x100x64xf32, #tpu.memory_space<vmem>>, vector<1x10x64xf32>
    %445 = vector.shape_cast %444 : vector<1x10x64xf32> to vector<10x64xf32>
    %446 = vector.shape_cast %443 : vector<10x64xf32> to vector<1x10x64xf32>
    tpu.vector_store %arg6[%c0_284, %c80, %c0_285], %446 {strides = array<i32>} : memref<1x100x64xf32, #tpu.memory_space<vmem>>, vector<1x10x64xf32>,
    %c432_286 = arith.constant 432 : index
    %c0_287 = arith.constant 0 : index
    %447 = vector.load %arg9[%c432_286, %c0_287] : memref<504x64xf32, #tpu.memory_space<vmem>>, vector<24x64xf32>
    %c456_288 = arith.constant 456 : index
    %c0_289 = arith.constant 0 : index
    %448 = vector.load %arg9[%c456_288, %c0_289] : memref<504x64xf32, #tpu.memory_space<vmem>>, vector<24x64xf32>
    %449 = arith.maximumf %447, %448 : vector<24x64xf32>
    %c0_290 = arith.constant 0 : index
    %c0_291 = arith.constant 0 : index
    %450 = vector.load %arg10[%c0_290, %c0_291] : memref<24x64xf32, #tpu.memory_space<vmem>>, vector<24x64xf32>
    tpu.vector_store %arg10[%c0_290, %c0_291], %449 {strides = array<i32>} : memref<24x64xf32, #tpu.memory_space<vmem>>, vector<24x64xf32>,
    %c0_292 = arith.constant 0 : index
    %c0_293 = arith.constant 0 : index
    %451 = tpu.strided_load %arg10[%c0_292, %c0_293] {strides = array<i32: 2, 1>} : memref<24x64xf32, #tpu.memory_space<vmem>>, vector<12x64xf32>
    %c1_294 = arith.constant 1 : index
    %c0_295 = arith.constant 0 : index
    %452 = tpu.strided_load %arg10[%c1_294, %c0_295] {strides = array<i32: 2, 1>} : memref<24x64xf32, #tpu.memory_space<vmem>>, vector<12x64xf32>
    %453 = arith.maximumf %451, %452 : vector<12x64xf32>
    %454 = arith.addf %453, %320 : vector<12x64xf32>
    %cst_296 = arith.constant 0.000000e+00 : f32
    %455 = vector.broadcast %cst_296 : f32 to vector<12x64xf32>
    %456 = arith.maximumf %454, %455 : vector<12x64xf32>
    %457 = vector.extract_strided_slice %456 {offsets = [0, 0], sizes = [10, 64], strides = [1, 1]} : vector<12x64xf32> to vector<10x64xf32>
    %c0_297 = arith.constant 0 : index
    %c90 = arith.constant 90 : index
    %c0_298 = arith.constant 0 : index
    %458 = vector.load %arg6[%c0_297, %c90, %c0_298] : memref<1x100x64xf32, #tpu.memory_space<vmem>>, vector<1x10x64xf32>
    %459 = vector.shape_cast %458 : vector<1x10x64xf32> to vector<10x64xf32>
    %460 = vector.shape_cast %457 : vector<10x64xf32> to vector<1x10x64xf32>
    tpu.vector_store %arg6[%c0_297, %c90, %c0_298], %460 {strides = array<i32>} : memref<1x100x64xf32, #tpu.memory_space<vmem>>, vector<1x10x64xf32>,
    return
  }
  func.func @transform_0(%arg0: i32) -> (i32, i32) {
    %c0_i32 = arith.constant 0 : i32
    %c0_i32_0 = arith.constant 0 : i32
    return %arg0, %c0_i32 : i32, i32
  }
  func.func @transform_1(%arg0: i32) -> (i32, i32, i32) {
    %c0_i32 = arith.constant 0 : i32
    %c0_i32_0 = arith.constant 0 : i32
    %c0_i32_1 = arith.constant 0 : i32
    %c0_i32_2 = arith.constant 0 : i32
    return %c0_i32, %c0_i32_0, %c0_i32_1 : i32, i32, i32
  }
  func.func @transform_2(%arg0: i32) -> (i32, i32) {
    %c0_i32 = arith.constant 0 : i32
    %c0_i32_0 = arith.constant 0 : i32
    %c0_i32_1 = arith.constant 0 : i32
    return %c0_i32, %c0_i32_0 : i32, i32
  }
  func.func @transform_3(%arg0: i32) -> (i32, i32, i32) {
    %c0_i32 = arith.constant 0 : i32
    %c0_i32_0 = arith.constant 0 : i32
    %c0_i32_1 = arith.constant 0 : i32
    %c0_i32_2 = arith.constant 0 : i32
    return %c0_i32, %c0_i32_0, %c0_i32_1 : i32, i32, i32
  }
  func.func @transform_4(%arg0: i32) -> (i32, i32) {
    %c0_i32 = arith.constant 0 : i32
    %c0_i32_0 = arith.constant 0 : i32
    %c0_i32_1 = arith.constant 0 : i32
    return %c0_i32, %c0_i32_0 : i32, i32
  }
  func.func @transform_5(%arg0: i32) -> (i32, i32, i32) {
    %c0_i32 = arith.constant 0 : i32
    %c0_i32_0 = arith.constant 0 : i32
    %c0_i32_1 = arith.constant 0 : i32
    return %arg0, %c0_i32, %c0_i32_0 : i32, i32, i32
  }
}

module attributes {stable_mosaic.version = 11 : i64} {
  func.func @_mlp_kernel(%arg0: i32, %arg1: memref<8x6400xf32, #tpu.memory_space<vmem>>, %arg2: memref<6400x128xf32, #tpu.memory_space<vmem>>, %arg3: memref<1x128xf32, #tpu.memory_space<vmem>>, %arg4: memref<128x128xf32, #tpu.memory_space<vmem>>, %arg5: memref<1x128xf32, #tpu.memory_space<vmem>>, %arg6: memref<8x128xf32, #tpu.memory_space<vmem>>) attributes {dimension_semantics = [#tpu.dimension_semantics<parallel>], iteration_bounds = array<i64: 1>, scalar_prefetch = 0 : i64, scratch_operands = 0 : i64, tpu.core_type = #tpu.core_type<tc>, window_params = [{transform_indices = @transform_0, window_bounds = array<i64: 8, 6400>}, {pipeline_mode = #tpu.pipeline_mode<synchronous>, transform_indices = @transform_1, window_bounds = array<i64: 6400, 128>}, {pipeline_mode = #tpu.pipeline_mode<synchronous>, transform_indices = @transform_2, window_bounds = array<i64: 1, 128>}, {pipeline_mode = #tpu.pipeline_mode<synchronous>, transform_indices = @transform_3, window_bounds = array<i64: 128, 128>}, {pipeline_mode = #tpu.pipeline_mode<synchronous>, transform_indices = @transform_4, window_bounds = array<i64: 1, 128>}, {transform_indices = @transform_5, window_bounds = array<i64: 8, 128>}]} {
    %c0 = arith.constant 0 : index
    %c0_0 = arith.constant 0 : index
    %0 = vector.load %arg1[%c0, %c0_0] : memref<8x6400xf32, #tpu.memory_space<vmem>>, vector<8x6400xf32>
    %c0_1 = arith.constant 0 : index
    %c0_2 = arith.constant 0 : index
    %1 = vector.load %arg2[%c0_1, %c0_2] : memref<6400x128xf32, #tpu.memory_space<vmem>>, vector<6400x128xf32>
    %cst = arith.constant dense<0.000000e+00> : vector<8x128xf32>
    %2 = tpu.matmul %0, %1, %cst {dimension_numbers = #tpu.dot_dimension_numbers<[1], [0], [0], [1], [0, 0, 1, 1], [], []>} : vector<8x6400xf32>, vector<6400x128xf32>, vector<8x128xf32> -> vector<8x128xf32>
    %c0_3 = arith.constant 0 : index
    %c0_4 = arith.constant 0 : index
    %3 = vector.load %arg3[%c0_3, %c0_4] : memref<1x128xf32, #tpu.memory_space<vmem>>, vector<1x128xf32>
    %4 = vector.broadcast %3 : vector<1x128xf32> to vector<8x128xf32>
    %5 = arith.addf %2, %4 : vector<8x128xf32>
    %cst_5 = arith.constant 0.000000e+00 : f32
    %6 = vector.broadcast %cst_5 : f32 to vector<8x128xf32>
    %7 = arith.maximumf %5, %6 : vector<8x128xf32>
    %c0_6 = arith.constant 0 : index
    %c0_7 = arith.constant 0 : index
    %8 = vector.load %arg4[%c0_6, %c0_7] : memref<128x128xf32, #tpu.memory_space<vmem>>, vector<128x128xf32>
    %cst_8 = arith.constant dense<0.000000e+00> : vector<8x128xf32>
    %9 = tpu.matmul %7, %8, %cst_8 {dimension_numbers = #tpu.dot_dimension_numbers<[1], [0], [0], [1], [0, 0, 1, 1], [], []>} : vector<8x128xf32>, vector<128x128xf32>, vector<8x128xf32> -> vector<8x128xf32>
    %c0_9 = arith.constant 0 : index
    %c0_10 = arith.constant 0 : index
    %10 = vector.load %arg5[%c0_9, %c0_10] : memref<1x128xf32, #tpu.memory_space<vmem>>, vector<1x128xf32>
    %11 = vector.broadcast %10 : vector<1x128xf32> to vector<8x128xf32>
    %12 = arith.addf %9, %11 : vector<8x128xf32>
    %c0_11 = arith.constant 0 : index
    %c0_12 = arith.constant 0 : index
    %13 = vector.load %arg6[%c0_11, %c0_12] : memref<8x128xf32, #tpu.memory_space<vmem>>, vector<8x128xf32>
    tpu.vector_store %arg6[%c0_11, %c0_12], %12 {strides = array<i32>} : memref<8x128xf32, #tpu.memory_space<vmem>>, vector<8x128xf32>,
    return
  }
  func.func @transform_0(%arg0: i32) -> (i32, i32) {
    %c0_i32 = arith.constant 0 : i32
    %c0_i32_0 = arith.constant 0 : i32
    return %arg0, %c0_i32 : i32, i32
  }
  func.func @transform_1(%arg0: i32) -> (i32, i32) {
    %c0_i32 = arith.constant 0 : i32
    %c0_i32_0 = arith.constant 0 : i32
    %c0_i32_1 = arith.constant 0 : i32
    return %c0_i32, %c0_i32_0 : i32, i32
  }
  func.func @transform_2(%arg0: i32) -> (i32, i32) {
    %c0_i32 = arith.constant 0 : i32
    %c0_i32_0 = arith.constant 0 : i32
    %c0_i32_1 = arith.constant 0 : i32
    return %c0_i32, %c0_i32_0 : i32, i32
  }
  func.func @transform_3(%arg0: i32) -> (i32, i32) {
    %c0_i32 = arith.constant 0 : i32
    %c0_i32_0 = arith.constant 0 : i32
    %c0_i32_1 = arith.constant 0 : i32
    return %c0_i32, %c0_i32_0 : i32, i32
  }
  func.func @transform_4(%arg0: i32) -> (i32, i32) {
    %c0_i32 = arith.constant 0 : i32
    %c0_i32_0 = arith.constant 0 : i32
    %c0_i32_1 = arith.constant 0 : i32
    return %c0_i32, %c0_i32_0 : i32, i32
  }
  func.func @transform_5(%arg0: i32) -> (i32, i32) {
    %c0_i32 = arith.constant 0 : i32
    %c0_i32_0 = arith.constant 0 : i32
    return %arg0, %c0_i32 : i32, i32
  }
}

</mosaic_0001>

<bundles_post_ra>
// kernel: emotion_cnn_forward.3
= control target key start
LH: loop header
LB: loop body
LE: loop exit
PB: predicated region body
PF: predicated region fallthrough
CT: control target
= control target key end

     0   :  { %10 = vsyncpa [#allocation3], 0  ;;  %s2293_s0 = inlined_call_operand.vmem [shape: f32[8,6400], index: 0, kind: input, shape index: {}]   ;;  %s2294_s1 = inlined_call_operand.hbm [shape: f32[6400,128], index: 1, kind: input, shape index: {}]   ;;  %s2295_s2 = inlined_call_operand.hbm [shape: f32[1,128], index: 2, kind: input, shape index: {}]   ;;  %s2296_s3 = inlined_call_operand.hbm [shape: f32[128,128], index: 3, kind: input, shape index: {}]   ;;  %s2297_s4 = inlined_call_operand.hbm [shape: f32[1,128], index: 4, kind: input, shape index: {}]   ;;  %s2298_s5 = inlined_call_operand.vmem [shape: f32[8,128], index: 5, kind: output, shape index: {}]  }
   0x1   :  { %11 = vsyncpa [#allocation5], 0  ;;  %s33_s20 = sshll.u32 %s2295_s2, 4  ;;  %s34_s20 = int_to_ptr.hbm [resolvable:$true] %s33_s20 }
   0x2   :  { %12 = vsyncpa [#allocation8], 0  ;;  %s2092_s21 = smov [#allocation4]   ;;  %s19_s25 = sshll.u32 %s2294_s1, 4  ;;  %s20_s25 = int_to_ptr.hbm [resolvable:$true] %s19_s25 }
   0x3   :  { %s35_s22 = sshll.u32 %s2092_s21, 4  ;;  %s2093_s26 = smov [#allocation2]   ;;  %s36_s22 = int_to_ptr.vmem [resolvable:$true] %s35_s22 }
   0x4   :  { %38 = dma.hbm_to_vmem [thread:$0]  %s34_s20, 16, %s36_s22, [#allocation5]  }
   0x5   :  { %s21_s27 = sshll.u32 %s2093_s26, 4  ;;  %s2094_s28 = smov 128   ;;  %s22_s27 = int_to_ptr.vmem [resolvable:$true] %s21_s27 }
   0x6   :  { %s2095_s29 = smov 8   ;;  %s43_s2 = sshll.u32 %s2296_s3, 4  ;;  %s44_s2 = int_to_ptr.hbm [resolvable:$true] %s43_s2 }
   0x7   :  { %27 = dma.hbm_to_vmem [thread:$0]  %s20_s25, 102400, %s22_s27, [#allocation3], %s2094_s28, %s2094_s28, %s2095_s29  }
   0x8   :  { %s2096_s7 = smov [#allocation6]   ;;  %s57_s1 = sshll.u32 %s2297_s4, 4  ;;  %s58_s1 = int_to_ptr.hbm [resolvable:$true] %s57_s1 }
   0x9   :  { %s45_s8 = sshll.u32 %s2096_s7, 4  ;;  %s2097_s11 = smov [#allocation7]   ;;  %s46_s8 = int_to_ptr.vmem [resolvable:$true] %s45_s8 }
   0xa   :  { %51 = dma.hbm_to_vmem [thread:$0]  %s44_s2, 2048, %s46_s8, [#allocation5], %s2094_s28, %s2094_s28, %s2095_s29  }
   0xb   :  { %s59_s12 = sshll.u32 %s2097_s11, 4  ;;  %s60_s12 = int_to_ptr.vmem [resolvable:$true] %s59_s12 }
   0xc   :  { %62 = dma.hbm_to_vmem [thread:$0]  %s58_s1, 16, %s60_s12, [#allocation8]  }
   0xd   :  { %2086 = dma.done.wait [#allocation3], 102400  }
   0xe   :  { %2087 = vsyncadd [#allocation3], 4294864896 }
   0xf   :  { %2088 = dma.done.wait [#allocation5], 2064  }
  0x10   :  { %2089 = vsyncadd [#allocation5], 4294965232 }
  0x11   :  { %2090 = dma.done.wait [#allocation8], 16  }
  0x12   :  { %2091 = vsyncadd [#allocation8], 4294967280  ;;  %v144_v0 = vld [vmem:[#allocation2 + $0x78] sm:$0xff]  ;;  %v143_v2 = vld [vmem:[#allocation2 + $0x70] sm:$0xff] }
  0x13   :  { %v176_v1 = vld [vmem:[#allocation2 + $0x178] sm:$0xff]  ;;  %933 = vmatpush.msra.mxu0 %v144_v0  ;;  %v175_v4 = vld [vmem:[#allocation2 + $0x170] sm:$0xff]  ;;  %v142_v6 = vld [vmem:[#allocation2 + $0x68] sm:$0xff] }
  0x14   :  { %973 = vmatpush.msra.mxu2 %v176_v1  ;;  %v160_v3 = vld [vmem:[#allocation2 + $0xf8] sm:$0xff]  ;;  %v159_v7 = vld [vmem:[#allocation2 + $0xf0] sm:$0xff]  ;;  %v174_v8 = vld [vmem:[#allocation2 + $0x168] sm:$0xff] }
  0x15   :  { %v192_v5 = vld [vmem:[#allocation2 + $0x1f8] sm:$0xff]  ;;  %953 = vmatpush.msra.mxu1 %v160_v3  ;;  %934 = vmatpush.msra.mxu0 %v143_v2  ;;  %v191_v9 = vld [vmem:[#allocation2 + $0x1f0] sm:$0xff]  ;;  %v158_v10 = vld [vmem:[#allocation2 + $0xe8] sm:$0xff] }
  0x16   :  { %993 = vmatpush.msra.mxu3 %v192_v5  ;;  %974 = vmatpush.msra.mxu2 %v175_v4  ;;  %v141_v11 = vld [vmem:[#allocation2 + $0x60] sm:$0xff]  ;;  %v190_v13 = vld [vmem:[#allocation2 + $0x1e8] sm:$0xff]  ;;  %v140_v16 = vld [vmem:[#allocation2 + $0x58] sm:$0xff] }
  0x17   :  { %954 = vmatpush.msra.mxu1 %v159_v7  ;;  %v173_v12 = vld [vmem:[#allocation2 + $0x160] sm:$0xff]  ;;  %935 = vmatpush.msra.mxu0 %v142_v6  ;;  %v172_v17 = vld [vmem:[#allocation2 + $0x158] sm:$0xff]  ;;  %v139_v20 = vld [vmem:[#allocation2 + $0x50] sm:$0xff] }
  0x18   :  { %994 = vmatpush.msra.mxu3 %v191_v9  ;;  %975 = vmatpush.msra.mxu2 %v174_v8  ;;  %v157_v14 = vld [vmem:[#allocation2 + $0xe0] sm:$0xff]  ;;  %v156_v18 = vld [vmem:[#allocation2 + $0xd8] sm:$0xff]  ;;  %v171_v21 = vld [vmem:[#allocation2 + $0x150] sm:$0xff] }
  0x19   :  { %v189_v15 = vld [vmem:[#allocation2 + $0x1e0] sm:$0xff]  ;;  %955 = vmatpush.msra.mxu1 %v158_v10  ;;  %936 = vmatpush.msra.mxu0 %v141_v11  ;;  %v188_v19 = vld [vmem:[#allocation2 + $0x1d8] sm:$0xff]  ;;  %v155_v22 = vld [vmem:[#allocation2 + $0xd0] sm:$0xff] }
  0x1a   :  { %995 = vmatpush.msra.mxu3 %v190_v13  ;;  %976 = vmatpush.msra.mxu2 %v173_v12  ;;  %v187_v23 = vld [vmem:[#allocation2 + $0x1d0] sm:$0xff]  ;;  %v138_v24 = vld [vmem:[#allocation2 + $0x48] sm:$0xff]  ;;  %v137_v28 = vld [vmem:[#allocation2 + $0x40] sm:$0xff] }
  0x1b   :  { %956 = vmatpush.msra.mxu1 %v157_v14  ;;  %937 = vmatpush.msra.mxu0 %v140_v16  ;;  %v170_v25 = vld [vmem:[#allocation2 + $0x148] sm:$0xff]  ;;  %v169_v29 = vld [vmem:[#allocation2 + $0x140] sm:$0xff]  ;;  %v136_v32 = vld [vmem:[#allocation2 + $0x38] sm:$0xff] }
  0x1c   :  { %996 = vmatpush.msra.mxu3 %v189_v15  ;;  %977 = vmatpush.msra.mxu2 %v172_v17  ;;  %v154_v26 = vld [vmem:[#allocation2 + $0xc8] sm:$0xff]  ;;  %v153_v30 = vld [vmem:[#allocation2 + $0xc0] sm:$0xff]  ;;  %v168_v33 = vld [vmem:[#allocation2 + $0x138] sm:$0xff] }
  0x1d   :  { %957 = vmatpush.msra.mxu1 %v156_v18  ;;  %938 = vmatpush.msra.mxu0 %v139_v20  ;;  %v186_v27 = vld [vmem:[#allocation2 + $0x1c8] sm:$0xff]  ;;  %v185_v31 = vld [vmem:[#allocation2 + $0x1c0] sm:$0xff]  ;;  %v152_v34 = vld [vmem:[#allocation2 + $0xb8] sm:$0xff] }
  0x1e   :  { %997 = vmatpush.msra.mxu3 %v188_v19  ;;  %978 = vmatpush.msra.mxu2 %v171_v21  ;;  %v184_v35 = vld [vmem:[#allocation2 + $0x1b8] sm:$0xff]  ;;  %v135_v36 = vld [vmem:[#allocation2 + $0x30] sm:$0xff]  ;;  %v134_v40 = vld [vmem:[#allocation2 + $0x28] sm:$0xff] }
  0x1f   :  { %958 = vmatpush.msra.mxu1 %v155_v22  ;;  %939 = vmatpush.msra.mxu0 %v138_v24  ;;  %v167_v37 = vld [vmem:[#allocation2 + $0x130] sm:$0xff]  ;;  %v166_v41 = vld [vmem:[#allocation2 + $0x128] sm:$0xff]  ;;  %v133_v44 = vld [vmem:[#allocation2 + $0x20] sm:$0xff] }
  0x20   :  { %998 = vmatpush.msra.mxu3 %v187_v23  ;;  %979 = vmatpush.msra.mxu2 %v170_v25  ;;  %v151_v38 = vld [vmem:[#allocation2 + $0xb0] sm:$0xff]  ;;  %v150_v42 = vld [vmem:[#allocation2 + $0xa8] sm:$0xff]  ;;  %v165_v45 = vld [vmem:[#allocation2 + $0x120] sm:$0xff] }
  0x21   :  { %959 = vmatpush.msra.mxu1 %v154_v26  ;;  %940 = vmatpush.msra.mxu0 %v137_v28  ;;  %v183_v39 = vld [vmem:[#allocation2 + $0x1b0] sm:$0xff]  ;;  %v182_v43 = vld [vmem:[#allocation2 + $0x1a8] sm:$0xff]  ;;  %v149_v46 = vld [vmem:[#allocation2 + $0xa0] sm:$0xff] }
  0x22   :  { %999 = vmatpush.msra.mxu3 %v186_v27  ;;  %980 = vmatpush.msra.mxu2 %v169_v29  ;;  %v181_v47 = vld [vmem:[#allocation2 + $0x1a0] sm:$0xff]  ;;  %v132_v48 = vld [vmem:[#allocation2 + $0x18] sm:$0xff]  ;;  %v131_v52 = vld [vmem:[#allocation2 + $0x10] sm:$0xff] }
  0x23   :  { %960 = vmatpush.msra.mxu1 %v153_v30  ;;  %941 = vmatpush.msra.mxu0 %v136_v32  ;;  %v164_v49 = vld [vmem:[#allocation2 + $0x118] sm:$0xff]  ;;  %v163_v53 = vld [vmem:[#allocation2 + $0x110] sm:$0xff]  ;;  %v130_v56 = vld [vmem:[#allocation2 + $0x8] sm:$0xff] }
  0x24   :  { %1000 = vmatpush.msra.mxu3 %v185_v31  ;;  %981 = vmatpush.msra.mxu2 %v168_v33  ;;  %v148_v50 = vld [vmem:[#allocation2 + $0x98] sm:$0xff]  ;;  %v147_v54 = vld [vmem:[#allocation2 + $0x90] sm:$0xff]  ;;  %v162_v57 = vld [vmem:[#allocation2 + $0x108] sm:$0xff] }
  0x25   :  { %961 = vmatpush.msra.mxu1 %v152_v34  ;;  %942 = vmatpush.msra.mxu0 %v135_v36  ;;  %v180_v51 = vld [vmem:[#allocation2 + $0x198] sm:$0xff]  ;;  %v179_v55 = vld [vmem:[#allocation2 + $0x190] sm:$0xff]  ;;  %v146_v58 = vld [vmem:[#allocation2 + $0x88] sm:$0xff] }
  0x26   :  { %1001 = vmatpush.msra.mxu3 %v184_v35  ;;  %982 = vmatpush.msra.mxu2 %v167_v37  ;;  %v178_v59 = vld [vmem:[#allocation2 + $0x188] sm:$0xff]  ;;  %v129_v60 = vld [vmem:[#allocation2] sm:$0xff]  ;;  %v208_v62 = vld [vmem:[#allocation2 + $0x278] sm:$0xff] }
  0x27   :  { %962 = vmatpush.msra.mxu1 %v151_v38  ;;  %943 = vmatpush.msra.mxu0 %v134_v40  ;;  %v161_v61 = vld [vmem:[#allocation2 + $0x100] sm:$0xff]  ;;  %v240_v63 = vld [vmem:[#allocation2 + $0x378] sm:$0xff]  ;;  %v207_v2 = vld [vmem:[#allocation2 + $0x270] sm:$0xff] }
  0x28   :  { %1002 = vmatpush.msra.mxu3 %v183_v39  ;;  %983 = vmatpush.msra.mxu2 %v166_v41  ;;  %v145_v0 = vld [vmem:[#allocation2 + $0x80] sm:$0xff]  ;;  %v224_v3 = vld [vmem:[#allocation2 + $0x2f8] sm:$0xff]  ;;  %v239_v4 = vld [vmem:[#allocation2 + $0x370] sm:$0xff] }
  0x29   :  { %963 = vmatpush.msra.mxu1 %v150_v42  ;;  %944 = vmatpush.msra.mxu0 %v133_v44  ;;  %v177_v1 = vld [vmem:[#allocation2 + $0x180] sm:$0xff]  ;;  %v256_v5 = vld [vmem:[#allocation2 + $0x3f8] sm:$0xff]  ;;  %v206_v6 = vld [vmem:[#allocation2 + $0x268] sm:$0xff] }
  0x2a   :  { %1003 = vmatpush.msra.mxu3 %v182_v43  ;;  %984 = vmatpush.msra.mxu2 %v165_v45  ;;  %v223_v7 = vld [vmem:[#allocation2 + $0x2f0] sm:$0xff]  ;;  %v238_v8 = vld [vmem:[#allocation2 + $0x368] sm:$0xff]  ;;  %v205_v10 = vld [vmem:[#allocation2 + $0x260] sm:$0xff] }
  0x2b   :  { %964 = vmatpush.msra.mxu1 %v149_v46  ;;  %945 = vmatpush.msra.mxu0 %v132_v48  ;;  %v255_v9 = vld [vmem:[#allocation2 + $0x3f0] sm:$0xff]  ;;  %v222_v11 = vld [vmem:[#allocation2 + $0x2e8] sm:$0xff]  ;;  %v237_v12 = vld [vmem:[#allocation2 + $0x360] sm:$0xff] }
  0x2c   :  { %1004 = vmatpush.msra.mxu3 %v181_v47  ;;  %985 = vmatpush.msra.mxu2 %v164_v49  ;;  %v254_v13 = vld [vmem:[#allocation2 + $0x3e8] sm:$0xff]  ;;  %v204_v14 = vld [vmem:[#allocation2 + $0x258] sm:$0xff]  ;;  %v221_v15 = vld [vmem:[#allocation2 + $0x2e0] sm:$0xff] }
  0x2d   :  { %965 = vmatpush.msra.mxu1 %v148_v50  ;;  %946 = vmatpush.msra.mxu0 %v131_v52  ;;  %v236_v16 = vld [vmem:[#allocation2 + $0x358] sm:$0xff]  ;;  %v253_v17 = vld [vmem:[#allocation2 + $0x3e0] sm:$0xff]  ;;  %v203_v18 = vld [vmem:[#allocation2 + $0x250] sm:$0xff] }
  0x2e   :  { %1005 = vmatpush.msra.mxu3 %v180_v51  ;;  %986 = vmatpush.msra.mxu2 %v163_v53  ;;  %v220_v19 = vld [vmem:[#allocation2 + $0x2d8] sm:$0xff]  ;;  %v235_v20 = vld [vmem:[#allocation2 + $0x350] sm:$0xff]  ;;  %v202_v22 = vld [vmem:[#allocation2 + $0x248] sm:$0xff] }
  0x2f   :  { %966 = vmatpush.msra.mxu1 %v147_v54  ;;  %947 = vmatpush.msra.mxu0 %v130_v56  ;;  %v252_v21 = vld [vmem:[#allocation2 + $0x3d8] sm:$0xff]  ;;  %v219_v23 = vld [vmem:[#allocation2 + $0x2d0] sm:$0xff]  ;;  %v234_v24 = vld [vmem:[#allocation2 + $0x348] sm:$0xff] }
  0x30   :  { %1006 = vmatpush.msra.mxu3 %v179_v55  ;;  %987 = vmatpush.msra.mxu2 %v162_v57  ;;  %v251_v25 = vld [vmem:[#allocation2 + $0x3d0] sm:$0xff]  ;;  %v201_v26 = vld [vmem:[#allocation2 + $0x240] sm:$0xff]  ;;  %v218_v27 = vld [vmem:[#allocation2 + $0x2c8] sm:$0xff] }
  0x31   :  { %967 = vmatpush.msra.mxu1 %v146_v58  ;;  %948 = vmatpush.msra.mxu0 %v129_v60  ;;  %v233_v28 = vld [vmem:[#allocation2 + $0x340] sm:$0xff]  ;;  %v250_v29 = vld [vmem:[#allocation2 + $0x3c8] sm:$0xff]  ;;  %v200_v30 = vld [vmem:[#allocation2 + $0x238] sm:$0xff] }
  0x32   :  { %1007 = vmatpush.msra.mxu3 %v178_v59  ;;  %988 = vmatpush.msra.mxu2 %v161_v61  ;;  %v217_v31 = vld [vmem:[#allocation2 + $0x2c0] sm:$0xff]  ;;  %v232_v32 = vld [vmem:[#allocation2 + $0x338] sm:$0xff]  ;;  %v199_v34 = vld [vmem:[#allocation2 + $0x230] sm:$0xff] }
  0x33   :  { %1013 = vmatpush.msrb.mxu0 %v208_v62  ;;  %968 = vmatpush.msra.mxu1 %v145_v0  ;;  %v249_v33 = vld [vmem:[#allocation2 + $0x3c0] sm:$0xff]  ;;  %v216_v35 = vld [vmem:[#allocation2 + $0x2b8] sm:$0xff]  ;;  %v231_v36 = vld [vmem:[#allocation2 + $0x330] sm:$0xff] }
  0x34   :  { %1053 = vmatpush.msrb.mxu2 %v240_v63  ;;  %1008 = vmatpush.msra.mxu3 %v177_v1  ;;  %v248_v37 = vld [vmem:[#allocation2 + $0x3b8] sm:$0xff]  ;;  %v198_v38 = vld [vmem:[#allocation2 + $0x228] sm:$0xff]  ;;  %v215_v39 = vld [vmem:[#allocation2 + $0x2b0] sm:$0xff] }
  0x35   :  { %1014 = vmatpush.msrb.mxu0 %v207_v2  ;;  %1033 = vmatpush.msrb.mxu1 %v224_v3  ;;  %v230_v40 = vld [vmem:[#allocation2 + $0x328] sm:$0xff]  ;;  %v247_v41 = vld [vmem:[#allocation2 + $0x3b0] sm:$0xff]  ;;  %v197_v42 = vld [vmem:[#allocation2 + $0x220] sm:$0xff] }
  0x36   :  { %1054 = vmatpush.msrb.mxu2 %v239_v4  ;;  %1073 = vmatpush.msrb.mxu3 %v256_v5  ;;  %v214_v43 = vld [vmem:[#allocation2 + $0x2a8] sm:$0xff]  ;;  %v229_v44 = vld [vmem:[#allocation2 + $0x320] sm:$0xff]  ;;  %v196_v46 = vld [vmem:[#allocation2 + $0x218] sm:$0xff] }
  0x37   :  { %1015 = vmatpush.msrb.mxu0 %v206_v6  ;;  %1034 = vmatpush.msrb.mxu1 %v223_v7  ;;  %v246_v45 = vld [vmem:[#allocation2 + $0x3a8] sm:$0xff]  ;;  %v213_v47 = vld [vmem:[#allocation2 + $0x2a0] sm:$0xff]  ;;  %v228_v48 = vld [vmem:[#allocation2 + $0x318] sm:$0xff] }
  0x38   :  { %1055 = vmatpush.msrb.mxu2 %v238_v8  ;;  %1074 = vmatpush.msrb.mxu3 %v255_v9  ;;  %v245_v49 = vld [vmem:[#allocation2 + $0x3a0] sm:$0xff]  ;;  %v195_v50 = vld [vmem:[#allocation2 + $0x210] sm:$0xff]  ;;  %v212_v51 = vld [vmem:[#allocation2 + $0x298] sm:$0xff] }
  0x39   :  { %1016 = vmatpush.msrb.mxu0 %v205_v10  ;;  %1035 = vmatpush.msrb.mxu1 %v222_v11  ;;  %v227_v52 = vld [vmem:[#allocation2 + $0x310] sm:$0xff]  ;;  %v244_v53 = vld [vmem:[#allocation2 + $0x398] sm:$0xff]  ;;  %v194_v54 = vld [vmem:[#allocation2 + $0x208] sm:$0xff] }
  0x3a   :  { %1056 = vmatpush.msrb.mxu2 %v237_v12  ;;  %1075 = vmatpush.msrb.mxu3 %v254_v13  ;;  %v211_v55 = vld [vmem:[#allocation2 + $0x290] sm:$0xff]  ;;  %v226_v56 = vld [vmem:[#allocation2 + $0x308] sm:$0xff]  ;;  %v193_v59 = vld [vmem:[#allocation2 + $0x200] sm:$0xff] }
  0x3b   :  { %1017 = vmatpush.msrb.mxu0 %v204_v14  ;;  %1036 = vmatpush.msrb.mxu1 %v221_v15  ;;  %v243_v57 = vld [vmem:[#allocation2 + $0x390] sm:$0xff]  ;;  %v210_v60 = vld [vmem:[#allocation2 + $0x288] sm:$0xff]  ;;  %v225_v61 = vld [vmem:[#allocation2 + $0x300] sm:$0xff] }
  0x3c   :  { %1057 = vmatpush.msrb.mxu2 %v236_v16  ;;  %1076 = vmatpush.msrb.mxu3 %v253_v17  ;;  %v81_v58 = vld [vmem:[%s2293_s0 + $0x10] sm:$0xff]  ;;  %v242_v62 = vld [vmem:[#allocation2 + $0x388] sm:$0xff]  ;;  %v79_v63 = vld [vmem:[%s2293_s0] sm:$0xff] }
  0x3d   :  { %1018 = vmatpush.msrb.mxu0 %v203_v18  ;;  %1037 = vmatpush.msrb.mxu1 %v220_v19  ;;  %v82_v0 = vld [vmem:[%s2293_s0 + $0x18] sm:$0xff]  ;;  %v209_v3 = vld [vmem:[#allocation2 + $0x280] sm:$0xff]  ;;  %v80_v5 = vld [vmem:[%s2293_s0 + $0x8] sm:$0xff] }
  0x3e   :  { %1058 = vmatpush.msrb.mxu2 %v235_v20  ;;  %1077 = vmatpush.msrb.mxu3 %v252_v21  ;;  %v272_v1 = vld [vmem:[#allocation2 + $0x478] sm:$0xff]  ;;  %v241_v4 = vld [vmem:[#allocation2 + $0x380] sm:$0xff]  ;;  %v271_v6 = vld [vmem:[#allocation2 + $0x470] sm:$0xff] }
  0x3f   :  { %1019 = vmatpush.msrb.mxu0 %v202_v22  ;;  %1038 = vmatpush.msrb.mxu1 %v219_v23  ;;  %v304_v2 = vld [vmem:[#allocation2 + $0x578] sm:$0xff]  ;;  %v303_v8 = vld [vmem:[#allocation2 + $0x570] sm:$0xff]  ;;  %v270_v10 = vld [vmem:[#allocation2 + $0x468] sm:$0xff] }
  0x40   :  { %1059 = vmatpush.msrb.mxu2 %v234_v24  ;;  %1078 = vmatpush.msrb.mxu3 %v251_v25  ;;  %v288_v7 = vld [vmem:[#allocation2 + $0x4f8] sm:$0xff]  ;;  %v287_v11 = vld [vmem:[#allocation2 + $0x4f0] sm:$0xff]  ;;  %v302_v12 = vld [vmem:[#allocation2 + $0x568] sm:$0xff] }
  0x41   :  { %1020 = vmatpush.msrb.mxu0 %v201_v26  ;;  %1039 = vmatpush.msrb.mxu1 %v218_v27  ;;  %v320_v9 = vld [vmem:[#allocation2 + $0x5f8] sm:$0xff]  ;;  %v319_v13 = vld [vmem:[#allocation2 + $0x5f0] sm:$0xff]  ;;  %v269_v15 = vld [vmem:[#allocation2 + $0x460] sm:$0xff] }
  0x42   :  { %1060 = vmatpush.msrb.mxu2 %v233_v28  ;;  %1079 = vmatpush.msrb.mxu3 %v250_v29  ;;  %v85_v14 = vld [vmem:[%s2293_s0 + $0x30] sm:$0xff]  ;;  %v286_v16 = vld [vmem:[#allocation2 + $0x4e8] sm:$0xff]  ;;  %v301_v17 = vld [vmem:[#allocation2 + $0x560] sm:$0xff] }
  0x43   :  { %1021 = vmatpush.msrb.mxu0 %v200_v30  ;;  %1040 = vmatpush.msrb.mxu1 %v217_v31  ;;  %v318_v18 = vld [vmem:[#allocation2 + $0x5e8] sm:$0xff]  ;;  %v83_v19 = vld [vmem:[%s2293_s0 + $0x20] sm:$0xff]  ;;  %v86_v20 = vld [vmem:[%s2293_s0 + $0x38] sm:$0xff] }
  0x44   :  { %1061 = vmatpush.msrb.mxu2 %v232_v32  ;;  %1080 = vmatpush.msrb.mxu3 %v249_v33  ;;  %v268_v21 = vld [vmem:[#allocation2 + $0x458] sm:$0xff]  ;;  %v285_v22 = vld [vmem:[#allocation2 + $0x4e0] sm:$0xff]  ;;  %v84_v25 = vld [vmem:[%s2293_s0 + $0x28] sm:$0xff] }
  0x45   :  { %1022 = vmatpush.msrb.mxu0 %v199_v34  ;;  %1041 = vmatpush.msrb.mxu1 %v216_v35  ;;  %v300_v23 = vld [vmem:[#allocation2 + $0x558] sm:$0xff]  ;;  %v317_v24 = vld [vmem:[#allocation2 + $0x5e0] sm:$0xff]  ;;  %v267_v26 = vld [vmem:[#allocation2 + $0x450] sm:$0xff] }
  0x46   :  { %1062 = vmatpush.msrb.mxu2 %v231_v36  ;;  %1081 = vmatpush.msrb.mxu3 %v248_v37  ;;  %v284_v27 = vld [vmem:[#allocation2 + $0x4d8] sm:$0xff]  ;;  %v299_v28 = vld [vmem:[#allocation2 + $0x550] sm:$0xff]  ;;  %v266_v30 = vld [vmem:[#allocation2 + $0x448] sm:$0xff] }
  0x47   :  { %1023 = vmatpush.msrb.mxu0 %v198_v38  ;;  %1042 = vmatpush.msrb.mxu1 %v215_v39  ;;  %v316_v29 = vld [vmem:[#allocation2 + $0x5d8] sm:$0xff]  ;;  %v283_v31 = vld [vmem:[#allocation2 + $0x4d0] sm:$0xff]  ;;  %v298_v32 = vld [vmem:[#allocation2 + $0x548] sm:$0xff] }
  0x48   :  { %1063 = vmatpush.msrb.mxu2 %v230_v40  ;;  %1082 = vmatpush.msrb.mxu3 %v247_v41  ;;  %v315_v33 = vld [vmem:[#allocation2 + $0x5d0] sm:$0xff]  ;;  %v265_v34 = vld [vmem:[#allocation2 + $0x440] sm:$0xff]  ;;  %v282_v35 = vld [vmem:[#allocation2 + $0x4c8] sm:$0xff] }
  0x49   :  { %1024 = vmatpush.msrb.mxu0 %v197_v42  ;;  %1043 = vmatpush.msrb.mxu1 %v214_v43  ;;  %v297_v36 = vld [vmem:[#allocation2 + $0x540] sm:$0xff]  ;;  %v314_v37 = vld [vmem:[#allocation2 + $0x5c8] sm:$0xff]  ;;  %v264_v38 = vld [vmem:[#allocation2 + $0x438] sm:$0xff] }
  0x4a   :  { %1064 = vmatpush.msrb.mxu2 %v229_v44  ;;  %1083 = vmatpush.msrb.mxu3 %v246_v45  ;;  %v281_v39 = vld [vmem:[#allocation2 + $0x4c0] sm:$0xff]  ;;  %v296_v40 = vld [vmem:[#allocation2 + $0x538] sm:$0xff]  ;;  %v263_v42 = vld [vmem:[#allocation2 + $0x430] sm:$0xff] }
  0x4b   :  { %1025 = vmatpush.msrb.mxu0 %v196_v46  ;;  %1044 = vmatpush.msrb.mxu1 %v213_v47  ;;  %v313_v41 = vld [vmem:[#allocation2 + $0x5c0] sm:$0xff]  ;;  %v280_v43 = vld [vmem:[#allocation2 + $0x4b8] sm:$0xff]  ;;  %v295_v44 = vld [vmem:[#allocation2 + $0x530] sm:$0xff] }
  0x4c   :  { %1065 = vmatpush.msrb.mxu2 %v228_v48  ;;  %1084 = vmatpush.msrb.mxu3 %v245_v49  ;;  %v312_v45 = vld [vmem:[#allocation2 + $0x5b8] sm:$0xff]  ;;  %v262_v46 = vld [vmem:[#allocation2 + $0x428] sm:$0xff]  ;;  %v279_v47 = vld [vmem:[#allocation2 + $0x4b0] sm:$0xff] }
  0x4d   :  { %1026 = vmatpush.msrb.mxu0 %v195_v50  ;;  %1045 = vmatpush.msrb.mxu1 %v212_v51  ;;  %v294_v48 = vld [vmem:[#allocation2 + $0x528] sm:$0xff]  ;;  %v311_v49 = vld [vmem:[#allocation2 + $0x5b0] sm:$0xff]  ;;  %v261_v50 = vld [vmem:[#allocation2 + $0x420] sm:$0xff] }
  0x4e   :  { %1066 = vmatpush.msrb.mxu2 %v227_v52  ;;  %1085 = vmatpush.msrb.mxu3 %v244_v53  ;;  %v278_v51 = vld [vmem:[#allocation2 + $0x4a8] sm:$0xff]  ;;  %v293_v52 = vld [vmem:[#allocation2 + $0x520] sm:$0xff] }
  0x4f   :  { %1027 = vmatpush.msrb.mxu0 %v194_v54  ;;  %1046 = vmatpush.msrb.mxu1 %v211_v55  ;;  %v310_v53 = vld [vmem:[#allocation2 + $0x5a8] sm:$0xff]  ;;  %v260_v54 = vld [vmem:[#allocation2 + $0x418] sm:$0xff]  ;;  %v277_v55 = vld [vmem:[#allocation2 + $0x4a0] sm:$0xff] }
  0x50   :  { %1067 = vmatpush.msrb.mxu2 %v226_v56  ;;  %1086 = vmatpush.msrb.mxu3 %v243_v57  ;;  %v292_v56 = vld [vmem:[#allocation2 + $0x518] sm:$0xff]  ;;  %v309_v57 = vld [vmem:[#allocation2 + $0x5a0] sm:$0xff] }
  0x51   :  { %989 = vmatmul.f32.vlgmr.msra.gmra.mxu2 %v81_v58  ;;  %1028 = vmatpush.msrb.mxu0 %v193_v59  ;;  %v259_v58 = vld [vmem:[#allocation2 + $0x410] sm:$0xff]  ;;  %v276_v59 = vld [vmem:[#allocation2 + $0x498] sm:$0xff] }
  0x52   :  { %1047 = vmatpush.msrb.mxu1 %v210_v60  ;;  %1068 = vmatpush.msrb.mxu2 %v225_v61  ;;  %v291_v60 = vld [vmem:[#allocation2 + $0x510] sm:$0xff]  ;;  %v308_v61 = vld [vmem:[#allocation2 + $0x598] sm:$0xff] }
  0x53   :  { %1087 = vmatpush.msrb.mxu3 %v242_v62  ;;  %949 = vmatmul.f32.vlgmr.msra.gmra.mxu0 %v79_v63  ;;  %v258_v62 = vld [vmem:[#allocation2 + $0x408] sm:$0xff]  ;;  %v275_v63 = vld [vmem:[#allocation2 + $0x490] sm:$0xff] }
  0x54   :  { %1009 = vmatmul.f32.vlgmr.msra.gmra.mxu3 %v82_v0  ;;  %1093 = vmatpush.msra.mxu0 %v272_v1  ;;  %v290_v0 = vld [vmem:[#allocation2 + $0x508] sm:$0xff]  ;;  %v307_v1 = vld [vmem:[#allocation2 + $0x590] sm:$0xff] }
  0x55   :  { %1133 = vmatpush.msra.mxu2 %v304_v2  ;;  %1048 = vmatpush.msrb.mxu1 %v209_v3  ;;  %v257_v2 = vld [vmem:[#allocation2 + $0x400] sm:$0xff]  ;;  %v274_v3 = vld [vmem:[#allocation2 + $0x488] sm:$0xff] }
  0x56   :  { %1088 = vmatpush.msrb.mxu3 %v241_v4  ;;  %969 = vmatmul.f32.vlgmr.msra.gmra.mxu1 %v80_v5  ;;  %v289_v4 = vld [vmem:[#allocation2 + $0x500] sm:$0xff]  ;;  %v306_v5 = vld [vmem:[#allocation2 + $0x588] sm:$0xff] }
  0x57   :  { %1094 = vmatpush.msra.mxu0 %v271_v6  ;;  %1113 = vmatpush.msra.mxu1 %v288_v7  ;;  %v87_v6 = vld [vmem:[%s2293_s0 + $0x40] sm:$0xff]  ;;  %v89_v7 = vld [vmem:[%s2293_s0 + $0x50] sm:$0xff] }
  0x58   :  { %1134 = vmatpush.msra.mxu2 %v303_v8  ;;  %1153 = vmatpush.msra.mxu3 %v320_v9  ;;  %v336_v8 = vld [vmem:[#allocation2 + $0x678] sm:$0xff] }
  0x59   :  { %1095 = vmatpush.msra.mxu0 %v270_v10  ;;  %1114 = vmatpush.msra.mxu1 %v287_v11  ;;  %v368_v9 = vld [vmem:[#allocation2 + $0x778] sm:$0xff]  ;;  %v273_v10 = vld [vmem:[#allocation2 + $0x480] sm:$0xff] }
  0x5a   :  { %1135 = vmatpush.msra.mxu2 %v302_v12  ;;  %1154 = vmatpush.msra.mxu3 %v319_v13  ;;  %v305_v11 = vld [vmem:[#allocation2 + $0x580] sm:$0xff]  ;;  %v88_v12 = vld [vmem:[%s2293_s0 + $0x48] sm:$0xff]  ;;  %v90_v13 = vld [vmem:[%s2293_s0 + $0x58] sm:$0xff] }
  0x5b   :  { %1069 = vmatmul.f32.vlgmr.msrb.gmra.mxu2 %v85_v14  ;;  %1096 = vmatpush.msra.mxu0 %v269_v15  ;;  %v335_v14 = vld [vmem:[#allocation2 + $0x670] sm:$0xff]  ;;  %v352_v15 = vld [vmem:[#allocation2 + $0x6f8] sm:$0xff] }
  0x5c   :  { %1115 = vmatpush.msra.mxu1 %v286_v16  ;;  %1136 = vmatpush.msra.mxu2 %v301_v17  ;;  %v367_v16 = vld [vmem:[#allocation2 + $0x770] sm:$0xff]  ;;  %v384_v17 = vld [vmem:[#allocation2 + $0x7f8] sm:$0xff] }
  0x5d   :  { %1155 = vmatpush.msra.mxu3 %v318_v18  ;;  %1029 = vmatmul.f32.vlgmr.msrb.gmra.mxu0 %v83_v19  ;;  %v334_v18 = vld [vmem:[#allocation2 + $0x668] sm:$0xff]  ;;  %v351_v19 = vld [vmem:[#allocation2 + $0x6f0] sm:$0xff] }
  0x5e   :  { %1089 = vmatmul.f32.vlgmr.msrb.gmra.mxu3 %v86_v20  ;;  %1097 = vmatpush.msra.mxu0 %v268_v21  ;;  %v366_v20 = vld [vmem:[#allocation2 + $0x768] sm:$0xff]  ;;  %v383_v21 = vld [vmem:[#allocation2 + $0x7f0] sm:$0xff] }
  0x5f   :  { %1116 = vmatpush.msra.mxu1 %v285_v22  ;;  %1137 = vmatpush.msra.mxu2 %v300_v23  ;;  %v333_v22 = vld [vmem:[#allocation2 + $0x660] sm:$0xff]  ;;  %v350_v23 = vld [vmem:[#allocation2 + $0x6e8] sm:$0xff] }
  0x60   :  { %1156 = vmatpush.msra.mxu3 %v317_v24  ;;  %1049 = vmatmul.f32.vlgmr.msrb.gmra.mxu1 %v84_v25  ;;  %v365_v24 = vld [vmem:[#allocation2 + $0x760] sm:$0xff]  ;;  %v382_v25 = vld [vmem:[#allocation2 + $0x7e8] sm:$0xff] }
  0x61   :  { %1098 = vmatpush.msra.mxu0 %v267_v26  ;;  %1117 = vmatpush.msra.mxu1 %v284_v27  ;;  %v332_v26 = vld [vmem:[#allocation2 + $0x658] sm:$0xff]  ;;  %v349_v27 = vld [vmem:[#allocation2 + $0x6e0] sm:$0xff] }
  0x62   :  { %1138 = vmatpush.msra.mxu2 %v299_v28  ;;  %1157 = vmatpush.msra.mxu3 %v316_v29  ;;  %v364_v28 = vld [vmem:[#allocation2 + $0x758] sm:$0xff]  ;;  %v381_v29 = vld [vmem:[#allocation2 + $0x7e0] sm:$0xff] }
  0x63   :  { %1099 = vmatpush.msra.mxu0 %v266_v30  ;;  %1118 = vmatpush.msra.mxu1 %v283_v31  ;;  %v331_v30 = vld [vmem:[#allocation2 + $0x650] sm:$0xff]  ;;  %v348_v31 = vld [vmem:[#allocation2 + $0x6d8] sm:$0xff] }
  0x64   :  { %1139 = vmatpush.msra.mxu2 %v298_v32  ;;  %1158 = vmatpush.msra.mxu3 %v315_v33  ;;  %v363_v32 = vld [vmem:[#allocation2 + $0x750] sm:$0xff]  ;;  %v380_v33 = vld [vmem:[#allocation2 + $0x7d8] sm:$0xff] }
  0x65   :  { %1100 = vmatpush.msra.mxu0 %v265_v34  ;;  %1119 = vmatpush.msra.mxu1 %v282_v35  ;;  %v330_v34 = vld [vmem:[#allocation2 + $0x648] sm:$0xff]  ;;  %v347_v35 = vld [vmem:[#allocation2 + $0x6d0] sm:$0xff] }
  0x66   :  { %1140 = vmatpush.msra.mxu2 %v297_v36  ;;  %1159 = vmatpush.msra.mxu3 %v314_v37  ;;  %v362_v36 = vld [vmem:[#allocation2 + $0x748] sm:$0xff]  ;;  %v379_v37 = vld [vmem:[#allocation2 + $0x7d0] sm:$0xff] }
  0x67   :  { %1101 = vmatpush.msra.mxu0 %v264_v38  ;;  %1120 = vmatpush.msra.mxu1 %v281_v39  ;;  %v329_v38 = vld [vmem:[#allocation2 + $0x640] sm:$0xff]  ;;  %v346_v39 = vld [vmem:[#allocation2 + $0x6c8] sm:$0xff] }
  0x68   :  { %1141 = vmatpush.msra.mxu2 %v296_v40  ;;  %1160 = vmatpush.msra.mxu3 %v313_v41  ;;  %v361_v40 = vld [vmem:[#allocation2 + $0x740] sm:$0xff]  ;;  %v378_v41 = vld [vmem:[#allocation2 + $0x7c8] sm:$0xff] }
  0x69   :  { %1102 = vmatpush.msra.mxu0 %v263_v42  ;;  %1121 = vmatpush.msra.mxu1 %v280_v43  ;;  %v328_v42 = vld [vmem:[#allocation2 + $0x638] sm:$0xff]  ;;  %v345_v43 = vld [vmem:[#allocation2 + $0x6c0] sm:$0xff] }
  0x6a   :  { %1142 = vmatpush.msra.mxu2 %v295_v44  ;;  %1161 = vmatpush.msra.mxu3 %v312_v45  ;;  %v360_v44 = vld [vmem:[#allocation2 + $0x738] sm:$0xff]  ;;  %v377_v45 = vld [vmem:[#allocation2 + $0x7c0] sm:$0xff] }
  0x6b   :  { %1103 = vmatpush.msra.mxu0 %v262_v46  ;;  %1122 = vmatpush.msra.mxu1 %v279_v47  ;;  %v327_v46 = vld [vmem:[#allocation2 + $0x630] sm:$0xff]  ;;  %v344_v47 = vld [vmem:[#allocation2 + $0x6b8] sm:$0xff] }
  0x6c   :  { %1143 = vmatpush.msra.mxu2 %v294_v48  ;;  %1162 = vmatpush.msra.mxu3 %v311_v49  ;;  %v359_v48 = vld [vmem:[#allocation2 + $0x730] sm:$0xff]  ;;  %v376_v49 = vld [vmem:[#allocation2 + $0x7b8] sm:$0xff] }
  0x6d   :  { %1104 = vmatpush.msra.mxu0 %v261_v50  ;;  %1123 = vmatpush.msra.mxu1 %v278_v51  ;;  %v326_v50 = vld [vmem:[#allocation2 + $0x628] sm:$0xff]  ;;  %v343_v51 = vld [vmem:[#allocation2 + $0x6b0] sm:$0xff] }
  0x6e   :  { %1144 = vmatpush.msra.mxu2 %v293_v52  ;;  %1163 = vmatpush.msra.mxu3 %v310_v53  ;;  %v358_v52 = vld [vmem:[#allocation2 + $0x728] sm:$0xff]  ;;  %v375_v53 = vld [vmem:[#allocation2 + $0x7b0] sm:$0xff] }
  0x6f   :  { %1105 = vmatpush.msra.mxu0 %v260_v54  ;;  %1124 = vmatpush.msra.mxu1 %v277_v55  ;;  %v325_v54 = vld [vmem:[#allocation2 + $0x620] sm:$0xff]  ;;  %v342_v55 = vld [vmem:[#allocation2 + $0x6a8] sm:$0xff] }
  0x70   :  { %1145 = vmatpush.msra.mxu2 %v292_v56  ;;  %1164 = vmatpush.msra.mxu3 %v309_v57  ;;  %v357_v56 = vld [vmem:[#allocation2 + $0x720] sm:$0xff]  ;;  %v374_v57 = vld [vmem:[#allocation2 + $0x7a8] sm:$0xff] }
  0x71   :  { %1106 = vmatpush.msra.mxu0 %v259_v58  ;;  %1125 = vmatpush.msra.mxu1 %v276_v59  ;;  %v324_v58 = vld [vmem:[#allocation2 + $0x618] sm:$0xff]  ;;  %v341_v59 = vld [vmem:[#allocation2 + $0x6a0] sm:$0xff] }
  0x72   :  { %1146 = vmatpush.msra.mxu2 %v291_v60  ;;  %1165 = vmatpush.msra.mxu3 %v308_v61  ;;  %v356_v60 = vld [vmem:[#allocation2 + $0x718] sm:$0xff]  ;;  %v373_v61 = vld [vmem:[#allocation2 + $0x7a0] sm:$0xff] }
  0x73   :  { %1107 = vmatpush.msra.mxu0 %v258_v62  ;;  %1126 = vmatpush.msra.mxu1 %v275_v63  ;;  %v323_v62 = vld [vmem:[#allocation2 + $0x610] sm:$0xff]  ;;  %v340_v63 = vld [vmem:[#allocation2 + $0x698] sm:$0xff] }
  0x74   :  { %1147 = vmatpush.msra.mxu2 %v290_v0  ;;  %1166 = vmatpush.msra.mxu3 %v307_v1  ;;  %v355_v0 = vld [vmem:[#allocation2 + $0x710] sm:$0xff]  ;;  %v372_v1 = vld [vmem:[#allocation2 + $0x798] sm:$0xff] }
  0x75   :  { %1108 = vmatpush.msra.mxu0 %v257_v2  ;;  %1127 = vmatpush.msra.mxu1 %v274_v3  ;;  %v322_v2 = vld [vmem:[#allocation2 + $0x608] sm:$0xff]  ;;  %v339_v3 = vld [vmem:[#allocation2 + $0x690] sm:$0xff] }
  0x76   :  { %1148 = vmatpush.msra.mxu2 %v289_v4  ;;  %1167 = vmatpush.msra.mxu3 %v306_v5  ;;  %v354_v4 = vld [vmem:[#allocation2 + $0x708] sm:$0xff]  ;;  %v371_v5 = vld [vmem:[#allocation2 + $0x790] sm:$0xff] }
  0x77   :  { %1109 = vmatmul.f32.vlgmr.msra.gmra.mxu0 %v87_v6  ;;  %1149 = vmatmul.f32.vlgmr.msra.gmra.mxu2 %v89_v7  ;;  %v321_v6 = vld [vmem:[#allocation2 + $0x600] sm:$0xff]  ;;  %v338_v7 = vld [vmem:[#allocation2 + $0x688] sm:$0xff] }
  0x78   :  { %1173 = vmatpush.msrb.mxu0 %v336_v8  ;;  %1213 = vmatpush.msrb.mxu2 %v368_v9  ;;  %v353_v8 = vld [vmem:[#allocation2 + $0x700] sm:$0xff]  ;;  %v370_v9 = vld [vmem:[#allocation2 + $0x788] sm:$0xff] }
  0x79   :  { %1128 = vmatpush.msra.mxu1 %v273_v10  ;;  %1168 = vmatpush.msra.mxu3 %v305_v11  ;;  %v91_v10 = vld [vmem:[%s2293_s0 + $0x60] sm:$0xff]  ;;  %v93_v11 = vld [vmem:[%s2293_s0 + $0x70] sm:$0xff] }
  0x7a   :  { %1129 = vmatmul.f32.vlgmr.msra.gmra.mxu1 %v88_v12  ;;  %1169 = vmatmul.f32.vlgmr.msra.gmra.mxu3 %v90_v13  ;;  %v400_v12 = vld [vmem:[#allocation2 + $0x878] sm:$0xff] }
  0x7b   :  { %1174 = vmatpush.msrb.mxu0 %v335_v14  ;;  %1193 = vmatpush.msrb.mxu1 %v352_v15  ;;  %v432_v13 = vld [vmem:[#allocation2 + $0x978] sm:$0xff]  ;;  %v337_v14 = vld [vmem:[#allocation2 + $0x680] sm:$0xff] }
  0x7c   :  { %1214 = vmatpush.msrb.mxu2 %v367_v16  ;;  %1233 = vmatpush.msrb.mxu3 %v384_v17  ;;  %v369_v15 = vld [vmem:[#allocation2 + $0x780] sm:$0xff]  ;;  %v92_v16 = vld [vmem:[%s2293_s0 + $0x68] sm:$0xff]  ;;  %v94_v17 = vld [vmem:[%s2293_s0 + $0x78] sm:$0xff] }
  0x7d   :  { %1175 = vmatpush.msrb.mxu0 %v334_v18  ;;  %1194 = vmatpush.msrb.mxu1 %v351_v19  ;;  %v399_v18 = vld [vmem:[#allocation2 + $0x870] sm:$0xff]  ;;  %v416_v19 = vld [vmem:[#allocation2 + $0x8f8] sm:$0xff] }
  0x7e   :  { %1215 = vmatpush.msrb.mxu2 %v366_v20  ;;  %1234 = vmatpush.msrb.mxu3 %v383_v21  ;;  %v431_v20 = vld [vmem:[#allocation2 + $0x970] sm:$0xff]  ;;  %v448_v21 = vld [vmem:[#allocation2 + $0x9f8] sm:$0xff] }
  0x7f   :  { %1176 = vmatpush.msrb.mxu0 %v333_v22  ;;  %1195 = vmatpush.msrb.mxu1 %v350_v23  ;;  %v398_v22 = vld [vmem:[#allocation2 + $0x868] sm:$0xff]  ;;  %v415_v23 = vld [vmem:[#allocation2 + $0x8f0] sm:$0xff] }
  0x80   :  { %1216 = vmatpush.msrb.mxu2 %v365_v24  ;;  %1235 = vmatpush.msrb.mxu3 %v382_v25  ;;  %v430_v24 = vld [vmem:[#allocation2 + $0x968] sm:$0xff]  ;;  %v447_v25 = vld [vmem:[#allocation2 + $0x9f0] sm:$0xff] }
  0x81   :  { %1177 = vmatpush.msrb.mxu0 %v332_v26  ;;  %1196 = vmatpush.msrb.mxu1 %v349_v27  ;;  %v397_v26 = vld [vmem:[#allocation2 + $0x860] sm:$0xff]  ;;  %v414_v27 = vld [vmem:[#allocation2 + $0x8e8] sm:$0xff] }
  0x82   :  { %1217 = vmatpush.msrb.mxu2 %v364_v28  ;;  %1236 = vmatpush.msrb.mxu3 %v381_v29  ;;  %v429_v28 = vld [vmem:[#allocation2 + $0x960] sm:$0xff]  ;;  %v446_v29 = vld [vmem:[#allocation2 + $0x9e8] sm:$0xff] }
  0x83   :  { %1178 = vmatpush.msrb.mxu0 %v331_v30  ;;  %1197 = vmatpush.msrb.mxu1 %v348_v31  ;;  %v396_v30 = vld [vmem:[#allocation2 + $0x858] sm:$0xff]  ;;  %v413_v31 = vld [vmem:[#allocation2 + $0x8e0] sm:$0xff] }
  0x84   :  { %1218 = vmatpush.msrb.mxu2 %v363_v32  ;;  %1237 = vmatpush.msrb.mxu3 %v380_v33  ;;  %v428_v32 = vld [vmem:[#allocation2 + $0x958] sm:$0xff]  ;;  %v445_v33 = vld [vmem:[#allocation2 + $0x9e0] sm:$0xff] }
  0x85   :  { %1179 = vmatpush.msrb.mxu0 %v330_v34  ;;  %1198 = vmatpush.msrb.mxu1 %v347_v35  ;;  %v395_v34 = vld [vmem:[#allocation2 + $0x850] sm:$0xff]  ;;  %v412_v35 = vld [vmem:[#allocation2 + $0x8d8] sm:$0xff] }
  0x86   :  { %1219 = vmatpush.msrb.mxu2 %v362_v36  ;;  %1238 = vmatpush.msrb.mxu3 %v379_v37  ;;  %v427_v36 = vld [vmem:[#allocation2 + $0x950] sm:$0xff]  ;;  %v444_v37 = vld [vmem:[#allocation2 + $0x9d8] sm:$0xff] }
  0x87   :  { %1180 = vmatpush.msrb.mxu0 %v329_v38  ;;  %1199 = vmatpush.msrb.mxu1 %v346_v39  ;;  %v394_v38 = vld [vmem:[#allocation2 + $0x848] sm:$0xff]  ;;  %v411_v39 = vld [vmem:[#allocation2 + $0x8d0] sm:$0xff] }
  0x88   :  { %1220 = vmatpush.msrb.mxu2 %v361_v40  ;;  %1239 = vmatpush.msrb.mxu3 %v378_v41  ;;  %v426_v40 = vld [vmem:[#allocation2 + $0x948] sm:$0xff]  ;;  %v443_v41 = vld [vmem:[#allocation2 + $0x9d0] sm:$0xff] }
  0x89   :  { %1181 = vmatpush.msrb.mxu0 %v328_v42  ;;  %1200 = vmatpush.msrb.mxu1 %v345_v43  ;;  %v393_v42 = vld [vmem:[#allocation2 + $0x840] sm:$0xff]  ;;  %v410_v43 = vld [vmem:[#allocation2 + $0x8c8] sm:$0xff] }
  0x8a   :  { %1221 = vmatpush.msrb.mxu2 %v360_v44  ;;  %1240 = vmatpush.msrb.mxu3 %v377_v45  ;;  %v425_v44 = vld [vmem:[#allocation2 + $0x940] sm:$0xff]  ;;  %v442_v45 = vld [vmem:[#allocation2 + $0x9c8] sm:$0xff] }
  0x8b   :  { %1182 = vmatpush.msrb.mxu0 %v327_v46  ;;  %1201 = vmatpush.msrb.mxu1 %v344_v47  ;;  %v392_v46 = vld [vmem:[#allocation2 + $0x838] sm:$0xff]  ;;  %v409_v47 = vld [vmem:[#allocation2 + $0x8c0] sm:$0xff] }
  0x8c   :  { %1222 = vmatpush.msrb.mxu2 %v359_v48  ;;  %1241 = vmatpush.msrb.mxu3 %v376_v49  ;;  %v424_v48 = vld [vmem:[#allocation2 + $0x938] sm:$0xff]  ;;  %v441_v49 = vld [vmem:[#allocation2 + $0x9c0] sm:$0xff] }
  0x8d   :  { %1183 = vmatpush.msrb.mxu0 %v326_v50  ;;  %1202 = vmatpush.msrb.mxu1 %v343_v51  ;;  %v391_v50 = vld [vmem:[#allocation2 + $0x830] sm:$0xff]  ;;  %v408_v51 = vld [vmem:[#allocation2 + $0x8b8] sm:$0xff] }
  0x8e   :  { %1223 = vmatpush.msrb.mxu2 %v358_v52  ;;  %1242 = vmatpush.msrb.mxu3 %v375_v53  ;;  %v423_v52 = vld [vmem:[#allocation2 + $0x930] sm:$0xff]  ;;  %v440_v53 = vld [vmem:[#allocation2 + $0x9b8] sm:$0xff] }
  0x8f   :  { %1184 = vmatpush.msrb.mxu0 %v325_v54  ;;  %1203 = vmatpush.msrb.mxu1 %v342_v55  ;;  %v390_v54 = vld [vmem:[#allocation2 + $0x828] sm:$0xff]  ;;  %v407_v55 = vld [vmem:[#allocation2 + $0x8b0] sm:$0xff] }
  0x90   :  { %1224 = vmatpush.msrb.mxu2 %v357_v56  ;;  %1243 = vmatpush.msrb.mxu3 %v374_v57  ;;  %v422_v56 = vld [vmem:[#allocation2 + $0x928] sm:$0xff]  ;;  %v439_v57 = vld [vmem:[#allocation2 + $0x9b0] sm:$0xff] }
  0x91   :  { %1185 = vmatpush.msrb.mxu0 %v324_v58  ;;  %1204 = vmatpush.msrb.mxu1 %v341_v59  ;;  %v389_v58 = vld [vmem:[#allocation2 + $0x820] sm:$0xff]  ;;  %v406_v59 = vld [vmem:[#allocation2 + $0x8a8] sm:$0xff] }
  0x92   :  { %1225 = vmatpush.msrb.mxu2 %v356_v60  ;;  %1244 = vmatpush.msrb.mxu3 %v373_v61  ;;  %v421_v60 = vld [vmem:[#allocation2 + $0x920] sm:$0xff]  ;;  %v438_v61 = vld [vmem:[#allocation2 + $0x9a8] sm:$0xff] }
  0x93   :  { %1186 = vmatpush.msrb.mxu0 %v323_v62  ;;  %1205 = vmatpush.msrb.mxu1 %v340_v63  ;;  %v388_v62 = vld [vmem:[#allocation2 + $0x818] sm:$0xff]  ;;  %v405_v63 = vld [vmem:[#allocation2 + $0x8a0] sm:$0xff] }
  0x94   :  { %1226 = vmatpush.msrb.mxu2 %v355_v0  ;;  %1245 = vmatpush.msrb.mxu3 %v372_v1  ;;  %v420_v0 = vld [vmem:[#allocation2 + $0x918] sm:$0xff]  ;;  %v437_v1 = vld [vmem:[#allocation2 + $0x9a0] sm:$0xff] }
  0x95   :  { %1187 = vmatpush.msrb.mxu0 %v322_v2  ;;  %1206 = vmatpush.msrb.mxu1 %v339_v3  ;;  %v387_v2 = vld [vmem:[#allocation2 + $0x810] sm:$0xff]  ;;  %v404_v3 = vld [vmem:[#allocation2 + $0x898] sm:$0xff] }
  0x96   :  { %1227 = vmatpush.msrb.mxu2 %v354_v4  ;;  %1246 = vmatpush.msrb.mxu3 %v371_v5  ;;  %v419_v4 = vld [vmem:[#allocation2 + $0x910] sm:$0xff]  ;;  %v436_v5 = vld [vmem:[#allocation2 + $0x998] sm:$0xff] }
  0x97   :  { %1188 = vmatpush.msrb.mxu0 %v321_v6  ;;  %1207 = vmatpush.msrb.mxu1 %v338_v7  ;;  %v386_v6 = vld [vmem:[#allocation2 + $0x808] sm:$0xff]  ;;  %v403_v7 = vld [vmem:[#allocation2 + $0x890] sm:$0xff] }
  0x98   :  { %1228 = vmatpush.msrb.mxu2 %v353_v8  ;;  %1247 = vmatpush.msrb.mxu3 %v370_v9  ;;  %v418_v8 = vld [vmem:[#allocation2 + $0x908] sm:$0xff]  ;;  %v435_v9 = vld [vmem:[#allocation2 + $0x990] sm:$0xff] }
  0x99   :  { %1189 = vmatmul.f32.vlgmr.msrb.gmra.mxu0 %v91_v10  ;;  %1229 = vmatmul.f32.vlgmr.msrb.gmra.mxu2 %v93_v11  ;;  %v385_v10 = vld [vmem:[#allocation2 + $0x800] sm:$0xff]  ;;  %v402_v11 = vld [vmem:[#allocation2 + $0x888] sm:$0xff] }
  0x9a   :  { %1253 = vmatpush.msra.mxu0 %v400_v12  ;;  %1293 = vmatpush.msra.mxu2 %v432_v13  ;;  %v417_v12 = vld [vmem:[#allocation2 + $0x900] sm:$0xff]  ;;  %v434_v13 = vld [vmem:[#allocation2 + $0x988] sm:$0xff] }
  0x9b   :  { %1208 = vmatpush.msrb.mxu1 %v337_v14  ;;  %1248 = vmatpush.msrb.mxu3 %v369_v15  ;;  %v95_v14 = vld [vmem:[%s2293_s0 + $0x80] sm:$0xff]  ;;  %v97_v15 = vld [vmem:[%s2293_s0 + $0x90] sm:$0xff] }
  0x9c   :  { %1209 = vmatmul.f32.vlgmr.msrb.gmra.mxu1 %v92_v16  ;;  %1249 = vmatmul.f32.vlgmr.msrb.gmra.mxu3 %v94_v17  ;;  %v464_v16 = vld [vmem:[#allocation2 + $0xa78] sm:$0xff] }
  0x9d   :  { %1254 = vmatpush.msra.mxu0 %v399_v18  ;;  %1273 = vmatpush.msra.mxu1 %v416_v19  ;;  %v496_v17 = vld [vmem:[#allocation2 + $0xb78] sm:$0xff]  ;;  %v401_v18 = vld [vmem:[#allocation2 + $0x880] sm:$0xff] }
  0x9e   :  { %1294 = vmatpush.msra.mxu2 %v431_v20  ;;  %1313 = vmatpush.msra.mxu3 %v448_v21  ;;  %v433_v19 = vld [vmem:[#allocation2 + $0x980] sm:$0xff]  ;;  %v96_v20 = vld [vmem:[%s2293_s0 + $0x88] sm:$0xff]  ;;  %v98_v21 = vld [vmem:[%s2293_s0 + $0x98] sm:$0xff] }
  0x9f   :  { %1255 = vmatpush.msra.mxu0 %v398_v22  ;;  %1274 = vmatpush.msra.mxu1 %v415_v23  ;;  %v463_v22 = vld [vmem:[#allocation2 + $0xa70] sm:$0xff]  ;;  %v480_v23 = vld [vmem:[#allocation2 + $0xaf8] sm:$0xff] }
  0xa0   :  { %1295 = vmatpush.msra.mxu2 %v430_v24  ;;  %1314 = vmatpush.msra.mxu3 %v447_v25  ;;  %v495_v24 = vld [vmem:[#allocation2 + $0xb70] sm:$0xff]  ;;  %v512_v25 = vld [vmem:[#allocation2 + $0xbf8] sm:$0xff] }
  0xa1   :  { %1256 = vmatpush.msra.mxu0 %v397_v26  ;;  %1275 = vmatpush.msra.mxu1 %v414_v27  ;;  %v462_v26 = vld [vmem:[#allocation2 + $0xa68] sm:$0xff]  ;;  %v479_v27 = vld [vmem:[#allocation2 + $0xaf0] sm:$0xff] }
  0xa2   :  { %1296 = vmatpush.msra.mxu2 %v429_v28  ;;  %1315 = vmatpush.msra.mxu3 %v446_v29  ;;  %v494_v28 = vld [vmem:[#allocation2 + $0xb68] sm:$0xff]  ;;  %v511_v29 = vld [vmem:[#allocation2 + $0xbf0] sm:$0xff] }
  0xa3   :  { %1257 = vmatpush.msra.mxu0 %v396_v30  ;;  %1276 = vmatpush.msra.mxu1 %v413_v31  ;;  %v461_v30 = vld [vmem:[#allocation2 + $0xa60] sm:$0xff]  ;;  %v478_v31 = vld [vmem:[#allocation2 + $0xae8] sm:$0xff] }
  0xa4   :  { %1297 = vmatpush.msra.mxu2 %v428_v32  ;;  %1316 = vmatpush.msra.mxu3 %v445_v33  ;;  %v493_v32 = vld [vmem:[#allocation2 + $0xb60] sm:$0xff]  ;;  %v510_v33 = vld [vmem:[#allocation2 + $0xbe8] sm:$0xff] }
  0xa5   :  { %1258 = vmatpush.msra.mxu0 %v395_v34  ;;  %1277 = vmatpush.msra.mxu1 %v412_v35  ;;  %v460_v34 = vld [vmem:[#allocation2 + $0xa58] sm:$0xff]  ;;  %v477_v35 = vld [vmem:[#allocation2 + $0xae0] sm:$0xff] }
  0xa6   :  { %1298 = vmatpush.msra.mxu2 %v427_v36  ;;  %1317 = vmatpush.msra.mxu3 %v444_v37  ;;  %v492_v36 = vld [vmem:[#allocation2 + $0xb58] sm:$0xff]  ;;  %v509_v37 = vld [vmem:[#allocation2 + $0xbe0] sm:$0xff] }
  0xa7   :  { %1259 = vmatpush.msra.mxu0 %v394_v38  ;;  %1278 = vmatpush.msra.mxu1 %v411_v39  ;;  %v459_v38 = vld [vmem:[#allocation2 + $0xa50] sm:$0xff]  ;;  %v476_v39 = vld [vmem:[#allocation2 + $0xad8] sm:$0xff] }
  0xa8   :  { %1299 = vmatpush.msra.mxu2 %v426_v40  ;;  %1318 = vmatpush.msra.mxu3 %v443_v41  ;;  %v491_v40 = vld [vmem:[#allocation2 + $0xb50] sm:$0xff]  ;;  %v508_v41 = vld [vmem:[#allocation2 + $0xbd8] sm:$0xff] }
  0xa9   :  { %1260 = vmatpush.msra.mxu0 %v393_v42  ;;  %1279 = vmatpush.msra.mxu1 %v410_v43  ;;  %v458_v42 = vld [vmem:[#allocation2 + $0xa48] sm:$0xff]  ;;  %v475_v43 = vld [vmem:[#allocation2 + $0xad0] sm:$0xff] }
  0xaa   :  { %1300 = vmatpush.msra.mxu2 %v425_v44  ;;  %1319 = vmatpush.msra.mxu3 %v442_v45  ;;  %v490_v44 = vld [vmem:[#allocation2 + $0xb48] sm:$0xff]  ;;  %v507_v45 = vld [vmem:[#allocation2 + $0xbd0] sm:$0xff] }
  0xab   :  { %1261 = vmatpush.msra.mxu0 %v392_v46  ;;  %1280 = vmatpush.msra.mxu1 %v409_v47  ;;  %v457_v46 = vld [vmem:[#allocation2 + $0xa40] sm:$0xff]  ;;  %v474_v47 = vld [vmem:[#allocation2 + $0xac8] sm:$0xff] }
  0xac   :  { %1301 = vmatpush.msra.mxu2 %v424_v48  ;;  %1320 = vmatpush.msra.mxu3 %v441_v49  ;;  %v489_v48 = vld [vmem:[#allocation2 + $0xb40] sm:$0xff]  ;;  %v506_v49 = vld [vmem:[#allocation2 + $0xbc8] sm:$0xff] }
  0xad   :  { %1262 = vmatpush.msra.mxu0 %v391_v50  ;;  %1281 = vmatpush.msra.mxu1 %v408_v51  ;;  %v456_v50 = vld [vmem:[#allocation2 + $0xa38] sm:$0xff]  ;;  %v473_v51 = vld [vmem:[#allocation2 + $0xac0] sm:$0xff] }
  0xae   :  { %1302 = vmatpush.msra.mxu2 %v423_v52  ;;  %1321 = vmatpush.msra.mxu3 %v440_v53  ;;  %v488_v52 = vld [vmem:[#allocation2 + $0xb38] sm:$0xff]  ;;  %v505_v53 = vld [vmem:[#allocation2 + $0xbc0] sm:$0xff] }
  0xaf   :  { %1263 = vmatpush.msra.mxu0 %v390_v54  ;;  %1282 = vmatpush.msra.mxu1 %v407_v55  ;;  %v455_v54 = vld [vmem:[#allocation2 + $0xa30] sm:$0xff]  ;;  %v472_v55 = vld [vmem:[#allocation2 + $0xab8] sm:$0xff] }
  0xb0   :  { %1303 = vmatpush.msra.mxu2 %v422_v56  ;;  %1322 = vmatpush.msra.mxu3 %v439_v57  ;;  %v487_v56 = vld [vmem:[#allocation2 + $0xb30] sm:$0xff]  ;;  %v504_v57 = vld [vmem:[#allocation2 + $0xbb8] sm:$0xff] }
  0xb1   :  { %1264 = vmatpush.msra.mxu0 %v389_v58  ;;  %1283 = vmatpush.msra.mxu1 %v406_v59  ;;  %v454_v58 = vld [vmem:[#allocation2 + $0xa28] sm:$0xff]  ;;  %v471_v59 = vld [vmem:[#allocation2 + $0xab0] sm:$0xff] }
  0xb2   :  { %1304 = vmatpush.msra.mxu2 %v421_v60  ;;  %1323 = vmatpush.msra.mxu3 %v438_v61  ;;  %v486_v60 = vld [vmem:[#allocation2 + $0xb28] sm:$0xff]  ;;  %v503_v61 = vld [vmem:[#allocation2 + $0xbb0] sm:$0xff] }
  0xb3   :  { %1265 = vmatpush.msra.mxu0 %v388_v62  ;;  %1284 = vmatpush.msra.mxu1 %v405_v63  ;;  %v453_v62 = vld [vmem:[#allocation2 + $0xa20] sm:$0xff]  ;;  %v470_v63 = vld [vmem:[#allocation2 + $0xaa8] sm:$0xff] }
  0xb4   :  { %1305 = vmatpush.msra.mxu2 %v420_v0  ;;  %1324 = vmatpush.msra.mxu3 %v437_v1  ;;  %v485_v0 = vld [vmem:[#allocation2 + $0xb20] sm:$0xff]  ;;  %v502_v1 = vld [vmem:[#allocation2 + $0xba8] sm:$0xff] }
  0xb5   :  { %1266 = vmatpush.msra.mxu0 %v387_v2  ;;  %1285 = vmatpush.msra.mxu1 %v404_v3  ;;  %v452_v2 = vld [vmem:[#allocation2 + $0xa18] sm:$0xff]  ;;  %v469_v3 = vld [vmem:[#allocation2 + $0xaa0] sm:$0xff] }
  0xb6   :  { %1306 = vmatpush.msra.mxu2 %v419_v4  ;;  %1325 = vmatpush.msra.mxu3 %v436_v5  ;;  %v484_v4 = vld [vmem:[#allocation2 + $0xb18] sm:$0xff]  ;;  %v501_v5 = vld [vmem:[#allocation2 + $0xba0] sm:$0xff] }
  0xb7   :  { %1267 = vmatpush.msra.mxu0 %v386_v6  ;;  %1286 = vmatpush.msra.mxu1 %v403_v7  ;;  %v451_v6 = vld [vmem:[#allocation2 + $0xa10] sm:$0xff]  ;;  %v468_v7 = vld [vmem:[#allocation2 + $0xa98] sm:$0xff] }
  0xb8   :  { %1307 = vmatpush.msra.mxu2 %v418_v8  ;;  %1326 = vmatpush.msra.mxu3 %v435_v9  ;;  %v483_v8 = vld [vmem:[#allocation2 + $0xb10] sm:$0xff]  ;;  %v500_v9 = vld [vmem:[#allocation2 + $0xb98] sm:$0xff] }
  0xb9   :  { %1268 = vmatpush.msra.mxu0 %v385_v10  ;;  %1287 = vmatpush.msra.mxu1 %v402_v11  ;;  %v450_v10 = vld [vmem:[#allocation2 + $0xa08] sm:$0xff]  ;;  %v467_v11 = vld [vmem:[#allocation2 + $0xa90] sm:$0xff] }
  0xba   :  { %1308 = vmatpush.msra.mxu2 %v417_v12  ;;  %1327 = vmatpush.msra.mxu3 %v434_v13  ;;  %v482_v12 = vld [vmem:[#allocation2 + $0xb08] sm:$0xff]  ;;  %v499_v13 = vld [vmem:[#allocation2 + $0xb90] sm:$0xff] }
  0xbb   :  { %1269 = vmatmul.f32.vlgmr.msra.gmra.mxu0 %v95_v14  ;;  %1309 = vmatmul.f32.vlgmr.msra.gmra.mxu2 %v97_v15  ;;  %v449_v14 = vld [vmem:[#allocation2 + $0xa00] sm:$0xff]  ;;  %v466_v15 = vld [vmem:[#allocation2 + $0xa88] sm:$0xff] }
  0xbc   :  { %1333 = vmatpush.msrb.mxu0 %v464_v16  ;;  %1373 = vmatpush.msrb.mxu2 %v496_v17  ;;  %v481_v16 = vld [vmem:[#allocation2 + $0xb00] sm:$0xff]  ;;  %v498_v17 = vld [vmem:[#allocation2 + $0xb88] sm:$0xff] }
  0xbd   :  { %1288 = vmatpush.msra.mxu1 %v401_v18  ;;  %1328 = vmatpush.msra.mxu3 %v433_v19  ;;  %v99_v18 = vld [vmem:[%s2293_s0 + $0xa0] sm:$0xff]  ;;  %v101_v19 = vld [vmem:[%s2293_s0 + $0xb0] sm:$0xff] }
  0xbe   :  { %1289 = vmatmul.f32.vlgmr.msra.gmra.mxu1 %v96_v20  ;;  %1329 = vmatmul.f32.vlgmr.msra.gmra.mxu3 %v98_v21  ;;  %v528_v20 = vld [vmem:[#allocation2 + $0xc78] sm:$0xff] }
  0xbf   :  { %1334 = vmatpush.msrb.mxu0 %v463_v22  ;;  %1353 = vmatpush.msrb.mxu1 %v480_v23  ;;  %v560_v21 = vld [vmem:[#allocation2 + $0xd78] sm:$0xff]  ;;  %v465_v22 = vld [vmem:[#allocation2 + $0xa80] sm:$0xff] }
  0xc0   :  { %1374 = vmatpush.msrb.mxu2 %v495_v24  ;;  %1393 = vmatpush.msrb.mxu3 %v512_v25  ;;  %v497_v23 = vld [vmem:[#allocation2 + $0xb80] sm:$0xff]  ;;  %v100_v24 = vld [vmem:[%s2293_s0 + $0xa8] sm:$0xff]  ;;  %v102_v25 = vld [vmem:[%s2293_s0 + $0xb8] sm:$0xff] }
  0xc1   :  { %1335 = vmatpush.msrb.mxu0 %v462_v26  ;;  %1354 = vmatpush.msrb.mxu1 %v479_v27  ;;  %v527_v26 = vld [vmem:[#allocation2 + $0xc70] sm:$0xff]  ;;  %v544_v27 = vld [vmem:[#allocation2 + $0xcf8] sm:$0xff] }
  0xc2   :  { %1375 = vmatpush.msrb.mxu2 %v494_v28  ;;  %1394 = vmatpush.msrb.mxu3 %v511_v29  ;;  %v559_v28 = vld [vmem:[#allocation2 + $0xd70] sm:$0xff]  ;;  %v576_v29 = vld [vmem:[#allocation2 + $0xdf8] sm:$0xff] }
  0xc3   :  { %1336 = vmatpush.msrb.mxu0 %v461_v30  ;;  %1355 = vmatpush.msrb.mxu1 %v478_v31  ;;  %v526_v30 = vld [vmem:[#allocation2 + $0xc68] sm:$0xff]  ;;  %v543_v31 = vld [vmem:[#allocation2 + $0xcf0] sm:$0xff] }
  0xc4   :  { %1376 = vmatpush.msrb.mxu2 %v493_v32  ;;  %1395 = vmatpush.msrb.mxu3 %v510_v33  ;;  %v558_v32 = vld [vmem:[#allocation2 + $0xd68] sm:$0xff]  ;;  %v575_v33 = vld [vmem:[#allocation2 + $0xdf0] sm:$0xff] }
  0xc5   :  { %1337 = vmatpush.msrb.mxu0 %v460_v34  ;;  %1356 = vmatpush.msrb.mxu1 %v477_v35  ;;  %v525_v34 = vld [vmem:[#allocation2 + $0xc60] sm:$0xff]  ;;  %v542_v35 = vld [vmem:[#allocation2 + $0xce8] sm:$0xff] }
  0xc6   :  { %1377 = vmatpush.msrb.mxu2 %v492_v36  ;;  %1396 = vmatpush.msrb.mxu3 %v509_v37  ;;  %v557_v36 = vld [vmem:[#allocation2 + $0xd60] sm:$0xff]  ;;  %v574_v37 = vld [vmem:[#allocation2 + $0xde8] sm:$0xff] }
  0xc7   :  { %1338 = vmatpush.msrb.mxu0 %v459_v38  ;;  %1357 = vmatpush.msrb.mxu1 %v476_v39  ;;  %v524_v38 = vld [vmem:[#allocation2 + $0xc58] sm:$0xff]  ;;  %v541_v39 = vld [vmem:[#allocation2 + $0xce0] sm:$0xff] }
  0xc8   :  { %1378 = vmatpush.msrb.mxu2 %v491_v40  ;;  %1397 = vmatpush.msrb.mxu3 %v508_v41  ;;  %v556_v40 = vld [vmem:[#allocation2 + $0xd58] sm:$0xff]  ;;  %v573_v41 = vld [vmem:[#allocation2 + $0xde0] sm:$0xff] }
  0xc9   :  { %1339 = vmatpush.msrb.mxu0 %v458_v42  ;;  %1358 = vmatpush.msrb.mxu1 %v475_v43  ;;  %v523_v42 = vld [vmem:[#allocation2 + $0xc50] sm:$0xff]  ;;  %v540_v43 = vld [vmem:[#allocation2 + $0xcd8] sm:$0xff] }
  0xca   :  { %1379 = vmatpush.msrb.mxu2 %v490_v44  ;;  %1398 = vmatpush.msrb.mxu3 %v507_v45  ;;  %v555_v44 = vld [vmem:[#allocation2 + $0xd50] sm:$0xff]  ;;  %v572_v45 = vld [vmem:[#allocation2 + $0xdd8] sm:$0xff] }
  0xcb   :  { %1340 = vmatpush.msrb.mxu0 %v457_v46  ;;  %1359 = vmatpush.msrb.mxu1 %v474_v47  ;;  %v522_v46 = vld [vmem:[#allocation2 + $0xc48] sm:$0xff]  ;;  %v539_v47 = vld [vmem:[#allocation2 + $0xcd0] sm:$0xff] }
  0xcc   :  { %1380 = vmatpush.msrb.mxu2 %v489_v48  ;;  %1399 = vmatpush.msrb.mxu3 %v506_v49  ;;  %v554_v48 = vld [vmem:[#allocation2 + $0xd48] sm:$0xff]  ;;  %v571_v49 = vld [vmem:[#allocation2 + $0xdd0] sm:$0xff] }
  0xcd   :  { %1341 = vmatpush.msrb.mxu0 %v456_v50  ;;  %1360 = vmatpush.msrb.mxu1 %v473_v51  ;;  %v521_v50 = vld [vmem:[#allocation2 + $0xc40] sm:$0xff]  ;;  %v538_v51 = vld [vmem:[#allocation2 + $0xcc8] sm:$0xff] }
  0xce   :  { %1381 = vmatpush.msrb.mxu2 %v488_v52  ;;  %1400 = vmatpush.msrb.mxu3 %v505_v53  ;;  %v553_v52 = vld [vmem:[#allocation2 + $0xd40] sm:$0xff]  ;;  %v570_v53 = vld [vmem:[#allocation2 + $0xdc8] sm:$0xff] }
  0xcf   :  { %1342 = vmatpush.msrb.mxu0 %v455_v54  ;;  %1361 = vmatpush.msrb.mxu1 %v472_v55  ;;  %v520_v54 = vld [vmem:[#allocation2 + $0xc38] sm:$0xff]  ;;  %v537_v55 = vld [vmem:[#allocation2 + $0xcc0] sm:$0xff] }
  0xd0   :  { %1382 = vmatpush.msrb.mxu2 %v487_v56  ;;  %1401 = vmatpush.msrb.mxu3 %v504_v57  ;;  %v552_v56 = vld [vmem:[#allocation2 + $0xd38] sm:$0xff]  ;;  %v569_v57 = vld [vmem:[#allocation2 + $0xdc0] sm:$0xff] }
  0xd1   :  { %1343 = vmatpush.msrb.mxu0 %v454_v58  ;;  %1362 = vmatpush.msrb.mxu1 %v471_v59  ;;  %v519_v58 = vld [vmem:[#allocation2 + $0xc30] sm:$0xff]  ;;  %v536_v59 = vld [vmem:[#allocation2 + $0xcb8] sm:$0xff] }
  0xd2   :  { %1383 = vmatpush.msrb.mxu2 %v486_v60  ;;  %1402 = vmatpush.msrb.mxu3 %v503_v61  ;;  %v551_v60 = vld [vmem:[#allocation2 + $0xd30] sm:$0xff]  ;;  %v568_v61 = vld [vmem:[#allocation2 + $0xdb8] sm:$0xff] }
  0xd3   :  { %1344 = vmatpush.msrb.mxu0 %v453_v62  ;;  %1363 = vmatpush.msrb.mxu1 %v470_v63  ;;  %v518_v62 = vld [vmem:[#allocation2 + $0xc28] sm:$0xff]  ;;  %v535_v63 = vld [vmem:[#allocation2 + $0xcb0] sm:$0xff] }
  0xd4   :  { %1384 = vmatpush.msrb.mxu2 %v485_v0  ;;  %1403 = vmatpush.msrb.mxu3 %v502_v1  ;;  %v550_v0 = vld [vmem:[#allocation2 + $0xd28] sm:$0xff]  ;;  %v567_v1 = vld [vmem:[#allocation2 + $0xdb0] sm:$0xff] }
  0xd5   :  { %1345 = vmatpush.msrb.mxu0 %v452_v2  ;;  %1364 = vmatpush.msrb.mxu1 %v469_v3  ;;  %v517_v2 = vld [vmem:[#allocation2 + $0xc20] sm:$0xff]  ;;  %v534_v3 = vld [vmem:[#allocation2 + $0xca8] sm:$0xff] }
  0xd6   :  { %1385 = vmatpush.msrb.mxu2 %v484_v4  ;;  %1404 = vmatpush.msrb.mxu3 %v501_v5  ;;  %v549_v4 = vld [vmem:[#allocation2 + $0xd20] sm:$0xff]  ;;  %v566_v5 = vld [vmem:[#allocation2 + $0xda8] sm:$0xff] }
  0xd7   :  { %1346 = vmatpush.msrb.mxu0 %v451_v6  ;;  %1365 = vmatpush.msrb.mxu1 %v468_v7  ;;  %v516_v6 = vld [vmem:[#allocation2 + $0xc18] sm:$0xff]  ;;  %v533_v7 = vld [vmem:[#allocation2 + $0xca0] sm:$0xff] }
  0xd8   :  { %1386 = vmatpush.msrb.mxu2 %v483_v8  ;;  %1405 = vmatpush.msrb.mxu3 %v500_v9  ;;  %v548_v8 = vld [vmem:[#allocation2 + $0xd18] sm:$0xff]  ;;  %v565_v9 = vld [vmem:[#allocation2 + $0xda0] sm:$0xff] }
  0xd9   :  { %1347 = vmatpush.msrb.mxu0 %v450_v10  ;;  %1366 = vmatpush.msrb.mxu1 %v467_v11  ;;  %v515_v10 = vld [vmem:[#allocation2 + $0xc10] sm:$0xff]  ;;  %v532_v11 = vld [vmem:[#allocation2 + $0xc98] sm:$0xff] }
  0xda   :  { %1387 = vmatpush.msrb.mxu2 %v482_v12  ;;  %1406 = vmatpush.msrb.mxu3 %v499_v13  ;;  %v547_v12 = vld [vmem:[#allocation2 + $0xd10] sm:$0xff]  ;;  %v564_v13 = vld [vmem:[#allocation2 + $0xd98] sm:$0xff] }
  0xdb   :  { %1348 = vmatpush.msrb.mxu0 %v449_v14  ;;  %1367 = vmatpush.msrb.mxu1 %v466_v15  ;;  %v514_v14 = vld [vmem:[#allocation2 + $0xc08] sm:$0xff]  ;;  %v531_v15 = vld [vmem:[#allocation2 + $0xc90] sm:$0xff] }
  0xdc   :  { %1388 = vmatpush.msrb.mxu2 %v481_v16  ;;  %1407 = vmatpush.msrb.mxu3 %v498_v17  ;;  %v546_v16 = vld [vmem:[#allocation2 + $0xd08] sm:$0xff]  ;;  %v563_v17 = vld [vmem:[#allocation2 + $0xd90] sm:$0xff] }
  0xdd   :  { %1349 = vmatmul.f32.vlgmr.msrb.gmra.mxu0 %v99_v18  ;;  %1389 = vmatmul.f32.vlgmr.msrb.gmra.mxu2 %v101_v19  ;;  %v513_v18 = vld [vmem:[#allocation2 + $0xc00] sm:$0xff]  ;;  %v530_v19 = vld [vmem:[#allocation2 + $0xc88] sm:$0xff] }
  0xde   :  { %1413 = vmatpush.msra.mxu0 %v528_v20  ;;  %1453 = vmatpush.msra.mxu2 %v560_v21  ;;  %v545_v20 = vld [vmem:[#allocation2 + $0xd00] sm:$0xff]  ;;  %v562_v21 = vld [vmem:[#allocation2 + $0xd88] sm:$0xff] }
  0xdf   :  { %1368 = vmatpush.msrb.mxu1 %v465_v22  ;;  %1408 = vmatpush.msrb.mxu3 %v497_v23  ;;  %v103_v22 = vld [vmem:[%s2293_s0 + $0xc0] sm:$0xff]  ;;  %v105_v23 = vld [vmem:[%s2293_s0 + $0xd0] sm:$0xff] }
  0xe0   :  { %1369 = vmatmul.f32.vlgmr.msrb.gmra.mxu1 %v100_v24  ;;  %1409 = vmatmul.f32.vlgmr.msrb.gmra.mxu3 %v102_v25  ;;  %v592_v24 = vld [vmem:[#allocation2 + $0xe78] sm:$0xff] }
  0xe1   :  { %1414 = vmatpush.msra.mxu0 %v527_v26  ;;  %1433 = vmatpush.msra.mxu1 %v544_v27  ;;  %v624_v25 = vld [vmem:[#allocation2 + $0xf78] sm:$0xff]  ;;  %v529_v26 = vld [vmem:[#allocation2 + $0xc80] sm:$0xff] }
  0xe2   :  { %1454 = vmatpush.msra.mxu2 %v559_v28  ;;  %1473 = vmatpush.msra.mxu3 %v576_v29  ;;  %v561_v27 = vld [vmem:[#allocation2 + $0xd80] sm:$0xff]  ;;  %v104_v28 = vld [vmem:[%s2293_s0 + $0xc8] sm:$0xff]  ;;  %v106_v29 = vld [vmem:[%s2293_s0 + $0xd8] sm:$0xff] }
  0xe3   :  { %1415 = vmatpush.msra.mxu0 %v526_v30  ;;  %1434 = vmatpush.msra.mxu1 %v543_v31  ;;  %v591_v30 = vld [vmem:[#allocation2 + $0xe70] sm:$0xff]  ;;  %v608_v31 = vld [vmem:[#allocation2 + $0xef8] sm:$0xff] }
  0xe4   :  { %1455 = vmatpush.msra.mxu2 %v558_v32  ;;  %1474 = vmatpush.msra.mxu3 %v575_v33  ;;  %v623_v32 = vld [vmem:[#allocation2 + $0xf70] sm:$0xff]  ;;  %v640_v33 = vld [vmem:[#allocation2 + $0xff8] sm:$0xff] }
  0xe5   :  { %1416 = vmatpush.msra.mxu0 %v525_v34  ;;  %1435 = vmatpush.msra.mxu1 %v542_v35  ;;  %v590_v34 = vld [vmem:[#allocation2 + $0xe68] sm:$0xff]  ;;  %v607_v35 = vld [vmem:[#allocation2 + $0xef0] sm:$0xff] }
  0xe6   :  { %1456 = vmatpush.msra.mxu2 %v557_v36  ;;  %1475 = vmatpush.msra.mxu3 %v574_v37  ;;  %v622_v36 = vld [vmem:[#allocation2 + $0xf68] sm:$0xff]  ;;  %v639_v37 = vld [vmem:[#allocation2 + $0xff0] sm:$0xff] }
  0xe7   :  { %1417 = vmatpush.msra.mxu0 %v524_v38  ;;  %1436 = vmatpush.msra.mxu1 %v541_v39  ;;  %v589_v38 = vld [vmem:[#allocation2 + $0xe60] sm:$0xff]  ;;  %v606_v39 = vld [vmem:[#allocation2 + $0xee8] sm:$0xff] }
  0xe8   :  { %1457 = vmatpush.msra.mxu2 %v556_v40  ;;  %1476 = vmatpush.msra.mxu3 %v573_v41  ;;  %v621_v40 = vld [vmem:[#allocation2 + $0xf60] sm:$0xff]  ;;  %v638_v41 = vld [vmem:[#allocation2 + $0xfe8] sm:$0xff] }
  0xe9   :  { %1418 = vmatpush.msra.mxu0 %v523_v42  ;;  %1437 = vmatpush.msra.mxu1 %v540_v43  ;;  %v588_v42 = vld [vmem:[#allocation2 + $0xe58] sm:$0xff]  ;;  %v605_v43 = vld [vmem:[#allocation2 + $0xee0] sm:$0xff] }
  0xea   :  { %1458 = vmatpush.msra.mxu2 %v555_v44  ;;  %1477 = vmatpush.msra.mxu3 %v572_v45  ;;  %v620_v44 = vld [vmem:[#allocation2 + $0xf58] sm:$0xff]  ;;  %v637_v45 = vld [vmem:[#allocation2 + $0xfe0] sm:$0xff] }
  0xeb   :  { %1419 = vmatpush.msra.mxu0 %v522_v46  ;;  %1438 = vmatpush.msra.mxu1 %v539_v47  ;;  %v587_v46 = vld [vmem:[#allocation2 + $0xe50] sm:$0xff]  ;;  %v604_v47 = vld [vmem:[#allocation2 + $0xed8] sm:$0xff] }
  0xec   :  { %1459 = vmatpush.msra.mxu2 %v554_v48  ;;  %1478 = vmatpush.msra.mxu3 %v571_v49  ;;  %v619_v48 = vld [vmem:[#allocation2 + $0xf50] sm:$0xff]  ;;  %v636_v49 = vld [vmem:[#allocation2 + $0xfd8] sm:$0xff] }
  0xed   :  { %1420 = vmatpush.msra.mxu0 %v521_v50  ;;  %1439 = vmatpush.msra.mxu1 %v538_v51  ;;  %v586_v50 = vld [vmem:[#allocation2 + $0xe48] sm:$0xff]  ;;  %v603_v51 = vld [vmem:[#allocation2 + $0xed0] sm:$0xff] }
  0xee   :  { %1460 = vmatpush.msra.mxu2 %v553_v52  ;;  %1479 = vmatpush.msra.mxu3 %v570_v53  ;;  %v618_v52 = vld [vmem:[#allocation2 + $0xf48] sm:$0xff]  ;;  %v635_v53 = vld [vmem:[#allocation2 + $0xfd0] sm:$0xff] }
  0xef   :  { %1421 = vmatpush.msra.mxu0 %v520_v54  ;;  %1440 = vmatpush.msra.mxu1 %v537_v55  ;;  %v585_v54 = vld [vmem:[#allocation2 + $0xe40] sm:$0xff]  ;;  %v602_v55 = vld [vmem:[#allocation2 + $0xec8] sm:$0xff] }
  0xf0   :  { %1461 = vmatpush.msra.mxu2 %v552_v56  ;;  %1480 = vmatpush.msra.mxu3 %v569_v57  ;;  %v617_v56 = vld [vmem:[#allocation2 + $0xf40] sm:$0xff]  ;;  %v634_v57 = vld [vmem:[#allocation2 + $0xfc8] sm:$0xff] }
  0xf1   :  { %1422 = vmatpush.msra.mxu0 %v519_v58  ;;  %1441 = vmatpush.msra.mxu1 %v536_v59  ;;  %v584_v58 = vld [vmem:[#allocation2 + $0xe38] sm:$0xff]  ;;  %v601_v59 = vld [vmem:[#allocation2 + $0xec0] sm:$0xff] }
  0xf2   :  { %1462 = vmatpush.msra.mxu2 %v551_v60  ;;  %1481 = vmatpush.msra.mxu3 %v568_v61  ;;  %v616_v60 = vld [vmem:[#allocation2 + $0xf38] sm:$0xff]  ;;  %v633_v61 = vld [vmem:[#allocation2 + $0xfc0] sm:$0xff] }
  0xf3   :  { %1423 = vmatpush.msra.mxu0 %v518_v62  ;;  %1442 = vmatpush.msra.mxu1 %v535_v63  ;;  %v583_v62 = vld [vmem:[#allocation2 + $0xe30] sm:$0xff]  ;;  %v600_v63 = vld [vmem:[#allocation2 + $0xeb8] sm:$0xff] }
  0xf4   :  { %1463 = vmatpush.msra.mxu2 %v550_v0  ;;  %1482 = vmatpush.msra.mxu3 %v567_v1  ;;  %v615_v0 = vld [vmem:[#allocation2 + $0xf30] sm:$0xff]  ;;  %v632_v1 = vld [vmem:[#allocation2 + $0xfb8] sm:$0xff] }
  0xf5   :  { %1424 = vmatpush.msra.mxu0 %v517_v2  ;;  %1443 = vmatpush.msra.mxu1 %v534_v3  ;;  %v582_v2 = vld [vmem:[#allocation2 + $0xe28] sm:$0xff]  ;;  %v599_v3 = vld [vmem:[#allocation2 + $0xeb0] sm:$0xff] }
  0xf6   :  { %1464 = vmatpush.msra.mxu2 %v549_v4  ;;  %1483 = vmatpush.msra.mxu3 %v566_v5  ;;  %v614_v4 = vld [vmem:[#allocation2 + $0xf28] sm:$0xff]  ;;  %v631_v5 = vld [vmem:[#allocation2 + $0xfb0] sm:$0xff] }
  0xf7   :  { %1425 = vmatpush.msra.mxu0 %v516_v6  ;;  %1444 = vmatpush.msra.mxu1 %v533_v7  ;;  %v581_v6 = vld [vmem:[#allocation2 + $0xe20] sm:$0xff]  ;;  %v598_v7 = vld [vmem:[#allocation2 + $0xea8] sm:$0xff] }
  0xf8   :  { %1465 = vmatpush.msra.mxu2 %v548_v8  ;;  %1484 = vmatpush.msra.mxu3 %v565_v9  ;;  %v613_v8 = vld [vmem:[#allocation2 + $0xf20] sm:$0xff]  ;;  %v630_v9 = vld [vmem:[#allocation2 + $0xfa8] sm:$0xff] }
  0xf9   :  { %1426 = vmatpush.msra.mxu0 %v515_v10  ;;  %1445 = vmatpush.msra.mxu1 %v532_v11  ;;  %v580_v10 = vld [vmem:[#allocation2 + $0xe18] sm:$0xff]  ;;  %v597_v11 = vld [vmem:[#allocation2 + $0xea0] sm:$0xff] }
  0xfa   :  { %1466 = vmatpush.msra.mxu2 %v547_v12  ;;  %1485 = vmatpush.msra.mxu3 %v564_v13  ;;  %v612_v12 = vld [vmem:[#allocation2 + $0xf18] sm:$0xff]  ;;  %v629_v13 = vld [vmem:[#allocation2 + $0xfa0] sm:$0xff] }
  0xfb   :  { %1427 = vmatpush.msra.mxu0 %v514_v14  ;;  %1446 = vmatpush.msra.mxu1 %v531_v15  ;;  %v579_v14 = vld [vmem:[#allocation2 + $0xe10] sm:$0xff]  ;;  %v596_v15 = vld [vmem:[#allocation2 + $0xe98] sm:$0xff] }
  0xfc   :  { %1467 = vmatpush.msra.mxu2 %v546_v16  ;;  %1486 = vmatpush.msra.mxu3 %v563_v17  ;;  %v611_v16 = vld [vmem:[#allocation2 + $0xf10] sm:$0xff]  ;;  %v628_v17 = vld [vmem:[#allocation2 + $0xf98] sm:$0xff] }
  0xfd   :  { %1428 = vmatpush.msra.mxu0 %v513_v18  ;;  %1447 = vmatpush.msra.mxu1 %v530_v19  ;;  %v578_v18 = vld [vmem:[#allocation2 + $0xe08] sm:$0xff]  ;;  %v595_v19 = vld [vmem:[#allocation2 + $0xe90] sm:$0xff] }
  0xfe   :  { %1468 = vmatpush.msra.mxu2 %v545_v20  ;;  %1487 = vmatpush.msra.mxu3 %v562_v21  ;;  %v610_v20 = vld [vmem:[#allocation2 + $0xf08] sm:$0xff]  ;;  %v627_v21 = vld [vmem:[#allocation2 + $0xf90] sm:$0xff] }
  0xff   :  { %1429 = vmatmul.f32.vlgmr.msra.gmra.mxu0 %v103_v22  ;;  %1469 = vmatmul.f32.vlgmr.msra.gmra.mxu2 %v105_v23  ;;  %v577_v22 = vld [vmem:[#allocation2 + $0xe00] sm:$0xff]  ;;  %v594_v23 = vld [vmem:[#allocation2 + $0xe88] sm:$0xff] }
 0x100   :  { %1493 = vmatpush.msrb.mxu0 %v592_v24  ;;  %1533 = vmatpush.msrb.mxu2 %v624_v25  ;;  %v609_v24 = vld [vmem:[#allocation2 + $0xf00] sm:$0xff]  ;;  %v626_v25 = vld [vmem:[#allocation2 + $0xf88] sm:$0xff] }
 0x101   :  { %1448 = vmatpush.msra.mxu1 %v529_v26  ;;  %1488 = vmatpush.msra.mxu3 %v561_v27  ;;  %v107_v26 = vld [vmem:[%s2293_s0 + $0xe0] sm:$0xff]  ;;  %v109_v27 = vld [vmem:[%s2293_s0 + $0xf0] sm:$0xff] }
 0x102   :  { %1449 = vmatmul.f32.vlgmr.msra.gmra.mxu1 %v104_v28  ;;  %1489 = vmatmul.f32.vlgmr.msra.gmra.mxu3 %v106_v29  ;;  %v656_v28 = vld [vmem:[#allocation2 + $0x1078] sm:$0xff] }
 0x103   :  { %1494 = vmatpush.msrb.mxu0 %v591_v30  ;;  %1513 = vmatpush.msrb.mxu1 %v608_v31  ;;  %v688_v29 = vld [vmem:[#allocation2 + $0x1178] sm:$0xff]  ;;  %v593_v30 = vld [vmem:[#allocation2 + $0xe80] sm:$0xff] }
 0x104   :  { %1534 = vmatpush.msrb.mxu2 %v623_v32  ;;  %1553 = vmatpush.msrb.mxu3 %v640_v33  ;;  %v625_v31 = vld [vmem:[#allocation2 + $0xf80] sm:$0xff]  ;;  %v108_v32 = vld [vmem:[%s2293_s0 + $0xe8] sm:$0xff]  ;;  %v110_v33 = vld [vmem:[%s2293_s0 + $0xf8] sm:$0xff] }
 0x105   :  { %1495 = vmatpush.msrb.mxu0 %v590_v34  ;;  %1514 = vmatpush.msrb.mxu1 %v607_v35  ;;  %v655_v34 = vld [vmem:[#allocation2 + $0x1070] sm:$0xff]  ;;  %v672_v35 = vld [vmem:[#allocation2 + $0x10f8] sm:$0xff] }
 0x106   :  { %1535 = vmatpush.msrb.mxu2 %v622_v36  ;;  %1554 = vmatpush.msrb.mxu3 %v639_v37  ;;  %v687_v36 = vld [vmem:[#allocation2 + $0x1170] sm:$0xff]  ;;  %v704_v37 = vld [vmem:[#allocation2 + $0x11f8] sm:$0xff] }
 0x107   :  { %1496 = vmatpush.msrb.mxu0 %v589_v38  ;;  %1515 = vmatpush.msrb.mxu1 %v606_v39  ;;  %v654_v38 = vld [vmem:[#allocation2 + $0x1068] sm:$0xff]  ;;  %v671_v39 = vld [vmem:[#allocation2 + $0x10f0] sm:$0xff] }
 0x108   :  { %1536 = vmatpush.msrb.mxu2 %v621_v40  ;;  %1555 = vmatpush.msrb.mxu3 %v638_v41  ;;  %v686_v40 = vld [vmem:[#allocation2 + $0x1168] sm:$0xff]  ;;  %v703_v41 = vld [vmem:[#allocation2 + $0x11f0] sm:$0xff] }
 0x109   :  { %1497 = vmatpush.msrb.mxu0 %v588_v42  ;;  %1516 = vmatpush.msrb.mxu1 %v605_v43  ;;  %v653_v42 = vld [vmem:[#allocation2 + $0x1060] sm:$0xff]  ;;  %v670_v43 = vld [vmem:[#allocation2 + $0x10e8] sm:$0xff] }
 0x10a   :  { %1537 = vmatpush.msrb.mxu2 %v620_v44  ;;  %1556 = vmatpush.msrb.mxu3 %v637_v45  ;;  %v685_v44 = vld [vmem:[#allocation2 + $0x1160] sm:$0xff]  ;;  %v702_v45 = vld [vmem:[#allocation2 + $0x11e8] sm:$0xff] }
 0x10b   :  { %1498 = vmatpush.msrb.mxu0 %v587_v46  ;;  %1517 = vmatpush.msrb.mxu1 %v604_v47  ;;  %v652_v46 = vld [vmem:[#allocation2 + $0x1058] sm:$0xff]  ;;  %v669_v47 = vld [vmem:[#allocation2 + $0x10e0] sm:$0xff] }
 0x10c   :  { %1538 = vmatpush.msrb.mxu2 %v619_v48  ;;  %1557 = vmatpush.msrb.mxu3 %v636_v49  ;;  %v684_v48 = vld [vmem:[#allocation2 + $0x1158] sm:$0xff]  ;;  %v701_v49 = vld [vmem:[#allocation2 + $0x11e0] sm:$0xff] }
 0x10d   :  { %1499 = vmatpush.msrb.mxu0 %v586_v50  ;;  %1518 = vmatpush.msrb.mxu1 %v603_v51  ;;  %v651_v50 = vld [vmem:[#allocation2 + $0x1050] sm:$0xff]  ;;  %v668_v51 = vld [vmem:[#allocation2 + $0x10d8] sm:$0xff] }
 0x10e   :  { %1539 = vmatpush.msrb.mxu2 %v618_v52  ;;  %1558 = vmatpush.msrb.mxu3 %v635_v53  ;;  %v683_v52 = vld [vmem:[#allocation2 + $0x1150] sm:$0xff]  ;;  %v700_v53 = vld [vmem:[#allocation2 + $0x11d8] sm:$0xff] }
 0x10f   :  { %1500 = vmatpush.msrb.mxu0 %v585_v54  ;;  %1519 = vmatpush.msrb.mxu1 %v602_v55  ;;  %v650_v54 = vld [vmem:[#allocation2 + $0x1048] sm:$0xff]  ;;  %v667_v55 = vld [vmem:[#allocation2 + $0x10d0] sm:$0xff] }
 0x110   :  { %1540 = vmatpush.msrb.mxu2 %v617_v56  ;;  %1559 = vmatpush.msrb.mxu3 %v634_v57  ;;  %v682_v56 = vld [vmem:[#allocation2 + $0x1148] sm:$0xff]  ;;  %v699_v57 = vld [vmem:[#allocation2 + $0x11d0] sm:$0xff] }
 0x111   :  { %1501 = vmatpush.msrb.mxu0 %v584_v58  ;;  %1520 = vmatpush.msrb.mxu1 %v601_v59  ;;  %v649_v58 = vld [vmem:[#allocation2 + $0x1040] sm:$0xff]  ;;  %v666_v59 = vld [vmem:[#allocation2 + $0x10c8] sm:$0xff] }
 0x112   :  { %1541 = vmatpush.msrb.mxu2 %v616_v60  ;;  %1560 = vmatpush.msrb.mxu3 %v633_v61  ;;  %v681_v60 = vld [vmem:[#allocation2 + $0x1140] sm:$0xff]  ;;  %v698_v61 = vld [vmem:[#allocation2 + $0x11c8] sm:$0xff] }
 0x113   :  { %1502 = vmatpush.msrb.mxu0 %v583_v62  ;;  %1521 = vmatpush.msrb.mxu1 %v600_v63  ;;  %v648_v62 = vld [vmem:[#allocation2 + $0x1038] sm:$0xff]  ;;  %v665_v63 = vld [vmem:[#allocation2 + $0x10c0] sm:$0xff] }
 0x114   :  { %1542 = vmatpush.msrb.mxu2 %v615_v0  ;;  %1561 = vmatpush.msrb.mxu3 %v632_v1  ;;  %v680_v0 = vld [vmem:[#allocation2 + $0x1138] sm:$0xff]  ;;  %v697_v1 = vld [vmem:[#allocation2 + $0x11c0] sm:$0xff] }
 0x115   :  { %1503 = vmatpush.msrb.mxu0 %v582_v2  ;;  %1522 = vmatpush.msrb.mxu1 %v599_v3  ;;  %v647_v2 = vld [vmem:[#allocation2 + $0x1030] sm:$0xff]  ;;  %v664_v3 = vld [vmem:[#allocation2 + $0x10b8] sm:$0xff] }
 0x116   :  { %1543 = vmatpush.msrb.mxu2 %v614_v4  ;;  %1562 = vmatpush.msrb.mxu3 %v631_v5  ;;  %v679_v4 = vld [vmem:[#allocation2 + $0x1130] sm:$0xff]  ;;  %v696_v5 = vld [vmem:[#allocation2 + $0x11b8] sm:$0xff] }
 0x117   :  { %1504 = vmatpush.msrb.mxu0 %v581_v6  ;;  %1523 = vmatpush.msrb.mxu1 %v598_v7  ;;  %v646_v6 = vld [vmem:[#allocation2 + $0x1028] sm:$0xff]  ;;  %v663_v7 = vld [vmem:[#allocation2 + $0x10b0] sm:$0xff] }
 0x118   :  { %1544 = vmatpush.msrb.mxu2 %v613_v8  ;;  %1563 = vmatpush.msrb.mxu3 %v630_v9  ;;  %v678_v8 = vld [vmem:[#allocation2 + $0x1128] sm:$0xff]  ;;  %v695_v9 = vld [vmem:[#allocation2 + $0x11b0] sm:$0xff] }
 0x119   :  { %1505 = vmatpush.msrb.mxu0 %v580_v10  ;;  %1524 = vmatpush.msrb.mxu1 %v597_v11  ;;  %v645_v10 = vld [vmem:[#allocation2 + $0x1020] sm:$0xff]  ;;  %v662_v11 = vld [vmem:[#allocation2 + $0x10a8] sm:$0xff] }
 0x11a   :  { %1545 = vmatpush.msrb.mxu2 %v612_v12  ;;  %1564 = vmatpush.msrb.mxu3 %v629_v13  ;;  %v677_v12 = vld [vmem:[#allocation2 + $0x1120] sm:$0xff]  ;;  %v694_v13 = vld [vmem:[#allocation2 + $0x11a8] sm:$0xff] }
 0x11b   :  { %1506 = vmatpush.msrb.mxu0 %v579_v14  ;;  %1525 = vmatpush.msrb.mxu1 %v596_v15  ;;  %v644_v14 = vld [vmem:[#allocation2 + $0x1018] sm:$0xff]  ;;  %v661_v15 = vld [vmem:[#allocation2 + $0x10a0] sm:$0xff] }
 0x11c   :  { %1546 = vmatpush.msrb.mxu2 %v611_v16  ;;  %1565 = vmatpush.msrb.mxu3 %v628_v17  ;;  %v676_v16 = vld [vmem:[#allocation2 + $0x1118] sm:$0xff]  ;;  %v693_v17 = vld [vmem:[#allocation2 + $0x11a0] sm:$0xff] }
 0x11d   :  { %1507 = vmatpush.msrb.mxu0 %v578_v18  ;;  %1526 = vmatpush.msrb.mxu1 %v595_v19  ;;  %v643_v18 = vld [vmem:[#allocation2 + $0x1010] sm:$0xff]  ;;  %v660_v19 = vld [vmem:[#allocation2 + $0x1098] sm:$0xff] }
 0x11e   :  { %1547 = vmatpush.msrb.mxu2 %v610_v20  ;;  %1566 = vmatpush.msrb.mxu3 %v627_v21  ;;  %v675_v20 = vld [vmem:[#allocation2 + $0x1110] sm:$0xff]  ;;  %v692_v21 = vld [vmem:[#allocation2 + $0x1198] sm:$0xff] }
 0x11f   :  { %1508 = vmatpush.msrb.mxu0 %v577_v22  ;;  %1527 = vmatpush.msrb.mxu1 %v594_v23  ;;  %v642_v22 = vld [vmem:[#allocation2 + $0x1008] sm:$0xff]  ;;  %v659_v23 = vld [vmem:[#allocation2 + $0x1090] sm:$0xff] }
 0x120   :  { %1548 = vmatpush.msrb.mxu2 %v609_v24  ;;  %1567 = vmatpush.msrb.mxu3 %v626_v25  ;;  %v674_v24 = vld [vmem:[#allocation2 + $0x1108] sm:$0xff]  ;;  %v691_v25 = vld [vmem:[#allocation2 + $0x1190] sm:$0xff] }
 0x121   :  { %1509 = vmatmul.f32.vlgmr.msrb.gmra.mxu0 %v107_v26  ;;  %1549 = vmatmul.f32.vlgmr.msrb.gmra.mxu2 %v109_v27  ;;  %v641_v26 = vld [vmem:[#allocation2 + $0x1000] sm:$0xff]  ;;  %v658_v27 = vld [vmem:[#allocation2 + $0x1088] sm:$0xff] }
 0x122   :  { %1573 = vmatpush.msra.mxu0 %v656_v28  ;;  %1613 = vmatpush.msra.mxu2 %v688_v29  ;;  %v673_v28 = vld [vmem:[#allocation2 + $0x1100] sm:$0xff]  ;;  %v690_v29 = vld [vmem:[#allocation2 + $0x1188] sm:$0xff] }
 0x123   :  { %1528 = vmatpush.msrb.mxu1 %v593_v30  ;;  %1568 = vmatpush.msrb.mxu3 %v625_v31  ;;  %v111_v30 = vld [vmem:[%s2293_s0 + $0x100] sm:$0xff]  ;;  %v113_v31 = vld [vmem:[%s2293_s0 + $0x110] sm:$0xff] }
 0x124   :  { %1529 = vmatmul.f32.vlgmr.msrb.gmra.mxu1 %v108_v32  ;;  %1569 = vmatmul.f32.vlgmr.msrb.gmra.mxu3 %v110_v33  ;;  %v720_v32 = vld [vmem:[#allocation2 + $0x1278] sm:$0xff] }
 0x125   :  { %1574 = vmatpush.msra.mxu0 %v655_v34  ;;  %1593 = vmatpush.msra.mxu1 %v672_v35  ;;  %v752_v33 = vld [vmem:[#allocation2 + $0x1378] sm:$0xff]  ;;  %v657_v34 = vld [vmem:[#allocation2 + $0x1080] sm:$0xff] }
 0x126   :  { %1614 = vmatpush.msra.mxu2 %v687_v36  ;;  %1633 = vmatpush.msra.mxu3 %v704_v37  ;;  %v689_v35 = vld [vmem:[#allocation2 + $0x1180] sm:$0xff]  ;;  %v112_v36 = vld [vmem:[%s2293_s0 + $0x108] sm:$0xff]  ;;  %v114_v37 = vld [vmem:[%s2293_s0 + $0x118] sm:$0xff] }
 0x127   :  { %1575 = vmatpush.msra.mxu0 %v654_v38  ;;  %1594 = vmatpush.msra.mxu1 %v671_v39  ;;  %v719_v38 = vld [vmem:[#allocation2 + $0x1270] sm:$0xff]  ;;  %v736_v39 = vld [vmem:[#allocation2 + $0x12f8] sm:$0xff] }
 0x128   :  { %1615 = vmatpush.msra.mxu2 %v686_v40  ;;  %1634 = vmatpush.msra.mxu3 %v703_v41  ;;  %v751_v40 = vld [vmem:[#allocation2 + $0x1370] sm:$0xff]  ;;  %v768_v41 = vld [vmem:[#allocation2 + $0x13f8] sm:$0xff] }
 0x129   :  { %1576 = vmatpush.msra.mxu0 %v653_v42  ;;  %1595 = vmatpush.msra.mxu1 %v670_v43  ;;  %v718_v42 = vld [vmem:[#allocation2 + $0x1268] sm:$0xff]  ;;  %v735_v43 = vld [vmem:[#allocation2 + $0x12f0] sm:$0xff] }
 0x12a   :  { %1616 = vmatpush.msra.mxu2 %v685_v44  ;;  %1635 = vmatpush.msra.mxu3 %v702_v45  ;;  %v750_v44 = vld [vmem:[#allocation2 + $0x1368] sm:$0xff]  ;;  %v767_v45 = vld [vmem:[#allocation2 + $0x13f0] sm:$0xff] }
 0x12b   :  { %1577 = vmatpush.msra.mxu0 %v652_v46  ;;  %1596 = vmatpush.msra.mxu1 %v669_v47  ;;  %v717_v46 = vld [vmem:[#allocation2 + $0x1260] sm:$0xff]  ;;  %v734_v47 = vld [vmem:[#allocation2 + $0x12e8] sm:$0xff] }
 0x12c   :  { %1617 = vmatpush.msra.mxu2 %v684_v48  ;;  %1636 = vmatpush.msra.mxu3 %v701_v49  ;;  %v749_v48 = vld [vmem:[#allocation2 + $0x1360] sm:$0xff]  ;;  %v766_v49 = vld [vmem:[#allocation2 + $0x13e8] sm:$0xff] }
 0x12d   :  { %1578 = vmatpush.msra.mxu0 %v651_v50  ;;  %1597 = vmatpush.msra.mxu1 %v668_v51  ;;  %v716_v50 = vld [vmem:[#allocation2 + $0x1258] sm:$0xff]  ;;  %v733_v51 = vld [vmem:[#allocation2 + $0x12e0] sm:$0xff] }
 0x12e   :  { %1618 = vmatpush.msra.mxu2 %v683_v52  ;;  %1637 = vmatpush.msra.mxu3 %v700_v53  ;;  %v748_v52 = vld [vmem:[#allocation2 + $0x1358] sm:$0xff]  ;;  %v765_v53 = vld [vmem:[#allocation2 + $0x13e0] sm:$0xff] }
 0x12f   :  { %1579 = vmatpush.msra.mxu0 %v650_v54  ;;  %1598 = vmatpush.msra.mxu1 %v667_v55  ;;  %v715_v54 = vld [vmem:[#allocation2 + $0x1250] sm:$0xff]  ;;  %v732_v55 = vld [vmem:[#allocation2 + $0x12d8] sm:$0xff] }
 0x130   :  { %1619 = vmatpush.msra.mxu2 %v682_v56  ;;  %1638 = vmatpush.msra.mxu3 %v699_v57  ;;  %v747_v56 = vld [vmem:[#allocation2 + $0x1350] sm:$0xff]  ;;  %v764_v57 = vld [vmem:[#allocation2 + $0x13d8] sm:$0xff] }
 0x131   :  { %1580 = vmatpush.msra.mxu0 %v649_v58  ;;  %1599 = vmatpush.msra.mxu1 %v666_v59  ;;  %v714_v58 = vld [vmem:[#allocation2 + $0x1248] sm:$0xff]  ;;  %v731_v59 = vld [vmem:[#allocation2 + $0x12d0] sm:$0xff] }
 0x132   :  { %1620 = vmatpush.msra.mxu2 %v681_v60  ;;  %1639 = vmatpush.msra.mxu3 %v698_v61  ;;  %v746_v60 = vld [vmem:[#allocation2 + $0x1348] sm:$0xff]  ;;  %v763_v61 = vld [vmem:[#allocation2 + $0x13d0] sm:$0xff] }
 0x133   :  { %1581 = vmatpush.msra.mxu0 %v648_v62  ;;  %1600 = vmatpush.msra.mxu1 %v665_v63  ;;  %v713_v62 = vld [vmem:[#allocation2 + $0x1240] sm:$0xff]  ;;  %v730_v63 = vld [vmem:[#allocation2 + $0x12c8] sm:$0xff] }
 0x134   :  { %1621 = vmatpush.msra.mxu2 %v680_v0  ;;  %1640 = vmatpush.msra.mxu3 %v697_v1  ;;  %v745_v0 = vld [vmem:[#allocation2 + $0x1340] sm:$0xff]  ;;  %v762_v1 = vld [vmem:[#allocation2 + $0x13c8] sm:$0xff] }
 0x135   :  { %1582 = vmatpush.msra.mxu0 %v647_v2  ;;  %1601 = vmatpush.msra.mxu1 %v664_v3  ;;  %v712_v2 = vld [vmem:[#allocation2 + $0x1238] sm:$0xff]  ;;  %v729_v3 = vld [vmem:[#allocation2 + $0x12c0] sm:$0xff] }
 0x136   :  { %1622 = vmatpush.msra.mxu2 %v679_v4  ;;  %1641 = vmatpush.msra.mxu3 %v696_v5  ;;  %v744_v4 = vld [vmem:[#allocation2 + $0x1338] sm:$0xff]  ;;  %v761_v5 = vld [vmem:[#allocation2 + $0x13c0] sm:$0xff] }
 0x137   :  { %1583 = vmatpush.msra.mxu0 %v646_v6  ;;  %1602 = vmatpush.msra.mxu1 %v663_v7  ;;  %v711_v6 = vld [vmem:[#allocation2 + $0x1230] sm:$0xff]  ;;  %v728_v7 = vld [vmem:[#allocation2 + $0x12b8] sm:$0xff] }
 0x138   :  { %1623 = vmatpush.msra.mxu2 %v678_v8  ;;  %1642 = vmatpush.msra.mxu3 %v695_v9  ;;  %v743_v8 = vld [vmem:[#allocation2 + $0x1330] sm:$0xff]  ;;  %v760_v9 = vld [vmem:[#allocation2 + $0x13b8] sm:$0xff] }
 0x139   :  { %1584 = vmatpush.msra.mxu0 %v645_v10  ;;  %1603 = vmatpush.msra.mxu1 %v662_v11  ;;  %v710_v10 = vld [vmem:[#allocation2 + $0x1228] sm:$0xff]  ;;  %v727_v11 = vld [vmem:[#allocation2 + $0x12b0] sm:$0xff] }
 0x13a   :  { %1624 = vmatpush.msra.mxu2 %v677_v12  ;;  %1643 = vmatpush.msra.mxu3 %v694_v13  ;;  %v742_v12 = vld [vmem:[#allocation2 + $0x1328] sm:$0xff]  ;;  %v759_v13 = vld [vmem:[#allocation2 + $0x13b0] sm:$0xff] }
 0x13b   :  { %1585 = vmatpush.msra.mxu0 %v644_v14  ;;  %1604 = vmatpush.msra.mxu1 %v661_v15  ;;  %v709_v14 = vld [vmem:[#allocation2 + $0x1220] sm:$0xff]  ;;  %v726_v15 = vld [vmem:[#allocation2 + $0x12a8] sm:$0xff] }
 0x13c   :  { %1625 = vmatpush.msra.mxu2 %v676_v16  ;;  %1644 = vmatpush.msra.mxu3 %v693_v17  ;;  %v741_v16 = vld [vmem:[#allocation2 + $0x1320] sm:$0xff]  ;;  %v758_v17 = vld [vmem:[#allocation2 + $0x13a8] sm:$0xff] }
 0x13d   :  { %1586 = vmatpush.msra.mxu0 %v643_v18  ;;  %1605 = vmatpush.msra.mxu1 %v660_v19  ;;  %v708_v18 = vld [vmem:[#allocation2 + $0x1218] sm:$0xff]  ;;  %v725_v19 = vld [vmem:[#allocation2 + $0x12a0] sm:$0xff] }
 0x13e   :  { %1626 = vmatpush.msra.mxu2 %v675_v20  ;;  %1645 = vmatpush.msra.mxu3 %v692_v21  ;;  %v740_v20 = vld [vmem:[#allocation2 + $0x1318] sm:$0xff]  ;;  %v757_v21 = vld [vmem:[#allocation2 + $0x13a0] sm:$0xff] }
 0x13f   :  { %1587 = vmatpush.msra.mxu0 %v642_v22  ;;  %1606 = vmatpush.msra.mxu1 %v659_v23  ;;  %v707_v22 = vld [vmem:[#allocation2 + $0x1210] sm:$0xff]  ;;  %v724_v23 = vld [vmem:[#allocation2 + $0x1298] sm:$0xff] }
 0x140   :  { %1627 = vmatpush.msra.mxu2 %v674_v24  ;;  %1646 = vmatpush.msra.mxu3 %v691_v25  ;;  %v739_v24 = vld [vmem:[#allocation2 + $0x1310] sm:$0xff]  ;;  %v756_v25 = vld [vmem:[#allocation2 + $0x1398] sm:$0xff] }
 0x141   :  { %1588 = vmatpush.msra.mxu0 %v641_v26  ;;  %1607 = vmatpush.msra.mxu1 %v658_v27  ;;  %v706_v26 = vld [vmem:[#allocation2 + $0x1208] sm:$0xff]  ;;  %v723_v27 = vld [vmem:[#allocation2 + $0x1290] sm:$0xff] }
 0x142   :  { %1628 = vmatpush.msra.mxu2 %v673_v28  ;;  %1647 = vmatpush.msra.mxu3 %v690_v29  ;;  %v738_v28 = vld [vmem:[#allocation2 + $0x1308] sm:$0xff]  ;;  %v755_v29 = vld [vmem:[#allocation2 + $0x1390] sm:$0xff] }
 0x143   :  { %1589 = vmatmul.f32.vlgmr.msra.gmra.mxu0 %v111_v30  ;;  %1629 = vmatmul.f32.vlgmr.msra.gmra.mxu2 %v113_v31  ;;  %v705_v30 = vld [vmem:[#allocation2 + $0x1200] sm:$0xff]  ;;  %v722_v31 = vld [vmem:[#allocation2 + $0x1288] sm:$0xff] }
 0x144   :  { %1653 = vmatpush.msrb.mxu0 %v720_v32  ;;  %1693 = vmatpush.msrb.mxu2 %v752_v33  ;;  %v737_v32 = vld [vmem:[#allocation2 + $0x1300] sm:$0xff]  ;;  %v754_v33 = vld [vmem:[#allocation2 + $0x1388] sm:$0xff] }
 0x145   :  { %1608 = vmatpush.msra.mxu1 %v657_v34  ;;  %1648 = vmatpush.msra.mxu3 %v689_v35  ;;  %v115_v34 = vld [vmem:[%s2293_s0 + $0x120] sm:$0xff]  ;;  %v117_v35 = vld [vmem:[%s2293_s0 + $0x130] sm:$0xff] }
 0x146   :  { %1609 = vmatmul.f32.vlgmr.msra.gmra.mxu1 %v112_v36  ;;  %1649 = vmatmul.f32.vlgmr.msra.gmra.mxu3 %v114_v37  ;;  %v784_v36 = vld [vmem:[#allocation2 + $0x1478] sm:$0xff] }
 0x147   :  { %1654 = vmatpush.msrb.mxu0 %v719_v38  ;;  %1673 = vmatpush.msrb.mxu1 %v736_v39  ;;  %v816_v37 = vld [vmem:[#allocation2 + $0x1578] sm:$0xff]  ;;  %v721_v38 = vld [vmem:[#allocation2 + $0x1280] sm:$0xff] }
 0x148   :  { %1694 = vmatpush.msrb.mxu2 %v751_v40  ;;  %1713 = vmatpush.msrb.mxu3 %v768_v41  ;;  %v753_v39 = vld [vmem:[#allocation2 + $0x1380] sm:$0xff]  ;;  %v116_v40 = vld [vmem:[%s2293_s0 + $0x128] sm:$0xff]  ;;  %v118_v41 = vld [vmem:[%s2293_s0 + $0x138] sm:$0xff] }
 0x149   :  { %1655 = vmatpush.msrb.mxu0 %v718_v42  ;;  %1674 = vmatpush.msrb.mxu1 %v735_v43  ;;  %v783_v42 = vld [vmem:[#allocation2 + $0x1470] sm:$0xff]  ;;  %v800_v43 = vld [vmem:[#allocation2 + $0x14f8] sm:$0xff] }
 0x14a   :  { %1695 = vmatpush.msrb.mxu2 %v750_v44  ;;  %1714 = vmatpush.msrb.mxu3 %v767_v45  ;;  %v815_v44 = vld [vmem:[#allocation2 + $0x1570] sm:$0xff]  ;;  %v832_v45 = vld [vmem:[#allocation2 + $0x15f8] sm:$0xff] }
 0x14b   :  { %1656 = vmatpush.msrb.mxu0 %v717_v46  ;;  %1675 = vmatpush.msrb.mxu1 %v734_v47  ;;  %v782_v46 = vld [vmem:[#allocation2 + $0x1468] sm:$0xff]  ;;  %v799_v47 = vld [vmem:[#allocation2 + $0x14f0] sm:$0xff] }
 0x14c   :  { %1696 = vmatpush.msrb.mxu2 %v749_v48  ;;  %1715 = vmatpush.msrb.mxu3 %v766_v49  ;;  %v814_v48 = vld [vmem:[#allocation2 + $0x1568] sm:$0xff]  ;;  %v831_v49 = vld [vmem:[#allocation2 + $0x15f0] sm:$0xff] }
 0x14d   :  { %1657 = vmatpush.msrb.mxu0 %v716_v50  ;;  %1676 = vmatpush.msrb.mxu1 %v733_v51  ;;  %v781_v50 = vld [vmem:[#allocation2 + $0x1460] sm:$0xff]  ;;  %v798_v51 = vld [vmem:[#allocation2 + $0x14e8] sm:$0xff] }
 0x14e   :  { %1697 = vmatpush.msrb.mxu2 %v748_v52  ;;  %1716 = vmatpush.msrb.mxu3 %v765_v53  ;;  %v813_v52 = vld [vmem:[#allocation2 + $0x1560] sm:$0xff]  ;;  %v830_v53 = vld [vmem:[#allocation2 + $0x15e8] sm:$0xff] }
 0x14f   :  { %1658 = vmatpush.msrb.mxu0 %v715_v54  ;;  %1677 = vmatpush.msrb.mxu1 %v732_v55  ;;  %v780_v54 = vld [vmem:[#allocation2 + $0x1458] sm:$0xff]  ;;  %v797_v55 = vld [vmem:[#allocation2 + $0x14e0] sm:$0xff] }
 0x150   :  { %1698 = vmatpush.msrb.mxu2 %v747_v56  ;;  %1717 = vmatpush.msrb.mxu3 %v764_v57  ;;  %v812_v56 = vld [vmem:[#allocation2 + $0x1558] sm:$0xff]  ;;  %v829_v57 = vld [vmem:[#allocation2 + $0x15e0] sm:$0xff] }
 0x151   :  { %1659 = vmatpush.msrb.mxu0 %v714_v58  ;;  %1678 = vmatpush.msrb.mxu1 %v731_v59  ;;  %v779_v58 = vld [vmem:[#allocation2 + $0x1450] sm:$0xff]  ;;  %v796_v59 = vld [vmem:[#allocation2 + $0x14d8] sm:$0xff] }
 0x152   :  { %1699 = vmatpush.msrb.mxu2 %v746_v60  ;;  %1718 = vmatpush.msrb.mxu3 %v763_v61  ;;  %v811_v60 = vld [vmem:[#allocation2 + $0x1550] sm:$0xff]  ;;  %v828_v61 = vld [vmem:[#allocation2 + $0x15d8] sm:$0xff] }
 0x153   :  { %1660 = vmatpush.msrb.mxu0 %v713_v62  ;;  %1679 = vmatpush.msrb.mxu1 %v730_v63  ;;  %v778_v62 = vld [vmem:[#allocation2 + $0x1448] sm:$0xff]  ;;  %v795_v63 = vld [vmem:[#allocation2 + $0x14d0] sm:$0xff] }
 0x154   :  { %1700 = vmatpush.msrb.mxu2 %v745_v0  ;;  %1719 = vmatpush.msrb.mxu3 %v762_v1  ;;  %v810_v0 = vld [vmem:[#allocation2 + $0x1548] sm:$0xff]  ;;  %v827_v1 = vld [vmem:[#allocation2 + $0x15d0] sm:$0xff] }
 0x155   :  { %1661 = vmatpush.msrb.mxu0 %v712_v2  ;;  %1680 = vmatpush.msrb.mxu1 %v729_v3  ;;  %v777_v2 = vld [vmem:[#allocation2 + $0x1440] sm:$0xff]  ;;  %v794_v3 = vld [vmem:[#allocation2 + $0x14c8] sm:$0xff] }
 0x156   :  { %1701 = vmatpush.msrb.mxu2 %v744_v4  ;;  %1720 = vmatpush.msrb.mxu3 %v761_v5  ;;  %v809_v4 = vld [vmem:[#allocation2 + $0x1540] sm:$0xff]  ;;  %v826_v5 = vld [vmem:[#allocation2 + $0x15c8] sm:$0xff] }
 0x157   :  { %1662 = vmatpush.msrb.mxu0 %v711_v6  ;;  %1681 = vmatpush.msrb.mxu1 %v728_v7  ;;  %v776_v6 = vld [vmem:[#allocation2 + $0x1438] sm:$0xff]  ;;  %v793_v7 = vld [vmem:[#allocation2 + $0x14c0] sm:$0xff] }
 0x158   :  { %1702 = vmatpush.msrb.mxu2 %v743_v8  ;;  %1721 = vmatpush.msrb.mxu3 %v760_v9  ;;  %v808_v8 = vld [vmem:[#allocation2 + $0x1538] sm:$0xff]  ;;  %v825_v9 = vld [vmem:[#allocation2 + $0x15c0] sm:$0xff] }
 0x159   :  { %1663 = vmatpush.msrb.mxu0 %v710_v10  ;;  %1682 = vmatpush.msrb.mxu1 %v727_v11  ;;  %v775_v10 = vld [vmem:[#allocation2 + $0x1430] sm:$0xff]  ;;  %v792_v11 = vld [vmem:[#allocation2 + $0x14b8] sm:$0xff] }
 0x15a   :  { %1703 = vmatpush.msrb.mxu2 %v742_v12  ;;  %1722 = vmatpush.msrb.mxu3 %v759_v13  ;;  %v807_v12 = vld [vmem:[#allocation2 + $0x1530] sm:$0xff]  ;;  %v824_v13 = vld [vmem:[#allocation2 + $0x15b8] sm:$0xff] }
 0x15b   :  { %1664 = vmatpush.msrb.mxu0 %v709_v14  ;;  %1683 = vmatpush.msrb.mxu1 %v726_v15  ;;  %v774_v14 = vld [vmem:[#allocation2 + $0x1428] sm:$0xff]  ;;  %v791_v15 = vld [vmem:[#allocation2 + $0x14b0] sm:$0xff] }
 0x15c   :  { %1704 = vmatpush.msrb.mxu2 %v741_v16  ;;  %1723 = vmatpush.msrb.mxu3 %v758_v17  ;;  %v806_v16 = vld [vmem:[#allocation2 + $0x1528] sm:$0xff]  ;;  %v823_v17 = vld [vmem:[#allocation2 + $0x15b0] sm:$0xff] }
 0x15d   :  { %1665 = vmatpush.msrb.mxu0 %v708_v18  ;;  %1684 = vmatpush.msrb.mxu1 %v725_v19  ;;  %v773_v18 = vld [vmem:[#allocation2 + $0x1420] sm:$0xff]  ;;  %v790_v19 = vld [vmem:[#allocation2 + $0x14a8] sm:$0xff] }
 0x15e   :  { %1705 = vmatpush.msrb.mxu2 %v740_v20  ;;  %1724 = vmatpush.msrb.mxu3 %v757_v21  ;;  %v805_v20 = vld [vmem:[#allocation2 + $0x1520] sm:$0xff]  ;;  %v822_v21 = vld [vmem:[#allocation2 + $0x15a8] sm:$0xff] }
 0x15f   :  { %1666 = vmatpush.msrb.mxu0 %v707_v22  ;;  %1685 = vmatpush.msrb.mxu1 %v724_v23  ;;  %v772_v22 = vld [vmem:[#allocation2 + $0x1418] sm:$0xff]  ;;  %v789_v23 = vld [vmem:[#allocation2 + $0x14a0] sm:$0xff] }
 0x160   :  { %1706 = vmatpush.msrb.mxu2 %v739_v24  ;;  %1725 = vmatpush.msrb.mxu3 %v756_v25  ;;  %v804_v24 = vld [vmem:[#allocation2 + $0x1518] sm:$0xff]  ;;  %v821_v25 = vld [vmem:[#allocation2 + $0x15a0] sm:$0xff] }
 0x161   :  { %1667 = vmatpush.msrb.mxu0 %v706_v26  ;;  %1686 = vmatpush.msrb.mxu1 %v723_v27  ;;  %v771_v26 = vld [vmem:[#allocation2 + $0x1410] sm:$0xff]  ;;  %v788_v27 = vld [vmem:[#allocation2 + $0x1498] sm:$0xff] }
 0x162   :  { %1707 = vmatpush.msrb.mxu2 %v738_v28  ;;  %1726 = vmatpush.msrb.mxu3 %v755_v29  ;;  %v803_v28 = vld [vmem:[#allocation2 + $0x1510] sm:$0xff]  ;;  %v820_v29 = vld [vmem:[#allocation2 + $0x1598] sm:$0xff] }
 0x163   :  { %1668 = vmatpush.msrb.mxu0 %v705_v30  ;;  %1687 = vmatpush.msrb.mxu1 %v722_v31  ;;  %v770_v30 = vld [vmem:[#allocation2 + $0x1408] sm:$0xff]  ;;  %v787_v31 = vld [vmem:[#allocation2 + $0x1490] sm:$0xff] }
 0x164   :  { %1708 = vmatpush.msrb.mxu2 %v737_v32  ;;  %1727 = vmatpush.msrb.mxu3 %v754_v33  ;;  %v802_v32 = vld [vmem:[#allocation2 + $0x1508] sm:$0xff]  ;;  %v819_v33 = vld [vmem:[#allocation2 + $0x1590] sm:$0xff] }
 0x165   :  { %1669 = vmatmul.f32.vlgmr.msrb.gmra.mxu0 %v115_v34  ;;  %1709 = vmatmul.f32.vlgmr.msrb.gmra.mxu2 %v117_v35  ;;  %v769_v34 = vld [vmem:[#allocation2 + $0x1400] sm:$0xff]  ;;  %v786_v35 = vld [vmem:[#allocation2 + $0x1488] sm:$0xff] }
 0x166   :  { %1733 = vmatpush.msra.mxu0 %v784_v36  ;;  %1773 = vmatpush.msra.mxu2 %v816_v37  ;;  %v801_v36 = vld [vmem:[#allocation2 + $0x1500] sm:$0xff]  ;;  %v818_v37 = vld [vmem:[#allocation2 + $0x1588] sm:$0xff] }
 0x167   :  { %1688 = vmatpush.msrb.mxu1 %v721_v38  ;;  %1728 = vmatpush.msrb.mxu3 %v753_v39  ;;  %v119_v38 = vld [vmem:[%s2293_s0 + $0x140] sm:$0xff]  ;;  %v121_v39 = vld [vmem:[%s2293_s0 + $0x150] sm:$0xff] }
 0x168   :  { %1689 = vmatmul.f32.vlgmr.msrb.gmra.mxu1 %v116_v40  ;;  %1729 = vmatmul.f32.vlgmr.msrb.gmra.mxu3 %v118_v41  ;;  %v848_v40 = vld [vmem:[#allocation2 + $0x1678] sm:$0xff] }
 0x169   :  { %1734 = vmatpush.msra.mxu0 %v783_v42  ;;  %1753 = vmatpush.msra.mxu1 %v800_v43  ;;  %v880_v41 = vld [vmem:[#allocation2 + $0x1778] sm:$0xff]  ;;  %v785_v42 = vld [vmem:[#allocation2 + $0x1480] sm:$0xff] }
 0x16a   :  { %1774 = vmatpush.msra.mxu2 %v815_v44  ;;  %1793 = vmatpush.msra.mxu3 %v832_v45  ;;  %v817_v43 = vld [vmem:[#allocation2 + $0x1580] sm:$0xff]  ;;  %v120_v44 = vld [vmem:[%s2293_s0 + $0x148] sm:$0xff]  ;;  %v122_v45 = vld [vmem:[%s2293_s0 + $0x158] sm:$0xff] }
 0x16b   :  { %1735 = vmatpush.msra.mxu0 %v782_v46  ;;  %1754 = vmatpush.msra.mxu1 %v799_v47  ;;  %v847_v46 = vld [vmem:[#allocation2 + $0x1670] sm:$0xff]  ;;  %v864_v47 = vld [vmem:[#allocation2 + $0x16f8] sm:$0xff] }
 0x16c   :  { %1775 = vmatpush.msra.mxu2 %v814_v48  ;;  %1794 = vmatpush.msra.mxu3 %v831_v49  ;;  %v879_v48 = vld [vmem:[#allocation2 + $0x1770] sm:$0xff]  ;;  %v896_v49 = vld [vmem:[#allocation2 + $0x17f8] sm:$0xff] }
 0x16d   :  { %1736 = vmatpush.msra.mxu0 %v781_v50  ;;  %1755 = vmatpush.msra.mxu1 %v798_v51  ;;  %v846_v50 = vld [vmem:[#allocation2 + $0x1668] sm:$0xff]  ;;  %v863_v51 = vld [vmem:[#allocation2 + $0x16f0] sm:$0xff] }
 0x16e   :  { %1776 = vmatpush.msra.mxu2 %v813_v52  ;;  %1795 = vmatpush.msra.mxu3 %v830_v53  ;;  %v878_v52 = vld [vmem:[#allocation2 + $0x1768] sm:$0xff]  ;;  %v895_v53 = vld [vmem:[#allocation2 + $0x17f0] sm:$0xff] }
 0x16f   :  { %1737 = vmatpush.msra.mxu0 %v780_v54  ;;  %1756 = vmatpush.msra.mxu1 %v797_v55  ;;  %v845_v54 = vld [vmem:[#allocation2 + $0x1660] sm:$0xff]  ;;  %v862_v55 = vld [vmem:[#allocation2 + $0x16e8] sm:$0xff] }
 0x170   :  { %1777 = vmatpush.msra.mxu2 %v812_v56  ;;  %1796 = vmatpush.msra.mxu3 %v829_v57  ;;  %v877_v56 = vld [vmem:[#allocation2 + $0x1760] sm:$0xff]  ;;  %v894_v57 = vld [vmem:[#allocation2 + $0x17e8] sm:$0xff] }
 0x171   :  { %1738 = vmatpush.msra.mxu0 %v779_v58  ;;  %1757 = vmatpush.msra.mxu1 %v796_v59  ;;  %v844_v58 = vld [vmem:[#allocation2 + $0x1658] sm:$0xff]  ;;  %v861_v59 = vld [vmem:[#allocation2 + $0x16e0] sm:$0xff] }
 0x172   :  { %1778 = vmatpush.msra.mxu2 %v811_v60  ;;  %1797 = vmatpush.msra.mxu3 %v828_v61  ;;  %v876_v60 = vld [vmem:[#allocation2 + $0x1758] sm:$0xff]  ;;  %v893_v61 = vld [vmem:[#allocation2 + $0x17e0] sm:$0xff] }
 0x173   :  { %1739 = vmatpush.msra.mxu0 %v778_v62  ;;  %1758 = vmatpush.msra.mxu1 %v795_v63  ;;  %v843_v62 = vld [vmem:[#allocation2 + $0x1650] sm:$0xff]  ;;  %v860_v63 = vld [vmem:[#allocation2 + $0x16d8] sm:$0xff] }
 0x174   :  { %1779 = vmatpush.msra.mxu2 %v810_v0  ;;  %1798 = vmatpush.msra.mxu3 %v827_v1  ;;  %v875_v0 = vld [vmem:[#allocation2 + $0x1750] sm:$0xff]  ;;  %v892_v1 = vld [vmem:[#allocation2 + $0x17d8] sm:$0xff] }
 0x175   :  { %1740 = vmatpush.msra.mxu0 %v777_v2  ;;  %1759 = vmatpush.msra.mxu1 %v794_v3  ;;  %v842_v2 = vld [vmem:[#allocation2 + $0x1648] sm:$0xff]  ;;  %v859_v3 = vld [vmem:[#allocation2 + $0x16d0] sm:$0xff] }
 0x176   :  { %1780 = vmatpush.msra.mxu2 %v809_v4  ;;  %1799 = vmatpush.msra.mxu3 %v826_v5  ;;  %v874_v4 = vld [vmem:[#allocation2 + $0x1748] sm:$0xff]  ;;  %v891_v5 = vld [vmem:[#allocation2 + $0x17d0] sm:$0xff] }
 0x177   :  { %1741 = vmatpush.msra.mxu0 %v776_v6  ;;  %1760 = vmatpush.msra.mxu1 %v793_v7  ;;  %v841_v6 = vld [vmem:[#allocation2 + $0x1640] sm:$0xff]  ;;  %v858_v7 = vld [vmem:[#allocation2 + $0x16c8] sm:$0xff] }
 0x178   :  { %1781 = vmatpush.msra.mxu2 %v808_v8  ;;  %1800 = vmatpush.msra.mxu3 %v825_v9  ;;  %v873_v8 = vld [vmem:[#allocation2 + $0x1740] sm:$0xff]  ;;  %v890_v9 = vld [vmem:[#allocation2 + $0x17c8] sm:$0xff] }
 0x179   :  { %1742 = vmatpush.msra.mxu0 %v775_v10  ;;  %1761 = vmatpush.msra.mxu1 %v792_v11  ;;  %v840_v10 = vld [vmem:[#allocation2 + $0x1638] sm:$0xff]  ;;  %v857_v11 = vld [vmem:[#allocation2 + $0x16c0] sm:$0xff] }
 0x17a   :  { %1782 = vmatpush.msra.mxu2 %v807_v12  ;;  %1801 = vmatpush.msra.mxu3 %v824_v13  ;;  %v872_v12 = vld [vmem:[#allocation2 + $0x1738] sm:$0xff]  ;;  %v889_v13 = vld [vmem:[#allocation2 + $0x17c0] sm:$0xff] }
 0x17b   :  { %1743 = vmatpush.msra.mxu0 %v774_v14  ;;  %1762 = vmatpush.msra.mxu1 %v791_v15  ;;  %v839_v14 = vld [vmem:[#allocation2 + $0x1630] sm:$0xff]  ;;  %v856_v15 = vld [vmem:[#allocation2 + $0x16b8] sm:$0xff] }
 0x17c   :  { %1783 = vmatpush.msra.mxu2 %v806_v16  ;;  %1802 = vmatpush.msra.mxu3 %v823_v17  ;;  %v871_v16 = vld [vmem:[#allocation2 + $0x1730] sm:$0xff]  ;;  %v888_v17 = vld [vmem:[#allocation2 + $0x17b8] sm:$0xff] }
 0x17d   :  { %1744 = vmatpush.msra.mxu0 %v773_v18  ;;  %1763 = vmatpush.msra.mxu1 %v790_v19  ;;  %v838_v18 = vld [vmem:[#allocation2 + $0x1628] sm:$0xff]  ;;  %v855_v19 = vld [vmem:[#allocation2 + $0x16b0] sm:$0xff] }
 0x17e   :  { %1784 = vmatpush.msra.mxu2 %v805_v20  ;;  %1803 = vmatpush.msra.mxu3 %v822_v21  ;;  %v870_v20 = vld [vmem:[#allocation2 + $0x1728] sm:$0xff]  ;;  %v887_v21 = vld [vmem:[#allocation2 + $0x17b0] sm:$0xff] }
 0x17f   :  { %1745 = vmatpush.msra.mxu0 %v772_v22  ;;  %1764 = vmatpush.msra.mxu1 %v789_v23  ;;  %v837_v22 = vld [vmem:[#allocation2 + $0x1620] sm:$0xff]  ;;  %v854_v23 = vld [vmem:[#allocation2 + $0x16a8] sm:$0xff] }
 0x180   :  { %1785 = vmatpush.msra.mxu2 %v804_v24  ;;  %1804 = vmatpush.msra.mxu3 %v821_v25  ;;  %v869_v24 = vld [vmem:[#allocation2 + $0x1720] sm:$0xff]  ;;  %v886_v25 = vld [vmem:[#allocation2 + $0x17a8] sm:$0xff] }
 0x181   :  { %1746 = vmatpush.msra.mxu0 %v771_v26  ;;  %1765 = vmatpush.msra.mxu1 %v788_v27  ;;  %v836_v26 = vld [vmem:[#allocation2 + $0x1618] sm:$0xff]  ;;  %v853_v27 = vld [vmem:[#allocation2 + $0x16a0] sm:$0xff] }
 0x182   :  { %1786 = vmatpush.msra.mxu2 %v803_v28  ;;  %1805 = vmatpush.msra.mxu3 %v820_v29  ;;  %v868_v28 = vld [vmem:[#allocation2 + $0x1718] sm:$0xff]  ;;  %v885_v29 = vld [vmem:[#allocation2 + $0x17a0] sm:$0xff] }
 0x183   :  { %1747 = vmatpush.msra.mxu0 %v770_v30  ;;  %1766 = vmatpush.msra.mxu1 %v787_v31  ;;  %v835_v30 = vld [vmem:[#allocation2 + $0x1610] sm:$0xff]  ;;  %v852_v31 = vld [vmem:[#allocation2 + $0x1698] sm:$0xff] }
 0x184   :  { %1787 = vmatpush.msra.mxu2 %v802_v32  ;;  %1806 = vmatpush.msra.mxu3 %v819_v33  ;;  %v867_v32 = vld [vmem:[#allocation2 + $0x1710] sm:$0xff]  ;;  %v884_v33 = vld [vmem:[#allocation2 + $0x1798] sm:$0xff] }
 0x185   :  { %1748 = vmatpush.msra.mxu0 %v769_v34  ;;  %1767 = vmatpush.msra.mxu1 %v786_v35  ;;  %v834_v34 = vld [vmem:[#allocation2 + $0x1608] sm:$0xff]  ;;  %v851_v35 = vld [vmem:[#allocation2 + $0x1690] sm:$0xff] }
 0x186   :  { %1788 = vmatpush.msra.mxu2 %v801_v36  ;;  %1807 = vmatpush.msra.mxu3 %v818_v37  ;;  %v866_v36 = vld [vmem:[#allocation2 + $0x1708] sm:$0xff]  ;;  %v883_v37 = vld [vmem:[#allocation2 + $0x1790] sm:$0xff] }
 0x187   :  { %1749 = vmatmul.f32.vlgmr.msra.gmra.mxu0 %v119_v38  ;;  %1789 = vmatmul.f32.vlgmr.msra.gmra.mxu2 %v121_v39  ;;  %v833_v38 = vld [vmem:[#allocation2 + $0x1600] sm:$0xff]  ;;  %v850_v39 = vld [vmem:[#allocation2 + $0x1688] sm:$0xff] }
 0x188   :  { %1813 = vmatpush.msrb.mxu0 %v848_v40  ;;  %1853 = vmatpush.msrb.mxu2 %v880_v41  ;;  %v865_v40 = vld [vmem:[#allocation2 + $0x1700] sm:$0xff]  ;;  %v882_v41 = vld [vmem:[#allocation2 + $0x1788] sm:$0xff] }
 0x189   :  { %1768 = vmatpush.msra.mxu1 %v785_v42  ;;  %1808 = vmatpush.msra.mxu3 %v817_v43  ;;  %v123_v42 = vld [vmem:[%s2293_s0 + $0x160] sm:$0xff]  ;;  %v125_v43 = vld [vmem:[%s2293_s0 + $0x170] sm:$0xff] }
 0x18a   :  { %1769 = vmatmul.f32.vlgmr.msra.gmra.mxu1 %v120_v44  ;;  %1809 = vmatmul.f32.vlgmr.msra.gmra.mxu3 %v122_v45  ;;  %v912_v44 = vld [vmem:[#allocation2 + $0x1878] sm:$0xff]  ;;  %v849_v45 = vld [vmem:[#allocation2 + $0x1680] sm:$0xff] }
 0x18b   :  { %1814 = vmatpush.msrb.mxu0 %v847_v46  ;;  %1833 = vmatpush.msrb.mxu1 %v864_v47  ;;  %v881_v46 = vld [vmem:[#allocation2 + $0x1780] sm:$0xff]  ;;  %v124_v47 = vld [vmem:[%s2293_s0 + $0x168] sm:$0xff] }
 0x18c   :  { %1854 = vmatpush.msrb.mxu2 %v879_v48  ;;  %1873 = vmatpush.msrb.mxu3 %v896_v49  ;;  %v126_v48 = vld [vmem:[%s2293_s0 + $0x178] sm:$0xff]  ;;  %v911_v49 = vld [vmem:[#allocation2 + $0x1870] sm:$0xff] }
 0x18d   :  { %1815 = vmatpush.msrb.mxu0 %v846_v50  ;;  %1834 = vmatpush.msrb.mxu1 %v863_v51  ;;  %v928_v50 = vld [vmem:[#allocation2 + $0x18f8] sm:$0xff]  ;;  %v910_v51 = vld [vmem:[#allocation2 + $0x1868] sm:$0xff] }
 0x18e   :  { %1855 = vmatpush.msrb.mxu2 %v878_v52  ;;  %1874 = vmatpush.msrb.mxu3 %v895_v53  ;;  %v927_v52 = vld [vmem:[#allocation2 + $0x18f0] sm:$0xff]  ;;  %v1988_v53 = vld [vmem:[#allocation4] ss:$0 sm:$0xff] }
 0x18f   :  { %1816 = vmatpush.msrb.mxu0 %v845_v54  ;;  %1835 = vmatpush.msrb.mxu1 %v862_v55  ;;  %v909_v54 = vld [vmem:[#allocation2 + $0x1860] sm:$0xff]  ;;  %v950_v55 = vpop.f32.mrf.mxu0 }
 0x190   :  { %1856 = vmatpush.msrb.mxu2 %v877_v56  ;;  %1875 = vmatpush.msrb.mxu3 %v894_v57  ;;  %v926_v56 = vld [vmem:[#allocation2 + $0x18e8] sm:$0xff]  ;;  %v908_v57 = vld [vmem:[#allocation2 + $0x1858] sm:$0xff] }
 0x191   :  { %1817 = vmatpush.msrb.mxu0 %v844_v58  ;;  %1836 = vmatpush.msrb.mxu1 %v861_v59  ;;  %v925_v58 = vld [vmem:[#allocation2 + $0x18e0] sm:$0xff]  ;;  %v951_v59 = vadd.f32 %v1988_v53, %v950_v55 }
 0x192   :  { %1857 = vmatpush.msrb.mxu2 %v876_v60  ;;  %1876 = vmatpush.msrb.mxu3 %v893_v61  ;;  %v907_v60 = vld [vmem:[#allocation2 + $0x1850] sm:$0xff]  ;;  %v970_v61 = vpop.f32.mrf.mxu1 }
 0x193   :  { %1818 = vmatpush.msrb.mxu0 %v843_v62  ;;  %1837 = vmatpush.msrb.mxu1 %v860_v63  ;;  %v924_v62 = vld [vmem:[#allocation2 + $0x18d8] sm:$0xff]  ;;  %v906_v63 = vld [vmem:[#allocation2 + $0x1848] sm:$0xff] }
 0x194   :  { %1858 = vmatpush.msrb.mxu2 %v875_v0  ;;  %1877 = vmatpush.msrb.mxu3 %v892_v1  ;;  %v923_v0 = vld [vmem:[#allocation2 + $0x18d0] sm:$0xff]  ;;  %v971_v1 = vadd.f32 %v970_v61, %v951_v59 }
 0x195   :  { %1819 = vmatpush.msrb.mxu0 %v842_v2  ;;  %1838 = vmatpush.msrb.mxu1 %v859_v3  ;;  %v905_v2 = vld [vmem:[#allocation2 + $0x1840] sm:$0xff]  ;;  %v990_v3 = vpop.f32.mrf.mxu2 }
 0x196   :  { %1859 = vmatpush.msrb.mxu2 %v874_v4  ;;  %1878 = vmatpush.msrb.mxu3 %v891_v5  ;;  %v922_v4 = vld [vmem:[#allocation2 + $0x18c8] sm:$0xff]  ;;  %v904_v5 = vld [vmem:[#allocation2 + $0x1838] sm:$0xff] }
 0x197   :  { %1820 = vmatpush.msrb.mxu0 %v841_v6  ;;  %1839 = vmatpush.msrb.mxu1 %v858_v7  ;;  %v921_v6 = vld [vmem:[#allocation2 + $0x18c0] sm:$0xff]  ;;  %v991_v7 = vadd.f32 %v990_v3, %v971_v1 }
 0x198   :  { %1860 = vmatpush.msrb.mxu2 %v873_v8  ;;  %1879 = vmatpush.msrb.mxu3 %v890_v9  ;;  %v903_v8 = vld [vmem:[#allocation2 + $0x1830] sm:$0xff]  ;;  %v1010_v9 = vpop.f32.mrf.mxu3 }
 0x199   :  { %1821 = vmatpush.msrb.mxu0 %v840_v10  ;;  %1840 = vmatpush.msrb.mxu1 %v857_v11  ;;  %v920_v10 = vld [vmem:[#allocation2 + $0x18b8] sm:$0xff]  ;;  %v902_v11 = vld [vmem:[#allocation2 + $0x1828] sm:$0xff] }
 0x19a   :  { %1861 = vmatpush.msrb.mxu2 %v872_v12  ;;  %1880 = vmatpush.msrb.mxu3 %v889_v13  ;;  %v919_v12 = vld [vmem:[#allocation2 + $0x18b0] sm:$0xff]  ;;  %v1011_v13 = vadd.f32 %v1010_v9, %v991_v7 }
 0x19b   :  { %1822 = vmatpush.msrb.mxu0 %v839_v14  ;;  %1841 = vmatpush.msrb.mxu1 %v856_v15  ;;  %v901_v14 = vld [vmem:[#allocation2 + $0x1820] sm:$0xff]  ;;  %v1030_v15 = vpop.f32.mrf.mxu0 }
 0x19c   :  { %1862 = vmatpush.msrb.mxu2 %v871_v16  ;;  %1881 = vmatpush.msrb.mxu3 %v888_v17  ;;  %v918_v16 = vld [vmem:[#allocation2 + $0x18a8] sm:$0xff]  ;;  %v900_v17 = vld [vmem:[#allocation2 + $0x1818] sm:$0xff] }
 0x19d   :  { %1823 = vmatpush.msrb.mxu0 %v838_v18  ;;  %1842 = vmatpush.msrb.mxu1 %v855_v19  ;;  %v917_v18 = vld [vmem:[#allocation2 + $0x18a0] sm:$0xff]  ;;  %v1031_v19 = vadd.f32 %v1030_v15, %v1011_v13 }
 0x19e   :  { %1863 = vmatpush.msrb.mxu2 %v870_v20  ;;  %1882 = vmatpush.msrb.mxu3 %v887_v21  ;;  %v899_v20 = vld [vmem:[#allocation2 + $0x1810] sm:$0xff]  ;;  %v1050_v21 = vpop.f32.mrf.mxu1 }
 0x19f   :  { %1824 = vmatpush.msrb.mxu0 %v837_v22  ;;  %1843 = vmatpush.msrb.mxu1 %v854_v23  ;;  %v916_v22 = vld [vmem:[#allocation2 + $0x1898] sm:$0xff]  ;;  %v898_v23 = vld [vmem:[#allocation2 + $0x1808] sm:$0xff] }
 0x1a0   :  { %1864 = vmatpush.msrb.mxu2 %v869_v24  ;;  %1883 = vmatpush.msrb.mxu3 %v886_v25  ;;  %v915_v24 = vld [vmem:[#allocation2 + $0x1890] sm:$0xff]  ;;  %v1051_v25 = vadd.f32 %v1050_v21, %v1031_v19  ;;  %v1946_v21 = vld [vmem:[#allocation6 + $0x60] sm:$0xff] }
 0x1a1   :  { %1825 = vmatpush.msrb.mxu0 %v836_v26  ;;  %1844 = vmatpush.msrb.mxu1 %v853_v27  ;;  %v897_v26 = vld [vmem:[#allocation2 + $0x1800] sm:$0xff]  ;;  %v1070_v27 = vpop.f32.mrf.mxu2 }
 0x1a2   :  { %1865 = vmatpush.msrb.mxu2 %v868_v28  ;;  %1884 = vmatpush.msrb.mxu3 %v885_v29  ;;  %v914_v28 = vld [vmem:[#allocation2 + $0x1888] sm:$0xff]  ;;  %v127_v29 = vld [vmem:[%s2293_s0 + $0x180] sm:$0xff] }
 0x1a3   :  { %1826 = vmatpush.msrb.mxu0 %v835_v30  ;;  %1845 = vmatpush.msrb.mxu1 %v852_v31  ;;  %v913_v30 = vld [vmem:[#allocation2 + $0x1880] sm:$0xff]  ;;  %v1071_v31 = vadd.f32 %v1070_v27, %v1051_v25  ;;  %v1944_v25 = vld [vmem:[#allocation6 + $0x50] sm:$0xff] }
 0x1a4   :  { %1866 = vmatpush.msrb.mxu2 %v867_v32  ;;  %1885 = vmatpush.msrb.mxu3 %v884_v33  ;;  %v128_v32 = vld [vmem:[%s2293_s0 + $0x188] sm:$0xff]  ;;  %v1090_v33 = vpop.f32.mrf.mxu3 }
 0x1a5   :  { %1827 = vmatpush.msrb.mxu0 %v834_v34  ;;  %1846 = vmatpush.msrb.mxu1 %v851_v35  ;;  %v1110_v34 = vpop.f32.mrf.mxu0  ;;  %v1091_v35 = vadd.f32 %v1090_v33, %v1071_v31 }
 0x1a6   :  { %1867 = vmatpush.msrb.mxu2 %v866_v36  ;;  %1886 = vmatpush.msrb.mxu3 %v883_v37  ;;  %v1130_v37 = vpop.f32.mrf.mxu1 }
 0x1a7   :  { %1828 = vmatpush.msrb.mxu0 %v833_v38  ;;  %1847 = vmatpush.msrb.mxu1 %v850_v39  ;;  %v1111_v36 = vadd.f32 %v1110_v34, %v1091_v35  ;;  %v1940_v35 = vld [vmem:[#allocation6 + $0x30] sm:$0xff] }
 0x1a8   :  { %1868 = vmatpush.msrb.mxu2 %v865_v40  ;;  %1887 = vmatpush.msrb.mxu3 %v882_v41 }
 0x1a9   :  { %1829 = vmatmul.f32.vlgmr.msrb.gmra.mxu0 %v123_v42  ;;  %1869 = vmatmul.f32.vlgmr.msrb.gmra.mxu2 %v125_v43  ;;  %v1150_v38 = vpop.f32.mrf.mxu2  ;;  %v1131_v39 = vadd.f32 %v1130_v37, %v1111_v36  ;;  %v1939_v37 = vld [vmem:[#allocation6 + $0x28] sm:$0xff] }
 0x1aa   :  { %1893 = vmatpush.msra.mxu0 %v912_v44  ;;  %1848 = vmatpush.msrb.mxu1 %v849_v45 }
 0x1ab   :  { %1888 = vmatpush.msrb.mxu3 %v881_v46  ;;  %1849 = vmatmul.f32.vlgmr.msrb.gmra.mxu1 %v124_v47  ;;  %v1151_v40 = vadd.f32 %v1150_v38, %v1131_v39  ;;  %v1938_v39 = vld [vmem:[#allocation6 + $0x20] sm:$0xff] }
 0x1ac   :  { %1889 = vmatmul.f32.vlgmr.msrb.gmra.mxu3 %v126_v48  ;;  %1894 = vmatpush.msra.mxu0 %v911_v49  ;;  %v1170_v41 = vpop.f32.mrf.mxu3 }
 0x1ad   :  { %1913 = vmatpush.msra.mxu1 %v928_v50  ;;  %v1190_v42 = vpop.f32.mrf.mxu0  ;;  %v1171_v43 = vadd.f32 %v1170_v41, %v1151_v40 }
 0x1ae   :  { %1895 = vmatpush.msra.mxu0 %v910_v51  ;;  %v1210_v45 = vpop.f32.mrf.mxu1 }
 0x1af   :  { %1914 = vmatpush.msra.mxu1 %v927_v52  ;;  %v1191_v44 = vadd.f32 %v1190_v42, %v1171_v43  ;;  %v1937_v43 = vld [vmem:[#allocation6 + $0x18] sm:$0xff] }
 0x1b0   :  { %1896 = vmatpush.msra.mxu0 %v909_v54 }
 0x1b1   :  { %1915 = vmatpush.msra.mxu1 %v926_v56  ;;  %v1230_v46 = vpop.f32.mrf.mxu2  ;;  %v1211_v47 = vadd.f32 %v1210_v45, %v1191_v44  ;;  %v1936_v45 = vld [vmem:[#allocation6 + $0x10] sm:$0xff] }
 0x1b2   :  { %1897 = vmatpush.msra.mxu0 %v908_v57 }
 0x1b3   :  { %1916 = vmatpush.msra.mxu1 %v925_v58  ;;  %v1231_v48 = vadd.f32 %v1230_v46, %v1211_v47 }
 0x1b4   :  { %1898 = vmatpush.msra.mxu0 %v907_v60  ;;  %v1250_v49 = vpop.f32.mrf.mxu3 }
 0x1b5   :  { %1917 = vmatpush.msra.mxu1 %v924_v62  ;;  %v1270_v50 = vpop.f32.mrf.mxu0  ;;  %v1251_v51 = vadd.f32 %v1250_v49, %v1231_v48  ;;  %v1935_v48 = vld [vmem:[#allocation6 + $0x8] sm:$0xff] }
 0x1b6   :  { %1899 = vmatpush.msra.mxu0 %v906_v63  ;;  %v1290_v53 = vpop.f32.mrf.mxu1 }
 0x1b7   :  { %1918 = vmatpush.msra.mxu1 %v923_v0  ;;  %v1271_v52 = vadd.f32 %v1270_v50, %v1251_v51  ;;  %v1934_v50 = vld [vmem:[#allocation6] sm:$0xff] }
 0x1b8   :  { %1900 = vmatpush.msra.mxu0 %v905_v2 }
 0x1b9   :  { %1919 = vmatpush.msra.mxu1 %v922_v4  ;;  %v1310_v54 = vpop.f32.mrf.mxu2  ;;  %v1291_v55 = vadd.f32 %v1290_v53, %v1271_v52 }
 0x1ba   :  { %1901 = vmatpush.msra.mxu0 %v904_v5 }
 0x1bb   :  { %1920 = vmatpush.msra.mxu1 %v921_v6  ;;  %v1311_v56 = vadd.f32 %v1310_v54, %v1291_v55 }
 0x1bc   :  { %1902 = vmatpush.msra.mxu0 %v903_v8  ;;  %v1330_v57 = vpop.f32.mrf.mxu3 }
 0x1bd   :  { %1921 = vmatpush.msra.mxu1 %v920_v10  ;;  %v1350_v58 = vpop.f32.mrf.mxu0  ;;  %v1331_v59 = vadd.f32 %v1330_v57, %v1311_v56 }
 0x1be   :  { %1903 = vmatpush.msra.mxu0 %v902_v11  ;;  %v1370_v61 = vpop.f32.mrf.mxu1 }
 0x1bf   :  { %1922 = vmatpush.msra.mxu1 %v919_v12  ;;  %v1351_v60 = vadd.f32 %v1350_v58, %v1331_v59 }
 0x1c0   :  { %1904 = vmatpush.msra.mxu0 %v901_v14  ;;  %v1949_v14 = vld [vmem:[#allocation6 + $0x78] sm:$0xff] }
 0x1c1   :  { %1923 = vmatpush.msra.mxu1 %v918_v16  ;;  %v1390_v62 = vpop.f32.mrf.mxu2  ;;  %v1371_v63 = vadd.f32 %v1370_v61, %v1351_v60  ;;  %1954 = vmatpush.msra.mxu2 %v1949_v14 }
 0x1c2   :  { %1905 = vmatpush.msra.mxu0 %v900_v17  ;;  %v1948_v17 = vld [vmem:[#allocation6 + $0x70] sm:$0xff] }
 0x1c3   :  { %1924 = vmatpush.msra.mxu1 %v917_v18  ;;  %v1391_v0 = vadd.f32 %v1390_v62, %v1371_v63  ;;  %v1947_v18 = vld [vmem:[#allocation6 + $0x68] sm:$0xff]  ;;  %1955 = vmatpush.msra.mxu2 %v1948_v17 }
 0x1c4   :  { %1906 = vmatpush.msra.mxu0 %v899_v20  ;;  %v1410_v1 = vpop.f32.mrf.mxu3 }
 0x1c5   :  { %1925 = vmatpush.msra.mxu1 %v916_v22  ;;  %v1430_v2 = vpop.f32.mrf.mxu0  ;;  %v1411_v3 = vadd.f32 %v1410_v1, %v1391_v0  ;;  %1956 = vmatpush.msra.mxu2 %v1947_v18 }
 0x1c6   :  { %1907 = vmatpush.msra.mxu0 %v898_v23  ;;  %v1450_v5 = vpop.f32.mrf.mxu1  ;;  %v1945_v23 = vld [vmem:[#allocation6 + $0x58] sm:$0xff] }
 0x1c7   :  { %1926 = vmatpush.msra.mxu1 %v915_v24  ;;  %v1431_v4 = vadd.f32 %v1430_v2, %v1411_v3  ;;  %1957 = vmatpush.msra.mxu2 %v1946_v21 }
 0x1c8   :  { %1908 = vmatpush.msra.mxu0 %v897_v26 }
 0x1c9   :  { %1927 = vmatpush.msra.mxu1 %v914_v28  ;;  %1909 = vmatmul.f32.vlgmr.msra.gmra.mxu0 %v127_v29  ;;  %v1470_v6 = vpop.f32.mrf.mxu2  ;;  %v1451_v7 = vadd.f32 %v1450_v5, %v1431_v4  ;;  %v1943_v28 = vld [vmem:[#allocation6 + $0x48] sm:$0xff] }
 0x1ca   :  { %1958 = vmatpush.msra.mxu2 %v1945_v23 }
 0x1cb   :  { %1928 = vmatpush.msra.mxu1 %v913_v30  ;;  %v1471_v8 = vadd.f32 %v1470_v6, %v1451_v7  ;;  %v1942_v30 = vld [vmem:[#allocation6 + $0x40] sm:$0xff] }
 0x1cc   :  { %1929 = vmatmul.f32.vlgmr.msra.gmra.mxu1 %v128_v32  ;;  %v1490_v9 = vpop.f32.mrf.mxu3  ;;  %1959 = vmatpush.msra.mxu2 %v1944_v25  ;;  %v1941_v32 = vld [vmem:[#allocation6 + $0x38] sm:$0xff] }
 0x1cd   :  { %v1510_v10 = vpop.f32.mrf.mxu0  ;;  %v1491_v11 = vadd.f32 %v1490_v9, %v1471_v8  ;;  %v1989_v8 = vld [vmem:[#allocation7] ss:$0 sm:$0xff] }
 0x1ce   :  { %v1530_v13 = vpop.f32.mrf.mxu1  ;;  %1960 = vmatpush.msra.mxu2 %v1943_v28 }
 0x1cf   :  { %v1511_v12 = vadd.f32 %v1510_v10, %v1491_v11 }
 0x1d0   :  { %1961 = vmatpush.msra.mxu2 %v1942_v30 }
 0x1d1   :  { %v1550_v15 = vpop.f32.mrf.mxu2  ;;  %v1531_v16 = vadd.f32 %v1530_v13, %v1511_v12 }
 0x1d2   :  { %1962 = vmatpush.msra.mxu2 %v1941_v32 }
 0x1d3   :  { %v1551_v19 = vadd.f32 %v1550_v15, %v1531_v16 }
 0x1d4   :  { %v1570_v20 = vpop.f32.mrf.mxu3  ;;  %1963 = vmatpush.msra.mxu2 %v1940_v35 }
 0x1d5   :  { %v1590_v22 = vpop.f32.mrf.mxu0  ;;  %v1571_v24 = vadd.f32 %v1570_v20, %v1551_v19 }
 0x1d6   :  { %v1610_v27 = vpop.f32.mrf.mxu1  ;;  %1964 = vmatpush.msra.mxu2 %v1939_v37 }
 0x1d7   :  { %v1591_v26 = vadd.f32 %v1590_v22, %v1571_v24 }
 0x1d8   :  { %1965 = vmatpush.msra.mxu2 %v1938_v39 }
 0x1d9   :  { %v1630_v29 = vpop.f32.mrf.mxu2  ;;  %v1611_v31 = vadd.f32 %v1610_v27, %v1591_v26 }
 0x1da   :  { %1966 = vmatpush.msra.mxu2 %v1937_v43 }
 0x1db   :  { %v1631_v33 = vadd.f32 %v1630_v29, %v1611_v31 }
 0x1dc   :  { %v1650_v34 = vpop.f32.mrf.mxu3  ;;  %1967 = vmatpush.msra.mxu2 %v1936_v45 }
 0x1dd   :  { %v1651_v38 = vadd.f32 %v1650_v34, %v1631_v33 }
 0x1de   :  { %1968 = vmatpush.msra.mxu2 %v1935_v48 }
 0x1e0   :  { %1969 = vmatpush.msra.mxu2 %v1934_v50 }
 0x1e2   :  { %v1670_v36 = vpop.f32.mrf.mxu0 }
 0x1e3   :  { %v1671_v40 = vadd.f32 %v1670_v36, %v1651_v38 }
 0x1e5   :  { %v1690_v41 = vpop.f32.mrf.mxu1 }
 0x1e6   :  { %v1691_v44 = vadd.f32 %v1690_v41, %v1671_v40 }
 0x1e8   :  { %v1710_v42 = vpop.f32.mrf.mxu2 }
 0x1e9   :  { %v1711_v46 = vadd.f32 %v1710_v42, %v1691_v44 }
 0x1eb   :  { %v1730_v47 = vpop.f32.mrf.mxu3 }
 0x1ec   :  { %v1731_v51 = vadd.f32 %v1730_v47, %v1711_v46 }
 0x204   :  { %v1750_v49 = vpop.f32.mrf.mxu0 }
 0x205   :  { %v1751_v52 = vadd.f32 %v1750_v49, %v1731_v51 }
 0x207   :  { %v1770_v53 = vpop.f32.mrf.mxu1 }
 0x208   :  { %v1771_v55 = vadd.f32 %v1770_v53, %v1751_v52 }
 0x20a   :  { %v1790_v54 = vpop.f32.mrf.mxu2 }
 0x20b   :  { %v1791_v56 = vadd.f32 %v1790_v54, %v1771_v55 }
 0x20d   :  { %v1810_v57 = vpop.f32.mrf.mxu3 }
 0x20e   :  { %v1811_v59 = vadd.f32 %v1810_v57, %v1791_v56 }
 0x226   :  { %v1830_v58 = vpop.f32.mrf.mxu0 }
 0x227   :  { %v1831_v60 = vadd.f32 %v1830_v58, %v1811_v59 }
 0x228   :  { %v1850_v61 = vpop.f32.mrf.mxu1 }
 0x229   :  { %v1851_v63 = vadd.f32 %v1850_v61, %v1831_v60 }
 0x22c   :  { %v1870_v62 = vpop.f32.mrf.mxu2 }
 0x22d   :  { %v1871_v0 = vadd.f32 %v1870_v62, %v1851_v63 }
 0x22f   :  { %v1890_v1 = vpop.f32.mrf.mxu3 }
 0x230   :  { %v1891_v2 = vadd.f32 %v1890_v1, %v1871_v0 }
 0x246   :  { %v1910_v3 = vpop.f32.mrf.mxu0 }
 0x247   :  { %v1911_v4 = vadd.f32 %v1910_v3, %v1891_v2 }
 0x249   :  { %v1930_v5 = vpop.f32.mrf.mxu1 }
 0x24a   :  { %v1931_v6 = vadd.f32 %v1930_v5, %v1911_v4 }
 0x24c   :  { %v1933_v7 = vmax.f32 %v1931_v6, 0.0 }
 0x24e   :  { %1970 = vmatmul.f32.vlgmr.msra.gmra.mxu2 %v1933_v7 }
 0x2d1   :  { %v1971_v9 = vpop.f32.mrf.mxu2 }
 0x2d2   :  { %v1972_v10 = vadd.f32 %v1989_v8, %v1971_v9 }
 0x2d4   :  { %1974 = vst [vmem:[%s2298_s5] sm:$0xff] %v1972_v10 }
 0x2d5   :  { %1979 = vsyncpa [#allocation3], 1 }
 0x2d6   :  { %1980 = vsyncpa [#allocation5], 1 }
 0x2d7   :  { %1981 = vsyncpa [#allocation8], 1 }

// kernel: emotion_cnn_forward.2
= control target key start
LH: loop header
LB: loop body
LE: loop exit
PB: predicated region body
PF: predicated region fallthrough
CT: control target
= control target key end

     0   :  { %10 = vsyncpa [#allocation7], 0  ;;  %s7619_s0 = inlined_call_operand.hbm [shape: f32[96,48], index: 0, kind: input, shape index: {}]   ;;  %s7620_s1 = inlined_call_operand.hbm [shape: f32[12,144,128], index: 1, kind: input, shape index: {}]   ;;  %s7621_s2 = inlined_call_operand.hbm [shape: f32[1,32], index: 2, kind: input, shape index: {}]   ;;  %s7622_s3 = inlined_call_operand.vmem [shape: f32[3,96,64], index: 3, kind: input, shape index: {}]   ;;  %s7623_s4 = inlined_call_operand.hbm [shape: f32[1,64], index: 4, kind: input, shape index: {}]   ;;  %s7624_s5 = inlined_call_operand.vmem [shape: f32[2,100,64], index: 5, kind: output, shape index: {}]  }
   0x1   :  { %12 = vsyncpa [#allocation7 + $0x1], 0 }
   0x2   :  { %13 = vsyncpa [#allocation9], 0 }
   0x3   :  { %14 = vsyncpa [#allocation12], 0  ;;  %s5548_s18 = smov 0   ;;  %s5550_s19 = smov 0  }
   0x4   :  { %s5552_s20 = smov 0   ;;  %s5554_s21 = smov 0  }
   0x5 LB: > { %s5567_s22 = sadd.s32 4294967295, %s5506_s21   ;;  %p40_p0 = scmp.ne.s32.totalorder %s5498_s19, %s5494_s18  ;;  %s5506_s21 = sphi %s5554_s21, %s7641_s21   ;;  %s5502_s20 = sphi %s5552_s20, %s7640_s20   ;;  %s5498_s19 = sphi %s5550_s19, %s7639_s19   ;;  %s5494_s18 = sphi %s5548_s18, %s7638_s18  }
   0x6   : > { %p41_p1 = scmp.eq.s32.totalorder %s5567_s22, 0  ;;  %p4872_p2 = scmp.ge.s32.totalorder %s5506_s21, 1 }
   0x7   : > { %p161_p3 = scmp.lt.s32.totalorder %s5506_s21, 3  ;;  %s172_s26 = sshll.u32 %s7620_s1, 4  ;;  %s173_s26 = int_to_ptr.hbm [resolvable:$true] %s172_s26 }
   0x8   : > { %p5575_p4 = por %p41_p1, %p40_p0  ;;  %s5508_s28 = smov [#allocation8]  }
   0x9   : > { %p5582_p5 = pnand %p4872_p2, %p161_p3  ;;  %s174_s29 = sshll.u32 %s5508_s28, 4  ;;  %s175_s29 = int_to_ptr.vmem [resolvable:$true] %s174_s29 }
   0xa   : > { %s187_s8 = sshll.u32 %s7621_s2, 4  ;;  %s5509_s9 = smov 128   ;;  %s188_s8 = int_to_ptr.hbm [resolvable:$true] %s187_s8 }
   0xb   : > { %p5241_p6 = pneg %p5582_p5  ;;  %s5510_s10 = smov 8  }
   0xc   : > { %s5511_s11 = smov [#allocation10]   ;;  %s202_s15 = sshll.u32 %s7623_s4, 4  ;;  %s203_s15 = int_to_ptr.hbm [resolvable:$true] %s202_s15 }
   0xd   : > { %p5590_p7 = pnand %p5241_p6, %p41_p1  ;;  %s189_s12 = sshll.u32 %s5511_s11, 4  ;;  %s190_s12 = int_to_ptr.vmem [resolvable:$true] %s189_s12 }
   0xe   : > { %s5512_s16 = smov [#allocation11]   ;;  %s5608_s18 = sadd.s32 1, %s5506_s21  }
   0xf   : > { %5244 = dma.hbm_to_vmem [thread:$0]  (!%p5590_p7), %s173_s26, 27648, %s175_s29, [#allocation9], %s5509_s9, %s5509_s9, %s5510_s10  }
  0x10   : > { %5247 = dma.hbm_to_vmem [thread:$0]  (!%p5590_p7), %s188_s8, 16, %s190_s12, [#allocation9]  }
  0x11   : > { %s204_s17 = sshll.u32 %s5512_s16, 4  ;;  %s24_s24 = ssub.s32 %s5506_s21, %s5608_s18  ;;  %s205_s17 = int_to_ptr.vmem [resolvable:$true] %s204_s17 }
  0x12   : > { %5250 = dma.hbm_to_vmem [thread:$0]  (!%p5590_p7), %s203_s15, 16, %s205_s17, [#allocation12]  }
  0x13   : > { %s27_s25 = sadd.s32 1, %s5502_s20  ;;  %p25_p8 = scmp.eq.s32.totalorder %s24_s24, 0 }
  0x14   : > { %p34_p9 = scmp.ne.s32.totalorder %s5502_s20, %s5498_s19  ;;  %p35_p10 = scmp.eq.s32.totalorder %s5506_s21, 0 }
  0x15   : > { %p5258_p11 = scmp.lt.s32.totalorder %s5506_s21, 2  ;;  %s215_s28 = sand.u32 1, %s5502_s20  }
  0x16   : > { %s5620_s26 = scalar_select %p25_p8, %s5502_s20, %s27_s25  }
  0x17   : > { %p36_p12 = por %p35_p10, %p34_p9  ;;  %s5224_s29 = smul.u32 48, %s215_s28 }
  0x18   : > { %s5187_s6 = smul.u32 48, %s5506_s21  ;;  %s216_s15 = scalar_lea.sflag [#allocation7], %s215_s28 }
  0x19   : > { %p5624_p13 = pnand %p5258_p11, %p36_p12  ;;  %s219_s12 = scalar_lea.vmem [#allocation6], %s5224_s29 }
  0x1a   : > { %s224_s11 = scalar_lea.hbm %s7619_s0, %s5187_s6  ;;  %s227_s13 = sshll.u32 %s219_s12, 4  ;;  %s228_s13 = int_to_ptr.vmem [resolvable:$true] %s227_s13 }
  0x1b   : > { %s225_s14 = sshll.u32 %s224_s11, 4  ;;  %p5438_p2 = pneg %p5624_p13  ;;  %s226_s14 = int_to_ptr.hbm [resolvable:$true] %s225_s14 }
  0x1c   : > { %s5434_s16 = sshra.s32 %s226_s14, 4  ;;  %s5441_s25 = scalar_lea.hbm %s7619_s0, 96  ;;  %s5435_s16 = int_to_ptr.hbm [resolvable:$true] %s5434_s16 }
  0x1d   : > { %s5436_s17 = scalar_lea.hbm %s5435_s16, 48  ;;  %p5442_p7 = scmp.lt.s32.totalorder %s5435_s16, %s7619_s0 }
  0x1e   : > { %p5437_p0 = scmp.ne.s32.totalorder %s5435_s16, %s5436_s17  ;;  %p5443_p8 = scmp.lt.s32.totalorder %s5441_s25, %s5436_s17 }
  0x20   : > { %p5439_p3 = pnand %p5438_p2, %p5437_p0  ;;  %p5444_p9 = por %p5443_p8, %p5442_p7 }
  0x22   : > { %p5440_p6 = pneg %p5439_p3 }
  0x24   : > { %p5445_p10 = pnand %p5444_p9, %p5440_p6 }
  0x26   : > { %5448 = shalt.err (!%p5445_p10)
}
  0x27   : > { %5254 = dma.hbm_to_vmem [thread:$0]  (!%p5624_p13), %s226_s14, 768, %s228_s13, %s216_s15, %s5509_s9, %s5509_s9, %s5510_s10  }
  0x28   : > { %239 = sbr.rel (%p5582_p5) target bundleno = 1883 (0x75b), region = 40 }
  0x2d   : > { %s241_s28 = sand.u32 1, %s5498_s19  }
  0x2e   : > { %s5225_s29 = smul.u32 48, %s241_s28  ;;  %s242_s30 = scalar_lea.sflag [#allocation7], %s241_s28 }
  0x30   : > { %s5647_s11 = scalar_lea.vmem [#allocation6], %s5225_s29 }
  0x31   : > { %5481 = dma.done.wait (%p5575_p4), %s242_s30, 768  }
  0x32   : > { %5483 = vsyncadd (%p5575_p4), %s242_s30, 4294966528 }
  0x33   : > { %5485 = dma.done.wait (%p41_p1), [#allocation9], 27664  }
  0x34   : > { %5487 = vsyncadd (%p41_p1), [#allocation9], 4294939632 }
  0x35   : > { %5489 = dma.done.wait (%p41_p1), [#allocation12], 16  }
  0x36   : > { %5491 = vsyncadd (%p41_p1), [#allocation12], 4294967280  ;;  %v4890_v0 = vld [vmem:[%s5647_s11 + $0x22] ss:$2 sm:$0x7f]  ;;  %s5513_s23 = smov 96  }
  0x37   : > { %v4888_v1 = vld [vmem:[%s5647_s11 + $0x2] ss:$2 sm:$0xff]  ;;  %345 = vrot.lane.b32.xlu1 %v4890_v0, %s5513_s23  ;;  %v4898_v2 = vld [vmem:[%s5647_s11 + $0x13] ss:$2 sm:$0xff]  ;;  %v4897_v3 = vld [vmem:[%s5647_s11 + $0x3] ss:$2 sm:$0xff] }
  0x38   : > { %341 = vrot.lane.b32.xlu0 %v4888_v1, %s5513_s23  ;;  %395 = vrot.lane.b32.xlu2 %v4898_v2, %s5513_s23  ;;  %v4889_v4 = vld [vmem:[%s5647_s11 + $0x12] ss:$2 sm:$0xff]  ;;  %v4885_v5 = vld [vmem:[%s5647_s11 + $0x1] ss:$2 sm:$0xff]  ;;  %s5514_s27 = smov 48   ;;  %vm295_vm0 = vcmask 130048  }
  0x39   : > { %v4899_v6 = vld [vmem:[%s5647_s11 + $0x23] ss:$2 sm:$0x7f]  ;;  %v4886_v7 = vld [vmem:[%s5647_s11 + $0x11] ss:$2 sm:$0xff]  ;;  %vm306_vm1 = vcmask 392192  }
  0x3a   : > { %v4887_v8 = vld [vmem:[%s5647_s11 + $0x21] ss:$2 sm:$0xff]  ;;  %v4894_v9 = vld [vmem:[%s5647_s11 + $0x2] ss:$2 sm:$0xff]  ;;  %v4895_v10 = vld [vmem:[%s5647_s11 + $0x12] ss:$2 sm:$0xff] }
  0x3b   : > { %v4896_v11 = vld [vmem:[%s5647_s11 + $0x22] ss:$2 sm:$0x7f]  ;;  %v5515_v23 = vmov 0.0   ;;  %v4893_v26 = vld [vmem:[%s5647_s11 + $0x21] ss:$2 sm:$0xff] }
  0x3c   : > { %v439_v12 = vld [vmem:[#allocation8 + $0x78] sm:$0xff]  ;;  %v610_v13 = vld [vmem:[#allocation8 + $0x108] sm:$0xff]  ;;  %v438_v14 = vld [vmem:[#allocation8 + $0x70] sm:$0xff]  ;;  %294 = vst [vmem:[#allocation2 + $0x20] sm:$0xff] %v5515_v23  ;;  %vm299_vm2 = vcmask 785408   ;;  %vm328_vm3 = vcmask 785792  }
  0x3d   : > { %460 = vmatpush.msra.mxu0 %v439_v12  ;;  %631 = vmatpush.msra.mxu2 %v610_v13  ;;  %v609_v15 = vld [vmem:[#allocation8 + $0x100] sm:$0xff]  ;;  %v437_v16 = vld [vmem:[#allocation8 + $0x68] sm:$0xff]  ;;  %v608_v17 = vld [vmem:[#allocation8 + $0xf8] sm:$0xff]  ;;  %296 = vst.msk [vmem:[#allocation2 + $0x28] sm:$0xff] %vm295_vm0, %v5515_v23  ;;  %vm355_vm4 = vcmask 1047296   ;;  %vm357_vm5 = vcmask 129024  }
  0x3e   : > { %v301_v18 = vld [vmem:[%s5647_s11] ss:$2 sm:$0xff]  ;;  %297 = vst [vmem:[#allocation2 + $0x50] sm:$0xff] %v5515_v23  ;;  %v4883_v54 = vld [vmem:[%s5647_s11 + $0x10] ss:$2 sm:$0xff]  ;;  %vm350_vm6 = vcmask 1048320  }
  0x3f   : > { %393 = vrot.lane.b32.xlu1 %v4897_v3, %s5513_s23  ;;  %461 = vmatpush.msra.mxu0 %v438_v14  ;;  %307 = vst.msk [vmem:[#allocation2] sm:$0xff] %vm306_vm1, %v301_v18  ;;  %v436_v19 = vld [vmem:[#allocation8 + $0x60] sm:$0xff]  ;;  %v607_v20 = vld [vmem:[#allocation8 + $0xf0] sm:$0xff]  ;;  %v435_v21 = vld [vmem:[#allocation8 + $0x58] sm:$0xff]  ;;  %vm382_vm7 = vcmask 784768   ;;  %s5516_s9 = smov 64  }
  0x40   : > { %343 = vrot.lane.b32.xlu0 %v4889_v4, %s5513_s23  ;;  %319 = vrot.lane.b32.xlu2 %v4885_v5, %s5514_s27  ;;  %v606_v22 = vld [vmem:[#allocation8 + $0xe8] sm:$0xff]  ;;  %v434_v24 = vld [vmem:[#allocation8 + $0x50] sm:$0xff]  ;;  %v605_v25 = vld [vmem:[#allocation8 + $0xe0] sm:$0xff]  ;;  %298 = vst.msk [vmem:[#allocation2 + $0x58] sm:$0xff] %vm295_vm0, %v5515_v23  ;;  %vm554_vm8 = vcmask 261120   ;;  %s5517_s10 = smov 32  }
  0x41   : > { %632 = vmatpush.msra.mxu2 %v609_v15  ;;  %462 = vmatpush.msra.mxu0 %v437_v16  ;;  %v433_v27 = vld [vmem:[#allocation8 + $0x48] sm:$0xff]  ;;  %v604_v28 = vld [vmem:[#allocation8 + $0xd8] sm:$0xff]  ;;  %300 = vst.msk [vmem:[#allocation3 + $0x228] sm:$0xff] %vm299_vm2, %v5515_v23  ;;  %v432_v30 = vld [vmem:[#allocation8 + $0x40] sm:$0xff]  ;;  %vm2743_vm9 = vcmask 523520   ;;  %vm3158_vm10 = vcmask 785920  }
  0x42   : > { %364 = vst.msk [vmem:[#allocation2 + $0x50] sm:$0xff] %vm306_vm1, %v4893_v26  ;;  %v4884_v29 = vld [vmem:[%s5647_s11 + $0x20] ss:$2 sm:$0xff]  ;;  %v4891_v58 = vld [vmem:[%s5647_s11 + $0x1] ss:$2 sm:$0xff]  ;;  %vm4463_vm11 = vcmask 523264  }
  0x43   : > { %633 = vmatpush.msra.mxu2 %v608_v17  ;;  %463 = vmatpush.msra.mxu0 %v436_v19  ;;  %309 = vst.msk [vmem:[#allocation2 + $0x20] sm:$0xff] %vm306_vm1, %v4884_v29  ;;  %v603_v31 = vld [vmem:[#allocation8 + $0xd0] sm:$0xff]  ;;  %v431_v32 = vld [vmem:[#allocation8 + $0x38] sm:$0xff]  ;;  %v602_v33 = vld [vmem:[#allocation8 + $0xc8] sm:$0xff]  ;;  %p289_p1 = scmp.lt.s32.totalorder %s5567_s22, 1  ;;  %vm4557_vm12 = vcmask 517120  }
  0x44   : > { %v430_v34 = vld [vmem:[#allocation8 + $0x30] sm:$0xff]  ;;  %v601_v35 = vld [vmem:[#allocation8 + $0xc0] sm:$0xff]  ;;  %v441_v36 = vld [vmem:[#allocation8 + $0x88] sm:$0xff]  ;;  %308 = vst.msk [vmem:[#allocation2 + $0x10] sm:$0xff] %vm306_vm1, %v4883_v54 }
  0x45   : > { %634 = vmatpush.msra.mxu2 %v607_v20  ;;  %464 = vmatpush.msra.mxu0 %v435_v21  ;;  %v429_v37 = vld [vmem:[#allocation8 + $0x28] sm:$0xff]  ;;  %v600_v38 = vld [vmem:[#allocation8 + $0xb8] sm:$0xff]  ;;  %v440_v40 = vld [vmem:[#allocation8 + $0x80] sm:$0xff]  ;;  %362 = vst.msk [vmem:[#allocation2 + $0x30] sm:$0xff] %vm306_vm1, %v4891_v58  ;;  %s7643_s22 = smov (!%p289_p1, %s5567_s22), 1 }
  0x46   : > { %509 = vmatpush.msra.mxu1 %v441_v36  ;;  %v612_v39 = vld [vmem:[#allocation8 + $0x118] sm:$0xff]  ;;  %v611_v41 = vld [vmem:[#allocation8 + $0x110] sm:$0xff]  ;;  %v428_v42 = vld [vmem:[#allocation8 + $0x20] sm:$0xff] }
  0x47   : > { %321 = vrot.lane.b32.xlu1 %v4886_v7, %s5514_s27  ;;  %635 = vmatpush.msra.mxu2 %v606_v22  ;;  %v599_v43 = vld [vmem:[#allocation8 + $0xb0] sm:$0xff]  ;;  %v427_v45 = vld [vmem:[#allocation8 + $0x18] sm:$0xff]  ;;  %v598_v46 = vld [vmem:[#allocation8 + $0xa8] sm:$0xff] }
  0x48   : > { %397 = vrot.lane.b32.xlu0 %v4899_v6, %s5513_s23  ;;  %323 = vrot.lane.b32.xlu2 %v4887_v8, %s5514_s27  ;;  %v426_v47 = vld [vmem:[#allocation8 + $0x10] sm:$0xff]  ;;  %v597_v48 = vld [vmem:[#allocation8 + $0xa0] sm:$0xff]  ;;  %v425_v49 = vld [vmem:[#allocation8 + $0x8] sm:$0xff] }
  0x49   : > { %465 = vmatpush.msra.mxu0 %v434_v24  ;;  %636 = vmatpush.msra.mxu2 %v605_v25  ;;  %v596_v50 = vld [vmem:[#allocation8 + $0x98] sm:$0xff]  ;;  %v424_v51 = vld [vmem:[#allocation8] sm:$0xff]  ;;  %v595_v52 = vld [vmem:[#allocation8 + $0x90] sm:$0xff] }
  0x4a   : > { %680 = vmatpush.msra.mxu3 %v612_v39  ;;  %510 = vmatpush.msra.mxu1 %v440_v40  ;;  %v946_v55 = vld [vmem:[#allocation8 + $0x238] sm:$0xff]  ;;  %v779_v56 = vld [vmem:[#allocation8 + $0x1a8] sm:$0xff]  ;;  %v943_v62 = vld [vmem:[#allocation8 + $0x220] sm:$0xff] }
  0x4b   : > { %466 = vmatpush.msra.mxu0 %v433_v27  ;;  %637 = vmatpush.msra.mxu2 %v604_v28  ;;  %v944_v57 = vld [vmem:[#allocation8 + $0x228] sm:$0xff]  ;;  %v777_v61 = vld [vmem:[#allocation8 + $0x198] sm:$0xff]  ;;  %v776_v63 = vld [vmem:[#allocation8 + $0x190] sm:$0xff] }
  0x4c   : > { %681 = vmatpush.msra.mxu3 %v611_v41  ;;  %v4892_v60 = vld [vmem:[%s5647_s11 + $0x11] ss:$2 sm:$0xff]  ;;  %798 = vmatpush.msrb.mxu1 %v777_v61 }
  0x4d   : > { %467 = vmatpush.msra.mxu0 %v432_v30  ;;  %638 = vmatpush.msra.mxu2 %v603_v31  ;;  %363 = vst.msk [vmem:[#allocation2 + $0x40] sm:$0xff] %vm306_vm1, %v4892_v60  ;;  %v942_v0 = vld [vmem:[#allocation8 + $0x218] sm:$0xff]  ;;  %v775_v1 = vld [vmem:[#allocation8 + $0x188] sm:$0xff]  ;;  %v774_v4 = vld [vmem:[#allocation8 + $0x180] sm:$0xff] }
  0x4e   : > { %847 = vmatpush.msrb.mxu3 %v779_v56  ;;  %799 = vmatpush.msrb.mxu1 %v776_v63  ;;  %v941_v6 = vld [vmem:[#allocation8 + $0x210] sm:$0xff]  ;;  %v773_v7 = vld [vmem:[#allocation8 + $0x178] sm:$0xff]  ;;  %v770_v15 = vld [vmem:[#allocation8 + $0x160] sm:$0xff] }
  0x4f   : > { %373 = vrot.lane.b32.xlu1 %v4895_v10, %s5514_s27  ;;  %468 = vmatpush.msra.mxu0 %v431_v32  ;;  %v772_v8 = vld [vmem:[#allocation8 + $0x170] sm:$0xff]  ;;  %v771_v10 = vld [vmem:[#allocation8 + $0x168] sm:$0xff]  ;;  %v769_v17 = vld [vmem:[#allocation8 + $0x158] sm:$0xff] }
  0x50   : > { %371 = vrot.lane.b32.xlu0 %v4894_v9, %s5514_s27  ;;  %375 = vrot.lane.b32.xlu2 %v4896_v11, %s5514_s27  ;;  %v940_v9 = vld [vmem:[#allocation8 + $0x208] sm:$0xff]  ;;  %v939_v11 = vld [vmem:[#allocation8 + $0x200] sm:$0xff]  ;;  %v938_v18 = vld [vmem:[#allocation8 + $0x1f8] sm:$0xff] }
  0x51   : > { %639 = vmatpush.msra.mxu2 %v602_v33  ;;  %469 = vmatpush.msra.mxu0 %v430_v34  ;;  %v945_v19 = vld [vmem:[#allocation8 + $0x230] sm:$0xff]  ;;  %v778_v20 = vld [vmem:[#allocation8 + $0x1a0] sm:$0xff]  ;;  %v936_v23 = vld [vmem:[#allocation8 + $0x1e8] sm:$0xff] }
  0x52   : > { %800 = vmatpush.msrb.mxu1 %v775_v1  ;;  %v937_v21 = vld [vmem:[#allocation8 + $0x1f0] sm:$0xff]  ;;  %848 = vmatpush.msrb.mxu3 %v778_v20  ;;  %v767_v26 = vld [vmem:[#allocation8 + $0x148] sm:$0xff]  ;;  %v766_v28 = vld [vmem:[#allocation8 + $0x140] sm:$0xff] }
  0x53   : > { %640 = vmatpush.msra.mxu2 %v601_v35  ;;  %470 = vmatpush.msra.mxu0 %v429_v37  ;;  %v768_v22 = vld [vmem:[#allocation8 + $0x150] sm:$0xff]  ;;  %v765_v29 = vld [vmem:[#allocation8 + $0x138] sm:$0xff]  ;;  %v935_v30 = vld [vmem:[#allocation8 + $0x1e0] sm:$0xff] }
  0x54   : > { %801 = vmatpush.msrb.mxu1 %v774_v4  ;;  %v934_v31 = vld [vmem:[#allocation8 + $0x1d8] sm:$0xff]  ;;  %v764_v32 = vld [vmem:[#allocation8 + $0x130] sm:$0xff]  ;;  %v763_v36 = vld [vmem:[#allocation8 + $0x128] sm:$0xff] }
  0x55   : > { %641 = vmatpush.msra.mxu2 %v600_v38  ;;  %471 = vmatpush.msra.mxu0 %v428_v42  ;;  %v933_v38 = vld [vmem:[#allocation8 + $0x1d0] sm:$0xff]  ;;  %v762_v39 = vld [vmem:[#allocation8 + $0x120] sm:$0xff]  ;;  %v932_v40 = vld [vmem:[#allocation8 + $0x1c8] sm:$0xff] }
  0x56   : > { %802 = vmatpush.msrb.mxu1 %v773_v7  ;;  %v931_v41 = vld [vmem:[#allocation8 + $0x1c0] sm:$0xff]  ;;  %v1107_v56 = vld [vmem:[#allocation8 + $0x298] sm:$0xff]  ;;  %v1275_v63 = vld [vmem:[#allocation8 + $0x330] sm:$0xff] }
  0x57   : > { %642 = vmatpush.msra.mxu2 %v599_v43  ;;  %472 = vmatpush.msra.mxu0 %v427_v45  ;;  %v930_v43 = vld [vmem:[#allocation8 + $0x1b8] sm:$0xff]  ;;  %v1277_v58 = vld [vmem:[#allocation8 + $0x340] sm:$0xff]  ;;  %v1101_v7 = vld [vmem:[#allocation8 + $0x268] sm:$0xff] }
  0x58   : > { %803 = vmatpush.msrb.mxu1 %v772_v8  ;;  %v1276_v60 = vld [vmem:[#allocation8 + $0x338] sm:$0xff]  ;;  %v1112_v1 = vld [vmem:[#allocation8 + $0x2c0] sm:$0xff]  ;;  %v1271_v8 = vld [vmem:[#allocation8 + $0x310] sm:$0xff] }
  0x59   : > { %643 = vmatpush.msra.mxu2 %v598_v46  ;;  %473 = vmatpush.msra.mxu0 %v426_v47  ;;  %v1113_v46 = vld [vmem:[#allocation8 + $0x2c8] sm:$0xff]  ;;  %v1273_v4 = vld [vmem:[#allocation8 + $0x320] sm:$0xff] }
  0x5a   : > { %804 = vmatpush.msrb.mxu1 %v771_v10  ;;  %v1270_v10 = vld [vmem:[#allocation8 + $0x308] sm:$0xff]  ;;  %v1096_v20 = vld [vmem:[#allocation8 + $0x240] sm:$0xff] }
  0x5b   : > { %644 = vmatpush.msra.mxu2 %v597_v48  ;;  %474 = vmatpush.msra.mxu0 %v425_v49  ;;  %v1111_v49 = vld [vmem:[#allocation8 + $0x2b8] sm:$0xff] }
  0x5c   : > { %805 = vmatpush.msrb.mxu1 %v770_v15  ;;  %v1268_v15 = vld [vmem:[#allocation8 + $0x2f8] sm:$0xff] }
  0x5d   : > { %645 = vmatpush.msra.mxu2 %v596_v50  ;;  %475 = vmatpush.msra.mxu0 %v424_v51  ;;  %v1110_v50 = vld [vmem:[#allocation8 + $0x2b0] sm:$0xff]  ;;  %v1109_v51 = vld [vmem:[#allocation8 + $0x2a8] sm:$0xff] }
  0x5e   : > { %806 = vmatpush.msrb.mxu1 %v769_v17  ;;  %v1279_v17 = vld [vmem:[#allocation8 + $0x350] sm:$0xff] }
  0x5f   : > { %646 = vmatpush.msra.mxu2 %v595_v52  ;;  %965 = vmatpush.msrb.mxu0 %v944_v57  ;;  %v1278_v57 = vld [vmem:[#allocation8 + $0x348] sm:$0xff] }
  0x60   : > { %807 = vmatpush.msrb.mxu1 %v768_v22  ;;  %v1265_v22 = vld [vmem:[#allocation8 + $0x2e0] sm:$0xff] }
  0x61   : > { %1014 = vmatpush.msrb.mxu2 %v946_v55  ;;  %966 = vmatpush.msrb.mxu0 %v943_v62  ;;  %v1280_v55 = vld [vmem:[#allocation8 + $0x358] sm:$0xff]  ;;  %v1105_v62 = vld [vmem:[#allocation8 + $0x288] sm:$0xff] }
  0x62   : > { %808 = vmatpush.msrb.mxu1 %v767_v26  ;;  %v1445_v26 = vld [vmem:[#allocation8 + $0x3d8] sm:$0xff] }
  0x63   : > { %967 = vmatpush.msrb.mxu0 %v942_v0  ;;  %1015 = vmatpush.msrb.mxu2 %v945_v19  ;;  %v1104_v0 = vld [vmem:[#allocation8 + $0x280] sm:$0xff]  ;;  %v1267_v19 = vld [vmem:[#allocation8 + $0x2f0] sm:$0xff] }
  0x64   : > { %809 = vmatpush.msrb.mxu1 %v766_v28  ;;  %v1444_v28 = vld [vmem:[#allocation8 + $0x3d0] sm:$0xff] }
  0x65   : > { %968 = vmatpush.msrb.mxu0 %v941_v6  ;;  %v1272_v6 = vld [vmem:[#allocation8 + $0x318] sm:$0xff] }
  0x66   : > { %810 = vmatpush.msrb.mxu1 %v765_v29  ;;  %v1443_v29 = vld [vmem:[#allocation8 + $0x3c8] sm:$0xff] }
  0x67   : > { %969 = vmatpush.msrb.mxu0 %v940_v9  ;;  %v1100_v9 = vld [vmem:[#allocation8 + $0x260] sm:$0xff] }
  0x68   : > { %811 = vmatpush.msrb.mxu1 %v764_v32  ;;  %v1612_v32 = vld [vmem:[#allocation8 + $0x468] sm:$0xff] }
  0x69   : > { %970 = vmatpush.msrb.mxu0 %v939_v11  ;;  %v1099_v11 = vld [vmem:[#allocation8 + $0x258] sm:$0xff] }
  0x6a   : > { %812 = vmatpush.msrb.mxu1 %v763_v36  ;;  %v1440_v36 = vld [vmem:[#allocation8 + $0x3b0] sm:$0xff] }
  0x6b   : > { %971 = vmatpush.msrb.mxu0 %v938_v18  ;;  %v1097_v18 = vld [vmem:[#allocation8 + $0x248] sm:$0xff] }
  0x6c   : > { %813 = vmatpush.msrb.mxu1 %v762_v39  ;;  %v1439_v39 = vld [vmem:[#allocation8 + $0x3a8] sm:$0xff] }
  0x6d   : > { %972 = vmatpush.msrb.mxu0 %v937_v21  ;;  %v1266_v21 = vld [vmem:[#allocation8 + $0x2e8] sm:$0xff] }
  0x6f   : > { %973 = vmatpush.msrb.mxu0 %v936_v23  ;;  %v1447_v23 = vld [vmem:[#allocation8 + $0x3e8] sm:$0xff] }
  0x71   : > { %974 = vmatpush.msrb.mxu0 %v935_v30  ;;  %v1442_v30 = vld [vmem:[#allocation8 + $0x3c0] sm:$0xff] }
  0x73   : > { %975 = vmatpush.msrb.mxu0 %v934_v31  ;;  %v1441_v31 = vld [vmem:[#allocation8 + $0x3b8] sm:$0xff] }
  0x75   : > { %976 = vmatpush.msrb.mxu0 %v933_v38  ;;  %v1610_v38 = vld [vmem:[#allocation8 + $0x458] sm:$0xff] }
  0x77   : > { %977 = vmatpush.msrb.mxu0 %v932_v40  ;;  %v1609_v40 = vld [vmem:[#allocation8 + $0x450] sm:$0xff] }
  0x79   : > { %978 = vmatpush.msrb.mxu0 %v931_v41  ;;  %v1438_v41 = vld [vmem:[#allocation8 + $0x3a0] sm:$0xff] }
  0x7b   : > { %979 = vmatpush.msrb.mxu0 %v930_v43  ;;  %v1446_v43 = vld [vmem:[#allocation8 + $0x3e0] sm:$0xff] }
  0x92   : > { %v5688_v44 = vpop.permute.xlu2 %395 }
  0x93   : > { %405 = vst.msk [vmem:[#allocation2 + $0x48] sm:$0xff] %vm295_vm0, %v5688_v44 }
  0x9a   : > { %v320_v53 = vpop.permute.xlu2 %319  ;;  %v5753_v48 = vld [vmem:[#allocation2 + $0x48] sm:$0xff] }
  0x9b   : > { %329 = vst.msk [vmem:[#allocation2] sm:$0xff] %vm328_vm3, %v320_v53  ;;  %v1108_v53 = vld [vmem:[#allocation8 + $0x2a0] sm:$0xff] }
  0xa2   : > { %v324_v59 = vpop.permute.xlu2 %323 }
  0xa3   : > { %331 = vst.msk [vmem:[#allocation2 + $0x20] sm:$0xff] %vm328_vm3, %v324_v59  ;;  %v1106_v59 = vld [vmem:[#allocation8 + $0x290] sm:$0xff] }
  0xa9   : > { %v346_v2 = vpop.permute.xlu1 %345 }
  0xaa   : > { %v342_v3 = vpop.permute.xlu0 %341  ;;  %356 = vst.msk [vmem:[#allocation2 + $0x20] sm:$0x7f] %vm355_vm4, %v346_v2  ;;  %v376_v5 = vpop.permute.xlu2 %375 }
  0xab   : > { %358 = vst.msk [vmem:[#allocation2 + $0x28] sm:$0x7f] %vm357_vm5, %v346_v2  ;;  %v1274_v2 = vld [vmem:[#allocation8 + $0x328] sm:$0xff] }
  0xac   : > { %351 = vst.msk [vmem:[#allocation2] sm:$0xff] %vm350_vm6, %v342_v3 }
  0xad   : > { %352 = vst.msk [vmem:[#allocation2 + $0x8] sm:$0xff] %vm295_vm0, %v342_v3  ;;  %v1103_v3 = vld [vmem:[#allocation8 + $0x278] sm:$0xff] }
  0xae   : > { %383 = vst.msk [vmem:[#allocation2 + $0x50] sm:$0x7f] %vm382_vm7, %v376_v5  ;;  %v1102_v5 = vld [vmem:[#allocation8 + $0x270] sm:$0xff] }
  0xb1   : > { %v394_v12 = vpop.permute.xlu1 %393  ;;  %v5741_v42 = vld [vmem:[#allocation2 + $0x20] sm:$0xff] }
  0xb2   : > { %v344_v13 = vpop.permute.xlu0 %343  ;;  %403 = vst.msk [vmem:[#allocation2 + $0x38] sm:$0xff] %vm295_vm0, %v394_v12  ;;  %v5731_v37 = vld [vmem:[#allocation2 + $0x28] sm:$0xff] }
  0xb3   : > { %354 = vst.msk [vmem:[#allocation2 + $0x18] sm:$0xff] %vm295_vm0, %v344_v13  ;;  %v5706_v14 = vld [vmem:[#allocation2] sm:$0xff] }
  0xb4   : > { %v5708_v16 = vld [vmem:[#allocation2 + $0x8] sm:$0xff]  ;;  %476 = vmatmul.f32.vlgmr.msra.gmra.mxu0 %v5706_v14  ;;  %647 = vmatmul.f32.vlgmr.msra.gmra.mxu2 %v5706_v14 }
  0xb5   : > { %4900 = vmatmul.msk.f32.vlgmr.msra.gmra.mxu1 %vm295_vm0, %v5708_v16  ;;  %4906 = vmatmul.msk.f32.vlgmr.msra.gmra.mxu3 %vm295_vm0, %v5708_v16 }
  0xb6   : > { %1181 = vmatpush.msra.mxu3 %v1113_v46  ;;  %1132 = vmatpush.msra.mxu1 %v1111_v49  ;;  %v1437_v46 = vld [vmem:[#allocation8 + $0x398] sm:$0xff]  ;;  %v1607_v49 = vld [vmem:[#allocation8 + $0x440] sm:$0xff] }
  0xb7   : > { %1348 = vmatpush.msra.mxu2 %v1280_v55  ;;  %v1605_v55 = vld [vmem:[#allocation8 + $0x430] sm:$0xff] }
  0xb8   : > { %1133 = vmatpush.msra.mxu1 %v1110_v50  ;;  %1182 = vmatpush.msra.mxu3 %v1112_v1  ;;  %v1436_v50 = vld [vmem:[#allocation8 + $0x390] sm:$0xff] }
  0xb9   : > { %v322_v25 = vpop.permute.xlu1 %321  ;;  %v5743_v45 = vld [vmem:[#allocation2 + $0x38] sm:$0xff]  ;;  %1349 = vmatpush.msra.mxu2 %v1279_v17  ;;  %v1601_v1 = vld [vmem:[#allocation8 + $0x410] sm:$0xff] }
  0xba   : > { %v398_v24 = vpop.permute.xlu0 %397  ;;  %v5717_v27 = vld [vmem:[#allocation2 + $0x18] sm:$0xff]  ;;  %330 = vst.msk [vmem:[#allocation2 + $0x10] sm:$0xff] %vm328_vm3, %v322_v25  ;;  %1134 = vmatpush.msra.mxu1 %v1109_v51  ;;  %v1263_v25 = vld [vmem:[#allocation8 + $0x2d0] sm:$0xff] }
  0xbb   : > { %407 = vst.msk [vmem:[#allocation2 + $0x58] sm:$0x7f] %vm357_vm5, %v398_v24  ;;  %v1606_v51 = vld [vmem:[#allocation8 + $0x438] sm:$0xff] }
  0xbc   : > { %353 = vst.msk [vmem:[#allocation2 + $0x10] sm:$0xff] %vm350_vm6, %v344_v13  ;;  %1135 = vmatpush.msra.mxu1 %v1108_v53  ;;  %v1098_v13 = vld [vmem:[#allocation8 + $0x250] sm:$0xff]  ;;  %v1435_v53 = vld [vmem:[#allocation8 + $0x388] sm:$0xff] }
  0xbd   : > { %4901 = vmatmul.msk.f32.gmra.mxu1 %vm295_vm0, %v5717_v27  ;;  %4907 = vmatmul.msk.f32.gmra.mxu3 %vm295_vm0, %v5717_v27  ;;  %406 = vst.msk [vmem:[#allocation2 + $0x50] sm:$0x7f] %vm355_vm4, %v398_v24  ;;  %v1264_v24 = vld [vmem:[#allocation8 + $0x2d8] sm:$0xff] }
  0xbe   : > { %1136 = vmatpush.msra.mxu1 %v1107_v56  ;;  %v1434_v56 = vld [vmem:[#allocation8 + $0x380] sm:$0xff] }
  0xc0   : > { %1137 = vmatpush.msra.mxu1 %v1106_v59  ;;  %v1603_v59 = vld [vmem:[#allocation8 + $0x420] sm:$0xff] }
  0xc1   : > { %v374_v34 = vpop.permute.xlu1 %373 }
  0xc2   : > { %v372_v33 = vpop.permute.xlu0 %371  ;;  %381 = vst.msk [vmem:[#allocation2 + $0x40] sm:$0xff] %vm328_vm3, %v374_v34  ;;  %v5763_v54 = vld [vmem:[#allocation2 + $0x58] sm:$0xff]  ;;  %1138 = vmatpush.msra.mxu1 %v1105_v62  ;;  %v1611_v34 = vld [vmem:[#allocation8 + $0x460] sm:$0xff] }
  0xc3   : > { %380 = vst.msk [vmem:[#allocation2 + $0x30] sm:$0xff] %vm328_vm3, %v372_v33  ;;  %v5728_v35 = vld [vmem:[#allocation2 + $0x10] sm:$0xff]  ;;  %v1614_v33 = vld [vmem:[#allocation8 + $0x478] sm:$0xff] }
  0xc4   : > { %402 = vst.msk [vmem:[#allocation2 + $0x30] sm:$0xff] %vm350_vm6, %v394_v12  ;;  %479 = vmatmul.f32.gmra.mxu0 %v5728_v35  ;;  %650 = vmatmul.f32.gmra.mxu2 %v5728_v35  ;;  %v5771_v61 = vld [vmem:[#allocation2 + $0x50] sm:$0xff]  ;;  %v1269_v12 = vld [vmem:[#allocation8 + $0x300] sm:$0xff]  ;;  %v1602_v62 = vld [vmem:[#allocation8 + $0x418] sm:$0xff] }
  0xc5   : > { %404 = vst.msk [vmem:[#allocation2 + $0x40] sm:$0xff] %vm350_vm6, %v5688_v44  ;;  %4902 = vmatmul.msk.f32.gmra.mxu1 %vm295_vm0, %v5731_v37  ;;  %4908 = vmatmul.msk.f32.gmra.mxu3 %vm295_vm0, %v5731_v37  ;;  %v929_v44 = vld [vmem:[#allocation8 + $0x1b0] sm:$0xff] }
  0xc6   : > { %980 = vmatpush.msrb.mxu0 %v929_v44  ;;  %1139 = vmatpush.msra.mxu1 %v1104_v0  ;;  %v1608_v44 = vld [vmem:[#allocation8 + $0x448] sm:$0xff] }
  0xc7   : > { %v1431_v0 = vld [vmem:[#allocation8 + $0x368] sm:$0xff] }
  0xc8   : > { %1299 = vmatpush.msra.mxu0 %v1278_v57  ;;  %1140 = vmatpush.msra.mxu1 %v1103_v3  ;;  %v1604_v57 = vld [vmem:[#allocation8 + $0x428] sm:$0xff] }
  0xc9   : > { %v1600_v3 = vld [vmem:[#allocation8 + $0x408] sm:$0xff] }
  0xca   : > { %1300 = vmatpush.msra.mxu0 %v1277_v58  ;;  %1141 = vmatpush.msra.mxu1 %v1102_v5  ;;  %v1433_v58 = vld [vmem:[#allocation8 + $0x378] sm:$0xff]  ;;  %v1781_v5 = vld [vmem:[#allocation8 + $0x508] sm:$0xff] }
  0xcb   : > { %v5751_v47 = vld [vmem:[#allocation2 + $0x30] sm:$0xff] }
  0xcc   : > { %482 = vmatmul.f32.gmra.mxu0 %v5741_v42  ;;  %653 = vmatmul.f32.gmra.mxu2 %v5741_v42  ;;  %v5761_v52 = vld [vmem:[#allocation2 + $0x40] sm:$0xff] }
  0xcd   : > { %4903 = vmatmul.msk.f32.gmra.mxu1 %vm295_vm0, %v5743_v45  ;;  %4909 = vmatmul.msk.f32.gmra.mxu3 %vm295_vm0, %v5743_v45 }
  0xce   : > { %1301 = vmatpush.msra.mxu0 %v1276_v60  ;;  %1142 = vmatpush.msra.mxu1 %v1101_v7  ;;  %v1432_v60 = vld [vmem:[#allocation8 + $0x370] sm:$0xff]  ;;  %v1598_v7 = vld [vmem:[#allocation8 + $0x3f8] sm:$0xff] }
  0xd0   : > { %1302 = vmatpush.msra.mxu0 %v1275_v63  ;;  %1143 = vmatpush.msra.mxu1 %v1100_v9  ;;  %v1613_v63 = vld [vmem:[#allocation8 + $0x470] sm:$0xff] }
  0xd1   : > { %v1597_v9 = vld [vmem:[#allocation8 + $0x3f0] sm:$0xff] }
  0xd2   : > { %1303 = vmatpush.msra.mxu0 %v1274_v2  ;;  %1144 = vmatpush.msra.mxu1 %v1099_v11  ;;  %v1430_v2 = vld [vmem:[#allocation8 + $0x360] sm:$0xff] }
  0xd4   : > { %485 = vmatmul.f32.gmra.mxu0 %v5751_v47  ;;  %656 = vmatmul.f32.gmra.mxu2 %v5751_v47 }
  0xd5   : > { %4904 = vmatmul.msk.f32.gmra.mxu1 %vm295_vm0, %v5753_v48  ;;  %4910 = vmatmul.msk.f32.gmra.mxu3 %vm295_vm0, %v5753_v48 }
  0xd6   : > { %1304 = vmatpush.msra.mxu0 %v1273_v4  ;;  %1145 = vmatpush.msra.mxu1 %v1098_v13  ;;  %v1599_v4 = vld [vmem:[#allocation8 + $0x400] sm:$0xff] }
  0xd8   : > { %1305 = vmatpush.msra.mxu0 %v1272_v6  ;;  %1146 = vmatpush.msra.mxu1 %v1097_v18  ;;  %v5832_v6 = vld [vmem:[#allocation10] ss:$0 sm:$0xff] }
  0xd9   : > { %558 = vrot.lane.b32.xlu0 %v5832_v6, %s5516_s9  ;;  %v1776_v18 = vld [vmem:[#allocation8 + $0x4e0] sm:$0xff] }
  0xda   : > { %1306 = vmatpush.msra.mxu0 %v1271_v8  ;;  %1147 = vmatpush.msra.mxu1 %v1096_v20  ;;  %v1775_v20 = vld [vmem:[#allocation8 + $0x4d8] sm:$0xff] }
  0xdc   : > { %488 = vmatmul.f32.gmra.mxu0 %v5761_v52  ;;  %659 = vmatmul.f32.gmra.mxu2 %v5761_v52 }
  0xdd   : > { %4905 = vmatmul.msk.f32.gmra.mxu1 %vm295_vm0, %v5763_v54  ;;  %4911 = vmatmul.msk.f32.gmra.mxu3 %vm295_vm0, %v5763_v54 }
  0xde   : > { %1307 = vmatpush.msra.mxu0 %v1270_v10  ;;  %v1779_v10 = vld [vmem:[#allocation8 + $0x4f8] sm:$0xff] }
  0xe0   : > { %1308 = vmatpush.msra.mxu0 %v1269_v12  ;;  %v1778_v12 = vld [vmem:[#allocation8 + $0x4f0] sm:$0xff] }
  0xe2   : > { %1309 = vmatpush.msra.mxu0 %v1268_v15  ;;  %v1777_v15 = vld [vmem:[#allocation8 + $0x4e8] sm:$0xff] }
  0xe4   : > { %491 = vmatmul.f32.gmra.mxu0 %v5771_v61  ;;  %662 = vmatmul.f32.gmra.mxu2 %v5771_v61 }
  0xe5   : > { %814 = vmatmul.f32.vlgmr.msrb.gmra.mxu1 %v5706_v14  ;;  %4912 = vmatmul.msk.f32.vlgmr.msrb.gmra.mxu3 %vm295_vm0, %v5708_v16 }
  0xe6   : > { %1310 = vmatpush.msra.mxu0 %v1267_v19  ;;  %1515 = vmatpush.msrb.mxu3 %v1447_v23  ;;  %v1774_v23 = vld [vmem:[#allocation8 + $0x4d0] sm:$0xff] }
  0xe7   : > { %1466 = vmatpush.msrb.mxu1 %v1445_v26 }
  0xe8   : > { %1311 = vmatpush.msra.mxu0 %v1266_v21  ;;  %1516 = vmatpush.msrb.mxu3 %v1446_v43  ;;  %v1946_v21 = vld [vmem:[#allocation8 + $0x588] sm:$0xff] }
  0xe9   : > { %1467 = vmatpush.msrb.mxu1 %v1444_v28 }
  0xea   : > { %1312 = vmatpush.msra.mxu0 %v1265_v22  ;;  %v1948_v22 = vld [vmem:[#allocation8 + $0x598] sm:$0xff] }
  0xeb   : > { %1468 = vmatpush.msrb.mxu1 %v1443_v29  ;;  %v1944_v29 = vld [vmem:[#allocation8 + $0x578] sm:$0xff] }
  0xec   : > { %981 = vmatmul.f32.vlgmr.msrb.gmra.mxu0 %v5706_v14  ;;  %4918 = vmatmul.msk.f32.vlgmr.msrb.gmra.mxu2 %vm295_vm0, %v5708_v16 }
  0xed   : > { %817 = vmatmul.f32.gmra.mxu1 %v5728_v35  ;;  %4913 = vmatmul.msk.f32.gmra.mxu3 %vm295_vm0, %v5717_v27 }
  0xee   : > { %1313 = vmatpush.msra.mxu0 %v1264_v24  ;;  %1469 = vmatpush.msrb.mxu1 %v1442_v30  ;;  %v1773_v30 = vld [vmem:[#allocation8 + $0x4c8] sm:$0xff] }
  0xef   : > { %1682 = vmatpush.msrb.mxu2 %v1614_v33  ;;  %v1780_v33 = vld [vmem:[#allocation8 + $0x500] sm:$0xff] }
  0xf0   : > { %1314 = vmatpush.msra.mxu0 %v1263_v25  ;;  %1470 = vmatpush.msrb.mxu1 %v1441_v31  ;;  %v1945_v25 = vld [vmem:[#allocation8 + $0x580] sm:$0xff]  ;;  %v1943_v31 = vld [vmem:[#allocation8 + $0x570] sm:$0xff] }
  0xf1   : > { %1683 = vmatpush.msrb.mxu2 %v1613_v63  ;;  %v1766_v63 = vld [vmem:[#allocation8 + $0x490] sm:$0xff] }
  0xf2   : > { %1633 = vmatpush.msrb.mxu0 %v1612_v32  ;;  %1471 = vmatpush.msrb.mxu1 %v1440_v36  ;;  %v1772_v32 = vld [vmem:[#allocation8 + $0x4c0] sm:$0xff] }
  0xf4   : > { %984 = vmatmul.f32.gmra.mxu0 %v5728_v35  ;;  %4919 = vmatmul.msk.f32.gmra.mxu2 %vm295_vm0, %v5717_v27 }
  0xf5   : > { %820 = vmatmul.f32.gmra.mxu1 %v5741_v42  ;;  %4914 = vmatmul.msk.f32.gmra.mxu3 %vm295_vm0, %v5731_v37 }
  0xf6   : > { %1634 = vmatpush.msrb.mxu0 %v1611_v34  ;;  %1472 = vmatpush.msrb.mxu1 %v1439_v39  ;;  %v1942_v34 = vld [vmem:[#allocation8 + $0x568] sm:$0xff] }
  0xf8   : > { %1635 = vmatpush.msrb.mxu0 %v1610_v38  ;;  %1473 = vmatpush.msrb.mxu1 %v1438_v41  ;;  %v1771_v38 = vld [vmem:[#allocation8 + $0x4b8] sm:$0xff] }
  0xfa   : > { %1636 = vmatpush.msrb.mxu0 %v1609_v40  ;;  %1474 = vmatpush.msrb.mxu1 %v1437_v46  ;;  %v1941_v40 = vld [vmem:[#allocation8 + $0x560] sm:$0xff]  ;;  %v1940_v46 = vld [vmem:[#allocation8 + $0x558] sm:$0xff] }
  0xfc   : > { %987 = vmatmul.f32.gmra.mxu0 %v5741_v42  ;;  %4920 = vmatmul.msk.f32.gmra.mxu2 %vm295_vm0, %v5731_v37 }
  0xfd   : > { %823 = vmatmul.f32.gmra.mxu1 %v5751_v47  ;;  %4915 = vmatmul.msk.f32.gmra.mxu3 %vm295_vm0, %v5743_v45 }
  0xfe   : > { %1637 = vmatpush.msrb.mxu0 %v1608_v44  ;;  %1475 = vmatpush.msrb.mxu1 %v1436_v50  ;;  %v1770_v44 = vld [vmem:[#allocation8 + $0x4b0] sm:$0xff] }
  0xff   : > { %v1939_v50 = vld [vmem:[#allocation8 + $0x550] sm:$0xff] }
 0x100   : > { %1638 = vmatpush.msrb.mxu0 %v1607_v49  ;;  %1476 = vmatpush.msrb.mxu1 %v1435_v53  ;;  %v1769_v49 = vld [vmem:[#allocation8 + $0x4a8] sm:$0xff]  ;;  %v1768_v53 = vld [vmem:[#allocation8 + $0x4a0] sm:$0xff] }
 0x102   : > { %1639 = vmatpush.msrb.mxu0 %v1606_v51  ;;  %1477 = vmatpush.msrb.mxu1 %v1434_v56 }
 0x104   : > { %990 = vmatmul.f32.gmra.mxu0 %v5751_v47  ;;  %4921 = vmatmul.msk.f32.gmra.mxu2 %vm295_vm0, %v5743_v45 }
 0x105   : > { %826 = vmatmul.f32.gmra.mxu1 %v5761_v52  ;;  %4916 = vmatmul.msk.f32.gmra.mxu3 %vm295_vm0, %v5753_v48 }
 0x106   : > { %1640 = vmatpush.msrb.mxu0 %v1605_v55  ;;  %1478 = vmatpush.msrb.mxu1 %v1433_v58  ;;  %v1938_v55 = vld [vmem:[#allocation8 + $0x548] sm:$0xff] }
 0x108   : > { %1641 = vmatpush.msrb.mxu0 %v1604_v57  ;;  %1479 = vmatpush.msrb.mxu1 %v1432_v60 }
 0x10a   : > { %1642 = vmatpush.msrb.mxu0 %v1603_v59  ;;  %1480 = vmatpush.msrb.mxu1 %v1431_v0  ;;  %v1767_v59 = vld [vmem:[#allocation8 + $0x498] sm:$0xff] }
 0x10b   : > { %v1936_v0 = vld [vmem:[#allocation8 + $0x538] sm:$0xff] }
 0x10c   : > { %993 = vmatmul.f32.gmra.mxu0 %v5761_v52  ;;  %4922 = vmatmul.msk.f32.gmra.mxu2 %vm295_vm0, %v5753_v48 }
 0x10d   : > { %829 = vmatmul.f32.gmra.mxu1 %v5771_v61  ;;  %4917 = vmatmul.msk.f32.gmra.mxu3 %vm295_vm0, %v5763_v54 }
 0x10e   : > { %1643 = vmatpush.msrb.mxu0 %v1602_v62  ;;  %1481 = vmatpush.msrb.mxu1 %v1430_v2  ;;  %v1937_v62 = vld [vmem:[#allocation8 + $0x540] sm:$0xff] }
 0x110   : > { %1644 = vmatpush.msrb.mxu0 %v1601_v1  ;;  %v1947_v1 = vld [vmem:[#allocation8 + $0x590] sm:$0xff] }
 0x112   : > { %1645 = vmatpush.msrb.mxu0 %v1600_v3  ;;  %v1765_v3 = vld [vmem:[#allocation8 + $0x488] sm:$0xff] }
 0x114   : > { %996 = vmatmul.f32.gmra.mxu0 %v5771_v61  ;;  %4923 = vmatmul.msk.f32.gmra.mxu2 %vm295_vm0, %v5763_v54 }
 0x115   : > { %1148 = vmatmul.f32.vlgmr.msra.gmra.mxu1 %v5706_v14  ;;  %4924 = vmatmul.msk.f32.vlgmr.msra.gmra.mxu3 %vm295_vm0, %v5708_v16 }
 0x116   : > { %1849 = vmatpush.msra.mxu3 %v1781_v5  ;;  %1646 = vmatpush.msrb.mxu0 %v1599_v4  ;;  %v1935_v5 = vld [vmem:[#allocation8 + $0x530] sm:$0xff] }
 0x117   : > { %1800 = vmatpush.msra.mxu1 %v1779_v10  ;;  %v1764_v10 = vld [vmem:[#allocation8 + $0x480] sm:$0xff] }
 0x118   : > { %1647 = vmatpush.msrb.mxu0 %v1598_v7  ;;  %1850 = vmatpush.msra.mxu3 %v1780_v33 }
 0x119   : > { %1801 = vmatpush.msra.mxu1 %v1778_v12 }
 0x11a   : > { %1648 = vmatpush.msrb.mxu0 %v1597_v9 }
 0x11b   : > { %1802 = vmatpush.msra.mxu1 %v1777_v15 }
 0x11c   : > { %1315 = vmatmul.f32.vlgmr.msra.gmra.mxu0 %v5706_v14  ;;  %4930 = vmatmul.msk.f32.vlgmr.msra.gmra.mxu2 %vm295_vm0, %v5708_v16 }
 0x11d   : > { %1151 = vmatmul.f32.gmra.mxu1 %v5728_v35  ;;  %4925 = vmatmul.msk.f32.gmra.mxu3 %vm295_vm0, %v5717_v27 }
 0x11e   : > { %1803 = vmatpush.msra.mxu1 %v1776_v18  ;;  %1967 = vmatpush.msra.mxu0 %v1946_v21 }
 0x11f   : > { %2016 = vmatpush.msra.mxu2 %v1948_v22 }
 0x120   : > { %1804 = vmatpush.msra.mxu1 %v1775_v20  ;;  %1968 = vmatpush.msra.mxu0 %v1945_v25 }
 0x121   : > { %2017 = vmatpush.msra.mxu2 %v1947_v1  ;;  %v2103_v1 = vld [vmem:[#allocation8 + $0x5c8] sm:$0xff] }
 0x122   : > { %1805 = vmatpush.msra.mxu1 %v1774_v23  ;;  %1969 = vmatpush.msra.mxu0 %v1944_v29 }
 0x124   : > { %1318 = vmatmul.f32.gmra.mxu0 %v5728_v35  ;;  %4931 = vmatmul.msk.f32.gmra.mxu2 %vm295_vm0, %v5717_v27 }
 0x125   : > { %1154 = vmatmul.f32.gmra.mxu1 %v5741_v42  ;;  %4926 = vmatmul.msk.f32.gmra.mxu3 %vm295_vm0, %v5731_v37 }
 0x126   : > { %1806 = vmatpush.msra.mxu1 %v1773_v30  ;;  %1970 = vmatpush.msra.mxu0 %v1943_v31 }
 0x128   : > { %1807 = vmatpush.msra.mxu1 %v1772_v32  ;;  %1971 = vmatpush.msra.mxu0 %v1942_v34  ;;  %v2112_v32 = vld [vmem:[#allocation8 + $0x610] sm:$0xff] }
 0x12a   : > { %1808 = vmatpush.msra.mxu1 %v1771_v38  ;;  %1972 = vmatpush.msra.mxu0 %v1941_v40  ;;  %v2111_v40 = vld [vmem:[#allocation8 + $0x608] sm:$0xff] }
 0x12c   : > { %1321 = vmatmul.f32.gmra.mxu0 %v5741_v42  ;;  %4932 = vmatmul.msk.f32.gmra.mxu2 %vm295_vm0, %v5731_v37 }
 0x12d   : > { %1157 = vmatmul.f32.gmra.mxu1 %v5751_v47  ;;  %4927 = vmatmul.msk.f32.gmra.mxu3 %vm295_vm0, %v5743_v45 }
 0x12e   : > { %1809 = vmatpush.msra.mxu1 %v1770_v44  ;;  %1973 = vmatpush.msra.mxu0 %v1940_v46  ;;  %v2108_v44 = vld [vmem:[#allocation8 + $0x5f0] sm:$0xff] }
 0x130   : > { %1810 = vmatpush.msra.mxu1 %v1769_v49  ;;  %1974 = vmatpush.msra.mxu0 %v1939_v50  ;;  %v2279_v49 = vld [vmem:[#allocation8 + $0x6a0] sm:$0xff] }
 0x131   : > { %v5844_v11 = vpop.f32.mrf.mxu0 }
 0x132   : > { %v5836_v8 = vpop.f32.mrf.mxu1  ;;  %1811 = vmatpush.msra.mxu1 %v1768_v53  ;;  %1975 = vmatpush.msra.mxu0 %v1938_v55  ;;  %v5960_v53 = vld [vmem:[#allocation2] sm:$0xff]  ;;  %v5962_v55 = vld [vmem:[#allocation2 + $0x8] sm:$0xff] }
 0x134   : > { %1324 = vmatmul.f32.gmra.mxu0 %v5751_v47  ;;  %4933 = vmatmul.msk.f32.gmra.mxu2 %vm295_vm0, %v5743_v45 }
 0x135   : > { %1160 = vmatmul.f32.gmra.mxu1 %v5761_v52  ;;  %4928 = vmatmul.msk.f32.gmra.mxu3 %vm295_vm0, %v5753_v48 }
 0x136   : > { %1812 = vmatpush.msra.mxu1 %v1767_v59  ;;  %1976 = vmatpush.msra.mxu0 %v1937_v62 }
 0x137   : > { %v5856_v19 = vpop.f32.mrf.mxu2 }
 0x138   : > { %v5846_v13 = vpop.f32.mrf.mxu3  ;;  %1813 = vmatpush.msra.mxu1 %v1766_v63  ;;  %1977 = vmatpush.msra.mxu0 %v1936_v0  ;;  %v2104_v63 = vld [vmem:[#allocation8 + $0x5d0] sm:$0xff] }
 0x13a   : > { %v5848_v17 = vpop.f32.mrf.mxu1  ;;  %1814 = vmatpush.msra.mxu1 %v1765_v3  ;;  %1978 = vmatpush.msra.mxu0 %v1935_v5  ;;  %v2275_v3 = vld [vmem:[#allocation8 + $0x680] sm:$0xff]  ;;  %v2101_v5 = vld [vmem:[#allocation8 + $0x5b8] sm:$0xff] }
 0x13c   : > { %1327 = vmatmul.f32.gmra.mxu0 %v5761_v52  ;;  %4934 = vmatmul.msk.f32.gmra.mxu2 %vm295_vm0, %v5753_v48 }
 0x13d   : > { %1163 = vmatmul.f32.gmra.mxu1 %v5771_v61  ;;  %4929 = vmatmul.msk.f32.gmra.mxu3 %vm295_vm0, %v5763_v54 }
 0x13e   : > { %1815 = vmatpush.msra.mxu1 %v1764_v10 }
 0x140   : > { %v5858_v24 = vpop.f32.mrf.mxu3 }
 0x141   : > { %v5860_v26 = vpop.f32.mrf.mxu0 }
 0x142   : > { %v5862_v28 = vpop.f32.mrf.mxu1  ;;  %v516_v18 = vadd.f32 %v5848_v17, %v5860_v26  ;;  %v1931_v17 = vld [vmem:[#allocation8 + $0x510] sm:$0xff]  ;;  %v2113_v26 = vld [vmem:[#allocation8 + $0x618] sm:$0xff] }
 0x144   : > { %1330 = vmatmul.f32.gmra.mxu0 %v5771_v61  ;;  %4935 = vmatmul.msk.f32.gmra.mxu2 %vm295_vm0, %v5763_v54 }
 0x145   : > { %1482 = vmatmul.f32.vlgmr.msrb.gmra.mxu1 %v5706_v14  ;;  %4936 = vmatmul.msk.f32.vlgmr.msrb.gmra.mxu3 %vm295_vm0, %v5708_v16 }
 0x146   : > { %2134 = vmatpush.msrb.mxu1 %v2113_v26 }
 0x147   : > { %v5870_v36 = vpop.f32.mrf.mxu2 }
 0x148   : > { %v5872_v39 = vpop.f32.mrf.mxu3  ;;  %2135 = vmatpush.msrb.mxu1 %v2112_v32  ;;  %v2282_v32 = vld [vmem:[#allocation8 + $0x6b8] sm:$0xff] }
 0x149   : > { %v5874_v41 = vpop.f32.mrf.mxu0 }
 0x14a   : > { %v521_v43 = vpop.f32.mrf.mxu1  ;;  %v519_v21 = vadd.f32 %v5862_v28, %v5874_v41  ;;  %2136 = vmatpush.msrb.mxu1 %v2111_v40 }
 0x14c   : > { %1649 = vmatmul.f32.vlgmr.msrb.gmra.mxu0 %v5706_v14  ;;  %4942 = vmatmul.msk.f32.vlgmr.msrb.gmra.mxu2 %vm295_vm0, %v5708_v16  ;;  %v513_v16 = vadd.f32 %v5836_v8, %v5844_v11  ;;  %v1934_v11 = vld [vmem:[#allocation8 + $0x528] sm:$0xff] }
 0x14d   : > { %1485 = vmatmul.f32.gmra.mxu1 %v5728_v35  ;;  %4937 = vmatmul.msk.f32.gmra.mxu3 %vm295_vm0, %v5717_v27 }
 0x14e   : > { %1979 = vmatpush.msra.mxu0 %v1934_v11  ;;  %2350 = vmatpush.msrb.mxu2 %v2282_v32 }
 0x14f   : > { %v5882_v51 = vpop.f32.mrf.mxu2 }
 0x150   : > { %v692_v56 = vpop.f32.mrf.mxu3 }
 0x151   : > { %v486_v14 = vpop.f32.mrf.mxu0 }
 0x152   : > { %v524_v57 = vpop.f32.mrf.mxu1  ;;  %v522_v58 = vadd.f32 %v521_v43, %v486_v14  ;;  %v2106_v14 = vld [vmem:[#allocation8 + $0x5e0] sm:$0xff] }
 0x154   : > { %v5886_v60 = vmax.f32 %v513_v16, %v522_v58  ;;  %1652 = vmatmul.f32.gmra.mxu0 %v5728_v35  ;;  %4943 = vmatmul.msk.f32.gmra.mxu2 %vm295_vm0, %v5717_v27  ;;  %v684_v27 = vadd.f32 %v5846_v13, %v5856_v19  ;;  %v1933_v13 = vld [vmem:[#allocation8 + $0x520] sm:$0xff]  ;;  %v1932_v19 = vld [vmem:[#allocation8 + $0x518] sm:$0xff]  ;;  %v2277_v16 = vld [vmem:[#allocation8 + $0x690] sm:$0xff] }
 0x155   : > { %1488 = vmatmul.f32.gmra.mxu1 %v5741_v42  ;;  %4938 = vmatmul.msk.f32.gmra.mxu3 %vm295_vm0, %v5731_v37  ;;  %v2105_v58 = vld [vmem:[#allocation8 + $0x5d8] sm:$0xff] }
 0x156   : > { %536 = vrot.lane.b32.xlu0 %v5886_v60, %s5513_s23  ;;  %1980 = vmatpush.msra.mxu0 %v1933_v13  ;;  %v2100_v13 = vld [vmem:[#allocation8 + $0x5b0] sm:$0xff] }
 0x157   : > { %v657_v2 = vpop.f32.mrf.mxu2 }
 0x158   : > { %v695_v35 = vpop.f32.mrf.mxu3  ;;  %v693_v4 = vadd.f32 %v692_v56, %v657_v2  ;;  %1981 = vmatpush.msra.mxu0 %v1932_v19  ;;  %v2278_v56 = vld [vmem:[#allocation8 + $0x698] sm:$0xff]  ;;  %v5976_v2 = vld [vmem:[#allocation2 + $0x10] sm:$0xff]  ;;  %v5994_v19 = vld [vmem:[#allocation2 + $0x28] sm:$0xff] }
 0x159   : > { %v489_v7 = vpop.f32.mrf.mxu0 }
 0x15a   : > { %v5898_v8 = vmax.f32 %v684_v27, %v693_v4  ;;  %v527_v9 = vpop.f32.mrf.mxu1  ;;  %v525_v12 = vadd.f32 %v524_v57, %v489_v7  ;;  %1982 = vmatpush.msra.mxu0 %v1931_v17  ;;  %v2102_v27 = vld [vmem:[#allocation8 + $0x5c0] sm:$0xff] }
 0x15b   : > { %v2098_v17 = vld [vmem:[#allocation8 + $0x5a0] sm:$0xff] }
 0x15c   : > { %4944 = vmatmul.msk.f32.gmra.mxu2 %vm295_vm0, %v5731_v37  ;;  %707 = vrot.lane.b32.xlu1 %v5898_v8, %s5513_s23  ;;  %v5912_v22 = vmax.f32 %v516_v18, %v525_v12 }
 0x15d   : > { %1491 = vmatmul.f32.gmra.mxu1 %v5751_v47  ;;  %4939 = vmatmul.msk.f32.gmra.mxu3 %vm295_vm0, %v5743_v45 }
 0x15e   : > { %1655 = vmatmul.f32.gmra.mxu0 %v5741_v42 }
 0x15f   : > { %v660_v15 = vpop.f32.mrf.mxu2 }
 0x160   : > { %v698_v37 = vpop.f32.mrf.mxu3  ;;  %v696_v29 = vadd.f32 %v695_v35, %v660_v15  ;;  %v2274_v35 = vld [vmem:[#allocation8 + $0x678] sm:$0xff] }
 0x161   : > { %v492_v20 = vpop.f32.mrf.mxu0 }
 0x162   : > { %v5914_v23 = vpop.f32.mrf.mxu1  ;;  %v528_v25 = vadd.f32 %v527_v9, %v492_v20  ;;  %v2273_v9 = vld [vmem:[#allocation8 + $0x670] sm:$0xff]  ;;  %v2272_v20 = vld [vmem:[#allocation8 + $0x668] sm:$0xff] }
 0x164   : > { %v5916_v42 = vmax.f32 %v519_v21, %v528_v25  ;;  %4945 = vmatmul.msk.f32.gmra.mxu2 %vm295_vm0, %v5743_v45  ;;  %538 = vrot.lane.b32.xlu1 %v5912_v22, %s5513_s23  ;;  %v690_v45 = vadd.f32 %v5872_v39, %v5882_v51  ;;  %v2110_v39 = vld [vmem:[#allocation8 + $0x600] sm:$0xff]  ;;  %v2107_v51 = vld [vmem:[#allocation8 + $0x5e8] sm:$0xff] }
 0x165   : > { %1494 = vmatmul.f32.gmra.mxu1 %v5761_v52  ;;  %4940 = vmatmul.msk.f32.gmra.mxu3 %vm295_vm0, %v5753_v48  ;;  %v2099_v21 = vld [vmem:[#allocation8 + $0x5a8] sm:$0xff]  ;;  %v2271_v25 = vld [vmem:[#allocation8 + $0x660] sm:$0xff] }
 0x166   : > { %1658 = vmatmul.f32.gmra.mxu0 %v5751_v47  ;;  %540 = vrot.lane.b32.xlu2 %v5916_v42, %s5513_s23  ;;  %v687_v47 = vadd.f32 %v5858_v24, %v5870_v36  ;;  %v2109_v24 = vld [vmem:[#allocation8 + $0x5f8] sm:$0xff]  ;;  %v2280_v36 = vld [vmem:[#allocation8 + $0x6a8] sm:$0xff] }
 0x167   : > { %v663_v28 = vpop.f32.mrf.mxu2  ;;  %2137 = vmatpush.msrb.mxu1 %v2110_v39  ;;  %2301 = vmatpush.msrb.mxu0 %v2280_v36  ;;  %v6008_v39 = vld [vmem:[#allocation2 + $0x30] sm:$0xff] }
 0x168   : > { %v5930_v30 = vpop.f32.mrf.mxu3  ;;  %v699_v31 = vadd.f32 %v698_v37, %v663_v28  ;;  %v5940_v41 = vmax.f32 %v687_v47, %v696_v29  ;;  %v5992_v37 = vld [vmem:[#allocation2 + $0x20] sm:$0xff]  ;;  %v2281_v36 = vld [vmem:[#allocation8 + $0x6b0] sm:$0xff] }
 0x169   : > { %v5932_v33 = vpop.f32.mrf.mxu0  ;;  %2138 = vmatpush.msrb.mxu1 %v2109_v24  ;;  %2302 = vmatpush.msrb.mxu0 %v2279_v49  ;;  %v851_v10 = vadd.f32 %v5930_v30, %v5914_v23  ;;  %v2114_v23 = vld [vmem:[#allocation8 + $0x620] sm:$0xff]  ;;  %v2270_v30 = vld [vmem:[#allocation8 + $0x658] sm:$0xff] }
 0x16a   : > { %v5936_v34 = vmax.f32 %v690_v45, %v699_v31  ;;  %v5938_v38 = vpop.f32.mrf.mxu1  ;;  %v6010_v24 = vld [vmem:[#allocation2 + $0x38] sm:$0xff]  ;;  %2351 = vmatpush.msrb.mxu2 %v2281_v36 }
 0x16b   : > { %2139 = vmatpush.msrb.mxu1 %v2108_v44  ;;  %2303 = vmatpush.msrb.mxu0 %v2278_v56  ;;  %v2268_v44 = vld [vmem:[#allocation8 + $0x648] sm:$0xff] }
 0x16c   : > { %4946 = vmatmul.msk.f32.gmra.mxu2 %vm295_vm0, %v5753_v48  ;;  %711 = vrot.lane.b32.xlu0 %v5936_v34, %s5513_s23 }
 0x16d   : > { %1497 = vmatmul.f32.gmra.mxu1 %v5771_v61  ;;  %4941 = vmatmul.msk.f32.gmra.mxu3 %vm295_vm0, %v5763_v54 }
 0x16e   : > { %1661 = vmatmul.f32.gmra.mxu0 %v5761_v52  ;;  %709 = vrot.lane.b32.xlu1 %v5940_v41, %s5513_s23  ;;  %v2115_v52 = vld [vmem:[#allocation8 + $0x628] sm:$0xff] }
 0x16f   : > { %v5952_v43 = vpop.f32.mrf.mxu2  ;;  %2183 = vmatpush.msrb.mxu3 %v2115_v52  ;;  %2140 = vmatpush.msrb.mxu1 %v2107_v51 }
 0x170   : > { %v5954_v48 = vpop.f32.mrf.mxu3  ;;  %2304 = vmatpush.msrb.mxu0 %v2277_v16  ;;  %v1018_v28 = vadd.f32 %v5952_v43, %v5932_v33  ;;  %v2269_v33 = vld [vmem:[#allocation8 + $0x650] sm:$0xff] }
 0x171   : > { %v5956_v46 = vpop.f32.mrf.mxu0  ;;  %2141 = vmatpush.msrb.mxu1 %v2106_v14  ;;  %2184 = vmatpush.msrb.mxu3 %v2114_v23  ;;  %v854_v52 = vadd.f32 %v5954_v48, %v5938_v38  ;;  %v2267_v14 = vld [vmem:[#allocation8 + $0x640] sm:$0xff]  ;;  %v6034_v48 = vld [vmem:[#allocation2 + $0x48] sm:$0xff] }
 0x172   : > { %v5958_v50 = vpop.f32.mrf.mxu1  ;;  %v6032_v38 = vld [vmem:[#allocation2 + $0x40] sm:$0xff] }
 0x173   : > { %2142 = vmatpush.msrb.mxu1 %v2105_v58 }
 0x174   : > { %4947 = vmatmul.msk.f32.gmra.mxu2 %vm295_vm0, %v5763_v54  ;;  %v2276_v54 = vld [vmem:[#allocation8 + $0x688] sm:$0xff] }
 0x175   : > { %1816 = vmatmul.f32.vlgmr.msra.gmra.mxu1 %v5960_v53  ;;  %4948 = vmatmul.msk.f32.vlgmr.msra.gmra.mxu3 %vm295_vm0, %v5962_v55 }
 0x176   : > { %1664 = vmatmul.f32.gmra.mxu0 %v5771_v61  ;;  %v5978_v61 = vld [vmem:[#allocation2 + $0x18] sm:$0xff]  ;;  %2143 = vmatpush.msrb.mxu1 %v2104_v63 }
 0x177   : > { %v5970_v57 = vpop.f32.mrf.mxu2  ;;  %2305 = vmatpush.msrb.mxu0 %v2276_v54 }
 0x178   : > { %v5972_v59 = vpop.f32.mrf.mxu3  ;;  %2144 = vmatpush.msrb.mxu1 %v2103_v1  ;;  %v1021_v58 = vadd.f32 %v5970_v57, %v5956_v46  ;;  %v2266_v46 = vld [vmem:[#allocation8 + $0x638] sm:$0xff] }
 0x179   : > { %v5974_v62 = vpop.f32.mrf.mxu0  ;;  %2306 = vmatpush.msrb.mxu0 %v2275_v3  ;;  %v857_v16 = vadd.f32 %v5972_v59, %v5958_v50  ;;  %v2265_v50 = vld [vmem:[#allocation8 + $0x630] sm:$0xff] }
 0x17a   : > { %v824_v0 = vpop.f32.mrf.mxu1  ;;  %2145 = vmatpush.msrb.mxu1 %v2102_v27 }
 0x17b   : > { %2307 = vmatpush.msrb.mxu0 %v2274_v35 }
 0x17c   : > { %4954 = vmatmul.msk.f32.vlgmr.msra.gmra.mxu2 %vm295_vm0, %v5962_v55  ;;  %2146 = vmatpush.msrb.mxu1 %v2101_v5 }
 0x17d   : > { %1819 = vmatmul.f32.gmra.mxu1 %v5976_v2  ;;  %4949 = vmatmul.msk.f32.gmra.mxu3 %vm295_vm0, %v5978_v61 }
 0x17e   : > { %1983 = vmatmul.f32.vlgmr.msra.gmra.mxu0 %v5960_v53  ;;  %2147 = vmatpush.msrb.mxu1 %v2100_v13 }
 0x17f   : > { %v5986_v4 = vpop.f32.mrf.mxu2  ;;  %2308 = vmatpush.msrb.mxu0 %v2273_v9 }
 0x180   : > { %v859_v7 = vpop.f32.mrf.mxu3  ;;  %2148 = vmatpush.msrb.mxu1 %v2099_v21  ;;  %v1024_v5 = vadd.f32 %v5986_v4, %v5974_v62 }
 0x181   : > { %v860_v11 = vadd.f32 %v859_v7, %v824_v0  ;;  %v991_v12 = vpop.f32.mrf.mxu0  ;;  %2309 = vmatpush.msrb.mxu0 %v2272_v20 }
 0x182   : > { %v827_v15 = vpop.f32.mrf.mxu1  ;;  %2149 = vmatpush.msrb.mxu1 %v2098_v17 }
 0x183   : > { %v5990_v18 = vmax.f32 %v851_v10, %v860_v11  ;;  %2310 = vmatpush.msrb.mxu0 %v2271_v25  ;;  %v6052_v11 = vld [vmem:[#allocation2 + $0x50] sm:$0xff] }
 0x184   : > { %4955 = vmatmul.msk.f32.gmra.mxu2 %vm295_vm0, %v5978_v61 }
 0x185   : > { %1822 = vmatmul.f32.gmra.mxu1 %v5992_v37  ;;  %4950 = vmatmul.msk.f32.gmra.mxu3 %vm295_vm0, %v5994_v19 }
 0x186   : > { %874 = vrot.lane.b32.xlu2 %v5990_v18, %s5513_s23  ;;  %1986 = vmatmul.f32.gmra.mxu0 %v5976_v2 }
 0x187   : > { %v1026_v26 = vpop.f32.mrf.mxu2  ;;  %2311 = vmatpush.msrb.mxu0 %v2270_v30 }
 0x188   : > { %v862_v45 = vpop.f32.mrf.mxu3  ;;  %v1027_v29 = vadd.f32 %v1026_v26, %v991_v12  ;;  %v6054_v12 = vld [vmem:[#allocation2 + $0x58] sm:$0xff] }
 0x189   : > { %v994_v31 = vpop.f32.mrf.mxu0  ;;  %v863_v43 = vadd.f32 %v862_v45, %v827_v15  ;;  %2312 = vmatpush.msrb.mxu0 %v2269_v33 }
 0x18a   : > { %v6006_v47 = vmax.f32 %v1018_v28, %v1027_v29  ;;  %v830_v40 = vpop.f32.mrf.mxu1 }
 0x18b   : > { %2313 = vmatpush.msrb.mxu0 %v2268_v44  ;;  %v6026_v0 = vmax.f32 %v854_v52, %v863_v43 }
 0x18c   : > { %4956 = vmatmul.msk.f32.gmra.mxu2 %vm295_vm0, %v5994_v19  ;;  %1041 = vrot.lane.b32.xlu0 %v6006_v47, %s5513_s23 }
 0x18d   : > { %1825 = vmatmul.f32.gmra.mxu1 %v6008_v39  ;;  %4951 = vmatmul.msk.f32.gmra.mxu3 %vm295_vm0, %v6010_v24 }
 0x18e   : > { %1989 = vmatmul.f32.gmra.mxu0 %v5992_v37 }
 0x18f   : > { %v1029_v49 = vpop.f32.mrf.mxu2  ;;  %2314 = vmatpush.msrb.mxu0 %v2267_v14 }
 0x190   : > { %v865_v51 = vpop.f32.mrf.mxu3  ;;  %v1030_v56 = vadd.f32 %v1029_v49, %v994_v31 }
 0x191   : > { %v866_v54 = vadd.f32 %v865_v51, %v830_v40  ;;  %v997_v63 = vpop.f32.mrf.mxu0  ;;  %2315 = vmatpush.msrb.mxu0 %v2266_v46 }
 0x192   : > { %v1149_v1 = vpop.f32.mrf.mxu1  ;;  %v6030_v27 = vmax.f32 %v1021_v58, %v1030_v56 }
 0x193   : > { %v6028_v3 = vmax.f32 %v857_v16, %v866_v54  ;;  %2316 = vmatpush.msrb.mxu0 %v2265_v50 }
 0x194   : > { %4957 = vmatmul.msk.f32.gmra.mxu2 %vm295_vm0, %v6010_v24  ;;  %876 = vrot.lane.b32.xlu0 %v6026_v0, %s5513_s23 }
 0x195   : > { %1828 = vmatmul.f32.gmra.mxu1 %v6032_v38  ;;  %4952 = vmatmul.msk.f32.gmra.mxu3 %vm295_vm0, %v6034_v48 }
 0x196   : > { %878 = vrot.lane.b32.xlu2 %v6028_v3, %s5513_s23  ;;  %1992 = vmatmul.f32.gmra.mxu0 %v6008_v39 }
 0x197   : > { %1043 = vrot.lane.b32.xlu1 %v6030_v27, %s5513_s23  ;;  %v1032_v57 = vpop.f32.mrf.mxu2 }
 0x198   : > { %v1184_v59 = vpop.f32.mrf.mxu3  ;;  %v1033_v35 = vadd.f32 %v1032_v57, %v997_v63 }
 0x199   : > { %v1316_v7 = vpop.f32.mrf.mxu0  ;;  %v1185_v28 = vadd.f32 %v1184_v59, %v1149_v1 }
 0x19a   : > { %v1152_v9 = vpop.f32.mrf.mxu1  ;;  %v6050_v10 = vmax.f32 %v1024_v5, %v1033_v35 }
 0x19c   : > { %4958 = vmatmul.msk.f32.gmra.mxu2 %vm295_vm0, %v6034_v48 }
 0x19d   : > { %1831 = vmatmul.f32.gmra.mxu1 %v6052_v11  ;;  %4953 = vmatmul.msk.f32.gmra.mxu3 %vm295_vm0, %v6054_v12 }
 0x19e   : > { %1995 = vmatmul.f32.gmra.mxu0 %v6032_v38 }
 0x19f   : > { %1045 = vrot.lane.b32.xlu1 %v6050_v10, %s5513_s23  ;;  %v1351_v62 = vpop.f32.mrf.mxu2 }
 0x1a0   : > { %v1187_v4 = vpop.f32.mrf.mxu3 }
 0x1a1   : > { %v1319_v13 = vpop.f32.mrf.mxu0  ;;  %v1188_v33 = vadd.f32 %v1187_v4, %v1152_v9 }
 0x1a2   : > { %v6064_v15 = vpop.f32.mrf.mxu1 }
 0x1a4   : > { %4959 = vmatmul.msk.f32.gmra.mxu2 %vm295_vm0, %v6054_v12 }
 0x1a5   : > { %2150 = vmatmul.f32.vlgmr.msrb.gmra.mxu1 %v5960_v53  ;;  %4960 = vmatmul.msk.f32.vlgmr.msrb.gmra.mxu3 %vm295_vm0, %v5962_v55 }
 0x1a6   : > { %1998 = vmatmul.f32.gmra.mxu0 %v6052_v11 }
 0x1a7   : > { %v1354_v20 = vpop.f32.mrf.mxu2 }
 0x1a8   : > { %v1190_v21 = vpop.f32.mrf.mxu3  ;;  %v1355_v51 = vadd.f32 %v1354_v20, %v1319_v13 }
 0x1a9   : > { %v1322_v23 = vpop.f32.mrf.mxu0 }
 0x1aa   : > { %v1158_v25 = vpop.f32.mrf.mxu1 }
 0x1ac   : > { %4966 = vmatmul.msk.f32.vlgmr.msrb.gmra.mxu2 %vm295_vm0, %v5962_v55  ;;  %v1352_v55 = vadd.f32 %v1351_v62, %v1316_v7 }
 0x1ad   : > { %2153 = vmatmul.f32.gmra.mxu1 %v5976_v2  ;;  %4961 = vmatmul.msk.f32.gmra.mxu3 %vm295_vm0, %v5978_v61 }
 0x1ae   : > { %2317 = vmatmul.f32.vlgmr.msrb.gmra.mxu0 %v5960_v53 }
 0x1af   : > { %v1357_v17 = vpop.f32.mrf.mxu2 }
 0x1b0   : > { %v1193_v26 = vpop.f32.mrf.mxu3  ;;  %v1358_v59 = vadd.f32 %v1357_v17, %v1322_v23 }
 0x1b1   : > { %v1194_v45 = vadd.f32 %v1193_v26, %v1158_v25  ;;  %v1325_v29 = vpop.f32.mrf.mxu0 }
 0x1b2   : > { %v1161_v30 = vpop.f32.mrf.mxu1 }
 0x1b3   : > { %v6078_v31 = vmax.f32 %v1185_v28, %v1194_v45 }
 0x1b4   : > { %4967 = vmatmul.msk.f32.gmra.mxu2 %vm295_vm0, %v5978_v61 }
 0x1b5   : > { %2156 = vmatmul.f32.gmra.mxu1 %v5992_v37  ;;  %4962 = vmatmul.msk.f32.gmra.mxu3 %vm295_vm0, %v5994_v19 }
 0x1b6   : > { %1208 = vrot.lane.b32.xlu0 %v6078_v31, %s5513_s23  ;;  %2320 = vmatmul.f32.gmra.mxu0 %v5976_v2  ;;  %v6102_v2 = vpop.permute.xlu0 %558 }
 0x1b7   : > { %v1360_v53 = vpop.f32.mrf.mxu2 }
 0x1b8   : > { %v1196_v32 = vpop.f32.mrf.mxu3  ;;  %v1361_v40 = vadd.f32 %v1360_v53, %v1325_v29 }
 0x1b9   : > { %v1197_v36 = vadd.f32 %v1196_v32, %v1161_v30  ;;  %v1328_v43 = vpop.f32.mrf.mxu0 }
 0x1ba   : > { %v6088_v44 = vmax.f32 %v1352_v55, %v1361_v40  ;;  %v1164_v61 = vpop.f32.mrf.mxu1 }
 0x1bb   : > { %v6090_v49 = vmax.f32 %v1188_v33, %v1197_v36 }
 0x1bc   : > { %4968 = vmatmul.msk.f32.gmra.mxu2 %vm295_vm0, %v5994_v19  ;;  %1375 = vrot.lane.b32.xlu1 %v6088_v44, %s5513_s23 }
 0x1bd   : > { %2159 = vmatmul.f32.gmra.mxu1 %v6008_v39  ;;  %4963 = vmatmul.msk.f32.gmra.mxu3 %vm295_vm0, %v6010_v24 }
 0x1be   : > { %1210 = vrot.lane.b32.xlu2 %v6090_v49, %s5513_s23  ;;  %2323 = vmatmul.f32.gmra.mxu0 %v5992_v37 }
 0x1bf   : > { %v1363_v52 = vpop.f32.mrf.mxu2 }
 0x1c0   : > { %v1199_v56 = vpop.f32.mrf.mxu3  ;;  %v1364_v14 = vadd.f32 %v1363_v52, %v1328_v43  ;;  %v541_v19 = vpop.permute.xlu2 %540 }
 0x1c1   : > { %v547_v16 = vmax.f32 %v5916_v42, %v541_v19  ;;  %v1331_v58 = vpop.f32.mrf.mxu0  ;;  %v1200_v50 = vadd.f32 %v1199_v56, %v1164_v61 }
 0x1c2   : > { %v6105_v54 = vmax.f32 %v1355_v51, %v1364_v14  ;;  %v6107_v63 = vpop.f32.mrf.mxu1 }
 0x1c3   : > { %v550_v1 = vadd.f32 %v5832_v6, %v547_v16  ;;  %v563_v46 = vadd.f32 %v6102_v2, %v547_v16 }
 0x1c4   : > { %4969 = vmatmul.msk.f32.gmra.mxu2 %vm295_vm0, %v6010_v24  ;;  %1377 = vrot.lane.b32.xlu1 %v6105_v54, %s5513_s23  ;;  %v1191_v24 = vadd.f32 %v1190_v21, %v6064_v15 }
 0x1c5   : > { %v553_v37 = vmax.f32 %v550_v1, 0.0  ;;  %2162 = vmatmul.f32.gmra.mxu1 %v6032_v38  ;;  %4964 = vmatmul.msk.f32.gmra.mxu3 %vm295_vm0, %v6034_v48  ;;  %v566_v42 = vmax.f32 %v563_v46, 0.0 }
 0x1c6   : > { %2326 = vmatmul.f32.gmra.mxu0 %v6008_v39  ;;  %v6127_v4 = vmax.f32 %v1191_v24, %v1200_v50 }
 0x1c7   : > { %557 = vst.msk [vmem:[#allocation3 + $0x10] sm:$0xff] %vm554_vm8, %v553_v37  ;;  %v1366_v57 = vpop.f32.mrf.mxu2  ;;  %574 = vrot.lane.b32.xlu0 %v566_v42, %s5516_s9 }
 0x1c8   : > { %v6122_v35 = vpop.f32.mrf.mxu3  ;;  %v1367_v5 = vadd.f32 %v1366_v57, %v1331_v58  ;;  %v537_v7 = vpop.permute.xlu0 %536 }
 0x1c9   : > { %v545_v9 = vmax.f32 %v5886_v60, %v537_v7  ;;  %v6125_v62 = vpop.f32.mrf.mxu0 }
 0x1ca   : > { %v6129_v13 = vmax.f32 %v1358_v59, %v1367_v5  ;;  %v6131_v39 = vpop.f32.mrf.mxu1 }
 0x1cb   : > { %v548_v20 = vadd.f32 %v5832_v6, %v545_v9  ;;  %v561_v60 = vadd.f32 %v6102_v2, %v545_v9 }
 0x1cc   : > { %4970 = vmatmul.msk.f32.gmra.mxu2 %vm295_vm0, %v6034_v48  ;;  %1212 = vrot.lane.b32.xlu1 %v6127_v4, %s5513_s23 }
 0x1cd   : > { %v551_v15 = vmax.f32 %v548_v20, 0.0  ;;  %2165 = vmatmul.f32.gmra.mxu1 %v6052_v11  ;;  %4965 = vmatmul.msk.f32.gmra.mxu3 %vm295_vm0, %v6054_v12  ;;  %v564_v45 = vmax.f32 %v561_v60, 0.0 }
 0x1ce   : > { %2329 = vmatmul.f32.gmra.mxu0 %v6032_v38  ;;  %1379 = vrot.lane.b32.xlu2 %v6129_v13, %s5513_s23  ;;  %v708_v21 = vpop.permute.xlu1 %707 }
 0x1cf   : > { %555 = vst.msk [vmem:[#allocation3] sm:$0xff] %vm554_vm8, %v551_v15  ;;  %v716_v48 = vmax.f32 %v5898_v8, %v708_v21  ;;  %v6147_v23 = vpop.f32.mrf.mxu2 }
 0x1d0   : > { %v6149_v25 = vpop.f32.mrf.mxu3 }
 0x1d1   : > { %v719_v17 = vadd.f32 %v5832_v6, %v716_v48  ;;  %v6152_v26 = vpop.f32.mrf.mxu0  ;;  %v728_v8 = vadd.f32 %v716_v48, %v6102_v2 }
 0x1d2   : > { %v6154_v28 = vpop.f32.mrf.mxu1 }
 0x1d3   : > { %v722_v38 = vmax.f32 %v719_v17, 0.0  ;;  %v731_v33 = vmax.f32 %v728_v8, 0.0 }
 0x1d4   : > { %4971 = vmatmul.msk.f32.gmra.mxu2 %vm295_vm0, %v6054_v12  ;;  %570 = vrot.lane.b32.xlu1 %v564_v45, %s5516_s9 }
 0x1d5   : > { %725 = vst.msk [vmem:[#allocation3 + $0x30] sm:$0xff] %vm554_vm8, %v722_v38 }
 0x1d6   : > { %2332 = vmatmul.f32.gmra.mxu0 %v6052_v11  ;;  %v539_v29 = vpop.permute.xlu1 %538 }
 0x1d7   : > { %v546_v30 = vmax.f32 %v5912_v22, %v539_v29  ;;  %v6163_v53 = vpop.f32.mrf.mxu2 }
 0x1d8   : > { %v6165_v55 = vpop.f32.mrf.mxu3 }
 0x1d9   : > { %v549_v32 = vadd.f32 %v5832_v6, %v546_v30  ;;  %v562_v40 = vadd.f32 %v6102_v2, %v546_v30 }
 0x1da   : > { %v1492_v12 = vpop.f32.mrf.mxu1 }
 0x1db   : > { %v552_v36 = vmax.f32 %v549_v32, 0.0  ;;  %v6169_v43 = vpop.f32.mrf.mxu0  ;;  %v565_v61 = vmax.f32 %v562_v40, 0.0 }
 0x1dc   : > { %737 = vrot.lane.b32.xlu1 %v731_v33, %s5516_s9  ;;  %v1519_v33 = vadd.f32 %v6122_v35, %v6107_v63 }
 0x1dd   : > { %556 = vst.msk [vmem:[#allocation3 + $0x8] sm:$0xff] %vm554_vm8, %v552_v36  ;;  %572 = vrot.lane.b32.xlu2 %v565_v61, %s5516_s9 }
 0x1de   : > { %v712_v22 = vpop.permute.xlu0 %711 }
 0x1df   : > { %v718_v11 = vmax.f32 %v5936_v34, %v712_v22  ;;  %v6175_v52 = vpop.f32.mrf.mxu2 }
 0x1e0   : > { %v875_v51 = vpop.permute.xlu2 %874  ;;  %v1527_v56 = vpop.f32.mrf.mxu3 }
 0x1e1   : > { %v883_v14 = vmax.f32 %v5990_v18, %v875_v51  ;;  %v721_v19 = vadd.f32 %v5832_v6, %v718_v11  ;;  %v730_v16 = vadd.f32 %v718_v11, %v6102_v2  ;;  %v710_v58 = vpop.permute.xlu1 %709  ;;  %v1528_v29 = vadd.f32 %v1527_v56, %v1492_v12 }
 0x1e2   : > { %v717_v1 = vmax.f32 %v5940_v41, %v710_v58  ;;  %v6181_v46 = vpop.f32.mrf.mxu1 }
 0x1e3   : > { %v886_v37 = vadd.f32 %v5832_v6, %v883_v14  ;;  %v724_v42 = vmax.f32 %v721_v19, 0.0  ;;  %v6184_v50 = vpop.f32.mrf.mxu0  ;;  %v733_v24 = vmax.f32 %v730_v16, 0.0  ;;  %v895_v20 = vadd.f32 %v883_v14, %v6102_v2 }
 0x1e4   : > { %v720_v34 = vadd.f32 %v5832_v6, %v717_v1  ;;  %v729_v57 = vadd.f32 %v717_v1, %v6102_v2  ;;  %v6217_v61 = vmax.f32 %v1519_v33, %v1528_v29 }
 0x1e5   : > { %v889_v18 = vmax.f32 %v886_v37, 0.0  ;;  %727 = vst.msk [vmem:[#allocation3 + $0x40] sm:$0xff] %vm554_vm8, %v724_v42  ;;  %741 = vrot.lane.b32.xlu0 %v733_v24, %s5516_s9  ;;  %v898_v48 = vmax.f32 %v895_v20, 0.0 }
 0x1e6   : > { %v723_v59 = vmax.f32 %v720_v34, 0.0  ;;  %v732_v5 = vmax.f32 %v729_v57, 0.0 }
 0x1e7   : > { %892 = vst.msk [vmem:[#allocation3 + $0x60] sm:$0xff] %vm554_vm8, %v889_v18  ;;  %v6191_v41 = vpop.f32.mrf.mxu2 }
 0x1e8   : > { %726 = vst.msk [vmem:[#allocation3 + $0x38] sm:$0xff] %vm554_vm8, %v723_v59  ;;  %739 = vrot.lane.b32.xlu2 %v732_v5, %s5516_s9  ;;  %v6195_v7 = vpop.f32.mrf.mxu3 }
 0x1ea   : > { %v6197_v9 = vpop.f32.mrf.mxu1 }
 0x1eb   : > { %v6200_v15 = vpop.f32.mrf.mxu0 }
 0x1ef   : > { %v2405_v60 = vld [vmem:[#allocation3 + $0x39] sm:$0xff]  ;;  %v2404_v21 = vld [vmem:[#allocation3 + $0x31] sm:$0xff]  ;;  %v6202_v17 = vpop.f32.mrf.mxu2 }
 0x1f0   : > { %2550 = vrot.lane.b32.xlu1 %v2405_v60, %s5517_s10  ;;  %2548 = vrot.lane.b32.xlu0 %v2404_v21, %s5517_s10  ;;  %v879_v45 = vpop.permute.xlu2 %878  ;;  %v6206_v38 = vpop.f32.mrf.mxu3 }
 0x1f1   : > { %904 = vrot.lane.b32.xlu2 %v898_v48, %s5516_s9  ;;  %v885_v8 = vmax.f32 %v6028_v3, %v879_v45  ;;  %v6245_v48 = vld [vmem:[#allocation10] ss:$0 sm:$0xff] }
 0x1f2   : > { %v6210_v30 = vpop.f32.mrf.mxu1 }
 0x1f3   : > { %v888_v32 = vadd.f32 %v5832_v6, %v885_v8  ;;  %v6213_v40 = vpop.f32.mrf.mxu0  ;;  %v897_v33 = vadd.f32 %v885_v8, %v6102_v2 }
 0x1f5   : > { %v891_v36 = vmax.f32 %v888_v32, 0.0 }
 0x1f7   : > { %894 = vst.msk [vmem:[#allocation3 + $0x70] sm:$0xff] %vm554_vm8, %v891_v36  ;;  %v6220_v22 = vpop.f32.mrf.mxu2 }
 0x1f8   : > { %1542 = vrot.lane.b32.xlu0 %v6217_v61, %s5513_s23  ;;  %v1852_v3 = vpop.f32.mrf.mxu3 }
 0x1fa   : > { %v6224_v12 = vpop.f32.mrf.mxu1 }
 0x1fb   : > { %v1984_v11 = vpop.f32.mrf.mxu0 }
 0x1fe   : > { %v1042_v51 = vpop.permute.xlu0 %1041 }
 0x1ff   : > { %v1050_v56 = vmax.f32 %v6006_v47, %v1042_v51  ;;  %v2019_v14 = vpop.f32.mrf.mxu2 }
 0x200   : > { %v6227_v19 = vpop.f32.mrf.mxu3 }
 0x201   : > { %v1053_v63 = vadd.f32 %v5832_v6, %v1050_v56  ;;  %v1062_v35 = vadd.f32 %v1050_v56, %v6102_v2 }
 0x202   : > { %v6231_v16 = vpop.f32.mrf.mxu1 }
 0x203   : > { %v1056_v58 = vmax.f32 %v1053_v63, 0.0  ;;  %v6233_v1 = vpop.f32.mrf.mxu0  ;;  %v1065_v37 = vmax.f32 %v1062_v35, 0.0  ;;  %v900_v35 = vmax.f32 %v897_v33, 0.0 }
 0x205   : > { %1059 = vst.msk [vmem:[#allocation3 + $0x90] sm:$0xff] %vm554_vm8, %v1056_v58  ;;  %1071 = vrot.lane.b32.xlu2 %v1065_v37, %s5516_s9 }
 0x206   : > { %v877_v42 = vpop.permute.xlu0 %876 }
 0x207   : > { %v884_v47 = vmax.f32 %v6026_v0, %v877_v42  ;;  %v6238_v34 = vpop.f32.mrf.mxu2 }
 0x208   : > { %v6240_v57 = vpop.f32.mrf.mxu3 }
 0x209   : > { %v887_v24 = vadd.f32 %v5832_v6, %v884_v47  ;;  %v896_v18 = vadd.f32 %v884_v47, %v6102_v2  ;;  %v1044_v59 = vpop.permute.xlu1 %1043 }
 0x20a   : > { %v1051_v5 = vmax.f32 %v6030_v27, %v1044_v59  ;;  %v1826_v20 = vpop.f32.mrf.mxu1 }
 0x20b   : > { %v890_v60 = vmax.f32 %v887_v24, 0.0  ;;  %v899_v21 = vmax.f32 %v896_v18, 0.0  ;;  %v6250_v29 = vpop.f32.mrf.mxu0 }
 0x20c   : > { %v1054_v45 = vadd.f32 %v6245_v48, %v1051_v5  ;;  %v1063_v0 = vadd.f32 %v1051_v5, %v6102_v2 }
 0x20d   : > { %893 = vst.msk [vmem:[#allocation3 + $0x68] sm:$0xff] %vm554_vm8, %v890_v60  ;;  %906 = vrot.lane.b32.xlu0 %v899_v21, %s5516_s9  ;;  %v2020_v21 = vadd.f32 %v2019_v14, %v1984_v11 }
 0x20e   : > { %v1057_v6 = vmax.f32 %v1054_v45, 0.0  ;;  %v1066_v32 = vmax.f32 %v1063_v0, 0.0 }
 0x20f   : > { %v6254_v27 = vpop.f32.mrf.mxu2 }
 0x210   : > { %1060 = vst.msk [vmem:[#allocation3 + $0x98] sm:$0xff] %vm554_vm8, %v1057_v6  ;;  %1073 = vrot.lane.b32.xlu1 %v1066_v32, %s5516_s9  ;;  %v1861_v36 = vpop.f32.mrf.mxu3  ;;  %v1853_v32 = vadd.f32 %v1852_v3, %v6210_v30 }
 0x211   : > { %v1046_v51 = vpop.permute.xlu1 %1045  ;;  %v1862_v45 = vadd.f32 %v1861_v36, %v1826_v20 }
 0x212   : > { %v1052_v56 = vmax.f32 %v6050_v10, %v1046_v51  ;;  %v1829_v63 = vpop.f32.mrf.mxu1 }
 0x213   : > { %v1993_v47 = vpop.f32.mrf.mxu0 }
 0x214   : > { %v1055_v58 = vadd.f32 %v6245_v48, %v1052_v56  ;;  %v1064_v37 = vadd.f32 %v1052_v56, %v6102_v2  ;;  %v2410_v51 = vld [vmem:[#allocation3 + $0x61] sm:$0xff]  ;;  %v2411_v20 = vld [vmem:[#allocation3 + $0x69] sm:$0xff] }
 0x215   : > { %908 = vrot.lane.b32.xlu0 %v900_v35, %s5516_s9  ;;  %v6274_v35 = vmax.f32 %v1853_v32, %v1862_v45 }
 0x216   : > { %v1058_v42 = vmax.f32 %v1055_v58, 0.0  ;;  %v1067_v8 = vmax.f32 %v1064_v37, 0.0 }
 0x217   : > { %v2416_v24 = vld [vmem:[#allocation3 + $0x91] sm:$0xff]  ;;  %v2028_v18 = vpop.f32.mrf.mxu2 }
 0x218   : > { %1061 = vst.msk [vmem:[#allocation3 + $0xa0] sm:$0xff] %vm554_vm8, %v1058_v42  ;;  %2572 = vrot.lane.b32.xlu1 %v2416_v24, %s5517_s10  ;;  %1075 = vrot.lane.b32.xlu2 %v1067_v8, %s5516_s9  ;;  %v1211_v10 = vpop.permute.xlu2 %1210  ;;  %v1864_v59 = vpop.f32.mrf.mxu3  ;;  %v2029_v5 = vadd.f32 %v2028_v18, %v1993_v47 }
 0x219   : > { %v6266_v60 = vmax.f32 %v6090_v49, %v1211_v10  ;;  %v1865_v8 = vadd.f32 %v1864_v59, %v1829_v63  ;;  %v1856_v10 = vadd.f32 %v6227_v19, %v6224_v12 }
 0x21a   : > { %v1832_v0 = vpop.f32.mrf.mxu1  ;;  %v6271_v33 = vmax.f32 %v2020_v21, %v2029_v5  ;;  %v1859_v5 = vadd.f32 %v6240_v57, %v6231_v16 }
 0x21b   : > { %v1221_v6 = vadd.f32 %v6245_v48, %v6266_v60  ;;  %v1996_v3 = vpop.f32.mrf.mxu0 }
 0x21d   : > { %v1224_v56 = vmax.f32 %v1221_v6, 0.0  ;;  %2560 = vrot.lane.b32.xlu0 %v2410_v51, %s5517_s10  ;;  %v6298_v6 = vmax.f32 %v1856_v10, %v1865_v8 }
 0x21f   : > { %1227 = vst.msk [vmem:[#allocation3 + $0xc8] sm:$0xff] %vm554_vm8, %v1224_v56  ;;  %v2031_v30 = vpop.f32.mrf.mxu2  ;;  %v2417_v14 = vld [vmem:[#allocation3 + $0x99] sm:$0xff] }
 0x220   : > { %1876 = vrot.lane.b32.xlu1 %v6274_v35, %s5513_s23  ;;  %2043 = vrot.lane.b32.xlu2 %v6271_v33, %s5513_s23  ;;  %v1867_v49 = vpop.f32.mrf.mxu3  ;;  %v2032_v51 = vadd.f32 %v2031_v30, %v1996_v3 }
 0x221   : > { %v1868_v47 = vadd.f32 %v1867_v49, %v1832_v0 }
 0x222   : > { %v6281_v11 = vpop.f32.mrf.mxu1 }
 0x223   : > { %v6300_v63 = vmax.f32 %v1859_v5, %v1868_v47  ;;  %v1999_v16 = vpop.f32.mrf.mxu0 }
 0x227   : > { %v2034_v0 = vpop.f32.mrf.mxu2 }
 0x228   : > { %v1209_v36 = vpop.permute.xlu0 %1208  ;;  %2574 = vrot.lane.b32.xlu1 %v2417_v14, %s5517_s10  ;;  %2562 = vrot.lane.b32.xlu2 %v2411_v20, %s5517_s10  ;;  %v2186_v58 = vpop.f32.mrf.mxu3  ;;  %v2035_v56 = vadd.f32 %v2034_v0, %v1999_v16  ;;  %v2026_v20 = vadd.f32 %v6254_v27, %v6250_v29 }
 0x229   : > { %v1217_v37 = vmax.f32 %v6078_v31, %v1209_v36  ;;  %v1380_v42 = vpop.permute.xlu2 %1379 }
 0x22a   : > { %v6287_v24 = vmax.f32 %v6129_v13, %v1380_v42  ;;  %v6296_v45 = vpop.f32.mrf.mxu1  ;;  %v6321_v42 = vmax.f32 %v2026_v20, %v2035_v56 }
 0x22b   : > { %v1220_v18 = vadd.f32 %v6245_v48, %v1217_v37 }
 0x22c   : > { %v1389_v21 = vadd.f32 %v6245_v48, %v6287_v24 }
 0x22d   : > { %v1223_v31 = vmax.f32 %v1220_v18, 0.0  ;;  %v1229_v18 = vadd.f32 %v1217_v37, %v6102_v2 }
 0x22e   : > { %v1392_v13 = vmax.f32 %v1389_v21, 0.0  ;;  %v1376_v59 = vpop.permute.xlu1 %1375 }
 0x22f   : > { %1226 = vst.msk [vmem:[#allocation3 + $0xc0] sm:$0xff] %vm554_vm8, %v1223_v31  ;;  %v1384_v12 = vmax.f32 %v6088_v44, %v1376_v59  ;;  %v2023_v44 = vadd.f32 %v6238_v34, %v6233_v1  ;;  %v2353_v34 = vpop.f32.mrf.mxu2  ;;  %v1232_v5 = vmax.f32 %v1229_v18, 0.0 }
 0x230   : > { %1395 = vst.msk [vmem:[#allocation3 + $0x100] sm:$0xff] %vm554_vm8, %v1392_v13  ;;  %1878 = vrot.lane.b32.xlu1 %v6298_v6, %s5513_s23  ;;  %1880 = vrot.lane.b32.xlu2 %v6300_v63, %s5513_s23  ;;  %v6309_v19 = vpop.f32.mrf.mxu3 }
 0x231   : > { %v1387_v57 = vadd.f32 %v6245_v48, %v1384_v12  ;;  %v1396_v32 = vadd.f32 %v1384_v12, %v6102_v2  ;;  %v6319_v36 = vmax.f32 %v2023_v44, %v2032_v51  ;;  %v2187_v12 = vadd.f32 %v2186_v58, %v6281_v11 }
 0x232   : > { %v6323_v8 = vpop.f32.mrf.mxu1 }
 0x233   : > { %v1390_v49 = vmax.f32 %v1387_v57, 0.0  ;;  %v1399_v14 = vmax.f32 %v1396_v32, 0.0  ;;  %v1230_v57 = vadd.f32 %v6266_v60, %v6102_v2 }
 0x235   : > { %1393 = vst.msk [vmem:[#allocation3 + $0xf0] sm:$0xff] %vm554_vm8, %v1390_v49  ;;  %1405 = vrot.lane.b32.xlu0 %v1399_v14, %s5516_s9  ;;  %v1233_v11 = vmax.f32 %v1230_v57, 0.0 }
 0x236   : > { %v1378_v30 = vpop.permute.xlu1 %1377  ;;  %v2422_v31 = vld [vmem:[#allocation3 + $0xc1] sm:$0xff] }
 0x237   : > { %v6326_v3 = vmax.f32 %v6105_v54, %v1378_v30  ;;  %v573_v47 = vpop.permute.xlu2 %572  ;;  %v2318_v54 = vpop.f32.mrf.mxu0 }
 0x238   : > { %2045 = vrot.lane.b32.xlu1 %v6319_v36, %s5513_s23  ;;  %2047 = vrot.lane.b32.xlu2 %v6321_v42, %s5513_s23  ;;  %v6332_v1 = vpop.f32.mrf.mxu3  ;;  %580 = vst.msk [vmem:[#allocation3 + $0x20] sm:$0xff] %vm554_vm8, %v573_v47  ;;  %v6347_v51 = vpop.f32.mrf.mxu2 }
 0x239   : > { %v1388_v29 = vadd.f32 %v6245_v48, %v6326_v3  ;;  %v575_v27 = vpop.permute.xlu0 %574 }
 0x23a   : > { %581 = vst.msk [vmem:[#allocation3 + $0x28] sm:$0xff] %vm554_vm8, %v575_v27  ;;  %v2160_v59 = vpop.f32.mrf.mxu1 }
 0x23b   : > { %v1391_v10 = vmax.f32 %v1388_v29, 0.0 }
 0x23d   : > { %1394 = vst.msk [vmem:[#allocation3 + $0xf8] sm:$0xff] %vm554_vm8, %v1391_v10 }
 0x23e   : > { %v1213_v21 = vpop.permute.xlu1 %1212 }
 0x23f   : > { %v1219_v13 = vmax.f32 %v6127_v4, %v1213_v21  ;;  %v6352_v49 = vpop.f32.mrf.mxu0 }
 0x240   : > { %1238 = vrot.lane.b32.xlu2 %v1232_v5, %s5516_s9  ;;  %2584 = vrot.lane.b32.xlu1 %v2422_v31, %s5517_s10  ;;  %v2195_v0 = vpop.f32.mrf.mxu3  ;;  %v6361_v44 = vpop.f32.mrf.mxu2 }
 0x241   : > { %v2196_v37 = vadd.f32 %v2195_v0, %v2160_v59  ;;  %v1222_v16 = vadd.f32 %v6245_v48, %v1219_v13  ;;  %v1231_v60 = vadd.f32 %v1219_v13, %v6102_v2  ;;  %v2354_v13 = vadd.f32 %v2353_v34, %v2318_v54  ;;  %v2402_v0 = vld [vmem:[#allocation3 + $0x21] sm:$0xff]  ;;  %v2403_v34 = vld [vmem:[#allocation3 + $0x29] sm:$0xff] }
 0x242   : > { %v740_v32 = vpop.permute.xlu2 %739 }
 0x243   : > { %v6349_v56 = vmax.f32 %v2187_v12, %v2196_v37  ;;  %v1225_v4 = vmax.f32 %v1222_v16, 0.0  ;;  %747 = vst.msk [vmem:[#allocation3 + $0x50] sm:$0xff] %vm554_vm8, %v740_v32  ;;  %v1234_v20 = vmax.f32 %v1231_v60, 0.0 }
 0x245   : > { %1228 = vst.msk [vmem:[#allocation3 + $0xd0] sm:$0xff] %vm554_vm8, %v1225_v4  ;;  %2210 = vrot.lane.b32.xlu0 %v6349_v56, %s5513_s23 }
 0x246   : > { %v571_v58 = vpop.permute.xlu1 %570 }
 0x247   : > { %579 = vst.msk [vmem:[#allocation3 + $0x18] sm:$0xff] %vm554_vm8, %v571_v58  ;;  %v6363_v47 = vpop.f32.mrf.mxu0 }
 0x248   : > { %1240 = vrot.lane.b32.xlu2 %v1233_v11, %s5516_s9  ;;  %v2362_v18 = vpop.f32.mrf.mxu2 }
 0x24b   : > { %v905_v14 = vpop.permute.xlu2 %904 }
 0x24c   : > { %913 = vst.msk [vmem:[#allocation3 + $0x78] sm:$0xff] %vm554_vm8, %v905_v14  ;;  %v2423_v54 = vld [vmem:[#allocation3 + $0xc9] sm:$0xff]  ;;  %v2198_v14 = vpop.f32.mrf.mxu3 }
 0x24e   : > { %v738_v30 = vpop.permute.xlu1 %737  ;;  %v2400_v10 = vld [vmem:[#allocation3 + $0x11] sm:$0xff] }
 0x24f   : > { %746 = vst.msk [vmem:[#allocation3 + $0x48] sm:$0xff] %vm554_vm8, %v738_v30  ;;  %v2327_v21 = vpop.f32.mrf.mxu0  ;;  %v2401_v30 = vld [vmem:[#allocation3 + $0x19] sm:$0xff] }
 0x250   : > { %1242 = vrot.lane.b32.xlu2 %v1234_v20, %s5516_s9  ;;  %v2363_v31 = vadd.f32 %v2362_v18, %v2327_v21  ;;  %v2365_v21 = vpop.f32.mrf.mxu2 }
 0x252   : > { %v6371_v59 = vmax.f32 %v2354_v13, %v2363_v31 }
 0x256   : > { %v2406_v29 = vld [vmem:[#allocation3 + $0x41] sm:$0xff]  ;;  %v2407_v27 = vld [vmem:[#allocation3 + $0x49] sm:$0xff] }
 0x257   : > { %2552 = vrot.lane.b32.xlu1 %v2406_v29, %s5517_s10  ;;  %2554 = vrot.lane.b32.xlu0 %v2407_v27, %s5517_s10  ;;  %v742_v5 = vpop.permute.xlu0 %741  ;;  %v2163_v29 = vpop.f32.mrf.mxu1 }
 0x258   : > { %2540 = vrot.lane.b32.xlu2 %v2400_v10, %s5517_s10  ;;  %748 = vst.msk [vmem:[#allocation3 + $0x58] sm:$0xff] %vm554_vm8, %v742_v5  ;;  %v2199_v27 = vadd.f32 %v2198_v14, %v2163_v29  ;;  %v2330_v31 = vpop.f32.mrf.mxu0 }
 0x259   : > { %v2366_v13 = vadd.f32 %v2365_v21, %v2330_v31 }
 0x25f   : > { %2544 = vrot.lane.b32.xlu0 %v2402_v0, %s5517_s10  ;;  %v1072_v12 = vpop.permute.xlu2 %1071  ;;  %v2408_v37 = vld [vmem:[#allocation3 + $0x51] sm:$0xff]  ;;  %v2409_v60 = vld [vmem:[#allocation3 + $0x59] sm:$0xff] }
 0x260   : > { %2377 = vrot.lane.b32.xlu2 %v6371_v59, %s5513_s23  ;;  %1080 = vst.msk [vmem:[#allocation3 + $0xa8] sm:$0xff] %vm554_vm8, %v1072_v12  ;;  %2556 = vrot.lane.b32.xlu1 %v2408_v37, %s5517_s10  ;;  %v2357_v37 = vadd.f32 %v6347_v51, %v6352_v49  ;;  %v2193_v51 = vadd.f32 %v6332_v1, %v6323_v8 }
 0x262   : > { %v2551_v16 = vpop.permute.xlu1 %2550  ;;  %v2549_v57 = vpop.permute.xlu0 %2548 }
 0x263   : > { %2751 = vst.msk [vmem:[#allocation3 + $0x38] sm:$0xff] %vm2743_vm9, %v2551_v16 }
 0x264   : > { %2750 = vst.msk [vmem:[#allocation3 + $0x30] sm:$0xff] %vm2743_vm9, %v2549_v57 }
 0x267   : > { %2546 = vrot.lane.b32.xlu0 %v2403_v34, %s5517_s10  ;;  %v2418_v32 = vld [vmem:[#allocation3 + $0xa1] sm:$0xff] }
 0x268   : > { %2586 = vrot.lane.b32.xlu2 %v2423_v54, %s5517_s10  ;;  %2576 = vrot.lane.b32.xlu1 %v2418_v32, %s5517_s10  ;;  %v2166_v54 = vpop.f32.mrf.mxu1 }
 0x26a   : > { %v1543_v4 = vpop.permute.xlu0 %1542 }
 0x26b   : > { %v6384_v11 = vmax.f32 %v6217_v61, %v1543_v4  ;;  %v2190_v61 = vadd.f32 %v6309_v19, %v6296_v45  ;;  %v2819_v5 = vld [vmem:[#allocation3 + $0x32] sm:$0xff]  ;;  %v6403_v45 = vmax.f32 %v2357_v37, %v2366_v13  ;;  %v2201_v19 = vpop.f32.mrf.mxu3 }
 0x26c   : > { %v2202_v32 = vadd.f32 %v2201_v19, %v2166_v54 }
 0x26d   : > { %v1554_v58 = vadd.f32 %v6245_v48, %v6384_v11  ;;  %v6394_v10 = vmax.f32 %v2190_v61, %v2199_v27  ;;  %v2412_v61 = vld [vmem:[#allocation3 + $0x71] sm:$0xff] }
 0x26e   : > { %v6413_v49 = vmax.f32 %v2193_v51, %v2202_v32 }
 0x26f   : > { %v1557_v20 = vmax.f32 %v1554_v58, 0.0  ;;  %2558 = vrot.lane.b32.xlu0 %v2409_v60, %s5517_s10 }
 0x270   : > { %2542 = vrot.lane.b32.xlu2 %v2401_v30, %s5517_s10 }
 0x271   : > { %1560 = vst.msk [vmem:[#allocation3 + $0x120] sm:$0xff] %vm554_vm8, %v1557_v20 }
 0x272   : > { %v1076_v18 = vpop.permute.xlu2 %1075 }
 0x273   : > { %1082 = vst.msk [vmem:[#allocation3 + $0xb8] sm:$0xff] %vm554_vm8, %v1076_v18 }
 0x277   : > { %2963 = vrot.lane.b32.xlu0 %v2819_v5, %s5516_s9 }
 0x278   : > { %2212 = vrot.lane.b32.xlu2 %v6394_v10, %s5513_s23 }
 0x27a   : > { %v2044_v0 = vpop.permute.xlu2 %2043  ;;  %v2421_v32 = vld [vmem:[#allocation3 + $0xb9] sm:$0xff] }
 0x27b   : > { %v2052_v12 = vmax.f32 %v6271_v33, %v2044_v0 }
 0x27d   : > { %v2055_v16 = vadd.f32 %v6245_v48, %v2052_v12  ;;  %v2064_v14 = vadd.f32 %v2052_v12, %v6102_v2 }
 0x27f   : > { %v2058_v57 = vmax.f32 %v2055_v16, 0.0  ;;  %v907_v34 = vpop.permute.xlu0 %906  ;;  %v2067_v27 = vmax.f32 %v2064_v14, 0.0 }
 0x280   : > { %2379 = vrot.lane.b32.xlu2 %v6403_v45, %s5513_s23  ;;  %914 = vst.msk [vmem:[#allocation3 + $0x80] sm:$0xff] %vm554_vm8, %v907_v34 }
 0x281   : > { %2061 = vst.msk [vmem:[#allocation3 + $0x1b0] sm:$0xff] %vm554_vm8, %v2058_v57 }
 0x282   : > { %v1074_v33 = vpop.permute.xlu1 %1073  ;;  %v2563_v4 = vpop.permute.xlu2 %2562 }
 0x283   : > { %1081 = vst.msk [vmem:[#allocation3 + $0xb0] sm:$0xff] %vm554_vm8, %v1074_v33 }
 0x284   : > { %2757 = vst.msk [vmem:[#allocation3 + $0x68] sm:$0xff] %vm2743_vm9, %v2563_v4 }
 0x287   : > { %v909_v58 = vpop.permute.xlu0 %908  ;;  %v2413_v60 = vld [vmem:[#allocation3 + $0x79] sm:$0xff] }
 0x288   : > { %2214 = vrot.lane.b32.xlu2 %v6413_v49, %s5513_s23  ;;  %915 = vst.msk [vmem:[#allocation3 + $0x88] sm:$0xff] %vm554_vm8, %v909_v58  ;;  %2566 = vrot.lane.b32.xlu0 %v2413_v60, %s5517_s10 }
 0x28a   : > { %v2573_v20 = vpop.permute.xlu1 %2572  ;;  %v1881_v30 = vpop.permute.xlu2 %1880  ;;  %v2419_v29 = vld [vmem:[#allocation3 + $0xa9] sm:$0xff] }
 0x28b   : > { %v1887_v8 = vmax.f32 %v6300_v63, %v1881_v30  ;;  %2578 = vrot.lane.b32.xlu1 %v2419_v29, %s5517_s10 }
 0x28d   : > { %v1890_v1 = vadd.f32 %v6245_v48, %v1887_v8 }
 0x28f   : > { %v1893_v18 = vmax.f32 %v1890_v1, 0.0  ;;  %v2561_v5 = vpop.permute.xlu0 %2560  ;;  %v2415_v21 = vld [vmem:[#allocation3 + $0x89] sm:$0xff]  ;;  %v2414_v31 = vld [vmem:[#allocation3 + $0x81] sm:$0xff] }
 0x290   : > { %2564 = vrot.lane.b32.xlu2 %v2412_v61, %s5517_s10  ;;  %2756 = vst.msk [vmem:[#allocation3 + $0x60] sm:$0xff] %vm2743_vm9, %v2561_v5  ;;  %2073 = vrot.lane.b32.xlu0 %v2067_v27, %s5516_s9 }
 0x291   : > { %1896 = vst.msk [vmem:[#allocation3 + $0x190] sm:$0xff] %vm554_vm8, %v1893_v18 }
 0x292   : > { %v1877_v13 = vpop.permute.xlu1 %1876  ;;  %v2048_v63 = vpop.permute.xlu2 %2047  ;;  %2762 = vst.msk [vmem:[#allocation3 + $0x90] sm:$0xff] %vm2743_vm9, %v2573_v20 }
 0x293   : > { %v1885_v0 = vmax.f32 %v6274_v35, %v1877_v13  ;;  %v2054_v12 = vmax.f32 %v6321_v42, %v2048_v63  ;;  %2568 = vrot.lane.b32.xlu1 %v2414_v31, %s5517_s10  ;;  %v2420_v42 = vld [vmem:[#allocation3 + $0xb1] sm:$0xff] }
 0x295   : > { %v1888_v37 = vadd.f32 %v6245_v48, %v1885_v0  ;;  %v2057_v16 = vadd.f32 %v6245_v48, %v2054_v12  ;;  %v1897_v33 = vadd.f32 %v1885_v0, %v6102_v2 }
 0x297   : > { %v1891_v19 = vmax.f32 %v1888_v37, 0.0  ;;  %v2060_v57 = vmax.f32 %v2057_v16, 0.0  ;;  %v2825_v34 = vld [vmem:[#allocation3 + $0x62] sm:$0xff]  ;;  %v1900_v30 = vmax.f32 %v1897_v33, 0.0 }
 0x298   : > { %2570 = vrot.lane.b32.xlu2 %v2415_v21, %s5517_s10  ;;  %2975 = vrot.lane.b32.xlu0 %v2825_v34, %s5516_s9  ;;  %v6461_v16 = vld [vmem:[#allocation3 + $0x9] sm:$0xff] }
 0x299   : > { %1894 = vst.msk [vmem:[#allocation3 + $0x180] sm:$0xff] %vm554_vm8, %v1891_v19 }
 0x29a   : > { %2063 = vst.msk [vmem:[#allocation3 + $0x1c0] sm:$0xff] %vm554_vm8, %v2060_v57  ;;  %v2575_v35 = vpop.permute.xlu1 %2574  ;;  %v1239_v54 = vpop.permute.xlu2 %1238 }
 0x29b   : > { %2763 = vst.msk [vmem:[#allocation3 + $0x98] sm:$0xff] %vm2743_vm9, %v2575_v35  ;;  %2580 = vrot.lane.b32.xlu1 %v2420_v42, %s5517_s10 }
 0x29c   : > { %1247 = vst.msk [vmem:[#allocation3 + $0xd8] sm:$0xff] %vm554_vm8, %v1239_v54 }
 0x2a0   : > { %2582 = vrot.lane.b32.xlu2 %v2421_v32, %s5517_s10 }
 0x2a2   : > { %v1879_v4 = vpop.permute.xlu1 %1878  ;;  %v1241_v51 = vpop.permute.xlu2 %1240  ;;  %v2831_v58 = vld [vmem:[#allocation3 + $0x92] sm:$0xff] }
 0x2a3   : > { %v1886_v60 = vmax.f32 %v6298_v6, %v1879_v4  ;;  %1248 = vst.msk [vmem:[#allocation3 + $0xe0] sm:$0xff] %vm554_vm8, %v1241_v51  ;;  %2987 = vrot.lane.b32.xlu1 %v2831_v58, %s5516_s9  ;;  %v1899_v6 = vadd.f32 %v1887_v8, %v6102_v2  ;;  %v2424_v57 = vld [vmem:[#allocation3 + $0xd1] sm:$0xff] }
 0x2a5   : > { %v1889_v14 = vadd.f32 %v6245_v48, %v1886_v60  ;;  %v1898_v20 = vadd.f32 %v1886_v60, %v6102_v2  ;;  %v1902_v13 = vmax.f32 %v1899_v6, 0.0 }
 0x2a7   : > { %v1892_v29 = vmax.f32 %v1889_v14, 0.0  ;;  %v1406_v1 = vpop.permute.xlu0 %1405  ;;  %v1901_v27 = vmax.f32 %v1898_v20, 0.0  ;;  %v5120_v14 = vld [vmem:[%s7622_s3 + $0x110] sm:$0xff] }
 0x2a8   : > { %1906 = vrot.lane.b32.xlu2 %v1900_v30, %s5516_s9  ;;  %1414 = vst.msk [vmem:[#allocation3 + $0x108] sm:$0xff] %vm554_vm8, %v1406_v1  ;;  %v5118_v30 = vld [vmem:[%s7622_s3 + $0x100] sm:$0xff] }
 0x2a9   : > { %1895 = vst.msk [vmem:[#allocation3 + $0x188] sm:$0xff] %vm554_vm8, %v1892_v29  ;;  %v5117_v29 = vld [vmem:[%s7622_s3 + $0xf8] sm:$0xff] }
 0x2aa   : > { %v2046_v18 = vpop.permute.xlu1 %2045  ;;  %v1243_v61 = vpop.permute.xlu2 %1242 }
 0x2ab   : > { %v2053_v5 = vmax.f32 %v6319_v36, %v2046_v18  ;;  %1249 = vst.msk [vmem:[#allocation3 + $0xe8] sm:$0xff] %vm554_vm8, %v1243_v61  ;;  %1908 = vrot.lane.b32.xlu1 %v1901_v27, %s5516_s9  ;;  %v2066_v36 = vadd.f32 %v2054_v12, %v6102_v2  ;;  %v5116_v27 = vld [vmem:[%s7622_s3 + $0xf0] sm:$0xff]  ;;  %v5115_v61 = vld [vmem:[%s7622_s3 + $0xe8] sm:$0xff] }
 0x2ad   : > { %v2056_v21 = vadd.f32 %v6245_v48, %v2053_v5  ;;  %v2065_v31 = vadd.f32 %v2053_v5, %v6102_v2  ;;  %v2069_v34 = vmax.f32 %v2066_v36, 0.0 }
 0x2af   : > { %v2059_v63 = vmax.f32 %v2056_v21, 0.0  ;;  %v2068_v0 = vmax.f32 %v2065_v31, 0.0  ;;  %v5114_v21 = vld [vmem:[%s7622_s3 + $0xe0] sm:$0xff]  ;;  %v5113_v31 = vld [vmem:[%s7622_s3 + $0xd8] sm:$0xff] }
 0x2b0   : > { %1910 = vrot.lane.b32.xlu2 %v1902_v13, %s5516_s9  ;;  %v5112_v13 = vld [vmem:[%s7622_s3 + $0xd0] sm:$0xff] }
 0x2b1   : > { %2062 = vst.msk [vmem:[#allocation3 + $0x1b8] sm:$0xff] %vm554_vm8, %v2059_v63  ;;  %2075 = vrot.lane.b32.xlu0 %v2068_v0, %s5516_s9 }
 0x2b2   : > { %v2585_v8 = vpop.permute.xlu1 %2584  ;;  %v2541_v37 = vpop.permute.xlu2 %2540 }
 0x2b3   : > { %2768 = vst.msk [vmem:[#allocation3 + $0xc0] sm:$0xff] %vm2743_vm9, %v2585_v8  ;;  %v5111_v8 = vld [vmem:[%s7622_s3 + $0xc8] sm:$0xff] }
 0x2b4   : > { %2746 = vst.msk [vmem:[#allocation3 + $0x10] sm:$0xff] %vm2743_vm9, %v2541_v37 }
 0x2b7   : > { %v2211_v19 = vpop.permute.xlu0 %2210 }
 0x2b8   : > { %v2219_v35 = vmax.f32 %v6349_v56, %v2211_v19  ;;  %2588 = vrot.lane.b32.xlu2 %v2424_v57, %s5517_s10  ;;  %v5121_v56 = vld [vmem:[%s7622_s3 + $0x118] sm:$0xff]  ;;  %v5110_v57 = vld [vmem:[%s7622_s3 + $0xc0] sm:$0xff] }
 0x2b9   : > { %2077 = vrot.lane.b32.xlu0 %v2069_v34, %s5516_s9  ;;  %4198 = vmatpush.msra.mxu0 %v5121_v56  ;;  %v2452_v60 = vld [vmem:[#allocation3 + $0x1b1] sm:$0xff]  ;;  %v2453_v1 = vld [vmem:[#allocation3 + $0x1b9] sm:$0xff] }
 0x2ba   : > { %v2222_v54 = vadd.f32 %v6245_v48, %v2219_v35  ;;  %v2231_v42 = vadd.f32 %v2219_v35, %v6102_v2  ;;  %v2378_v12 = vpop.permute.xlu2 %2377 }
 0x2bb   : > { %v2386_v32 = vmax.f32 %v6371_v59, %v2378_v12  ;;  %4199 = vmatpush.msra.mxu0 %v5120_v14  ;;  %v5119_v59 = vld [vmem:[%s7622_s3 + $0x108] sm:$0xff] }
 0x2bc   : > { %v2225_v33 = vmax.f32 %v2222_v54, 0.0  ;;  %v2234_v4 = vmax.f32 %v2231_v42, 0.0 }
 0x2bd   : > { %v2389_v51 = vadd.f32 %v6245_v48, %v2386_v32  ;;  %4200 = vmatpush.msra.mxu0 %v5119_v59 }
 0x2be   : > { %2228 = vst.msk [vmem:[#allocation3 + $0x1e0] sm:$0xff] %vm554_vm8, %v2225_v33  ;;  %2240 = vrot.lane.b32.xlu1 %v2234_v4, %s5516_s9 }
 0x2bf   : > { %v2392_v58 = vmax.f32 %v2389_v51, 0.0  ;;  %4201 = vmatpush.msra.mxu0 %v5118_v30 }
 0x2c1   : > { %2395 = vst.msk [vmem:[#allocation3 + $0x210] sm:$0xff] %vm554_vm8, %v2392_v58  ;;  %2644 = vrot.lane.b32.xlu0 %v2452_v60, %s5517_s10  ;;  %4202 = vmatpush.msra.mxu0 %v5117_v29 }
 0x2c2   : > { %v2587_v20 = vpop.permute.xlu2 %2586 }
 0x2c3   : > { %2769 = vst.msk [vmem:[#allocation3 + $0xc8] sm:$0xff] %vm2743_vm9, %v2587_v20  ;;  %4203 = vmatpush.msra.mxu0 %v5116_v27 }
 0x2c5   : > { %4204 = vmatpush.msra.mxu0 %v5115_v61 }
 0x2c7   : > { %4205 = vmatpush.msra.mxu0 %v5114_v21 }
 0x2c9   : > { %2646 = vrot.lane.b32.xlu0 %v2453_v1, %s5517_s10  ;;  %v2553_v6 = vpop.permute.xlu1 %2552  ;;  %v2555_v18 = vpop.permute.xlu0 %2554  ;;  %4206 = vmatpush.msra.mxu0 %v5113_v31 }
 0x2ca   : > { %v2543_v5 = vpop.permute.xlu2 %2542  ;;  %2752 = vst.msk [vmem:[#allocation3 + $0x40] sm:$0xff] %vm2743_vm9, %v2553_v6 }
 0x2cb   : > { %2747 = vst.msk [vmem:[#allocation3 + $0x18] sm:$0xff] %vm2743_vm9, %v2543_v5  ;;  %4207 = vmatpush.msra.mxu0 %v5112_v13 }
 0x2cc   : > { %2753 = vst.msk [vmem:[#allocation3 + $0x48] sm:$0xff] %vm2743_vm9, %v2555_v18 }
 0x2cd   : > { %4208 = vmatpush.msra.mxu0 %v5111_v8 }
 0x2cf   : > { %4209 = vmatpush.msra.mxu0 %v5110_v57 }
 0x2d1   : > { %v2545_v63 = vpop.permute.xlu0 %2544  ;;  %v2820_v0 = vld [vmem:[#allocation3 + $0x3a] sm:$0xff] }
 0x2d2   : > { %v2213_v37 = vpop.permute.xlu2 %2212  ;;  %2748 = vst.msk [vmem:[#allocation3 + $0x20] sm:$0xff] %vm2743_vm9, %v2545_v63  ;;  %2965 = vrot.lane.b32.xlu2 %v2820_v0, %s5516_s9  ;;  %v2557_v19 = vpop.permute.xlu1 %2556 }
 0x2d3   : > { %v2220_v36 = vmax.f32 %v6394_v10, %v2213_v37  ;;  %2754 = vst.msk [vmem:[#allocation3 + $0x50] sm:$0xff] %vm2743_vm9, %v2557_v19  ;;  %v2821_v12 = vld [vmem:[#allocation3 + $0x42] sm:$0xff] }
 0x2d5   : > { %v2223_v34 = vadd.f32 %v6245_v48, %v2220_v36  ;;  %v2232_v35 = vadd.f32 %v2220_v36, %v6102_v2 }
 0x2d7   : > { %v2226_v54 = vmax.f32 %v2223_v34, 0.0  ;;  %v2235_v42 = vmax.f32 %v2232_v35, 0.0 }
 0x2d9   : > { %2229 = vst.msk [vmem:[#allocation3 + $0x1e8] sm:$0xff] %vm554_vm8, %v2226_v54  ;;  %2242 = vrot.lane.b32.xlu1 %v2235_v42, %s5516_s9  ;;  %v2547_v10 = vpop.permute.xlu0 %2546 }
 0x2da   : > { %v2380_v32 = vpop.permute.xlu2 %2379  ;;  %2749 = vst.msk [vmem:[#allocation3 + $0x28] sm:$0xff] %vm2743_vm9, %v2547_v10  ;;  %2967 = vrot.lane.b32.xlu2 %v2821_v12, %s5516_s9  ;;  %v2577_v4 = vpop.permute.xlu1 %2576  ;;  %v2822_v51 = vld [vmem:[#allocation3 + $0x4a] sm:$0xff] }
 0x2db   : > { %v2387_v33 = vmax.f32 %v6403_v45, %v2380_v32  ;;  %2764 = vst.msk [vmem:[#allocation3 + $0xa0] sm:$0xff] %vm2743_vm9, %v2577_v4  ;;  %2969 = vrot.lane.b32.xlu0 %v2822_v51, %s5516_s9  ;;  %v1397_v51 = vadd.f32 %v6326_v3, %v6102_v2 }
 0x2dd   : > { %v2390_v56 = vadd.f32 %v6245_v48, %v2387_v33 }
 0x2df   : > { %v2393_v58 = vmax.f32 %v2390_v56, 0.0 }
 0x2e0   : > { %v2458_v14 = vld [vmem:[#allocation3 + $0x1e1] sm:$0xff] }
 0x2e1   : > { %2396 = vst.msk [vmem:[#allocation3 + $0x218] sm:$0xff] %vm554_vm8, %v2393_v58  ;;  %v2559_v60 = vpop.permute.xlu0 %2558  ;;  %v2818_v27 = vld [vmem:[#allocation3 + $0x2a] sm:$0xff]  ;;  %v2817_v31 = vld [vmem:[#allocation3 + $0x22] sm:$0xff] }
 0x2e2   : > { %v2215_v59 = vpop.permute.xlu2 %2214  ;;  %2755 = vst.msk [vmem:[#allocation3 + $0x58] sm:$0xff] %vm2743_vm9, %v2559_v60  ;;  %2656 = vrot.lane.b32.xlu2 %v2458_v14, %s5517_s10  ;;  %v2832_v10 = vld [vmem:[#allocation3 + $0x9a] sm:$0xff]  ;;  %v1400_v60 = vmax.f32 %v1397_v51, 0.0  ;;  %v1531_v14 = vadd.f32 %v6195_v7, %v6181_v46 }
 0x2e3   : > { %v2221_v45 = vmax.f32 %v6413_v49, %v2215_v59  ;;  %v4972_v51 = vld [vmem:[%s7622_s3 + $0x60] sm:$0xff] }
 0x2e5   : > { %v2224_v20 = vadd.f32 %v6245_v48, %v2221_v45  ;;  %v2233_v30 = vadd.f32 %v2221_v45, %v6102_v2  ;;  %v2816_v48 = vld [vmem:[#allocation3 + $0x1a] sm:$0xff]  ;;  %v1522_v45 = vadd.f32 %v6149_v25, %v6131_v39 }
 0x2e7   : > { %v2227_v29 = vmax.f32 %v2224_v20, 0.0  ;;  %v2236_v1 = vmax.f32 %v2233_v30, 0.0  ;;  %v6578_v3 = vmax.f32 %v1522_v45, %v1531_v14  ;;  %v1398_v30 = vadd.f32 %v6287_v24, %v6102_v2  ;;  %v3300_v14 = vld [vmem:[%s7622_s3 + $0x48] sm:$0xff] }
 0x2e8   : > { %v1534_v24 = vadd.f32 %v6206_v38, %v6197_v9  ;;  %v4982_v9 = vld [vmem:[%s7622_s3 + $0xb0] sm:$0xff]  ;;  %v4981_v38 = vld [vmem:[%s7622_s3 + $0xa8] sm:$0xff] }
 0x2e9   : > { %2230 = vst.msk [vmem:[#allocation3 + $0x1f0] sm:$0xff] %vm554_vm8, %v2227_v29  ;;  %2244 = vrot.lane.b32.xlu1 %v2236_v1, %s5516_s9  ;;  %v2964_v6 = vpop.permute.xlu0 %2963  ;;  %v2824_v18 = vld [vmem:[#allocation3 + $0x5a] sm:$0xff]  ;;  %v2823_v61 = vld [vmem:[#allocation3 + $0x52] sm:$0xff]  ;;  %v1401_v39 = vmax.f32 %v1398_v30, 0.0 }
 0x2ea   : > { %v2565_v5 = vpop.permute.xlu2 %2564  ;;  %3165 = vst.msk [vmem:[#allocation3 + $0x30] sm:$0xff] %vm3158_vm10, %v2964_v6  ;;  %2973 = vrot.lane.b32.xlu0 %v2824_v18, %s5516_s9  ;;  %2971 = vrot.lane.b32.xlu2 %v2823_v61, %s5516_s9  ;;  %v2425_v6 = vld [vmem:[#allocation3 + $0xd9] sm:$0xff] }
 0x2eb   : > { %2758 = vst.msk [vmem:[#allocation3 + $0x70] sm:$0xff] %vm2743_vm9, %v2565_v5  ;;  %v3298_v30 = vld [vmem:[%s7622_s3 + $0x38] sm:$0xff] }
 0x2f1   : > { %2957 = vrot.lane.b32.xlu1 %v2816_v48, %s5516_s9  ;;  %v6543_v49 = vld [vmem:[#allocation3 + $0x30] sm:$0xff]  ;;  %v4983_v48 = vld [vmem:[%s7622_s3 + $0xb8] sm:$0xff] }
 0x2f2   : > { %v2571_v21 = vpop.permute.xlu2 %2570  ;;  %5122 = vmatmul.msk.f32.vlgmr.msra.gmra.mxu0 %vm299_vm2, %v6543_v49  ;;  %v2826_v57 = vld [vmem:[#allocation3 + $0x6a] sm:$0xff]  ;;  %3512 = vmatpush.msra.mxu1 %v4983_v48 }
 0x2f3   : > { %2761 = vst.msk [vmem:[#allocation3 + $0x88] sm:$0xff] %vm2743_vm9, %v2571_v21  ;;  %v1525_v21 = vadd.f32 %v6165_v55, %v6154_v28  ;;  %5188 = vmatpush.msra.mxu2 %v4983_v48  ;;  %v4980_v28 = vld [vmem:[%s7622_s3 + $0xa0] sm:$0xff]  ;;  %v3292_v48 = vld [vmem:[%s7622_s3 + $0x8] sm:$0xff] }
 0x2f4   : > { %3513 = vmatpush.msra.mxu1 %v4982_v9 }
 0x2f5   : > { %5189 = vmatpush.msra.mxu2 %v4982_v9  ;;  %v6708_v9 = vld [vmem:[#allocation3 + $0x12] sm:$0xff] }
 0x2f6   : > { %3514 = vmatpush.msra.mxu1 %v4981_v38 }
 0x2f7   : > { %5190 = vmatpush.msra.mxu2 %v4981_v38 }
 0x2f8   : > { %3515 = vmatpush.msra.mxu1 %v4980_v28 }
 0x2f9   : > { %2959 = vrot.lane.b32.xlu1 %v2817_v31, %s5516_s9  ;;  %5191 = vmatpush.msra.mxu2 %v4980_v28 }
 0x2fa   : > { %v2583_v13 = vpop.permute.xlu2 %2582  ;;  %v2567_v63 = vpop.permute.xlu0 %2566  ;;  %v2830_v33 = vld [vmem:[#allocation3 + $0x8a] sm:$0xff] }
 0x2fb   : > { %2767 = vst.msk [vmem:[#allocation3 + $0xb8] sm:$0xff] %vm2743_vm9, %v2583_v13  ;;  %v6611_v13 = vmax.f32 %v1525_v21, %v1534_v24  ;;  %v3294_v24 = vld [vmem:[%s7622_s3 + $0x18] sm:$0xff] }
 0x2fc   : > { %2759 = vst.msk [vmem:[#allocation3 + $0x78] sm:$0xff] %vm2743_vm9, %v2567_v63  ;;  %v2459_v63 = vld [vmem:[#allocation3 + $0x1e9] sm:$0xff] }
 0x2fd   : > { %v2579_v0 = vpop.permute.xlu1 %2578 }
 0x2fe   : > { %2765 = vst.msk [vmem:[#allocation3 + $0xa8] sm:$0xff] %vm2743_vm9, %v2579_v0 }
 0x301   : > { %2961 = vrot.lane.b32.xlu1 %v2818_v27, %s5516_s9 }
 0x302   : > { %v1907_v8 = vpop.permute.xlu2 %1906  ;;  %v2074_v37 = vpop.permute.xlu0 %2073 }
 0x303   : > { %1915 = vst.msk [vmem:[#allocation3 + $0x198] sm:$0xff] %vm554_vm8, %v1907_v8  ;;  %v2827_v36 = vld [vmem:[#allocation3 + $0x72] sm:$0xff] }
 0x304   : > { %2082 = vst.msk [vmem:[#allocation3 + $0x1c8] sm:$0xff] %vm554_vm8, %v2074_v37  ;;  %2979 = vrot.lane.b32.xlu0 %v2827_v36, %s5516_s9  ;;  %v4979_v36 = vld [vmem:[%s7622_s3 + $0x98] sm:$0xff] }
 0x305   : > { %v2569_v19 = vpop.permute.xlu1 %2568  ;;  %v2833_v31 = vld [vmem:[#allocation3 + $0xa2] sm:$0xff]  ;;  %3516 = vmatpush.msra.mxu1 %v4979_v36  ;;  %5192 = vmatpush.msra.mxu2 %v4979_v36 }
 0x306   : > { %2760 = vst.msk [vmem:[#allocation3 + $0x80] sm:$0xff] %vm2743_vm9, %v2569_v19  ;;  %v4978_v19 = vld [vmem:[%s7622_s3 + $0x90] sm:$0xff] }
 0x307   : > { %3517 = vmatpush.msra.mxu1 %v4978_v19  ;;  %5193 = vmatpush.msra.mxu2 %v4978_v19 }
 0x309   : > { %2977 = vrot.lane.b32.xlu1 %v2826_v57, %s5516_s9 }
 0x30a   : > { %v1911_v34 = vpop.permute.xlu2 %1910  ;;  %v2976_v35 = vpop.permute.xlu0 %2975 }
 0x30b   : > { %1917 = vst.msk [vmem:[#allocation3 + $0x1a8] sm:$0xff] %vm554_vm8, %v1911_v34  ;;  %v2454_v58 = vld [vmem:[#allocation3 + $0x1c1] sm:$0xff] }
 0x30c   : > { %3171 = vst.msk [vmem:[#allocation3 + $0x60] sm:$0xff] %vm3158_vm10, %v2976_v35  ;;  %v4977_v34 = vld [vmem:[%s7622_s3 + $0x88] sm:$0xff]  ;;  %v2428_v35 = vld [vmem:[#allocation3 + $0xf1] sm:$0xff] }
 0x30d   : > { %v2581_v54 = vpop.permute.xlu1 %2580  ;;  %v2828_v42 = vld [vmem:[#allocation3 + $0x7a] sm:$0xff]  ;;  %v2829_v4 = vld [vmem:[#allocation3 + $0x82] sm:$0xff]  ;;  %3518 = vmatpush.msra.mxu1 %v4977_v34  ;;  %5194 = vmatpush.msra.mxu2 %v4977_v34 }
 0x30e   : > { %2766 = vst.msk [vmem:[#allocation3 + $0xb0] sm:$0xff] %vm2743_vm9, %v2581_v54  ;;  %2981 = vrot.lane.b32.xlu0 %v2828_v42, %s5516_s9  ;;  %v4976_v54 = vld [vmem:[%s7622_s3 + $0x80] sm:$0xff] }
 0x30f   : > { %3519 = vmatpush.msra.mxu1 %v4976_v54  ;;  %5195 = vmatpush.msra.mxu2 %v4976_v54 }
 0x311   : > { %2989 = vrot.lane.b32.xlu1 %v2832_v10, %s5516_s9  ;;  %v4975_v10 = vld [vmem:[%s7622_s3 + $0x78] sm:$0xff] }
 0x312   : > { %v2589_v12 = vpop.permute.xlu2 %2588  ;;  %v2451_v18 = vld [vmem:[#allocation3 + $0x1a9] sm:$0xff]  ;;  %3520 = vmatpush.msra.mxu1 %v4975_v10  ;;  %5196 = vmatpush.msra.mxu2 %v4975_v10 }
 0x313   : > { %2770 = vst.msk [vmem:[#allocation3 + $0xd0] sm:$0xff] %vm2743_vm9, %v2589_v12  ;;  %v4974_v12 = vld [vmem:[%s7622_s3 + $0x70] sm:$0xff]  ;;  %v6719_v36 = vld [vmem:[#allocation3 + $0x60] sm:$0xff] }
 0x314   : > { %3521 = vmatpush.msra.mxu1 %v4974_v12  ;;  %5197 = vmatpush.msra.mxu2 %v4974_v12 }
 0x315   : > { %v2988_v32 = vpop.permute.xlu1 %2987  ;;  %v2834_v57 = vld [vmem:[#allocation3 + $0xaa] sm:$0xff] }
 0x316   : > { %2985 = vrot.lane.b32.xlu0 %v2830_v33, %s5516_s9  ;;  %3177 = vst.msk [vmem:[#allocation3 + $0x90] sm:$0xff] %vm3158_vm10, %v2988_v32  ;;  %v2835_v32 = vld [vmem:[#allocation3 + $0xb2] sm:$0xff]  ;;  %v4973_v33 = vld [vmem:[%s7622_s3 + $0x68] sm:$0xff] }
 0x317   : > { %3522 = vmatpush.msra.mxu1 %v4973_v33  ;;  %5198 = vmatpush.msra.mxu2 %v4973_v33 }
 0x319   : > { %2983 = vrot.lane.b32.xlu1 %v2829_v4, %s5516_s9  ;;  %v3302_v4 = vld [vmem:[%s7622_s3 + $0x58] sm:$0xff]  ;;  %3523 = vmatpush.msra.mxu1 %v4972_v51 }
 0x31a   : > { %5200 = vmatpush.msra.mxu3 %v3302_v4  ;;  %5199 = vmatpush.msra.mxu2 %v4972_v51 }
 0x31c   : > { %3727 = vmatpush.msrb.mxu2 %v3302_v4 }
 0x31d   : > { %v1909_v56 = vpop.permute.xlu1 %1908 }
 0x31e   : > { %1916 = vst.msk [vmem:[#allocation3 + $0x1a0] sm:$0xff] %vm554_vm8, %v1909_v56  ;;  %2648 = vrot.lane.b32.xlu0 %v2454_v58, %s5517_s10  ;;  %v2426_v58 = vld [vmem:[#allocation3 + $0xe1] sm:$0xff] }
 0x321   : > { %1407 = vrot.lane.b32.xlu1 %v1400_v60, %s5516_s9  ;;  %v3301_v60 = vld [vmem:[%s7622_s3 + $0x50] sm:$0xff] }
 0x322   : > { %5201 = vmatpush.msra.mxu3 %v3301_v60  ;;  %3728 = vmatpush.msrb.mxu2 %v3301_v60 }
 0x323   : > { %v2076_v59 = vpop.permute.xlu0 %2075 }
 0x324   : > { %2083 = vst.msk [vmem:[#allocation3 + $0x1d0] sm:$0xff] %vm554_vm8, %v2076_v59  ;;  %5202 = vmatpush.msra.mxu3 %v3300_v14  ;;  %3729 = vmatpush.msrb.mxu2 %v3300_v14 }
 0x325   : > { %v2449_v20 = vld [vmem:[#allocation3 + $0x199] sm:$0xff]  ;;  %v2450_v7 = vld [vmem:[#allocation3 + $0x1a1] sm:$0xff] }
 0x326   : > { %2638 = vrot.lane.b32.xlu2 %v2449_v20, %s5517_s10  ;;  %v3299_v20 = vld [vmem:[%s7622_s3 + $0x40] sm:$0xff] }
 0x327   : > { %5203 = vmatpush.msra.mxu3 %v3299_v20  ;;  %3730 = vmatpush.msrb.mxu2 %v3299_v20 }
 0x329   : > { %1544 = vrot.lane.b32.xlu1 %v6578_v3, %s5513_s23  ;;  %5204 = vmatpush.msra.mxu3 %v3298_v30 }
 0x32a   : > { %3731 = vmatpush.msrb.mxu2 %v3298_v30 }
 0x32b   : > { %v2078_v29 = vpop.permute.xlu0 %2077  ;;  %v2455_v1 = vld [vmem:[#allocation3 + $0x1c9] sm:$0xff] }
 0x32c   : > { %2084 = vst.msk [vmem:[#allocation3 + $0x1d8] sm:$0xff] %vm554_vm8, %v2078_v29  ;;  %2650 = vrot.lane.b32.xlu0 %v2455_v1, %s5517_s10  ;;  %v2966_v46 = vpop.permute.xlu2 %2965  ;;  %v2427_v29 = vld [vmem:[#allocation3 + $0xe9] sm:$0xff] }
 0x32d   : > { %3166 = vst.msk [vmem:[#allocation3 + $0x38] sm:$0xff] %vm3158_vm10, %v2966_v46  ;;  %v3297_v1 = vld [vmem:[%s7622_s3 + $0x30] sm:$0xff]  ;;  %v3296_v46 = vld [vmem:[%s7622_s3 + $0x28] sm:$0xff] }
 0x32e   : > { %2640 = vrot.lane.b32.xlu2 %v2450_v7, %s5517_s10  ;;  %5205 = vmatpush.msra.mxu3 %v3297_v1 }
 0x32f   : > { %3732 = vmatpush.msrb.mxu2 %v3297_v1 }
 0x330   : > { %v2241_v25 = vpop.permute.xlu1 %2240  ;;  %5206 = vmatpush.msra.mxu3 %v3296_v46 }
 0x331   : > { %2249 = vst.msk [vmem:[#allocation3 + $0x1f8] sm:$0xff] %vm554_vm8, %v2241_v25  ;;  %1409 = vrot.lane.b32.xlu1 %v1401_v39, %s5516_s9  ;;  %v3295_v25 = vld [vmem:[%s7622_s3 + $0x20] sm:$0xff]  ;;  %3733 = vmatpush.msrb.mxu2 %v3296_v46 }
 0x332   : > { %5207 = vmatpush.msra.mxu3 %v3295_v25 }
 0x333   : > { %v2645_v27 = vpop.permute.xlu0 %2644  ;;  %v2457_v0 = vld [vmem:[#allocation3 + $0x1d9] sm:$0xff]  ;;  %3734 = vmatpush.msrb.mxu2 %v3295_v25  ;;  %v2456_v28 = vld [vmem:[#allocation3 + $0x1d1] sm:$0xff] }
 0x334   : > { %2590 = vrot.lane.b32.xlu0 %v2425_v6, %s5517_s10  ;;  %v2968_v61 = vpop.permute.xlu2 %2967  ;;  %v6593_v5 = vld [vmem:[#allocation3 + $0x38] sm:$0xff]  ;;  %2798 = vst.msk [vmem:[#allocation3 + $0x1b0] sm:$0xff] %vm2743_vm9, %v2645_v27  ;;  %5208 = vmatpush.msra.mxu3 %v3294_v24 }
 0x335   : > { %3167 = vst.msk [vmem:[#allocation3 + $0x40] sm:$0xff] %vm3158_vm10, %v2968_v61  ;;  %5123 = vmatmul.msk.f32.gmra.mxu0 %vm299_vm2, %v6593_v5  ;;  %v2836_v6 = vld [vmem:[#allocation3 + $0xba] sm:$0xff]  ;;  %v3293_v61 = vld [vmem:[%s7622_s3 + $0x10] sm:$0xff]  ;;  %3735 = vmatpush.msrb.mxu2 %v3294_v24 }
 0x336   : > { %2991 = vrot.lane.b32.xlu2 %v2833_v31, %s5516_s9  ;;  %5209 = vmatpush.msra.mxu3 %v3293_v61  ;;  %v3291_v31 = vld [vmem:[%s7622_s3] sm:$0xff] }
 0x337   : > { %3736 = vmatpush.msrb.mxu2 %v3293_v61  ;;  %v2429_v24 = vld [vmem:[#allocation3 + $0xf9] sm:$0xff] }
 0x338   : > { %5210 = vmatpush.msra.mxu3 %v3292_v48 }
 0x339   : > { %1546 = vrot.lane.b32.xlu1 %v6611_v13, %s5513_s23  ;;  %3737 = vmatpush.msrb.mxu2 %v3292_v48  ;;  %v2838_v48 = vld [vmem:[#allocation3 + $0xca] sm:$0xff] }
 0x33a   : > { %5211 = vmatpush.msra.mxu3 %v3291_v31 }
 0x33b   : > { %v2647_v55 = vpop.permute.xlu0 %2646  ;;  %3738 = vmatpush.msrb.mxu2 %v3291_v31 }
 0x33c   : > { %2799 = vst.msk [vmem:[#allocation3 + $0x1b8] sm:$0xff] %vm2743_vm9, %v2647_v55  ;;  %2658 = vrot.lane.b32.xlu0 %v2459_v63, %s5517_s10  ;;  %v2657_v8 = vpop.permute.xlu2 %2656  ;;  %v6620_v37 = vld [vmem:[#allocation3 + $0x40] sm:$0xff] }
 0x33d   : > { %5124 = vmatmul.msk.f32.gmra.mxu0 %vm299_vm2, %v6620_v37  ;;  %2804 = vst.msk [vmem:[#allocation3 + $0x1e0] sm:$0xff] %vm2743_vm9, %v2657_v8  ;;  %v2460_v8 = vld [vmem:[#allocation3 + $0x1f1] sm:$0xff] }
 0x33e   : > { %2993 = vrot.lane.b32.xlu2 %v2834_v57, %s5516_s9 }
 0x341   : > { %2596 = vrot.lane.b32.xlu1 %v2428_v35, %s5517_s10 }
 0x343   : > { %v2867_v59 = vld [vmem:[#allocation3 + $0x1b2] sm:$0xff] }
 0x344   : > { %2642 = vrot.lane.b32.xlu0 %v2451_v18, %s5517_s10  ;;  %v2972_v42 = vpop.permute.xlu2 %2971 }
 0x345   : > { %3169 = vst.msk [vmem:[#allocation3 + $0x50] sm:$0xff] %vm3158_vm10, %v2972_v42 }
 0x346   : > { %2995 = vrot.lane.b32.xlu2 %v2835_v32, %s5516_s9  ;;  %v6733_v32 = vld [vmem:[#allocation3 + $0x191] sm:$0xff] }
 0x349   : > { %2654 = vrot.lane.b32.xlu1 %v2457_v0, %s5517_s10 }
 0x34b   : > { %v2243_v56 = vpop.permute.xlu1 %2242 }
 0x34c   : > { %2250 = vst.msk [vmem:[#allocation3 + $0x200] sm:$0xff] %vm554_vm8, %v2243_v56  ;;  %2592 = vrot.lane.b32.xlu0 %v2426_v58, %s5517_s10  ;;  %v6701_v21 = vld [vmem:[#allocation3 + $0x50] sm:$0xff] }
 0x34d   : > { %v2970_v45 = vpop.permute.xlu0 %2969 }
 0x34e   : > { %3059 = vrot.lane.b32.xlu2 %v2867_v59, %s5516_s9  ;;  %3168 = vst.msk [vmem:[#allocation3 + $0x48] sm:$0xff] %vm3158_vm10, %v2970_v45 }
 0x353   : > { %v2461_v7 = vld [vmem:[#allocation3 + $0x1f9] sm:$0xff] }
 0x354   : > { %2594 = vrot.lane.b32.xlu0 %v2427_v29, %s5517_s10 }
 0x355   : > { %v6682_v39 = vld [vmem:[#allocation3 + $0x48] sm:$0xff] }
 0x356   : > { %2662 = vrot.lane.b32.xlu2 %v2461_v7, %s5517_s10  ;;  %5125 = vmatmul.msk.f32.gmra.mxu0 %vm299_vm2, %v6682_v39 }
 0x35b   : > { %v2245_v27 = vpop.permute.xlu1 %2244 }
 0x35c   : > { %2251 = vst.msk [vmem:[#allocation3 + $0x208] sm:$0xff] %vm554_vm8, %v2245_v27  ;;  %2997 = vrot.lane.b32.xlu0 %v2836_v6, %s5516_s9  ;;  %v2974_v18 = vpop.permute.xlu0 %2973  ;;  %v6786_v27 = vld [vmem:[#allocation3 + $0x90] sm:$0xff] }
 0x35d   : > { %3170 = vst.msk [vmem:[#allocation3 + $0x58] sm:$0xff] %vm3158_vm10, %v2974_v18 }
 0x35e   : > { %5126 = vmatmul.msk.f32.gmra.mxu0 %vm299_vm2, %v6701_v21 }
 0x363   : > { %v2958_v38 = vpop.permute.xlu1 %2957 }
 0x364   : > { %3162 = vst.msk [vmem:[#allocation3 + $0x18] sm:$0xff] %vm3158_vm10, %v2958_v38  ;;  %2652 = vrot.lane.b32.xlu0 %v2456_v28, %s5517_s10  ;;  %v6712_v55 = vld [vmem:[#allocation3 + $0x58] sm:$0xff] }
 0x366   : > { %5127 = vmatmul.msk.f32.gmra.mxu0 %vm299_vm2, %v6712_v55 }
 0x36b   : > { %v2960_v63 = vpop.permute.xlu1 %2959  ;;  %v3231_v0 = vld [vmem:[#allocation3 + $0x18] sm:$0xff] }
 0x36c   : > { %3163 = vst.msk [vmem:[#allocation3 + $0x20] sm:$0xff] %vm3158_vm10, %v2960_v63  ;;  %4984 = vmatmul.msk.f32.vlgmr.msra.gmra.mxu1 %vm299_vm2, %v3231_v0  ;;  %2660 = vrot.lane.b32.xlu0 %v2460_v8, %s5517_s10  ;;  %v2837_v0 = vld [vmem:[#allocation3 + $0xc2] sm:$0xff] }
 0x36e   : > { %5128 = vmatmul.msk.f32.gmra.mxu0 %vm299_vm2, %v6719_v36 }
 0x373   : > { %v2962_v19 = vpop.permute.xlu1 %2961  ;;  %v3232_v57 = vld [vmem:[#allocation3 + $0x20] sm:$0xff] }
 0x374   : > { %3164 = vst.msk [vmem:[#allocation3 + $0x28] sm:$0xff] %vm3158_vm10, %v2962_v19  ;;  %4985 = vmatmul.msk.f32.gmra.mxu1 %vm299_vm2, %v3232_v57 }
 0x376   : > { %v2980_v34 = vpop.permute.xlu0 %2979 }
 0x377   : > { %3173 = vst.msk [vmem:[#allocation3 + $0x70] sm:$0xff] %vm3158_vm10, %v2980_v34 }
 0x37b   : > { %v2978_v35 = vpop.permute.xlu1 %2977  ;;  %v3233_v54 = vld [vmem:[#allocation3 + $0x28] sm:$0xff] }
 0x37c   : > { %3172 = vst.msk [vmem:[#allocation3 + $0x68] sm:$0xff] %vm3158_vm10, %v2978_v35  ;;  %4986 = vmatmul.msk.f32.gmra.mxu1 %vm299_vm2, %v3233_v54 }
 0x37e   : > { %v6728_v42 = vld [vmem:[#allocation3 + $0x70] sm:$0xff] }
 0x37f   : > { %5061 = vmatmul.msk.f32.vlgmr.msra.gmra.mxu3 %vm299_vm2, %v6728_v42 }
 0x380   : > { %v2982_v10 = vpop.permute.xlu0 %2981  ;;  %v2639_v12 = vpop.permute.xlu2 %2638 }
 0x381   : > { %3174 = vst.msk [vmem:[#allocation3 + $0x78] sm:$0xff] %vm3158_vm10, %v2982_v10 }
 0x382   : > { %2795 = vst.msk [vmem:[#allocation3 + $0x198] sm:$0xff] %vm2743_vm9, %v2639_v12 }
 0x383   : > { %v2990_v33 = vpop.permute.xlu1 %2989  ;;  %v6736_v4 = vld [vmem:[#allocation3 + $0x68] sm:$0xff] }
 0x384   : > { %3178 = vst.msk [vmem:[#allocation3 + $0x98] sm:$0xff] %vm3158_vm10, %v2990_v33  ;;  %4987 = vmatmul.msk.f32.gmra.mxu1 %vm299_vm2, %v6543_v49  ;;  %5129 = vmatmul.msk.f32.gmra.mxu0 %vm299_vm2, %v6736_v4 }
 0x388   : > { %v2986_v51 = vpop.permute.xlu0 %2985  ;;  %v2641_v56 = vpop.permute.xlu2 %2640  ;;  %v6743_v58 = vld [vmem:[#allocation3 + $0x78] sm:$0xff] }
 0x389   : > { %3176 = vst.msk [vmem:[#allocation3 + $0x88] sm:$0xff] %vm3158_vm10, %v2986_v51  ;;  %5062 = vmatmul.msk.f32.gmra.mxu3 %vm299_vm2, %v6743_v58 }
 0x38a   : > { %2796 = vst.msk [vmem:[#allocation3 + $0x1a0] sm:$0xff] %vm2743_vm9, %v2641_v56  ;;  %v2463_v56 = vld [vmem:[#allocation3 + $0x209] sm:$0xff] }
 0x38b   : > { %v2984_v60 = vpop.permute.xlu1 %2983  ;;  %v6798_v38 = vld [vmem:[#allocation3 + $0x98] sm:$0xff] }
 0x38c   : > { %3175 = vst.msk [vmem:[#allocation3 + $0x80] sm:$0xff] %vm3158_vm10, %v2984_v60  ;;  %4988 = vmatmul.msk.f32.gmra.mxu1 %vm299_vm2, %v6593_v5  ;;  %5130 = vmatmul.msk.f32.gmra.mxu0 %vm299_vm2, %v6728_v42  ;;  %v2462_v60 = vld [vmem:[#allocation3 + $0x201] sm:$0xff] }
 0x390   : > { %v2649_v49 = vpop.permute.xlu0 %2648  ;;  %v2992_v14 = vpop.permute.xlu2 %2991  ;;  %v6767_v29 = vld [vmem:[#allocation3 + $0x88] sm:$0xff] }
 0x391   : > { %2800 = vst.msk [vmem:[#allocation3 + $0x1c0] sm:$0xff] %vm2743_vm9, %v2649_v49  ;;  %v6851_v49 = vpop.f32.mrf.mxu0 }
 0x392   : > { %3179 = vst.msk [vmem:[#allocation3 + $0xa0] sm:$0xff] %vm3158_vm10, %v2992_v14 }
 0x393   : > { %v1408_v59 = vpop.permute.xlu1 %1407  ;;  %v6756_v45 = vld [vmem:[#allocation3 + $0x80] sm:$0xff] }
 0x394   : > { %1415 = vst.msk [vmem:[#allocation3 + $0x110] sm:$0xff] %vm554_vm8, %v1408_v59  ;;  %4989 = vmatmul.msk.f32.gmra.mxu1 %vm299_vm2, %v6620_v37  ;;  %5063 = vmatmul.msk.f32.gmra.mxu3 %vm299_vm2, %v6756_v45  ;;  %v6778_v37 = vld [vmem:[#allocation10] ss:$0 sm:$0xff] }
 0x395   : > { %5131 = vmatmul.msk.f32.gmra.mxu0 %vm299_vm2, %v6743_v58 }
 0x398   : > { %v2994_v5 = vpop.permute.xlu2 %2993  ;;  %v2868_v20 = vld [vmem:[#allocation3 + $0x1ba] sm:$0xff] }
 0x399   : > { %3180 = vst.msk [vmem:[#allocation3 + $0xa8] sm:$0xff] %vm3158_vm10, %v2994_v5  ;;  %3061 = vrot.lane.b32.xlu2 %v2868_v20, %s5516_s9  ;;  %v6816_v57 = vld [vmem:[#allocation3 + $0xa0] sm:$0xff]  ;;  %v6862_v20 = vpop.f32.mrf.mxu0 }
 0x39a   : > { %v2430_v5 = vld [vmem:[#allocation3 + $0x101] sm:$0xff] }
 0x39b   : > { %v1545_v30 = vpop.permute.xlu1 %1544 }
 0x39c   : > { %v6770_v1 = vmax.f32 %v6578_v3, %v1545_v30  ;;  %4990 = vmatmul.msk.f32.gmra.mxu1 %vm299_vm2, %v6682_v39  ;;  %5064 = vmatmul.msk.f32.gmra.mxu3 %vm299_vm2, %v6767_v29 }
 0x39d   : > { %5132 = vmatmul.msk.f32.gmra.mxu0 %vm299_vm2, %v6756_v45 }
 0x39e   : > { %v1555_v46 = vadd.f32 %v6778_v37, %v6770_v1  ;;  %v2651_v7 = vpop.permute.xlu0 %2650 }
 0x39f   : > { %2801 = vst.msk [vmem:[#allocation3 + $0x1c8] sm:$0xff] %vm2743_vm9, %v2651_v7  ;;  %v2464_v7 = vld [vmem:[#allocation3 + $0x211] sm:$0xff] }
 0x3a0   : > { %v1558_v25 = vmax.f32 %v1555_v46, 0.0  ;;  %v2996_v3 = vpop.permute.xlu2 %2995  ;;  %v6827_v10 = vld [vmem:[#allocation3 + $0xa8] sm:$0xff] }
 0x3a1   : > { %3181 = vst.msk [vmem:[#allocation3 + $0xb0] sm:$0xff] %vm3158_vm10, %v2996_v3  ;;  %2598 = vrot.lane.b32.xlu2 %v2429_v24, %s5517_s10  ;;  %v2431_v3 = vld [vmem:[#allocation3 + $0x109] sm:$0xff]  ;;  %v1698_v24 = vadd.f32 %v6202_v17, %v6200_v15 }
 0x3a2   : > { %1561 = vst.msk [vmem:[#allocation3 + $0x128] sm:$0xff] %vm554_vm8, %v1558_v25 }
 0x3a3   : > { %v1410_v39 = vpop.permute.xlu1 %1409 }
 0x3a4   : > { %1416 = vst.msk [vmem:[#allocation3 + $0x118] sm:$0xff] %vm554_vm8, %v1410_v39  ;;  %4991 = vmatmul.msk.f32.gmra.mxu1 %vm299_vm2, %v6701_v21  ;;  %5065 = vmatmul.msk.f32.gmra.mxu3 %vm299_vm2, %v6786_v27 }
 0x3a5   : > { %5133 = vmatmul.msk.f32.gmra.mxu0 %vm299_vm2, %v6767_v29 }
 0x3a6   : > { %v2591_v6 = vpop.permute.xlu0 %2590  ;;  %v2869_v18 = vld [vmem:[#allocation3 + $0x1c2] sm:$0xff] }
 0x3a7   : > { %2771 = vst.msk [vmem:[#allocation3 + $0xd8] sm:$0xff] %vm2743_vm9, %v2591_v6  ;;  %3063 = vrot.lane.b32.xlu1 %v2869_v18, %s5516_s9  ;;  %v2398_v6 = vld [vmem:[#allocation3 + $0x1] sm:$0xff] }
 0x3a8   : > { %v3060_v61 = vpop.permute.xlu2 %3059  ;;  %v6840_v51 = vld [vmem:[#allocation3 + $0xb0] sm:$0xff] }
 0x3a9   : > { %3001 = vrot.lane.b32.xlu2 %v2838_v48, %s5516_s9  ;;  %v1692_v48 = vadd.f32 %v6175_v52, %v6169_v43 }
 0x3ab   : > { %v1547_v31 = vpop.permute.xlu1 %1546 }
 0x3ac   : > { %v6801_v21 = vmax.f32 %v6611_v13, %v1547_v31  ;;  %4992 = vmatmul.msk.f32.gmra.mxu1 %vm299_vm2, %v6712_v55  ;;  %5066 = vmatmul.msk.f32.gmra.mxu3 %vm299_vm2, %v6798_v38 }
 0x3ad   : > { %5134 = vmatmul.msk.f32.gmra.mxu0 %vm299_vm2, %v6786_v27 }
 0x3ae   : > { %v1556_v28 = vadd.f32 %v6778_v37, %v6801_v21  ;;  %v2659_v63 = vpop.permute.xlu0 %2658  ;;  %v2839_v19 = vld [vmem:[#allocation3 + $0xd2] sm:$0xff]  ;;  %v1565_v18 = vadd.f32 %v6801_v21, %v6102_v2 }
 0x3af   : > { %2805 = vst.msk [vmem:[#allocation3 + $0x1e8] sm:$0xff] %vm2743_vm9, %v2659_v63  ;;  %2999 = vrot.lane.b32.xlu1 %v2837_v0, %s5516_s9  ;;  %v2433_v0 = vld [vmem:[#allocation3 + $0x119] sm:$0xff] }
 0x3b0   : > { %v1559_v13 = vmax.f32 %v1556_v28, 0.0  ;;  %v2663_v8 = vpop.permute.xlu2 %2662  ;;  %v1568_v63 = vmax.f32 %v1565_v18, 0.0 }
 0x3b1   : > { %2807 = vst.msk [vmem:[#allocation3 + $0x1f8] sm:$0xff] %vm2743_vm9, %v2663_v8  ;;  %3003 = vrot.lane.b32.xlu2 %v2839_v19, %s5516_s9 }
 0x3b2   : > { %1562 = vst.msk [vmem:[#allocation3 + $0x130] sm:$0xff] %vm554_vm8, %v1559_v13 }
 0x3b3   : > { %v2597_v55 = vpop.permute.xlu1 %2596 }
 0x3b4   : > { %2774 = vst.msk [vmem:[#allocation3 + $0xf0] sm:$0xff] %vm2743_vm9, %v2597_v55  ;;  %4993 = vmatmul.msk.f32.gmra.mxu1 %vm299_vm2, %v6719_v36  ;;  %5067 = vmatmul.msk.f32.gmra.mxu3 %vm299_vm2, %v6816_v57 }
 0x3b5   : > { %5135 = vmatmul.msk.f32.gmra.mxu0 %vm299_vm2, %v6798_v38 }
 0x3b6   : > { %v2643_v34 = vpop.permute.xlu0 %2642  ;;  %v2873_v35 = vld [vmem:[#allocation3 + $0x1e2] sm:$0xff] }
 0x3b7   : > { %2797 = vst.msk [vmem:[#allocation3 + $0x1a8] sm:$0xff] %vm2743_vm9, %v2643_v34 }
 0x3b9   : > { %3071 = vrot.lane.b32.xlu2 %v2873_v35, %s5516_s9 }
 0x3bb   : > { %v2655_v54 = vpop.permute.xlu1 %2654 }
 0x3bc   : > { %2803 = vst.msk [vmem:[#allocation3 + $0x1d8] sm:$0xff] %vm2743_vm9, %v2655_v54  ;;  %4994 = vmatmul.msk.f32.gmra.mxu1 %vm299_vm2, %v6736_v4  ;;  %5068 = vmatmul.msk.f32.gmra.mxu3 %vm299_vm2, %v6827_v10 }
 0x3bd   : > { %5136 = vmatmul.msk.f32.gmra.mxu0 %vm299_vm2, %v6816_v57 }
 0x3be   : > { %v2593_v36 = vpop.permute.xlu0 %2592  ;;  %v2866_v12 = vld [vmem:[#allocation3 + $0x1aa] sm:$0xff]  ;;  %v2865_v33 = vld [vmem:[#allocation3 + $0x1a2] sm:$0xff] }
 0x3bf   : > { %2772 = vst.msk [vmem:[#allocation3 + $0xe0] sm:$0xff] %vm2743_vm9, %v2593_v36  ;;  %3057 = vrot.lane.b32.xlu1 %v2866_v12, %s5516_s9  ;;  %3055 = vrot.lane.b32.xlu0 %v2865_v33, %s5516_s9 }
 0x3c0   : > { %3213 = vst.msk [vmem:[#allocation3 + $0x1b0] sm:$0xff] %vm3158_vm10, %v3060_v61 }
 0x3c4   : > { %4995 = vmatmul.msk.f32.gmra.mxu1 %vm299_vm2, %v6728_v42  ;;  %5069 = vmatmul.msk.f32.gmra.mxu3 %vm299_vm2, %v6840_v51  ;;  %v1563_v42 = vadd.f32 %v6384_v11, %v6102_v2  ;;  %v1695_v11 = vadd.f32 %v6191_v41, %v6184_v50  ;;  %v6878_v50 = vpop.f32.mrf.mxu0 }
 0x3c5   : > { %5137 = vmatmul.msk.f32.gmra.mxu0 %vm299_vm2, %v6827_v10 }
 0x3c6   : > { %v2595_v4 = vpop.permute.xlu0 %2594  ;;  %v1566_v14 = vmax.f32 %v1563_v42, 0.0 }
 0x3c7   : > { %2773 = vst.msk [vmem:[#allocation3 + $0xe8] sm:$0xff] %vm2743_vm9, %v2595_v4  ;;  %2666 = vrot.lane.b32.xlu1 %v2463_v56, %s5517_s10  ;;  %2664 = vrot.lane.b32.xlu0 %v2462_v60, %s5517_s10 }
 0x3cc   : > { %4996 = vmatmul.msk.f32.gmra.mxu1 %vm299_vm2, %v6743_v58  ;;  %v1686_v58 = vadd.f32 %v6147_v23, %v6125_v62  ;;  %v1564_v62 = vadd.f32 %v6770_v1, %v6102_v2  ;;  %v6894_v39 = vpop.f32.mrf.mxu0 }
 0x3cd   : > { %5138 = vmatmul.msk.f32.gmra.mxu0 %vm299_vm2, %v6840_v51 }
 0x3ce   : > { %v2998_v59 = vpop.permute.xlu0 %2997  ;;  %v6870_v30 = vmax.f32 %v1686_v58, %v1695_v11  ;;  %v1567_v23 = vmax.f32 %v1564_v62, 0.0  ;;  %v2841_v21 = vld [vmem:[#allocation3 + $0xe2] sm:$0xff]  ;;  %v2842_v19 = vld [vmem:[#allocation3 + $0xea] sm:$0xff] }
 0x3cf   : > { %3182 = vst.msk [vmem:[#allocation3 + $0xb8] sm:$0xff] %vm3158_vm10, %v2998_v59  ;;  %1572 = vrot.lane.b32.xlu1 %v1566_v14, %s5516_s9  ;;  %2600 = vrot.lane.b32.xlu0 %v2430_v5, %s5517_s10 }
 0x3d4   : > { %4997 = vmatmul.msk.f32.gmra.mxu1 %vm299_vm2, %v6756_v45  ;;  %v6909_v17 = vpop.f32.mrf.mxu0 }
 0x3d6   : > { %v2653_v46 = vpop.permute.xlu0 %2652  ;;  %v6872_v25 = vld [vmem:[#allocation3 + $0xb8] sm:$0xff] }
 0x3d7   : > { %2802 = vst.msk [vmem:[#allocation3 + $0x1d0] sm:$0xff] %vm2743_vm9, %v2653_v46  ;;  %1709 = vrot.lane.b32.xlu1 %v6870_v30, %s5513_s23  ;;  %2668 = vrot.lane.b32.xlu0 %v2464_v7, %s5517_s10 }
 0x3d8   : > { %5070 = vmatmul.msk.f32.gmra.mxu3 %vm299_vm2, %v6872_v25  ;;  %5139 = vmatmul.msk.f32.gmra.mxu0 %vm299_vm2, %v6872_v25 }
 0x3dc   : > { %4998 = vmatmul.msk.f32.gmra.mxu1 %vm299_vm2, %v6767_v29  ;;  %v1689_v29 = vadd.f32 %v6163_v53, %v6152_v26  ;;  %v2432_v26 = vld [vmem:[#allocation3 + $0x111] sm:$0xff]  ;;  %v2872_v53 = vld [vmem:[#allocation3 + $0x1da] sm:$0xff] }
 0x3de   : > { %v2661_v41 = vpop.permute.xlu0 %2660  ;;  %v2870_v45 = vld [vmem:[#allocation3 + $0x1ca] sm:$0xff]  ;;  %v6900_v1 = vmax.f32 %v1689_v29, %v1698_v24 }
 0x3df   : > { %2806 = vst.msk [vmem:[#allocation3 + $0x1f0] sm:$0xff] %vm2743_vm9, %v2661_v41  ;;  %1574 = vrot.lane.b32.xlu1 %v1567_v23, %s5516_s9  ;;  %3065 = vrot.lane.b32.xlu2 %v2870_v45, %s5516_s9  ;;  %v6986_v23 = vld [vmem:[#allocation3 + $0x19a] sm:$0xff] }
 0x3e0   : > { %2602 = vrot.lane.b32.xlu0 %v2431_v3, %s5517_s10 }
 0x3e4   : > { %4999 = vmatmul.msk.f32.gmra.mxu1 %vm299_vm2, %v6786_v27  ;;  %v1701_v27 = vadd.f32 %v6220_v22, %v6213_v40  ;;  %v2840_v40 = vld [vmem:[#allocation3 + $0xda] sm:$0xff] }
 0x3e6   : > { %v6929_v28 = vmax.f32 %v1692_v48, %v1701_v27  ;;  %v2874_v55 = vld [vmem:[#allocation3 + $0x1ea] sm:$0xff] }
 0x3e7   : > { %2538 = vrot.lane.b32.xlu1 %v6461_v16, %s5517_s10  ;;  %1711 = vrot.lane.b32.xlu2 %v6900_v1, %s5513_s23  ;;  %v2871_v16 = vld [vmem:[#allocation3 + $0x1d2] sm:$0xff]  ;;  %v5310_v27 = vld [vmem:[%s7622_s3 + $0x108] sm:$0xff] }
 0x3e8   : > { %2536 = vrot.lane.b32.xlu0 %v2398_v6, %s5517_s10 }
 0x3e9   : > { %v6907_v15 = vpop.f32.mrf.mxu1 }
 0x3ec   : > { %5000 = vmatmul.msk.f32.gmra.mxu1 %vm299_vm2, %v6798_v38  ;;  %v6924_v38 = vpop.f32.mrf.mxu0 }
 0x3ef   : > { %2604 = vrot.lane.b32.xlu1 %v2432_v26, %s5517_s10  ;;  %3069 = vrot.lane.b32.xlu2 %v2872_v53, %s5516_s9  ;;  %v5308_v53 = vld [vmem:[%s7622_s3 + $0x118] sm:$0xff] }
 0x3f0   : > { %3067 = vrot.lane.b32.xlu0 %v2871_v16, %s5516_s9  ;;  %v5309_v16 = vld [vmem:[%s7622_s3 + $0x110] sm:$0xff] }
 0x3f1   : > { %v6920_v61 = vpop.f32.mrf.mxu1 }
 0x3f3   : > { %v3062_v31 = vpop.permute.xlu2 %3061 }
 0x3f4   : > { %3214 = vst.msk [vmem:[#allocation3 + $0x1b8] sm:$0xff] %vm3158_vm10, %v3062_v31  ;;  %5001 = vmatmul.msk.f32.gmra.mxu1 %vm299_vm2, %v6816_v57  ;;  %v6940_v22 = vpop.f32.mrf.mxu0 }
 0x3f7   : > { %1713 = vrot.lane.b32.xlu1 %v6929_v28, %s5513_s23  ;;  %1576 = vrot.lane.b32.xlu2 %v1568_v63, %s5516_s9 }
 0x3f8   : > { %3005 = vrot.lane.b32.xlu0 %v2840_v40, %s5516_s9 }
 0x3f9   : > { %v6935_v43 = vpop.f32.mrf.mxu1 }
 0x3fb   : > { %v2599_v52 = vpop.permute.xlu2 %2598 }
 0x3fc   : > { %2775 = vst.msk [vmem:[#allocation3 + $0xf8] sm:$0xff] %vm2743_vm9, %v2599_v52  ;;  %5002 = vmatmul.msk.f32.gmra.mxu1 %vm299_vm2, %v6827_v10  ;;  %v6950_v57 = vpop.f32.mrf.mxu0  ;;  %v2434_v10 = vld [vmem:[#allocation3 + $0x121] sm:$0xff] }
 0x3fd   : > { %v5311_v52 = vld [vmem:[%s7622_s3 + $0x100] sm:$0xff] }
 0x3ff   : > { %3007 = vrot.lane.b32.xlu2 %v2841_v21, %s5516_s9 }
 0x400   : > { %2606 = vrot.lane.b32.xlu0 %v2433_v0, %s5517_s10 }
 0x401   : > { %v6944_v13 = vpop.f32.mrf.mxu1 }
 0x403   : > { %v3002_v8 = vpop.permute.xlu2 %3001  ;;  %v2843_v54 = vld [vmem:[#allocation3 + $0xf2] sm:$0xff] }
 0x404   : > { %3184 = vst.msk [vmem:[#allocation3 + $0xc8] sm:$0xff] %vm3158_vm10, %v3002_v8  ;;  %5003 = vmatmul.msk.f32.gmra.mxu1 %vm299_vm2, %v6840_v51  ;;  %v6959_v36 = vpop.f32.mrf.mxu0  ;;  %v2435_v51 = vld [vmem:[#allocation3 + $0x129] sm:$0xff]  ;;  %v5312_v8 = vld [vmem:[%s7622_s3 + $0xf8] sm:$0xff] }
 0x407   : > { %3009 = vrot.lane.b32.xlu2 %v2842_v19, %s5516_s9 }
 0x408   : > { %3073 = vrot.lane.b32.xlu0 %v2874_v55, %s5516_s9  ;;  %v5313_v55 = vld [vmem:[%s7622_s3 + $0xf0] sm:$0xff] }
 0x409   : > { %v6953_v34 = vpop.f32.mrf.mxu1 }
 0x40b   : > { %v3004_v35 = vpop.permute.xlu2 %3003 }
 0x40c   : > { %3185 = vst.msk [vmem:[#allocation3 + $0xd0] sm:$0xff] %vm3158_vm10, %v3004_v35  ;;  %5004 = vmatmul.msk.f32.gmra.mxu1 %vm299_vm2, %v6872_v25  ;;  %v6968_v60 = vpop.f32.mrf.mxu0  ;;  %v3253_v25 = vld [vmem:[#allocation3 + $0xc8] sm:$0xff] }
 0x40f   : > { %3011 = vrot.lane.b32.xlu2 %v2843_v54, %s5516_s9  ;;  %v5314_v54 = vld [vmem:[%s7622_s3 + $0xe8] sm:$0xff] }
 0x410   : > { %2608 = vrot.lane.b32.xlu0 %v2434_v10, %s5517_s10 }
 0x411   : > { %v6962_v12 = vpop.f32.mrf.mxu1 }
 0x413   : > { %v3072_v33 = vpop.permute.xlu2 %3071  ;;  %v3254_v24 = vld [vmem:[#allocation3 + $0xd0] sm:$0xff] }
 0x414   : > { %3219 = vst.msk [vmem:[#allocation3 + $0x1e0] sm:$0xff] %vm3158_vm10, %v3072_v33  ;;  %v6974_v59 = vpop.f32.mrf.mxu0 }
 0x418   : > { %2610 = vrot.lane.b32.xlu0 %v2435_v51, %s5517_s10 }
 0x419   : > { %v3064_v4 = vpop.permute.xlu1 %3063  ;;  %v6966_v56 = vpop.f32.mrf.mxu1 }
 0x41a   : > { %3215 = vst.msk [vmem:[#allocation3 + $0x1c0] sm:$0xff] %vm3158_vm10, %v3064_v4 }
 0x41c   : > { %v6981_v58 = vpop.f32.mrf.mxu0 }
 0x421   : > { %v3000_v42 = vpop.permute.xlu1 %2999  ;;  %v6971_v14 = vpop.f32.mrf.mxu1 }
 0x422   : > { %3183 = vst.msk [vmem:[#allocation3 + $0xc0] sm:$0xff] %vm3158_vm10, %v3000_v42  ;;  %v7044_v42 = vld [vmem:[#allocation3 + $0x1b0] sm:$0xff] }
 0x424   : > { %v6992_v41 = vpop.f32.mrf.mxu0 }
 0x429   : > { %v6976_v5 = vpop.f32.mrf.mxu1  ;;  %v3252_v11 = vld [vmem:[#allocation3 + $0xc0] sm:$0xff] }
 0x42a   : > { %5005 = vmatmul.msk.f32.gmra.mxu1 %vm299_vm2, %v3252_v11  ;;  %5071 = vmatmul.msk.f32.gmra.mxu3 %vm299_vm2, %v3252_v11 }
 0x42b   : > { %5140 = vmatmul.msk.f32.gmra.mxu0 %vm299_vm2, %v3252_v11 }
 0x42c   : > { %v7017_v31 = vpop.f32.mrf.mxu0 }
 0x431   : > { %v3058_v46 = vpop.permute.xlu1 %3057  ;;  %v6983_v7 = vpop.f32.mrf.mxu1 }
 0x432   : > { %3212 = vst.msk [vmem:[#allocation3 + $0x1a8] sm:$0xff] %vm3158_vm10, %v3058_v46  ;;  %v3056_v62 = vpop.permute.xlu0 %3055  ;;  %5006 = vmatmul.msk.f32.gmra.mxu1 %vm299_vm2, %v3253_v25  ;;  %5072 = vmatmul.msk.f32.gmra.mxu3 %vm299_vm2, %v3253_v25  ;;  %v5315_v46 = vld [vmem:[%s7622_s3 + $0xe0] sm:$0xff] }
 0x433   : > { %3211 = vst.msk [vmem:[#allocation3 + $0x1a0] sm:$0xff] %vm3158_vm10, %v3056_v62  ;;  %5141 = vmatmul.msk.f32.gmra.mxu0 %vm299_vm2, %v3253_v25 }
 0x439   : > { %v2667_v45 = vpop.permute.xlu1 %2666  ;;  %v6994_v3 = vpop.f32.mrf.mxu1  ;;  %v7020_v40 = vld [vmem:[#allocation3 + $0x1a8] sm:$0xff] }
 0x43a   : > { %2809 = vst.msk [vmem:[#allocation3 + $0x208] sm:$0xff] %vm2743_vm9, %v2667_v45  ;;  %v2665_v29 = vpop.permute.xlu0 %2664  ;;  %5007 = vmatmul.msk.f32.gmra.mxu1 %vm299_vm2, %v3254_v24  ;;  %v6998_v6 = vld [vmem:[#allocation3 + $0x1a0] sm:$0xff]  ;;  %5073 = vmatmul.msk.f32.gmra.mxu3 %vm299_vm2, %v3254_v24  ;;  %v3066_v26 = vpop.permute.xlu2 %3065 }
 0x43b   : > { %2808 = vst.msk [vmem:[#allocation3 + $0x200] sm:$0xff] %vm2743_vm9, %v2665_v29  ;;  %5033 = vmatmul.msk.f32.vlgmr.msra.gmra.mxu2 %vm299_vm2, %v6998_v6  ;;  %5142 = vmatmul.msk.f32.gmra.mxu0 %vm299_vm2, %v3254_v24  ;;  %v5316_v24 = vld [vmem:[%s7622_s3 + $0xd8] sm:$0xff] }
 0x43c   : > { %3216 = vst.msk [vmem:[#allocation3 + $0x1c8] sm:$0xff] %vm3158_vm10, %v3066_v26  ;;  %5212 = vmatpush.msra.mxu2 %v5308_v53  ;;  %v5317_v53 = vld [vmem:[%s7622_s3 + $0xd0] sm:$0xff] }
 0x43e   : > { %5213 = vmatpush.msra.mxu2 %v5309_v16  ;;  %v5318_v16 = vld [vmem:[%s7622_s3 + $0xc8] sm:$0xff] }
 0x440   : > { %5214 = vmatpush.msra.mxu2 %v5310_v27 }
 0x441   : > { %v1573_v18 = vpop.permute.xlu1 %1572  ;;  %v7015_v48 = vpop.f32.mrf.mxu1 }
 0x442   : > { %1581 = vst.msk [vmem:[#allocation3 + $0x138] sm:$0xff] %vm554_vm8, %v1573_v18  ;;  %v2601_v63 = vpop.permute.xlu0 %2600  ;;  %5215 = vmatpush.msra.mxu2 %v5311_v52  ;;  %v1712_v21 = vpop.permute.xlu2 %1711  ;;  %v7072_v52 = vld [vmem:[#allocation3 + $0x1b8] sm:$0xff] }
 0x443   : > { %2776 = vst.msk [vmem:[#allocation3 + $0x100] sm:$0xff] %vm2743_vm9, %v2601_v63  ;;  %5034 = vmatmul.msk.f32.gmra.mxu2 %vm299_vm2, %v7020_v40  ;;  %v1719_v0 = vmax.f32 %v6900_v1, %v1712_v21 }
 0x444   : > { %5216 = vmatpush.msra.mxu2 %v5312_v8  ;;  %v5319_v8 = vld [vmem:[%s7622_s3 + $0xc0] sm:$0xff] }
 0x445   : > { %v1722_v19 = vadd.f32 %v6778_v37, %v1719_v0 }
 0x446   : > { %5217 = vmatpush.msra.mxu2 %v5313_v55  ;;  %v3782_v55 = vpop.f32.mrf.mxu3 }
 0x447   : > { %v1725_v35 = vmax.f32 %v1722_v19, 0.0 }
 0x448   : > { %5218 = vmatpush.msra.mxu2 %v5314_v54  ;;  %v1731_v54 = vadd.f32 %v1719_v0, %v6102_v2 }
 0x449   : > { %v1710_v10 = vpop.permute.xlu1 %1709  ;;  %v7039_v1 = vpop.f32.mrf.mxu1  ;;  %v2436_v33 = vld [vmem:[#allocation3 + $0x131] sm:$0xff]  ;;  %1728 = vst.msk [vmem:[#allocation3 + $0x158] sm:$0xff] %vm554_vm8, %v1725_v35 }
 0x44a   : > { %v1718_v51 = vmax.f32 %v6870_v30, %v1710_v10  ;;  %v2669_v4 = vpop.permute.xlu0 %2668  ;;  %2612 = vrot.lane.b32.xlu0 %v2436_v33, %s5517_s10  ;;  %v2844_v11 = vld [vmem:[#allocation3 + $0xfa] sm:$0xff]  ;;  %5219 = vmatpush.msra.mxu2 %v5315_v46  ;;  %v3070_v25 = vpop.permute.xlu2 %3069  ;;  %v2875_v10 = vld [vmem:[#allocation3 + $0x1f2] sm:$0xff] }
 0x44b   : > { %2810 = vst.msk [vmem:[#allocation3 + $0x210] sm:$0xff] %vm2743_vm9, %v2669_v4  ;;  %5035 = vmatmul.msk.f32.gmra.mxu2 %vm299_vm2, %v7044_v42  ;;  %3013 = vrot.lane.b32.xlu2 %v2844_v11, %s5516_s9  ;;  %v7053_v30 = vpop.f32.mrf.mxu0  ;;  %v1734_v4 = vmax.f32 %v1731_v54, 0.0 }
 0x44c   : > { %v1721_v62 = vadd.f32 %v6778_v37, %v1718_v51  ;;  %v1730_v45 = vadd.f32 %v1718_v51, %v6102_v2  ;;  %3218 = vst.msk [vmem:[#allocation3 + $0x1d8] sm:$0xff] %vm3158_vm10, %v3070_v25  ;;  %5220 = vmatpush.msra.mxu2 %v5316_v24 }
 0x44e   : > { %v1724_v29 = vmax.f32 %v1721_v62, 0.0  ;;  %v1733_v26 = vmax.f32 %v1730_v45, 0.0  ;;  %5221 = vmatpush.msra.mxu2 %v5317_v53  ;;  %v7085_v62 = vld [vmem:[#allocation3 + $0x1c0] sm:$0xff]  ;;  %v3785_v24 = vpop.f32.mrf.mxu3 }
 0x450   : > { %1727 = vst.msk [vmem:[#allocation3 + $0x150] sm:$0xff] %vm554_vm8, %v1724_v29  ;;  %1739 = vrot.lane.b32.xlu1 %v1733_v26, %s5516_s9  ;;  %5222 = vmatpush.msra.mxu2 %v5318_v16  ;;  %v2876_v29 = vld [vmem:[#allocation3 + $0x1fa] sm:$0xff] }
 0x451   : > { %v1575_v27 = vpop.permute.xlu1 %1574  ;;  %v7069_v18 = vpop.f32.mrf.mxu1 }
 0x452   : > { %1582 = vst.msk [vmem:[#allocation3 + $0x140] sm:$0xff] %vm554_vm8, %v1575_v27  ;;  %v2603_v63 = vpop.permute.xlu0 %2602  ;;  %v2878_v21 = vld [vmem:[#allocation3 + $0x20a] sm:$0xff]  ;;  %5223 = vmatpush.msra.mxu2 %v5319_v8  ;;  %v1577_v19 = vpop.permute.xlu2 %1576 }
 0x453   : > { %2777 = vst.msk [vmem:[#allocation3 + $0x108] sm:$0xff] %vm2743_vm9, %v2603_v63  ;;  %5036 = vmatmul.msk.f32.gmra.mxu2 %vm299_vm2, %v7072_v52  ;;  %3081 = vrot.lane.b32.xlu2 %v2878_v21, %s5516_s9  ;;  %v4253_v35 = vpop.f32.mrf.mxu0  ;;  %v7096_v8 = vld [vmem:[#allocation3 + $0x1c8] sm:$0xff] }
 0x454   : > { %1583 = vst.msk [vmem:[#allocation3 + $0x148] sm:$0xff] %vm554_vm8, %v1577_v19 }
 0x456   : > { %v3788_v54 = vpop.f32.mrf.mxu3 }
 0x458   : > { %3075 = vrot.lane.b32.xlu1 %v2875_v10, %s5516_s9  ;;  %v2877_v10 = vld [vmem:[#allocation3 + $0x202] sm:$0xff] }
 0x459   : > { %v2539_v33 = vpop.permute.xlu1 %2538  ;;  %v3567_v51 = vpop.f32.mrf.mxu1 }
 0x45a   : > { %2745 = vst.msk [vmem:[#allocation3 + $0x8] sm:$0xff] %vm2743_vm9, %v2539_v33  ;;  %v3783_v11 = vadd.f32 %v3782_v55, %v3567_v51  ;;  %v2537_v46 = vpop.permute.xlu0 %2536  ;;  %v2845_v25 = vld [vmem:[#allocation3 + $0x102] sm:$0xff]  ;;  %v3008_v45 = vpop.permute.xlu2 %3007 }
 0x45b   : > { %2744 = vst.msk [vmem:[#allocation3] sm:$0xff] %vm2743_vm9, %v2537_v46  ;;  %3015 = vrot.lane.b32.xlu0 %v2845_v25, %s5516_s9  ;;  %5037 = vmatmul.msk.f32.gmra.mxu2 %vm299_vm2, %v7085_v62  ;;  %v4256_v26 = vpop.f32.mrf.mxu0  ;;  %v2438_v55 = vld [vmem:[#allocation3 + $0x141] sm:$0xff] }
 0x45c   : > { %v4414_v0 = vadd.f32 %v4253_v35, %v3783_v11  ;;  %3187 = vst.msk [vmem:[#allocation3 + $0xe0] sm:$0xff] %vm3158_vm10, %v3008_v45  ;;  %1741 = vrot.lane.b32.xlu2 %v1734_v4, %s5516_s9 }
 0x45e   : > { %4478 = vst.msk [vmem:[#allocation4 + $0x70] sm:$0xff] %vm4463_vm11, %v4414_v0 }
 0x460   : > { %3077 = vrot.lane.b32.xlu1 %v2876_v29, %s5516_s9 }
 0x461   : > { %v2605_v53 = vpop.permute.xlu1 %2604  ;;  %v3570_v16 = vpop.f32.mrf.mxu1 }
 0x462   : > { %2778 = vst.msk [vmem:[#allocation3 + $0x110] sm:$0xff] %vm2743_vm9, %v2605_v53  ;;  %v3786_v27 = vadd.f32 %v3785_v24, %v3570_v16  ;;  %v3068_v63 = vpop.permute.xlu0 %3067  ;;  %v2813_v21 = vld [vmem:[#allocation3 + $0x2] sm:$0xff]  ;;  %v3010_v19 = vpop.permute.xlu2 %3009  ;;  %v2437_v16 = vld [vmem:[#allocation3 + $0x139] sm:$0xff] }
 0x463   : > { %3217 = vst.msk [vmem:[#allocation3 + $0x1d0] sm:$0xff] %vm3158_vm10, %v3068_v63  ;;  %2951 = vrot.lane.b32.xlu0 %v2813_v21, %s5516_s9  ;;  %5038 = vmatmul.msk.f32.gmra.mxu2 %vm299_vm2, %v7096_v8  ;;  %v4259_v45 = vpop.f32.mrf.mxu0 }
 0x464   : > { %v4415_v35 = vadd.f32 %v4256_v26, %v3786_v27  ;;  %3188 = vst.msk [vmem:[#allocation3 + $0xe8] sm:$0xff] %vm3158_vm10, %v3010_v19  ;;  %2616 = vrot.lane.b32.xlu2 %v2438_v55, %s5517_s10  ;;  %v3791_v27 = vpop.f32.mrf.mxu3 }
 0x466   : > { %4479 = vst.msk [vmem:[#allocation4 + $0x78] sm:$0xff] %vm4463_vm11, %v4415_v35 }
 0x468   : > { %3079 = vrot.lane.b32.xlu1 %v2877_v10, %s5516_s9  ;;  %v2439_v10 = vld [vmem:[#allocation3 + $0x149] sm:$0xff] }
 0x469   : > { %v1714_v33 = vpop.permute.xlu1 %1713  ;;  %v3573_v51 = vpop.f32.mrf.mxu1 }
 0x46a   : > { %v1720_v4 = vmax.f32 %v6929_v28, %v1714_v33  ;;  %v3789_v11 = vadd.f32 %v3788_v54, %v3573_v51  ;;  %v3006_v46 = vpop.permute.xlu0 %3005  ;;  %v7107_v25 = vld [vmem:[#allocation3 + $0x1d0] sm:$0xff]  ;;  %v3012_v0 = vpop.permute.xlu2 %3011  ;;  %v7130_v51 = vld [vmem:[#allocation3 + $0x1e0] sm:$0xff] }
 0x46b   : > { %3186 = vst.msk [vmem:[#allocation3 + $0xd8] sm:$0xff] %vm3158_vm10, %v3006_v46  ;;  %5039 = vmatmul.msk.f32.gmra.mxu2 %vm299_vm2, %v7107_v25  ;;  %v4262_v55 = vpop.f32.mrf.mxu0  ;;  %v2846_v54 = vld [vmem:[#allocation3 + $0x10a] sm:$0xff] }
 0x46c   : > { %v1723_v24 = vadd.f32 %v6778_v37, %v1720_v4  ;;  %v1732_v29 = vadd.f32 %v1720_v4, %v6102_v2  ;;  %v4416_v26 = vadd.f32 %v4259_v45, %v3789_v11  ;;  %3189 = vst.msk [vmem:[#allocation3 + $0xf0] sm:$0xff] %vm3158_vm10, %v3012_v0  ;;  %v7119_v2 = vld [vmem:[#allocation3 + $0x1d8] sm:$0xff]  ;;  %v3256_v11 = vld [vmem:[#allocation3 + $0xe0] sm:$0xff]  ;;  %v2814_v46 = vld [vmem:[#allocation3 + $0xa] sm:$0xff] }
 0x46d   : > { %v2440_v45 = vld [vmem:[#allocation3 + $0x151] sm:$0xff] }
 0x46e   : > { %v1726_v53 = vmax.f32 %v1723_v24, 0.0  ;;  %v1735_v28 = vmax.f32 %v1732_v29, 0.0  ;;  %4480 = vst.msk [vmem:[#allocation4 + $0x80] sm:$0xff] %vm4463_vm11, %v4416_v26  ;;  %v3257_v29 = vld [vmem:[#allocation3 + $0xe8] sm:$0xff] }
 0x470   : > { %1729 = vst.msk [vmem:[#allocation3 + $0x160] sm:$0xff] %vm554_vm8, %v1726_v53  ;;  %1743 = vrot.lane.b32.xlu0 %v1735_v28, %s5516_s9  ;;  %2614 = vrot.lane.b32.xlu1 %v2437_v16, %s5517_s10 }
 0x471   : > { %v3576_v63 = vpop.f32.mrf.mxu1 }
 0x472   : > { %v2607_v21 = vpop.permute.xlu0 %2606  ;;  %v3792_v37 = vadd.f32 %v3791_v27, %v3576_v63  ;;  %v3255_v19 = vld [vmem:[#allocation3 + $0xd8] sm:$0xff]  ;;  %v3794_v63 = vpop.f32.mrf.mxu3 }
 0x473   : > { %2779 = vst.msk [vmem:[#allocation3 + $0x118] sm:$0xff] %vm2743_vm9, %v2607_v21  ;;  %5008 = vmatmul.msk.f32.gmra.mxu1 %vm299_vm2, %v3255_v19  ;;  %5040 = vmatmul.msk.f32.gmra.mxu2 %vm299_vm2, %v7119_v2  ;;  %v3258_v28 = vld [vmem:[#allocation3 + $0xf0] sm:$0xff] }
 0x474   : > { %v4417_v35 = vadd.f32 %v4262_v55, %v3792_v37  ;;  %5074 = vmatmul.msk.f32.gmra.mxu3 %vm299_vm2, %v3255_v19  ;;  %5143 = vmatmul.msk.f32.gmra.mxu0 %vm299_vm2, %v3255_v19 }
 0x476   : > { %4481 = vst.msk [vmem:[#allocation4 + $0x88] sm:$0xff] %vm4463_vm11, %v4417_v35 }
 0x477   : > { %v2441_v27 = vld [vmem:[#allocation3 + $0x159] sm:$0xff] }
 0x478   : > { %3017 = vrot.lane.b32.xlu1 %v2846_v54, %s5516_s9  ;;  %2618 = vrot.lane.b32.xlu0 %v2439_v10, %s5517_s10 }
 0x47a   : > { %v3074_v33 = vpop.permute.xlu0 %3073  ;;  %v2847_v4 = vld [vmem:[#allocation3 + $0x112] sm:$0xff]  ;;  %v3797_v54 = vpop.f32.mrf.mxu3 }
 0x47b   : > { %3220 = vst.msk [vmem:[#allocation3 + $0x1e8] sm:$0xff] %vm3158_vm10, %v3074_v33  ;;  %5041 = vmatmul.msk.f32.gmra.mxu2 %vm299_vm2, %v7130_v51  ;;  %3019 = vrot.lane.b32.xlu2 %v2847_v4, %s5516_s9 }
 0x47c   : > { %5009 = vmatmul.msk.f32.gmra.mxu1 %vm299_vm2, %v3256_v11  ;;  %5075 = vmatmul.msk.f32.gmra.mxu3 %vm299_vm2, %v3256_v11 }
 0x47d   : > { %5144 = vmatmul.msk.f32.gmra.mxu0 %vm299_vm2, %v3256_v11 }
 0x480   : > { %2953 = vrot.lane.b32.xlu1 %v2814_v46, %s5516_s9  ;;  %2620 = vrot.lane.b32.xlu0 %v2440_v45, %s5517_s10 }
 0x482   : > { %v2609_v0 = vpop.permute.xlu0 %2608  ;;  %v7141_v24 = vld [vmem:[#allocation3 + $0x1e8] sm:$0xff] }
 0x483   : > { %2780 = vst.msk [vmem:[#allocation3 + $0x120] sm:$0xff] %vm2743_vm9, %v2609_v0  ;;  %5042 = vmatmul.msk.f32.gmra.mxu2 %vm299_vm2, %v7141_v24  ;;  %v3800_v0 = vpop.f32.mrf.mxu3 }
 0x484   : > { %5010 = vmatmul.msk.f32.gmra.mxu1 %vm299_vm2, %v3257_v29  ;;  %5076 = vmatmul.msk.f32.gmra.mxu3 %vm299_vm2, %v3257_v29 }
 0x485   : > { %5145 = vmatmul.msk.f32.gmra.mxu0 %vm299_vm2, %v3257_v29 }
 0x488   : > { %2955 = vrot.lane.b32.xlu1 %v6708_v9, %s5516_s9  ;;  %v3579_v9 = vpop.f32.mrf.mxu1 }
 0x489   : > { %v3795_v37 = vadd.f32 %v3794_v63, %v3579_v9 }
 0x48a   : > { %v2611_v26 = vpop.permute.xlu0 %2610  ;;  %v2848_v53 = vld [vmem:[#allocation3 + $0x11a] sm:$0xff] }
 0x48b   : > { %2781 = vst.msk [vmem:[#allocation3 + $0x128] sm:$0xff] %vm2743_vm9, %v2611_v26  ;;  %3021 = vrot.lane.b32.xlu2 %v2848_v53, %s5516_s9 }
 0x48c   : > { %5011 = vmatmul.msk.f32.gmra.mxu1 %vm299_vm2, %v3258_v28  ;;  %5077 = vmatmul.msk.f32.gmra.mxu3 %vm299_vm2, %v3258_v28 }
 0x48d   : > { %5146 = vmatmul.msk.f32.gmra.mxu0 %vm299_vm2, %v3258_v28 }
 0x490   : > { %v3582_v35 = vpop.f32.mrf.mxu1 }
 0x491   : > { %v3798_v4 = vadd.f32 %v3797_v54, %v3582_v35 }
 0x492   : > { %v2849_v16 = vld [vmem:[#allocation3 + $0x122] sm:$0xff] }
 0x493   : > { %3023 = vrot.lane.b32.xlu1 %v2849_v16, %s5516_s9  ;;  %2622 = vrot.lane.b32.xlu2 %v2441_v27, %s5517_s10 }
 0x498   : > { %v3585_v45 = vpop.f32.mrf.mxu1 }
 0x499   : > { %v3801_v26 = vadd.f32 %v3800_v0, %v3585_v45 }
 0x4a5   : > { %v3014_v21 = vpop.permute.xlu2 %3013 }
 0x4a6   : > { %3190 = vst.msk [vmem:[#allocation3 + $0xf8] sm:$0xff] %vm3158_vm10, %v3014_v21 }
 0x4a8   : > { %v4265_v19 = vpop.f32.mrf.mxu0 }
 0x4a9   : > { %v4418_v55 = vadd.f32 %v4265_v19, %v3795_v37 }
 0x4ab   : > { %4482 = vst.msk [vmem:[#allocation4 + $0x90] sm:$0xff] %vm4463_vm11, %v4418_v55 }
 0x4ad   : > { %v3082_v10 = vpop.permute.xlu2 %3081  ;;  %v3259_v33 = vld [vmem:[#allocation3 + $0xf8] sm:$0xff] }
 0x4ae   : > { %3224 = vst.msk [vmem:[#allocation3 + $0x208] sm:$0xff] %vm3158_vm10, %v3082_v10  ;;  %5012 = vmatmul.msk.f32.gmra.mxu1 %vm299_vm2, %v3259_v33  ;;  %5078 = vmatmul.msk.f32.gmra.mxu3 %vm299_vm2, %v3259_v33 }
 0x4af   : > { %5147 = vmatmul.msk.f32.gmra.mxu0 %vm299_vm2, %v3259_v33 }
 0x4b0   : > { %v4268_v11 = vpop.f32.mrf.mxu0 }
 0x4b1   : > { %v4419_v46 = vadd.f32 %v4268_v11, %v3798_v4 }
 0x4b3   : > { %4483 = vst.msk [vmem:[#allocation4 + $0x98] sm:$0xff] %vm4463_vm11, %v4419_v46 }
 0x4b6   : > { %v1742_v29 = vpop.permute.xlu2 %1741 }
 0x4b7   : > { %1749 = vst.msk [vmem:[#allocation3 + $0x170] sm:$0xff] %vm554_vm8, %v1742_v29 }
 0x4b8   : > { %v4271_v53 = vpop.f32.mrf.mxu0 }
 0x4b9   : > { %v4420_v28 = vadd.f32 %v4271_v53, %v3801_v26  ;;  %v3588_v53 = vpop.f32.mrf.mxu1 }
 0x4bb   : > { %4484 = vst.msk [vmem:[#allocation4 + $0xa0] sm:$0xff] %vm4463_vm11, %v4420_v28 }
 0x4bc   : > { %v2613_v16 = vpop.permute.xlu0 %2612 }
 0x4bd   : > { %2782 = vst.msk [vmem:[#allocation3 + $0x130] sm:$0xff] %vm2743_vm9, %v2613_v16 }
 0x4be   : > { %v2617_v27 = vpop.permute.xlu2 %2616 }
 0x4bf   : > { %2784 = vst.msk [vmem:[#allocation3 + $0x140] sm:$0xff] %vm2743_vm9, %v2617_v27  ;;  %v7197_v27 = vld [vmem:[#allocation3 + $0x208] sm:$0xff] }
 0x4c2   : > { %v1740_v9 = vpop.permute.xlu1 %1739 }
 0x4c3   : > { %1748 = vst.msk [vmem:[#allocation3 + $0x168] sm:$0xff] %vm554_vm8, %v1740_v9 }
 0x4c4   : > { %v2850_v63 = vld [vmem:[#allocation3 + $0x12a] sm:$0xff] }
 0x4c5   : > { %3025 = vrot.lane.b32.xlu0 %v2850_v63, %s5516_s9 }
 0x4ca   : > { %v3076_v21 = vpop.permute.xlu1 %3075  ;;  %v2442_v37 = vld [vmem:[#allocation3 + $0x161] sm:$0xff]  ;;  %v2443_v19 = vld [vmem:[#allocation3 + $0x169] sm:$0xff] }
 0x4cb   : > { %3221 = vst.msk [vmem:[#allocation3 + $0x1f0] sm:$0xff] %vm3158_vm10, %v3076_v21  ;;  %2624 = vrot.lane.b32.xlu1 %v2442_v37, %s5517_s10  ;;  %v7202_v21 = vpop.f32.mrf.mxu2 }
 0x4cd   : > { %v3016_v55 = vpop.permute.xlu0 %3015  ;;  %2626 = vrot.lane.b32.xlu0 %v2443_v19, %s5517_s10  ;;  %v3803_v19 = vpop.f32.mrf.mxu3 }
 0x4ce   : > { %3191 = vst.msk [vmem:[#allocation3 + $0x100] sm:$0xff] %vm3158_vm10, %v3016_v55  ;;  %v3804_v55 = vadd.f32 %v3803_v19, %v3588_v53 }
 0x4d2   : > { %v3078_v35 = vpop.permute.xlu1 %3077  ;;  %v7175_v54 = vld [vmem:[#allocation3 + $0x1f0] sm:$0xff] }
 0x4d3   : > { %3222 = vst.msk [vmem:[#allocation3 + $0x1f8] sm:$0xff] %vm3158_vm10, %v3078_v35  ;;  %5043 = vmatmul.msk.f32.gmra.mxu2 %vm299_vm2, %v7175_v54 }
 0x4d5   : > { %v2952_v10 = vpop.permute.xlu0 %2951  ;;  %v3020_v33 = vpop.permute.xlu2 %3019  ;;  %v3260_v4 = vld [vmem:[#allocation3 + $0x100] sm:$0xff] }
 0x4d6   : > { %3159 = vst.msk [vmem:[#allocation3] sm:$0xff] %vm3158_vm10, %v2952_v10  ;;  %5013 = vmatmul.msk.f32.gmra.mxu1 %vm299_vm2, %v3260_v4  ;;  %5079 = vmatmul.msk.f32.gmra.mxu3 %vm299_vm2, %v3260_v4 }
 0x4d7   : > { %3193 = vst.msk [vmem:[#allocation3 + $0x110] sm:$0xff] %vm3158_vm10, %v3020_v33  ;;  %5148 = vmatmul.msk.f32.gmra.mxu0 %vm299_vm2, %v3260_v4 }
 0x4da   : > { %v3080_v11 = vpop.permute.xlu1 %3079  ;;  %v7185_v46 = vld [vmem:[#allocation3 + $0x1f8] sm:$0xff] }
 0x4db   : > { %3223 = vst.msk [vmem:[#allocation3 + $0x200] sm:$0xff] %vm3158_vm10, %v3080_v11  ;;  %5044 = vmatmul.msk.f32.gmra.mxu2 %vm299_vm2, %v7185_v46 }
 0x4e2   : > { %v1744_v45 = vpop.permute.xlu0 %1743  ;;  %v2615_v0 = vpop.permute.xlu1 %2614  ;;  %v7190_v29 = vld [vmem:[#allocation3 + $0x200] sm:$0xff] }
 0x4e3   : > { %1750 = vst.msk [vmem:[#allocation3 + $0x178] sm:$0xff] %vm554_vm8, %v1744_v45  ;;  %5045 = vmatmul.msk.f32.gmra.mxu2 %vm299_vm2, %v7190_v29  ;;  %v3228_v45 = vld [vmem:[#allocation3] sm:$0xff] }
 0x4e4   : > { %2783 = vst.msk [vmem:[#allocation3 + $0x138] sm:$0xff] %vm2743_vm9, %v2615_v0 }
 0x4e5   : > { %v3022_v26 = vpop.permute.xlu2 %3021 }
 0x4e6   : > { %3194 = vst.msk [vmem:[#allocation3 + $0x118] sm:$0xff] %vm3158_vm10, %v3022_v26  ;;  %v3591_v26 = vpop.f32.mrf.mxu1 }
 0x4ea   : > { %v3018_v28 = vpop.permute.xlu1 %3017  ;;  %v2619_v16 = vpop.permute.xlu0 %2618  ;;  %v2444_v53 = vld [vmem:[#allocation3 + $0x171] sm:$0xff] }
 0x4eb   : > { %3192 = vst.msk [vmem:[#allocation3 + $0x108] sm:$0xff] %vm3158_vm10, %v3018_v28  ;;  %v2851_v9 = vld [vmem:[#allocation3 + $0x132] sm:$0xff]  ;;  %5046 = vmatmul.msk.f32.gmra.mxu2 %vm299_vm2, %v7197_v27  ;;  %v2852_v63 = vld [vmem:[#allocation3 + $0x13a] sm:$0xff]  ;;  %v7211_v28 = vpop.f32.mrf.mxu2 }
 0x4ec   : > { %2785 = vst.msk [vmem:[#allocation3 + $0x148] sm:$0xff] %vm2743_vm9, %v2619_v16  ;;  %3027 = vrot.lane.b32.xlu2 %v2851_v9, %s5516_s9  ;;  %3029 = vrot.lane.b32.xlu1 %v2852_v63, %s5516_s9  ;;  %v2445_v16 = vld [vmem:[#allocation3 + $0x179] sm:$0xff]  ;;  %v3806_v9 = vpop.f32.mrf.mxu3 }
 0x4ed   : > { %v2623_v37 = vpop.permute.xlu2 %2622  ;;  %v3807_v63 = vadd.f32 %v3806_v9, %v3591_v26 }
 0x4ee   : > { %2787 = vst.msk [vmem:[#allocation3 + $0x158] sm:$0xff] %vm2743_vm9, %v2623_v37 }
 0x4f1   : > { %v4274_v35 = vpop.f32.mrf.mxu0 }
 0x4f2   : > { %v4421_v10 = vadd.f32 %v4274_v35, %v3804_v55  ;;  %v2954_v33 = vpop.permute.xlu1 %2953  ;;  %v2621_v4 = vpop.permute.xlu0 %2620  ;;  %v3261_v11 = vld [vmem:[#allocation3 + $0x108] sm:$0xff]  ;;  %v3262_v35 = vld [vmem:[#allocation3 + $0x110] sm:$0xff] }
 0x4f3   : > { %3160 = vst.msk [vmem:[#allocation3 + $0x8] sm:$0xff] %vm3158_vm10, %v2954_v33  ;;  %5014 = vmatmul.msk.f32.gmra.mxu1 %vm299_vm2, %v3261_v11  ;;  %5047 = vmatmul.msk.f32.vlgmr.msrb.gmra.mxu2 %vm299_vm2, %v3228_v45  ;;  %v2853_v0 = vld [vmem:[#allocation3 + $0x142] sm:$0xff]  ;;  %v3594_v45 = vpop.f32.mrf.mxu1 }
 0x4f4   : > { %4485 = vst.msk [vmem:[#allocation4 + $0xa8] sm:$0xff] %vm4463_vm11, %v4421_v10  ;;  %5080 = vmatmul.msk.f32.gmra.mxu3 %vm299_vm2, %v3261_v11  ;;  %5149 = vmatmul.msk.f32.gmra.mxu0 %vm299_vm2, %v3261_v11  ;;  %v3809_v26 = vpop.f32.mrf.mxu3 }
 0x4f5   : > { %2786 = vst.msk [vmem:[#allocation3 + $0x150] sm:$0xff] %vm2743_vm9, %v2621_v4  ;;  %2628 = vrot.lane.b32.xlu2 %v2444_v53, %s5517_s10  ;;  %3031 = vrot.lane.b32.xlu0 %v2853_v0, %s5516_s9  ;;  %v2446_v4 = vld [vmem:[#allocation3 + $0x181] sm:$0xff]  ;;  %v7228_v0 = vpop.f32.mrf.mxu2  ;;  %v3810_v53 = vadd.f32 %v3809_v26, %v3594_v45  ;;  %v5320_v26 = vld [vmem:[#allocation3 + $0x18] sm:$0xff] }
 0x4f6   : > { %2630 = vrot.lane.b32.xlu1 %v2445_v16, %s5517_s10 }
 0x4fa   : > { %v4277_v37 = vpop.f32.mrf.mxu0  ;;  %v2956_v19 = vpop.permute.xlu1 %2955  ;;  %v3229_v55 = vld [vmem:[#allocation3 + $0x8] sm:$0xff] }
 0x4fb   : > { %v4422_v10 = vadd.f32 %v4277_v37, %v3807_v63  ;;  %3161 = vst.msk [vmem:[#allocation3 + $0x10] sm:$0xff] %vm3158_vm10, %v2956_v19  ;;  %5048 = vmatmul.msk.f32.gmra.mxu2 %vm299_vm2, %v3229_v55  ;;  %5015 = vmatmul.msk.f32.gmra.mxu1 %vm299_vm2, %v3262_v35  ;;  %v3263_v63 = vld [vmem:[#allocation3 + $0x118] sm:$0xff]  ;;  %v2447_v19 = vld [vmem:[#allocation3 + $0x189] sm:$0xff] }
 0x4fc   : > { %v2854_v33 = vld [vmem:[#allocation3 + $0x14a] sm:$0xff]  ;;  %5081 = vmatmul.msk.f32.gmra.mxu3 %vm299_vm2, %v3262_v35  ;;  %5150 = vmatmul.msk.f32.gmra.mxu0 %vm299_vm2, %v3262_v35  ;;  %v2855_v11 = vld [vmem:[#allocation3 + $0x152] sm:$0xff]  ;;  %v3597_v35 = vpop.f32.mrf.mxu1 }
 0x4fd   : > { %4486 = vst.msk [vmem:[#allocation4 + $0xb0] sm:$0xff] %vm4463_vm11, %v4422_v10  ;;  %3033 = vrot.lane.b32.xlu2 %v2854_v33, %s5516_s9  ;;  %2632 = vrot.lane.b32.xlu0 %v2446_v4, %s5517_s10  ;;  %v3812_v10 = vpop.f32.mrf.mxu3  ;;  %v7240_v33 = vpop.f32.mrf.mxu2 }
 0x4fe   : > { %3035 = vrot.lane.b32.xlu1 %v2855_v11, %s5516_s9  ;;  %v3813_v4 = vadd.f32 %v3812_v10, %v3597_v35 }
 0x502   : > { %v4280_v16 = vpop.f32.mrf.mxu0  ;;  %v3230_v9 = vld [vmem:[#allocation3 + $0x10] sm:$0xff] }
 0x503   : > { %v4423_v37 = vadd.f32 %v4280_v16, %v3810_v53  ;;  %5049 = vmatmul.msk.f32.gmra.mxu2 %vm299_vm2, %v3230_v9  ;;  %5016 = vmatmul.msk.f32.gmra.mxu1 %vm299_vm2, %v3263_v63  ;;  %v5321_v16 = vld [vmem:[#allocation3 + $0x20] sm:$0xff]  ;;  %v5322_v9 = vld [vmem:[#allocation3 + $0x28] sm:$0xff] }
 0x504   : > { %5082 = vmatmul.msk.f32.gmra.mxu3 %vm299_vm2, %v3263_v63  ;;  %5151 = vmatmul.msk.f32.gmra.mxu0 %vm299_vm2, %v3263_v63 }
 0x505   : > { %4487 = vst.msk [vmem:[#allocation4 + $0xb8] sm:$0xff] %vm4463_vm11, %v4423_v37  ;;  %2634 = vrot.lane.b32.xlu2 %v2447_v19, %s5517_s10  ;;  %v3024_v55 = vpop.permute.xlu1 %3023  ;;  %v5323_v37 = vld [vmem:[#allocation3 + $0x30] sm:$0xff]  ;;  %v3815_v35 = vpop.f32.mrf.mxu3 }
 0x506   : > { %2636 = vrot.lane.b32.xlu1 %v6733_v32, %s5517_s10  ;;  %3195 = vst.msk [vmem:[#allocation3 + $0x120] sm:$0xff] %vm3158_vm10, %v3024_v55  ;;  %v7247_v32 = vpop.f32.mrf.mxu2  ;;  %v3600_v55 = vpop.f32.mrf.mxu1 }
 0x507   : > { %v3816_v10 = vadd.f32 %v3815_v35, %v3600_v55 }
 0x50a   : > { %v4283_v11 = vpop.f32.mrf.mxu0 }
 0x50b   : > { %v4424_v45 = vadd.f32 %v4283_v11, %v3813_v4  ;;  %5050 = vmatmul.msk.f32.gmra.mxu2 %vm299_vm2, %v5320_v26  ;;  %v5324_v4 = vld [vmem:[#allocation3 + $0x38] sm:$0xff] }
 0x50d   : > { %4488 = vst.msk [vmem:[#allocation4 + $0xc0] sm:$0xff] %vm4463_vm11, %v4424_v45  ;;  %v3264_v53 = vld [vmem:[#allocation3 + $0x120] sm:$0xff] }
 0x50e   : > { %5017 = vmatmul.msk.f32.gmra.mxu1 %vm299_vm2, %v3264_v53  ;;  %5083 = vmatmul.msk.f32.gmra.mxu3 %vm299_vm2, %v3264_v53  ;;  %v7251_v63 = vpop.f32.mrf.mxu2 }
 0x50f   : > { %5152 = vmatmul.msk.f32.gmra.mxu0 %vm299_vm2, %v3264_v53  ;;  %v5325_v53 = vld [vmem:[#allocation3 + $0x40] sm:$0xff] }
 0x513   : > { %5051 = vmatmul.msk.f32.gmra.mxu2 %vm299_vm2, %v5321_v16 }
 0x516   : > { %v7254_v19 = vpop.f32.mrf.mxu2 }
 0x51b   : > { %5052 = vmatmul.msk.f32.gmra.mxu2 %vm299_vm2, %v5322_v9 }
 0x51e   : > { %v7258_v26 = vpop.f32.mrf.mxu2 }
 0x51f   : > { %7629 = vst [vmem:[#allocation16_spill] sm:$0xff] %v7258_v26 }
 0x523   : > { %5053 = vmatmul.msk.f32.gmra.mxu2 %vm299_vm2, %v5323_v37  ;;  %v5326_v37 = vld [vmem:[#allocation3 + $0x48] sm:$0xff] }
 0x526   : > { %v7262_v9 = vpop.f32.mrf.mxu2 }
 0x527   : > { %7630 = vst [vmem:[#allocation17_spill] sm:$0xff] %v7262_v9 }
 0x52b   : > { %5054 = vmatmul.msk.f32.gmra.mxu2 %vm299_vm2, %v5324_v4  ;;  %v5327_v4 = vld [vmem:[#allocation3 + $0x50] sm:$0xff] }
 0x52c   : > { %v4286_v11 = vpop.f32.mrf.mxu0 }
 0x52d   : > { %v4425_v45 = vadd.f32 %v4286_v11, %v3816_v10 }
 0x52e   : > { %v7271_v11 = vpop.f32.mrf.mxu2 }
 0x52f   : > { %4489 = vst.msk [vmem:[#allocation4 + $0xc8] sm:$0xff] %vm4463_vm11, %v4425_v45 }
 0x530   : > { %7631 = vst [vmem:[#allocation18_spill] sm:$0xff] %v7271_v11  ;;  %v5329_v11 = vld [vmem:[#allocation3 + $0x60] sm:$0xff] }
 0x533   : > { %5055 = vmatmul.msk.f32.gmra.mxu2 %vm299_vm2, %v5325_v53 }
 0x537   : > { %v3026_v16 = vpop.permute.xlu0 %3025 }
 0x538   : > { %3196 = vst.msk [vmem:[#allocation3 + $0x128] sm:$0xff] %vm3158_vm10, %v3026_v16 }
 0x53b   : > { %5056 = vmatmul.msk.f32.gmra.mxu2 %vm299_vm2, %v5326_v37  ;;  %v5328_v37 = vld [vmem:[#allocation3 + $0x58] sm:$0xff] }
 0x53d   : > { %v2625_v55 = vpop.permute.xlu1 %2624 }
 0x53e   : > { %2788 = vst.msk [vmem:[#allocation3 + $0x160] sm:$0xff] %vm2743_vm9, %v2625_v55  ;;  %v7277_v55 = vpop.f32.mrf.mxu2 }
 0x53f   : > { %v2627_v35 = vpop.permute.xlu0 %2626  ;;  %v3265_v10 = vld [vmem:[#allocation3 + $0x128] sm:$0xff]  ;;  %7632 = vst [vmem:[#allocation19_spill] sm:$0xff] %v7277_v55 }
 0x540   : > { %2789 = vst.msk [vmem:[#allocation3 + $0x168] sm:$0xff] %vm2743_vm9, %v2627_v35  ;;  %5018 = vmatmul.msk.f32.gmra.mxu1 %vm299_vm2, %v3265_v10  ;;  %5084 = vmatmul.msk.f32.gmra.mxu3 %vm299_vm2, %v3265_v10 }
 0x541   : > { %5153 = vmatmul.msk.f32.gmra.mxu0 %vm299_vm2, %v3265_v10 }
 0x543   : > { %5057 = vmatmul.msk.f32.gmra.mxu2 %vm299_vm2, %v5327_v4  ;;  %v3603_v4 = vpop.f32.mrf.mxu1 }
 0x545   : > { %v2856_v45 = vld [vmem:[#allocation3 + $0x15a] sm:$0xff] }
 0x546   : > { %v3028_v53 = vpop.permute.xlu2 %3027  ;;  %3037 = vrot.lane.b32.xlu0 %v2856_v45, %s5516_s9  ;;  %v3818_v45 = vpop.f32.mrf.mxu3 }
 0x547   : > { %3197 = vst.msk [vmem:[#allocation3 + $0x130] sm:$0xff] %vm3158_vm10, %v3028_v53  ;;  %v2857_v16 = vld [vmem:[#allocation3 + $0x162] sm:$0xff]  ;;  %v3819_v53 = vadd.f32 %v3818_v45, %v3603_v4 }
 0x548   : > { %3039 = vrot.lane.b32.xlu2 %v2857_v16, %s5516_s9 }
 0x54b   : > { %5058 = vmatmul.msk.f32.gmra.mxu2 %vm299_vm2, %v5328_v37 }
 0x54e   : > { %v3266_v35 = vld [vmem:[#allocation3 + $0x130] sm:$0xff] }
 0x54f   : > { %v2629_v10 = vpop.permute.xlu2 %2628  ;;  %5019 = vmatmul.msk.f32.gmra.mxu1 %vm299_vm2, %v3266_v35  ;;  %5085 = vmatmul.msk.f32.gmra.mxu3 %vm299_vm2, %v3266_v35 }
 0x550   : > { %2790 = vst.msk [vmem:[#allocation3 + $0x170] sm:$0xff] %vm2743_vm9, %v2629_v10  ;;  %5154 = vmatmul.msk.f32.gmra.mxu0 %vm299_vm2, %v3266_v35  ;;  %v2369_v35 = vadd.f32 %v7202_v21, %v6851_v49  ;;  %v5330_v10 = vld [vmem:[#allocation3 + $0x68] sm:$0xff] }
 0x553   : > { %5059 = vmatmul.msk.f32.gmra.mxu2 %vm299_vm2, %v5329_v11  ;;  %v2360_v11 = vadd.f32 %v6361_v44, %v6363_v47  ;;  %v3821_v47 = vpop.f32.mrf.mxu3 }
 0x554   : > { %v4289_v16 = vpop.f32.mrf.mxu0 }
 0x555   : > { %v4426_v37 = vadd.f32 %v4289_v16, %v3819_v53  ;;  %v7294_v4 = vmax.f32 %v2360_v11, %v2369_v35 }
 0x556   : > { %v7284_v9 = vpop.f32.mrf.mxu2 }
 0x557   : > { %4490 = vst.msk [vmem:[#allocation4 + $0xd0] sm:$0xff] %vm4463_vm11, %v4426_v37  ;;  %v3034_v55 = vpop.permute.xlu2 %3033  ;;  %v2858_v26 = vld [vmem:[#allocation3 + $0x16a] sm:$0xff] }
 0x558   : > { %3200 = vst.msk [vmem:[#allocation3 + $0x148] sm:$0xff] %vm3158_vm10, %v3034_v55  ;;  %3041 = vrot.lane.b32.xlu0 %v2858_v26, %s5516_s9  ;;  %v3606_v55 = vpop.f32.mrf.mxu1 }
 0x55b   : > { %5060 = vmatmul.msk.f32.gmra.mxu2 %vm299_vm2, %v5330_v10  ;;  %v3822_v10 = vadd.f32 %v3821_v47, %v3606_v55 }
 0x55e   : > { %v3030_v45 = vpop.permute.xlu1 %3029  ;;  %v3705_v53 = vpop.f32.mrf.mxu2 }
 0x55f   : > { %3198 = vst.msk [vmem:[#allocation3 + $0x138] sm:$0xff] %vm3158_vm10, %v3030_v45  ;;  %v2635_v16 = vpop.permute.xlu2 %2634  ;;  %v3269_v47 = vld [vmem:[#allocation3 + $0x148] sm:$0xff] }
 0x560   : > { %2793 = vst.msk [vmem:[#allocation3 + $0x188] sm:$0xff] %vm2743_vm9, %v2635_v16  ;;  %2381 = vrot.lane.b32.xlu0 %v7294_v4, %s5513_s23  ;;  %v3824_v16 = vpop.f32.mrf.mxu3  ;;  %s5226_s23 = smul.u32 104, %s7643_s22 }
 0x562   : > { %s7382_s29 = scalar_lea.vmem %s7624_s5, %s5226_s23 }
 0x563   : > { %5168 = vmatmul.msk.f32.vlgmr.msra.gmra.mxu2 %vm299_vm2, %v6998_v6 }
 0x566   : > { %v3267_v49 = vld [vmem:[#allocation3 + $0x138] sm:$0xff]  ;;  %v3708_v21 = vpop.f32.mrf.mxu2 }
 0x567   : > { %v3032_v26 = vpop.permute.xlu0 %3031  ;;  %5020 = vmatmul.msk.f32.gmra.mxu1 %vm299_vm2, %v3267_v49  ;;  %5086 = vmatmul.msk.f32.gmra.mxu3 %vm299_vm2, %v3267_v49 }
 0x568   : > { %3199 = vst.msk [vmem:[#allocation3 + $0x140] sm:$0xff] %vm3158_vm10, %v3032_v26  ;;  %v2631_v44 = vpop.permute.xlu1 %2630  ;;  %5155 = vmatmul.msk.f32.gmra.mxu0 %vm299_vm2, %v3267_v49  ;;  %v3609_v49 = vpop.f32.mrf.mxu1 }
 0x569   : > { %2791 = vst.msk [vmem:[#allocation3 + $0x178] sm:$0xff] %vm2743_vm9, %v2631_v44 }
 0x56b   : > { %5169 = vmatmul.msk.f32.gmra.mxu2 %vm299_vm2, %v7020_v40 }
 0x56e   : > { %v3711_v6 = vpop.f32.mrf.mxu2 }
 0x56f   : > { %v2633_v37 = vpop.permute.xlu0 %2632  ;;  %v3268_v35 = vld [vmem:[#allocation3 + $0x140] sm:$0xff]  ;;  %v3825_v6 = vadd.f32 %v3824_v16, %v3609_v49 }
 0x570   : > { %2792 = vst.msk [vmem:[#allocation3 + $0x180] sm:$0xff] %vm2743_vm9, %v2633_v37  ;;  %v3036_v11 = vpop.permute.xlu1 %3035  ;;  %5021 = vmatmul.msk.f32.gmra.mxu1 %vm299_vm2, %v3268_v35  ;;  %5087 = vmatmul.msk.f32.gmra.mxu3 %vm299_vm2, %v3268_v35  ;;  %v2859_v45 = vld [vmem:[#allocation3 + $0x172] sm:$0xff] }
 0x571   : > { %3201 = vst.msk [vmem:[#allocation3 + $0x150] sm:$0xff] %vm3158_vm10, %v3036_v11  ;;  %5156 = vmatmul.msk.f32.gmra.mxu0 %vm299_vm2, %v3268_v35  ;;  %3043 = vrot.lane.b32.xlu1 %v2859_v45, %s5516_s9  ;;  %v4292_v40 = vpop.f32.mrf.mxu0  ;;  %v3827_v45 = vpop.f32.mrf.mxu3 }
 0x572   : > { %v4427_v53 = vadd.f32 %v4292_v40, %v3822_v10  ;;  %v3612_v10 = vpop.f32.mrf.mxu1 }
 0x573   : > { %5170 = vmatmul.msk.f32.gmra.mxu2 %vm299_vm2, %v7044_v42 }
 0x574   : > { %4491 = vst.msk [vmem:[#allocation4 + $0xd8] sm:$0xff] %vm4463_vm11, %v4427_v53  ;;  %v3828_v53 = vadd.f32 %v3827_v45, %v3612_v10 }
 0x576   : > { %v3740_v21 = vpop.f32.mrf.mxu2 }
 0x577   : > { %v3741_v26 = vadd.f32 %v3740_v21, %v6907_v15  ;;  %v2860_v44 = vld [vmem:[#allocation3 + $0x17a] sm:$0xff]  ;;  %v2861_v55 = vld [vmem:[#allocation3 + $0x182] sm:$0xff] }
 0x578   : > { %v2637_v37 = vpop.permute.xlu1 %2636  ;;  %3045 = vrot.lane.b32.xlu2 %v2860_v44, %s5516_s9  ;;  %5022 = vmatmul.msk.f32.gmra.mxu1 %vm299_vm2, %v3269_v47  ;;  %v3270_v40 = vld [vmem:[#allocation3 + $0x150] sm:$0xff] }
 0x579   : > { %2794 = vst.msk [vmem:[#allocation3 + $0x190] sm:$0xff] %vm2743_vm9, %v2637_v37  ;;  %v4400_v42 = vadd.f32 %v6862_v20, %v3741_v26  ;;  %5088 = vmatmul.msk.f32.gmra.mxu3 %vm299_vm2, %v3269_v47  ;;  %5157 = vmatmul.msk.f32.gmra.mxu0 %vm299_vm2, %v3269_v47  ;;  %v4295_v35 = vpop.f32.mrf.mxu0 }
 0x57a   : > { %3047 = vrot.lane.b32.xlu1 %v2861_v55, %s5516_s9  ;;  %v4428_v15 = vadd.f32 %v4295_v35, %v3825_v6  ;;  %v3615_v44 = vpop.f32.mrf.mxu1  ;;  %v3830_v55 = vpop.f32.mrf.mxu3 }
 0x57b   : > { %4464 = vst.msk [vmem:[#allocation4] sm:$0xff] %vm4463_vm11, %v4400_v42  ;;  %5171 = vmatmul.msk.f32.gmra.mxu2 %vm299_vm2, %v7072_v52  ;;  %v3831_v6 = vadd.f32 %v3830_v55, %v3615_v44 }
 0x57c   : > { %4492 = vst.msk [vmem:[#allocation4 + $0xe0] sm:$0xff] %vm4463_vm11, %v4428_v15 }
 0x57e   : > { %v3743_v11 = vpop.f32.mrf.mxu2 }
 0x57f   : > { %v3744_v20 = vadd.f32 %v3743_v11, %v6920_v61 }
 0x580   : > { %v2863_v16 = vld [vmem:[#allocation3 + $0x192] sm:$0xff]  ;;  %5023 = vmatmul.msk.f32.gmra.mxu1 %vm299_vm2, %v3270_v40  ;;  %v2862_v49 = vld [vmem:[#allocation3 + $0x18a] sm:$0xff] }
 0x581   : > { %v4401_v21 = vadd.f32 %v6878_v50, %v3744_v20  ;;  %3051 = vrot.lane.b32.xlu0 %v2863_v16, %s5516_s9  ;;  %5089 = vmatmul.msk.f32.gmra.mxu3 %vm299_vm2, %v3270_v40  ;;  %v4298_v52 = vpop.f32.mrf.mxu0  ;;  %v7371_v16 = vld [vmem:[#allocation11] ss:$0 sm:$0xff] }
 0x582   : > { %5158 = vmatmul.msk.f32.gmra.mxu0 %vm299_vm2, %v3270_v40  ;;  %3049 = vrot.lane.b32.xlu2 %v2862_v49, %s5516_s9  ;;  %v4429_v26 = vadd.f32 %v4298_v52, %v3828_v53 }
 0x583   : > { %4465 = vst.msk [vmem:[#allocation4 + $0x8] sm:$0xff] %vm4463_vm11, %v4401_v21  ;;  %3053 = vrot.lane.b32.xlu1 %v6986_v23, %s5516_s9  ;;  %5172 = vmatmul.msk.f32.gmra.mxu2 %vm299_vm2, %v7085_v62 }
 0x584   : > { %4493 = vst.msk [vmem:[#allocation4 + $0xe8] sm:$0xff] %vm4463_vm11, %v4429_v26 }
 0x586   : > { %v3746_v50 = vpop.f32.mrf.mxu2 }
 0x587   : > { %v3747_v61 = vadd.f32 %v3746_v50, %v6935_v43 }
 0x589   : > { %v4402_v47 = vadd.f32 %v6894_v39, %v3747_v61 }
 0x58b   : > { %4466 = vst.msk [vmem:[#allocation4 + $0x10] sm:$0xff] %vm4463_vm11, %v4402_v47  ;;  %5173 = vmatmul.msk.f32.gmra.mxu2 %vm299_vm2, %v7096_v8  ;;  %v4531_v8 = vld [vmem:[#allocation4] sm:$0xff] }
 0x58c   : > { %v4301_v37 = vpop.f32.mrf.mxu0 }
 0x58d   : > { %v4430_v23 = vadd.f32 %v4301_v37, %v3831_v6 }
 0x58e   : > { %v3749_v42 = vpop.f32.mrf.mxu2 }
 0x58f   : > { %4494 = vst.msk [vmem:[#allocation4 + $0xf0] sm:$0xff] %vm4463_vm11, %v4430_v23  ;;  %v3750_v62 = vadd.f32 %v3749_v42, %v6944_v13  ;;  %v3618_v42 = vpop.f32.mrf.mxu1 }
 0x591   : > { %v4403_v35 = vadd.f32 %v6909_v17, %v3750_v62 }
 0x593   : > { %4467 = vst.msk [vmem:[#allocation4 + $0x18] sm:$0xff] %vm4463_vm11, %v4403_v35  ;;  %5174 = vmatmul.msk.f32.gmra.mxu2 %vm299_vm2, %v7107_v25 }
 0x596   : > { %v3752_v39 = vpop.f32.mrf.mxu2 }
 0x597   : > { %v3753_v43 = vadd.f32 %v3752_v39, %v6953_v34  ;;  %v4532_v34 = vld [vmem:[#allocation4 + $0x8] sm:$0xff] }
 0x599   : > { %v4404_v15 = vadd.f32 %v6924_v38, %v3753_v43 }
 0x59a   : > { %v4534_v10 = vld [vmem:[#allocation4 + $0x18] sm:$0xff] }
 0x59b   : > { %v4537_v11 = vmax.f32 %v4531_v8, %v4534_v10  ;;  %4468 = vst.msk [vmem:[#allocation4 + $0x20] sm:$0xff] %vm4463_vm11, %v4404_v15  ;;  %5175 = vmatmul.msk.f32.gmra.mxu2 %vm299_vm2, %v7119_v2  ;;  %v3621_v10 = vpop.f32.mrf.mxu1 }
 0x59d   : > { %4540 = vst.msk [vmem:[#allocation5] sm:$0xff] %vm4463_vm11, %v4537_v11 }
 0x59e   : > { %v3755_v17 = vpop.f32.mrf.mxu2 }
 0x59f   : > { %v3756_v13 = vadd.f32 %v3755_v17, %v6962_v12  ;;  %v4533_v12 = vld [vmem:[#allocation4 + $0x10] sm:$0xff] }
 0x5a1   : > { %v4405_v25 = vadd.f32 %v6940_v22, %v3756_v13 }
 0x5a2   : > { %v4535_v45 = vld [vmem:[#allocation4 + $0x20] sm:$0xff]  ;;  %v3040_v38 = vpop.permute.xlu2 %3039 }
 0x5a3   : > { %v4538_v20 = vmax.f32 %v4532_v34, %v4535_v45  ;;  %4469 = vst.msk [vmem:[#allocation4 + $0x28] sm:$0xff] %vm4463_vm11, %v4405_v25  ;;  %5176 = vmatmul.msk.f32.gmra.mxu2 %vm299_vm2, %v7130_v51 }
 0x5a4   : > { %3203 = vst.msk [vmem:[#allocation3 + $0x160] sm:$0xff] %vm3158_vm10, %v3040_v38 }
 0x5a5   : > { %4541 = vst.msk [vmem:[#allocation5 + $0x8] sm:$0xff] %vm4463_vm11, %v4538_v20 }
 0x5a6   : > { %v3758_v2 = vpop.f32.mrf.mxu2 }
 0x5a7   : > { %v3759_v40 = vadd.f32 %v3758_v2, %v6966_v56 }
 0x5a9   : > { %v4406_v22 = vadd.f32 %v6950_v57, %v3759_v40 }
 0x5aa   : > { %v4536_v53 = vld [vmem:[#allocation4 + $0x28] sm:$0xff] }
 0x5ab   : > { %v4539_v49 = vmax.f32 %v4533_v12, %v4536_v53  ;;  %4470 = vst.msk [vmem:[#allocation4 + $0x30] sm:$0xff] %vm4463_vm11, %v4406_v22  ;;  %5177 = vmatmul.msk.f32.gmra.mxu2 %vm299_vm2, %v7141_v24 }
 0x5ac   : > { %v4543_v51 = vld [vmem:[#allocation5] ss:$2 sm:$0xff]  ;;  %v4547_v21 = vld [vmem:[#allocation5 + $0x1] ss:$2 sm:$0xff] }
 0x5ad   : > { %v4550_v52 = vmax.f32 %v4543_v51, %v4547_v21  ;;  %4542 = vst.msk [vmem:[#allocation5 + $0x10] sm:$0xff] %vm4463_vm11, %v4539_v49 }
 0x5ae   : > { %v3761_v56 = vpop.f32.mrf.mxu2 }
 0x5af   : > { %v4552_v26 = vadd.f32 %v7371_v16, %v4550_v52  ;;  %v3762_v57 = vadd.f32 %v3761_v56, %v6971_v14 }
 0x5b1   : > { %v4554_v50 = vmax.f32 %v4552_v26, 0.0  ;;  %v4407_v24 = vadd.f32 %v6959_v36, %v3762_v57 }
 0x5b3   : > { %4556 = vst.msk [vmem:[%s7382_s29] sm:$0xff] %vm4463_vm11, %v4554_v50  ;;  %5178 = vmatmul.msk.f32.gmra.mxu2 %vm299_vm2, %v7175_v54  ;;  %v3833_v54 = vpop.f32.mrf.mxu3 }
 0x5b4   : > { %v4545_v61 = vld [vmem:[#allocation5 + $0x10] ss:$2 sm:$0xf]  ;;  %v4549_v44 = vld [vmem:[#allocation5 + $0x11] ss:$2 sm:$0xf]  ;;  %v3834_v62 = vadd.f32 %v3833_v54, %v3618_v42 }
 0x5b5   : > { %v4551_v47 = vmax.f32 %v4545_v61, %v4549_v44  ;;  %4471 = vst.msk [vmem:[#allocation4 + $0x38] sm:$0xff] %vm4463_vm11, %v4407_v24  ;;  %v4586_v42 = vld [vmem:[#allocation4 + $0x78] sm:$0xff] }
 0x5b6   : > { %v3764_v14 = vpop.f32.mrf.mxu2 }
 0x5b7   : > { %v4553_v55 = vadd.f32 %v7371_v16, %v4551_v47  ;;  %v3765_v6 = vadd.f32 %v3764_v14, %v6976_v5 }
 0x5b8   : > { %v3038_v37 = vpop.permute.xlu0 %3037 }
 0x5b9   : > { %v4555_v23 = vmax.f32 %v4553_v55, 0.0  ;;  %v4408_v36 = vadd.f32 %v6968_v60, %v3765_v6  ;;  %3202 = vst.msk [vmem:[#allocation3 + $0x158] sm:$0xff] %vm3158_vm10, %v3038_v37  ;;  %v3624_v37 = vpop.f32.mrf.mxu1 }
 0x5bb   : > { %4558 = vst.msk [vmem:[%s7382_s29 + $0x8] sm:$0x3] %vm4557_vm12, %v4555_v23  ;;  %5179 = vmatmul.msk.f32.gmra.mxu2 %vm299_vm2, %v7185_v46  ;;  %v3836_v25 = vpop.f32.mrf.mxu3 }
 0x5bc   : > { %4472 = vst.msk [vmem:[#allocation4 + $0x40] sm:$0xff] %vm4463_vm11, %v4408_v36  ;;  %v4560_v2 = vld [vmem:[#allocation4 + $0x38] sm:$0xff]  ;;  %v4585_v36 = vld [vmem:[#allocation4 + $0x70] sm:$0xff] }
 0x5be   : > { %v4304_v35 = vpop.f32.mrf.mxu0  ;;  %v3767_v39 = vpop.f32.mrf.mxu2 }
 0x5bf   : > { %v4431_v5 = vadd.f32 %v4304_v35, %v3834_v62  ;;  %v3768_v43 = vadd.f32 %v3767_v39, %v6983_v7  ;;  %v3272_v7 = vld [vmem:[#allocation3 + $0x160] sm:$0xff] }
 0x5c0   : > { %v3271_v15 = vld [vmem:[#allocation3 + $0x158] sm:$0xff] }
 0x5c1   : > { %4495 = vst.msk [vmem:[#allocation4 + $0xf8] sm:$0xff] %vm4463_vm11, %v4431_v5  ;;  %v4409_v60 = vadd.f32 %v6974_v59, %v3768_v43  ;;  %5024 = vmatmul.msk.f32.gmra.mxu1 %vm299_vm2, %v3271_v15  ;;  %5090 = vmatmul.msk.f32.gmra.mxu3 %vm299_vm2, %v3271_v15  ;;  %v4559_v59 = vld [vmem:[#allocation4 + $0x30] sm:$0xff] }
 0x5c2   : > { %5159 = vmatmul.msk.f32.gmra.mxu0 %vm299_vm2, %v3271_v15 }
 0x5c3   : > { %4473 = vst.msk [vmem:[#allocation4 + $0x48] sm:$0xff] %vm4463_vm11, %v4409_v60  ;;  %5180 = vmatmul.msk.f32.gmra.mxu2 %vm299_vm2, %v7190_v29  ;;  %v4561_v56 = vld [vmem:[#allocation4 + $0x40] sm:$0xff]  ;;  %v3839_v54 = vpop.f32.mrf.mxu3 }
 0x5c4   : > { %v3840_v43 = vadd.f32 %v3839_v54, %v3624_v37 }
 0x5c6   : > { %v3770_v46 = vpop.f32.mrf.mxu2 }
 0x5c7   : > { %v3771_v8 = vadd.f32 %v3770_v46, %v6994_v3  ;;  %v3837_v3 = vadd.f32 %v3836_v25, %v3621_v10 }
 0x5c9   : > { %v4410_v11 = vadd.f32 %v6981_v58, %v3771_v8  ;;  %5025 = vmatmul.msk.f32.gmra.mxu1 %vm299_vm2, %v3272_v7  ;;  %5091 = vmatmul.msk.f32.gmra.mxu3 %vm299_vm2, %v3272_v7 }
 0x5ca   : > { %v4562_v17 = vld [vmem:[#allocation4 + $0x48] sm:$0xff]  ;;  %v3042_v13 = vpop.permute.xlu0 %3041  ;;  %5160 = vmatmul.msk.f32.gmra.mxu0 %vm299_vm2, %v3272_v7 }
 0x5cb   : > { %v4565_v34 = vmax.f32 %v4559_v59, %v4562_v17  ;;  %4474 = vst.msk [vmem:[#allocation4 + $0x50] sm:$0xff] %vm4463_vm11, %v4410_v11  ;;  %5181 = vmatmul.msk.f32.gmra.mxu2 %vm299_vm2, %v7197_v27  ;;  %v4612_v11 = vld [vmem:[#allocation4 + $0xb8] sm:$0xff]  ;;  %v4609_v59 = vld [vmem:[#allocation4 + $0xa0] sm:$0xff]  ;;  %v3627_v17 = vpop.f32.mrf.mxu1  ;;  %v3842_v25 = vpop.f32.mrf.mxu3 }
 0x5cc   : > { %3204 = vst.msk [vmem:[#allocation3 + $0x168] sm:$0xff] %vm3158_vm10, %v3042_v13  ;;  %v4615_v13 = vmax.f32 %v4609_v59, %v4612_v11 }
 0x5cd   : > { %4568 = vst.msk [vmem:[#allocation5] sm:$0xff] %vm4463_vm11, %v4565_v34  ;;  %v4307_v58 = vpop.f32.mrf.mxu0 }
 0x5ce   : > { %v4432_v29 = vadd.f32 %v4307_v58, %v3837_v3  ;;  %v3773_v45 = vpop.f32.mrf.mxu2 }
 0x5cf   : > { %v3774_v38 = vadd.f32 %v3773_v45, %v7015_v48  ;;  %v5331_v48 = vld [vmem:[#allocation10] ss:$0 sm:$0xff] }
 0x5d0   : > { %4496 = vst.msk [vmem:[#allocation4 + $0x100] sm:$0xff] %vm4463_vm11, %v4432_v29  ;;  %v3843_v29 = vadd.f32 %v3842_v25, %v3627_v17  ;;  %v4632_v17 = vld [vmem:[#allocation4 + $0xc8] sm:$0xff] }
 0x5d1   : > { %v4411_v20 = vadd.f32 %v6992_v41, %v3774_v38  ;;  %v4587_v38 = vld [vmem:[#allocation4 + $0x80] sm:$0xff] }
 0x5d2   : > { %v4563_v40 = vld [vmem:[#allocation4 + $0x50] sm:$0xff]  ;;  %v2382_v22 = vpop.permute.xlu0 %2381  ;;  %v3046_v12 = vpop.permute.xlu2 %3045 }
 0x5d3   : > { %v4566_v53 = vmax.f32 %v4560_v2, %v4563_v40  ;;  %4475 = vst.msk [vmem:[#allocation4 + $0x58] sm:$0xff] %vm4463_vm11, %v4411_v20  ;;  %v2388_v27 = vmax.f32 %v7294_v4, %v2382_v22  ;;  %v3273_v49 = vld [vmem:[#allocation3 + $0x168] sm:$0xff] }
 0x5d4   : > { %3206 = vst.msk [vmem:[#allocation3 + $0x178] sm:$0xff] %vm3158_vm10, %v3046_v12  ;;  %5026 = vmatmul.msk.f32.gmra.mxu1 %vm299_vm2, %v3273_v49  ;;  %5092 = vmatmul.msk.f32.gmra.mxu3 %vm299_vm2, %v3273_v49 }
 0x5d5   : > { %4569 = vst.msk [vmem:[#allocation5 + $0x8] sm:$0xff] %vm4463_vm11, %v4566_v53  ;;  %v2391_v41 = vadd.f32 %v5331_v48, %v2388_v27  ;;  %5161 = vmatmul.msk.f32.gmra.mxu0 %vm299_vm2, %v3273_v49  ;;  %v4636_v27 = vld [vmem:[#allocation4 + $0xe8] sm:$0xff]  ;;  %v4633_v48 = vld [vmem:[#allocation4 + $0xd0] sm:$0xff] }
 0x5d6   : > { %v3776_v51 = vpop.f32.mrf.mxu2 }
 0x5d7   : > { %v2394_v21 = vmax.f32 %v2391_v41, 0.0  ;;  %v3777_v52 = vadd.f32 %v3776_v51, %v7039_v1  ;;  %v4610_v41 = vld [vmem:[#allocation4 + $0xa8] sm:$0xff]  ;;  %v4639_v51 = vmax.f32 %v4633_v48, %v4636_v27  ;;  %v4655_v27 = vld [vmem:[#allocation4 + $0xf0] sm:$0xff] }
 0x5d9   : > { %2397 = vst.msk [vmem:[#allocation3 + $0x220] sm:$0xff] %vm554_vm8, %v2394_v21  ;;  %v4412_v4 = vadd.f32 %v7017_v31, %v3777_v52  ;;  %v4588_v31 = vld [vmem:[#allocation4 + $0x88] sm:$0xff]  ;;  %v3630_v52 = vpop.f32.mrf.mxu1 }
 0x5da   : > { %v4564_v26 = vld [vmem:[#allocation4 + $0x58] sm:$0xff]  ;;  %v4591_v35 = vmax.f32 %v4585_v36, %v4588_v31 }
 0x5db   : > { %v4567_v57 = vmax.f32 %v4561_v56, %v4564_v26  ;;  %4476 = vst.msk [vmem:[#allocation4 + $0x60] sm:$0xff] %vm4463_vm11, %v4412_v4  ;;  %v4611_v26 = vld [vmem:[#allocation4 + $0xb0] sm:$0xff] }
 0x5dc   : > { %v4571_v50 = vld [vmem:[#allocation5] ss:$2 sm:$0xff]  ;;  %v4573_v24 = vld [vmem:[#allocation5 + $0x1] ss:$2 sm:$0xff]  ;;  %v3050_v61 = vpop.permute.xlu2 %3049 }
 0x5dd   : > { %v4575_v44 = vmax.f32 %v4571_v50, %v4573_v24  ;;  %4570 = vst.msk [vmem:[#allocation5 + $0x10] sm:$0xff] %vm4463_vm11, %v4567_v57  ;;  %v4607_v24 = vld [vmem:[#allocation4 + $0x90] sm:$0xff] }
 0x5de   : > { %3208 = vst.msk [vmem:[#allocation3 + $0x188] sm:$0xff] %vm3158_vm10, %v3050_v61  ;;  %v3779_v47 = vpop.f32.mrf.mxu2  ;;  %v3845_v61 = vpop.f32.mrf.mxu3 }
 0x5df   : > { %v4577_v1 = vadd.f32 %v7371_v16, %v4575_v44  ;;  %v3780_v14 = vadd.f32 %v3779_v47, %v7069_v18  ;;  %v4608_v47 = vld [vmem:[#allocation4 + $0x98] sm:$0xff] }
 0x5e0   : > { %v2466_v55 = vld [vmem:[#allocation3 + $0x221] sm:$0xff]  ;;  %v2465_v6 = vld [vmem:[#allocation3 + $0x219] sm:$0xff] }
 0x5e1   : > { %v4579_v23 = vmax.f32 %v4577_v1, 0.0  ;;  %2672 = vrot.lane.b32.xlu0 %v2466_v55, %s5517_s10  ;;  %2670 = vrot.lane.b32.xlu2 %v2465_v6, %s5517_s10  ;;  %v4413_v5 = vadd.f32 %v7053_v30, %v3780_v14  ;;  %v4613_v1 = vmax.f32 %v4607_v24, %v4610_v41  ;;  %v3846_v14 = vadd.f32 %v3845_v61, %v3630_v52  ;;  %v3275_v55 = vld [vmem:[#allocation3 + $0x178] sm:$0xff] }
 0x5e2   : > { %v4583_v62 = vld [vmem:[#allocation4 + $0x60] sm:$0xff]  ;;  %v4614_v6 = vmax.f32 %v4608_v47, %v4611_v26 }
 0x5e3   : > { %4581 = vst.msk [vmem:[%s7382_s29 + $0xa] sm:$0xff] %vm4463_vm11, %v4579_v23  ;;  %v4589_v39 = vmax.f32 %v4583_v62, %v4586_v42  ;;  %v3044_v18 = vpop.permute.xlu1 %3043 }
 0x5e4   : > { %v4572_v15 = vld [vmem:[#allocation5 + $0x10] ss:$2 sm:$0xf]  ;;  %v4574_v60 = vld [vmem:[#allocation5 + $0x11] ss:$2 sm:$0xf] }
 0x5e5   : > { %v4576_v46 = vmax.f32 %v4572_v15, %v4574_v60  ;;  %4594 = vst.msk [vmem:[#allocation5 + $0x10] sm:$0xff] %vm4463_vm11, %v4591_v35  ;;  %v4310_v8 = vpop.f32.mrf.mxu0 }
 0x5e6   : > { %4592 = vst.msk [vmem:[#allocation5] sm:$0xff] %vm4463_vm11, %v4589_v39  ;;  %v4433_v7 = vadd.f32 %v4310_v8, %v3840_v43  ;;  %v3848_v60 = vpop.f32.mrf.mxu3  ;;  %v4635_v8 = vld [vmem:[#allocation4 + $0xe0] sm:$0xff] }
 0x5e7   : > { %v4578_v10 = vadd.f32 %v7371_v16, %v4576_v46  ;;  %4477 = vst.msk [vmem:[#allocation4 + $0x68] sm:$0xff] %vm4463_vm11, %v4413_v5  ;;  %v3633_v5 = vpop.f32.mrf.mxu1  ;;  %v4631_v46 = vld [vmem:[#allocation4 + $0xc0] sm:$0xff] }
 0x5e8   : > { %3205 = vst.msk [vmem:[#allocation3 + $0x170] sm:$0xff] %vm3158_vm10, %v3044_v18  ;;  %v4634_v18 = vld [vmem:[#allocation4 + $0xd8] sm:$0xff] }
 0x5e9   : > { %v4580_v30 = vmax.f32 %v4578_v10, 0.0  ;;  %4497 = vst.msk [vmem:[#allocation4 + $0x108] sm:$0xff] %vm4463_vm11, %v4433_v7  ;;  %v3849_v10 = vadd.f32 %v3848_v60, %v3633_v5  ;;  %v4637_v59 = vmax.f32 %v4631_v46, %v4634_v18  ;;  %v5336_v46 = vld [vmem:[#allocation3 + $0x1c0] sm:$0xff] }
 0x5eb   : > { %4582 = vst.msk [vmem:[%s7382_s29 + $0x12] sm:$0x3] %vm4557_vm12, %v4580_v30 }
 0x5ec   : > { %v4596_v34 = vld [vmem:[#allocation5 + $0x10] ss:$2 sm:$0xf]  ;;  %v4598_v3 = vld [vmem:[#allocation5 + $0x11] ss:$2 sm:$0xf]  ;;  %v3048_v58 = vpop.permute.xlu1 %3047 }
 0x5ed   : > { %v4600_v45 = vmax.f32 %v4596_v34, %v4598_v3  ;;  %4618 = vst.msk [vmem:[#allocation5 + $0x10] sm:$0xff] %vm4463_vm11, %v4615_v13 }
 0x5ee   : > { %v4584_v20 = vld [vmem:[#allocation4 + $0x68] sm:$0xff]  ;;  %3207 = vst.msk [vmem:[#allocation3 + $0x180] sm:$0xff] %vm3158_vm10, %v3048_v58  ;;  %v4313_v2 = vpop.f32.mrf.mxu0  ;;  %v4638_v58 = vmax.f32 %v4632_v17, %v4635_v8 }
 0x5ef   : > { %v4602_v40 = vadd.f32 %v7371_v16, %v4600_v45  ;;  %v4590_v22 = vmax.f32 %v4584_v20, %v4587_v38  ;;  %v3274_v12 = vld [vmem:[#allocation3 + $0x170] sm:$0xff]  ;;  %v4434_v53 = vadd.f32 %v4313_v2, %v3843_v29 }
 0x5f0   : > { %5027 = vmatmul.msk.f32.gmra.mxu1 %vm299_vm2, %v3274_v12  ;;  %5093 = vmatmul.msk.f32.gmra.mxu3 %vm299_vm2, %v3274_v12  ;;  %v4657_v45 = vld [vmem:[#allocation4 + $0x100] sm:$0xff] }
 0x5f1   : > { %v4604_v49 = vmax.f32 %v4602_v40, 0.0  ;;  %4593 = vst.msk [vmem:[#allocation5 + $0x8] sm:$0xff] %vm4463_vm11, %v4590_v22  ;;  %5162 = vmatmul.msk.f32.gmra.mxu0 %vm299_vm2, %v3274_v12  ;;  %v4658_v22 = vld [vmem:[#allocation4 + $0x108] sm:$0xff]  ;;  %v3277_v12 = vld [vmem:[#allocation3 + $0x188] sm:$0xff] }
 0x5f2   : > { %4498 = vst.msk [vmem:[#allocation4 + $0x110] sm:$0xff] %vm4463_vm11, %v4434_v53  ;;  %v4661_v48 = vmax.f32 %v4655_v27, %v4658_v22 }
 0x5f3   : > { %4606 = vst.msk [vmem:[%s7382_s29 + $0x1c] sm:$0x3] %vm4557_vm12, %v4604_v49  ;;  %v3052_v21 = vpop.permute.xlu0 %3051  ;;  %v4656_v49 = vld [vmem:[#allocation4 + $0xf8] sm:$0xff] }
 0x5f4   : > { %v4620_v4 = vld [vmem:[#allocation5 + $0x10] ss:$2 sm:$0xf]  ;;  %v4622_v56 = vld [vmem:[#allocation5 + $0x11] ss:$2 sm:$0xf] }
 0x5f5   : > { %v4624_v57 = vmax.f32 %v4620_v4, %v4622_v56  ;;  %4642 = vst.msk [vmem:[#allocation5 + $0x10] sm:$0xff] %vm4463_vm11, %v4639_v51  ;;  %v3054_v50 = vpop.permute.xlu1 %3053  ;;  %v3276_v11 = vld [vmem:[#allocation3 + $0x180] sm:$0xff] }
 0x5f6   : > { %3209 = vst.msk [vmem:[#allocation3 + $0x190] sm:$0xff] %vm3158_vm10, %v3052_v21  ;;  %v4316_v44 = vpop.f32.mrf.mxu0 }
 0x5f7   : > { %v4626_v31 = vadd.f32 %v7371_v16, %v4624_v57  ;;  %3210 = vst.msk [vmem:[#allocation3 + $0x198] sm:$0xff] %vm3158_vm10, %v3054_v50  ;;  %v4435_v54 = vadd.f32 %v4316_v44, %v3846_v14 }
 0x5f8   : > { %v4595_v37 = vld [vmem:[#allocation5] ss:$2 sm:$0xff]  ;;  %v4597_v23 = vld [vmem:[#allocation5 + $0x1] ss:$2 sm:$0xff]  ;;  %5028 = vmatmul.msk.f32.gmra.mxu1 %vm299_vm2, %v3275_v55  ;;  %5094 = vmatmul.msk.f32.gmra.mxu3 %vm299_vm2, %v3275_v55 }
 0x5f9   : > { %v4628_v36 = vmax.f32 %v4626_v31, 0.0  ;;  %v4599_v42 = vmax.f32 %v4595_v37, %v4597_v23  ;;  %4616 = vst.msk [vmem:[#allocation5] sm:$0xff] %vm4463_vm11, %v4613_v1  ;;  %5163 = vmatmul.msk.f32.gmra.mxu0 %vm299_vm2, %v3275_v55  ;;  %v4659_v53 = vld [vmem:[#allocation4 + $0x110] sm:$0xff]  ;;  %v3851_v23 = vpop.f32.mrf.mxu3 }
 0x5fa   : > { %4617 = vst.msk [vmem:[#allocation5 + $0x8] sm:$0xff] %vm4463_vm11, %v4614_v6  ;;  %v4662_v21 = vmax.f32 %v4656_v49, %v4659_v53  ;;  %v5332_v37 = vld [vmem:[#allocation3 + $0x1a0] sm:$0xff] }
 0x5fb   : > { %4630 = vst.msk [vmem:[%s7382_s29 + $0x26] sm:$0x3] %vm4557_vm12, %v4628_v36  ;;  %v4601_v62 = vadd.f32 %v7371_v16, %v4599_v42  ;;  %v5333_v36 = vld [vmem:[#allocation3 + $0x1a8] sm:$0xff] }
 0x5fc   : > { %v4644_v35 = vld [vmem:[#allocation5 + $0x10] ss:$2 sm:$0xf]  ;;  %v4646_v39 = vld [vmem:[#allocation5 + $0x11] ss:$2 sm:$0xf] }
 0x5fd   : > { %v4648_v43 = vmax.f32 %v4644_v35, %v4646_v39  ;;  %v4603_v15 = vmax.f32 %v4601_v62, 0.0  ;;  %4499 = vst.msk [vmem:[#allocation4 + $0x118] sm:$0xff] %vm4463_vm11, %v4435_v54  ;;  %v3278_v50 = vld [vmem:[#allocation3 + $0x190] sm:$0xff]  ;;  %v3636_v35 = vpop.f32.mrf.mxu1  ;;  %v5335_v39 = vld [vmem:[#allocation3 + $0x1b8] sm:$0xff] }
 0x5fe   : > { %v3279_v55 = vld [vmem:[#allocation3 + $0x198] sm:$0xff]  ;;  %v5334_v54 = vld [vmem:[#allocation3 + $0x1b0] sm:$0xff] }
 0x5ff   : > { %v4650_v7 = vadd.f32 %v7371_v16, %v4648_v43  ;;  %4605 = vst.msk [vmem:[%s7382_s29 + $0x14] sm:$0xff] %vm4463_vm11, %v4603_v15  ;;  %v4319_v30 = vpop.f32.mrf.mxu0  ;;  %v3852_v43 = vadd.f32 %v3851_v23, %v3636_v35 }
 0x600   : > { %5029 = vmatmul.msk.f32.gmra.mxu1 %vm299_vm2, %v3276_v11  ;;  %5095 = vmatmul.msk.f32.gmra.mxu3 %vm299_vm2, %v3276_v11  ;;  %v4436_v3 = vadd.f32 %v4319_v30, %v3849_v10 }
 0x601   : > { %v4652_v13 = vmax.f32 %v4650_v7, 0.0  ;;  %v4619_v25 = vld [vmem:[#allocation5] ss:$2 sm:$0xff]  ;;  %v4621_v34 = vld [vmem:[#allocation5 + $0x1] ss:$2 sm:$0xff]  ;;  %5164 = vmatmul.msk.f32.gmra.mxu0 %vm299_vm2, %v3276_v11  ;;  %v3854_v42 = vpop.f32.mrf.mxu3 }
 0x602   : > { %v4623_v29 = vmax.f32 %v4619_v25, %v4621_v34  ;;  %4640 = vst.msk [vmem:[#allocation5] sm:$0xff] %vm4463_vm11, %v4637_v59  ;;  %v5337_v59 = vld [vmem:[#allocation3 + $0x1c8] sm:$0xff]  ;;  %v5338_v34 = vld [vmem:[#allocation3 + $0x1d0] sm:$0xff] }
 0x603   : > { %4654 = vst.msk [vmem:[%s7382_s29 + $0x30] sm:$0x3] %vm4557_vm12, %v4652_v13 }
 0x604   : > { %v4625_v38 = vadd.f32 %v7371_v16, %v4623_v29  ;;  %4641 = vst.msk [vmem:[#allocation5 + $0x8] sm:$0xff] %vm4463_vm11, %v4638_v58  ;;  %v4660_v20 = vld [vmem:[#allocation4 + $0x118] sm:$0xff] }
 0x605   : > { %v4663_v2 = vmax.f32 %v4657_v45, %v4660_v20  ;;  %4500 = vst.msk [vmem:[#allocation4 + $0x120] sm:$0xff] %vm4463_vm11, %v4436_v3  ;;  %v3639_v15 = vpop.f32.mrf.mxu1 }
 0x606   : > { %v4627_v40 = vmax.f32 %v4625_v38, 0.0  ;;  %v3855_v11 = vadd.f32 %v3854_v42, %v3639_v15 }
 0x607   : > { %4666 = vst.msk [vmem:[#allocation5 + $0x10] sm:$0xff] %vm4463_vm11, %v4663_v2  ;;  %v5339_v2 = vld [vmem:[#allocation3 + $0x1d8] sm:$0xff] }
 0x608   : > { %4629 = vst.msk [vmem:[%s7382_s29 + $0x1e] sm:$0xff] %vm4463_vm11, %v4627_v40  ;;  %5030 = vmatmul.msk.f32.gmra.mxu1 %vm299_vm2, %v3277_v12  ;;  %5096 = vmatmul.msk.f32.gmra.mxu3 %vm299_vm2, %v3277_v12  ;;  %v4349_v40 = vpop.f32.mrf.mxu2 }
 0x609   : > { %5165 = vmatmul.msk.f32.gmra.mxu0 %vm299_vm2, %v3277_v12  ;;  %v3857_v62 = vpop.f32.mrf.mxu3 }
 0x60b   : > { %v4643_v41 = vld [vmem:[#allocation5] ss:$2 sm:$0xff]  ;;  %v4645_v51 = vld [vmem:[#allocation5 + $0x1] ss:$2 sm:$0xff] }
 0x60c   : > { %v4647_v52 = vmax.f32 %v4643_v41, %v4645_v51  ;;  %4664 = vst.msk [vmem:[#allocation5] sm:$0xff] %vm4463_vm11, %v4661_v48  ;;  %v4679_v27 = vld [vmem:[#allocation4 + $0x120] sm:$0xff]  ;;  %v5340_v41 = vld [vmem:[#allocation3 + $0x1e0] sm:$0xff] }
 0x60d   : > { %4665 = vst.msk [vmem:[#allocation5 + $0x8] sm:$0xff] %vm4463_vm11, %v4662_v21  ;;  %v3642_v13 = vpop.f32.mrf.mxu1 }
 0x60e   : > { %v4649_v4 = vadd.f32 %v7371_v16, %v4647_v52  ;;  %v4668_v56 = vld [vmem:[#allocation5 + $0x10] ss:$2 sm:$0xf]  ;;  %v4670_v26 = vld [vmem:[#allocation5 + $0x11] ss:$2 sm:$0xf]  ;;  %v3858_v3 = vadd.f32 %v3857_v62, %v3642_v13 }
 0x60f   : > { %v4672_v57 = vmax.f32 %v4668_v56, %v4670_v26 }
 0x610   : > { %v4651_v24 = vmax.f32 %v4649_v4, 0.0  ;;  %5031 = vmatmul.msk.f32.gmra.mxu1 %vm299_vm2, %v3278_v50  ;;  %5097 = vmatmul.msk.f32.gmra.mxu3 %vm299_vm2, %v3278_v50  ;;  %v7525_v21 = vpop.f32.mrf.mxu2  ;;  %v5341_v4 = vld [vmem:[#allocation3 + $0x1e8] sm:$0xff] }
 0x611   : > { %v4674_v61 = vadd.f32 %v7371_v16, %v4672_v57  ;;  %5166 = vmatmul.msk.f32.gmra.mxu0 %vm299_vm2, %v3278_v50  ;;  %v3860_v5 = vpop.f32.mrf.mxu3 }
 0x612   : > { %4653 = vst.msk [vmem:[%s7382_s29 + $0x28] sm:$0xff] %vm4463_vm11, %v4651_v24 }
 0x613   : > { %v4676_v44 = vmax.f32 %v4674_v61, 0.0 }
 0x614   : > { %v4667_v47 = vld [vmem:[#allocation5] ss:$2 sm:$0xff]  ;;  %v4669_v1 = vld [vmem:[#allocation5 + $0x1] ss:$2 sm:$0xff] }
 0x615   : > { %v4671_v14 = vmax.f32 %v4667_v47, %v4669_v1  ;;  %4678 = vst.msk [vmem:[%s7382_s29 + $0x3a] sm:$0x3] %vm4557_vm12, %v4676_v44  ;;  %v5342_v44 = vld [vmem:[#allocation3 + $0x1f0] sm:$0xff] }
 0x617   : > { %v4673_v31 = vadd.f32 %v7371_v16, %v4671_v14 }
 0x618   : > { %5032 = vmatmul.msk.f32.gmra.mxu1 %vm299_vm2, %v3279_v55  ;;  %5098 = vmatmul.msk.f32.gmra.mxu3 %vm299_vm2, %v3279_v55  ;;  %v7530_v24 = vpop.f32.mrf.mxu2 }
 0x619   : > { %v4675_v6 = vmax.f32 %v4673_v31, 0.0  ;;  %5167 = vmatmul.msk.f32.gmra.mxu0 %vm299_vm2, %v3279_v55  ;;  %v3863_v10 = vpop.f32.mrf.mxu3 }
 0x61b   : > { %4677 = vst.msk [vmem:[%s7382_s29 + $0x32] sm:$0xff] %vm4463_vm11, %v4675_v6 }
 0x620   : > { %5099 = vmatmul.msk.f32.gmra.mxu3 %vm299_vm2, %v5332_v37  ;;  %v4358_v23 = vpop.f32.mrf.mxu2 }
 0x621   : > { %v3866_v25 = vpop.f32.mrf.mxu3 }
 0x628   : > { %5100 = vmatmul.msk.f32.gmra.mxu3 %vm299_vm2, %v5333_v36 }
 0x630   : > { %5101 = vmatmul.msk.f32.gmra.mxu3 %vm299_vm2, %v5334_v54 }
 0x638   : > { %5102 = vmatmul.msk.f32.gmra.mxu3 %vm299_vm2, %v5335_v39 }
 0x63b   : > { %v2671_v18 = vpop.permute.xlu2 %2670 }
 0x63c   : > { %2811 = vst.msk [vmem:[#allocation3 + $0x218] sm:$0xff] %vm2743_vm9, %v2671_v18 }
 0x63e   : > { %v3645_v58 = vpop.f32.mrf.mxu1 }
 0x63f   : > { %v4322_v60 = vpop.f32.mrf.mxu0  ;;  %v3861_v26 = vadd.f32 %v3860_v5, %v3645_v58 }
 0x640   : > { %5103 = vmatmul.msk.f32.gmra.mxu3 %vm299_vm2, %v5336_v46  ;;  %v4437_v8 = vadd.f32 %v4322_v60, %v3852_v43  ;;  %v4361_v46 = vpop.f32.mrf.mxu2 }
 0x642   : > { %4501 = vst.msk [vmem:[#allocation4 + $0x128] sm:$0xff] %vm4463_vm11, %v4437_v8 }
 0x643   : > { %v2879_v7 = vld [vmem:[#allocation3 + $0x212] sm:$0xff] }
 0x644   : > { %3083 = vrot.lane.b32.xlu1 %v2879_v7, %s5516_s9  ;;  %v3869_v20 = vpop.f32.mrf.mxu3 }
 0x646   : > { %v3648_v22 = vpop.f32.mrf.mxu1 }
 0x647   : > { %v4325_v30 = vpop.f32.mrf.mxu0  ;;  %v3864_v1 = vadd.f32 %v3863_v10, %v3648_v22 }
 0x648   : > { %5104 = vmatmul.msk.f32.gmra.mxu3 %vm299_vm2, %v5337_v59  ;;  %v4438_v17 = vadd.f32 %v4325_v30, %v3855_v11 }
 0x649   : > { %v4680_v6 = vld [vmem:[#allocation4 + $0x128] sm:$0xff] }
 0x64a   : > { %4502 = vst.msk [vmem:[#allocation4 + $0x130] sm:$0xff] %vm4463_vm11, %v4438_v17 }
 0x64c   : > { %v3872_v51 = vpop.f32.mrf.mxu3 }
 0x650   : > { %5105 = vmatmul.msk.f32.gmra.mxu3 %vm299_vm2, %v5338_v34 }
 0x651   : > { %v3651_v52 = vpop.f32.mrf.mxu1  ;;  %v4681_v5 = vld [vmem:[#allocation4 + $0x130] sm:$0xff] }
 0x652   : > { %v4328_v29 = vpop.f32.mrf.mxu0  ;;  %v3867_v54 = vadd.f32 %v3866_v25, %v3651_v52 }
 0x653   : > { %v4439_v45 = vadd.f32 %v4328_v29, %v3858_v3  ;;  %v2673_v38 = vpop.permute.xlu0 %2672 }
 0x654   : > { %2812 = vst.msk [vmem:[#allocation3 + $0x220] sm:$0xff] %vm2743_vm9, %v2673_v38 }
 0x655   : > { %4503 = vst.msk [vmem:[#allocation4 + $0x138] sm:$0xff] %vm4463_vm11, %v4439_v45 }
 0x657   : > { %v7528_v56 = vpop.f32.mrf.mxu3 }
 0x658   : > { %5106 = vmatmul.msk.f32.gmra.mxu3 %vm299_vm2, %v5339_v2  ;;  %v4364_v2 = vpop.f32.mrf.mxu2 }
 0x65b   : > { %v2881_v12 = vld [vmem:[#allocation3 + $0x222] sm:$0xff]  ;;  %v2880_v53 = vld [vmem:[#allocation3 + $0x21a] sm:$0xff] }
 0x65c   : > { %v4682_v49 = vld [vmem:[#allocation4 + $0x138] sm:$0xff]  ;;  %3087 = vrot.lane.b32.xlu0 %v2881_v12, %s5516_s9  ;;  %3085 = vrot.lane.b32.xlu2 %v2880_v53, %s5516_s9 }
 0x65d   : > { %v4685_v48 = vmax.f32 %v4679_v27, %v4682_v49 }
 0x65f   : > { %4688 = vst.msk [vmem:[#allocation5] sm:$0xff] %vm4463_vm11, %v4685_v48 }
 0x660   : > { %5107 = vmatmul.msk.f32.gmra.mxu3 %vm299_vm2, %v5340_v41 }
 0x668   : > { %5108 = vmatmul.msk.f32.gmra.mxu3 %vm299_vm2, %v5341_v4 }
 0x66d   : > { %v3654_v57 = vpop.f32.mrf.mxu1 }
 0x66e   : > { %v4331_v50 = vpop.f32.mrf.mxu0  ;;  %v3870_v30 = vadd.f32 %v3869_v20, %v3654_v57 }
 0x66f   : > { %v4440_v61 = vadd.f32 %v4331_v50, %v3861_v26 }
 0x670   : > { %5109 = vmatmul.msk.f32.gmra.mxu3 %vm299_vm2, %v5342_v44 }
 0x671   : > { %4504 = vst.msk [vmem:[#allocation4 + $0x140] sm:$0xff] %vm4463_vm11, %v4440_v61 }
 0x673   : > { %v3878_v47 = vpop.f32.mrf.mxu3 }
 0x675   : > { %v3657_v14 = vpop.f32.mrf.mxu1 }
 0x676   : > { %v4334_v31 = vpop.f32.mrf.mxu0  ;;  %v3873_v20 = vadd.f32 %v3872_v51, %v3657_v14 }
 0x677   : > { %v4441_v55 = vadd.f32 %v4334_v31, %v3864_v1 }
 0x678   : > { %v4683_v37 = vld [vmem:[#allocation4 + $0x140] sm:$0xff] }
 0x679   : > { %v4686_v36 = vmax.f32 %v4680_v6, %v4683_v37  ;;  %4505 = vst.msk [vmem:[#allocation4 + $0x148] sm:$0xff] %vm4463_vm11, %v4441_v55 }
 0x67b   : > { %4689 = vst.msk [vmem:[#allocation5 + $0x8] sm:$0xff] %vm4463_vm11, %v4686_v36  ;;  %v3881_v42 = vpop.f32.mrf.mxu3 }
 0x67d   : > { %v3660_v62 = vpop.f32.mrf.mxu1 }
 0x67e   : > { %v4337_v35 = vpop.f32.mrf.mxu0  ;;  %v3876_v57 = vadd.f32 %v7528_v56, %v3660_v62 }
 0x67f   : > { %v4442_v39 = vadd.f32 %v4337_v35, %v3867_v54 }
 0x680   : > { %v4684_v18 = vld [vmem:[#allocation4 + $0x148] sm:$0xff] }
 0x681   : > { %v4687_v43 = vmax.f32 %v4681_v5, %v4684_v18  ;;  %4506 = vst.msk [vmem:[#allocation4 + $0x150] sm:$0xff] %vm4463_vm11, %v4442_v39 }
 0x682   : > { %v4691_v15 = vld [vmem:[#allocation5] ss:$2 sm:$0xff]  ;;  %v4693_v60 = vld [vmem:[#allocation5 + $0x1] ss:$2 sm:$0xff] }
 0x683   : > { %v4695_v8 = vmax.f32 %v4691_v15, %v4693_v60  ;;  %4690 = vst.msk [vmem:[#allocation5 + $0x10] sm:$0xff] %vm4463_vm11, %v4687_v43  ;;  %v3884_v7 = vpop.f32.mrf.mxu3 }
 0x685   : > { %v4697_v10 = vadd.f32 %v7371_v16, %v4695_v8  ;;  %v3663_v11 = vpop.f32.mrf.mxu1 }
 0x686   : > { %v3879_v59 = vadd.f32 %v3878_v47, %v3663_v11  ;;  %v4340_v17 = vpop.f32.mrf.mxu0  ;;  %v4367_v47 = vpop.f32.mrf.mxu2 }
 0x687   : > { %v4699_v13 = vmax.f32 %v4697_v10, 0.0  ;;  %v4443_v34 = vadd.f32 %v4340_v17, %v3870_v30 }
 0x688   : > { %v4446_v25 = vadd.f32 %v4349_v40, %v3879_v59 }
 0x689   : > { %4701 = vst.msk [vmem:[%s7382_s29 + $0x3c] sm:$0xff] %vm4463_vm11, %v4699_v13 }
 0x68a   : > { %v4692_v3 = vld [vmem:[#allocation5 + $0x10] ss:$2 sm:$0xf]  ;;  %v4694_v58 = vld [vmem:[#allocation5 + $0x11] ss:$2 sm:$0xf] }
 0x68b   : > { %v4696_v29 = vmax.f32 %v4692_v3, %v4694_v58  ;;  %4510 = vst.msk [vmem:[#allocation4 + $0x170] sm:$0xff] %vm4463_vm11, %v4446_v25  ;;  %v3887_v45 = vpop.f32.mrf.mxu3 }
 0x68c   : > { %4507 = vst.msk [vmem:[#allocation4 + $0x158] sm:$0xff] %vm4463_vm11, %v4443_v34  ;;  %v3888_v38 = vadd.f32 %v3887_v45, %v7211_v28 }
 0x68d   : > { %v4698_v22 = vadd.f32 %v7371_v16, %v4696_v29  ;;  %v3666_v12 = vpop.f32.mrf.mxu1 }
 0x68e   : > { %v4449_v40 = vadd.f32 %v4358_v23, %v3888_v38  ;;  %v3882_v53 = vadd.f32 %v3881_v42, %v3666_v12  ;;  %v4343_v27 = vpop.f32.mrf.mxu0  ;;  %v4703_v23 = vld [vmem:[#allocation4 + $0x150] sm:$0xff]  ;;  %v4370_v42 = vpop.f32.mrf.mxu2 }
 0x68f   : > { %v4700_v49 = vmax.f32 %v4698_v22, 0.0  ;;  %v4444_v48 = vadd.f32 %v4343_v27, %v3873_v20 }
 0x690   : > { %4513 = vst.msk [vmem:[#allocation4 + $0x188] sm:$0xff] %vm4463_vm11, %v4449_v40  ;;  %v4447_v41 = vadd.f32 %v7525_v21, %v3882_v53 }
 0x691   : > { %4702 = vst.msk [vmem:[%s7382_s29 + $0x44] sm:$0x3] %vm4557_vm12, %v4700_v49 }
 0x692   : > { %v4707_v52 = vld [vmem:[#allocation4 + $0x170] sm:$0xff]  ;;  %4511 = vst.msk [vmem:[#allocation4 + $0x178] sm:$0xff] %vm4463_vm11, %v4447_v41 }
 0x693   : > { %v4704_v28 = vld [vmem:[#allocation4 + $0x158] sm:$0xff]  ;;  %4508 = vst.msk [vmem:[#allocation4 + $0x160] sm:$0xff] %vm4463_vm11, %v4444_v48  ;;  %v3890_v51 = vpop.f32.mrf.mxu3 }
 0x694   : > { %v4710_v4 = vmax.f32 %v4704_v28, %v4707_v52  ;;  %v3891_v26 = vadd.f32 %v3890_v51, %v7228_v0  ;;  %v7633_v48 = vld [vmem:[#allocation16_spill] sm:$0xff] }
 0x695   : > { %v3669_v50 = vpop.f32.mrf.mxu1 }
 0x696   : > { %4713 = vst.msk [vmem:[#allocation5 + $0x8] sm:$0xff] %vm4463_vm11, %v4710_v4  ;;  %v4450_v61 = vadd.f32 %v4361_v46, %v3891_v26  ;;  %v3885_v44 = vadd.f32 %v3884_v7, %v3669_v50  ;;  %v4346_v21 = vpop.f32.mrf.mxu0  ;;  %v4373_v10 = vpop.f32.mrf.mxu2 }
 0x697   : > { %v4445_v1 = vadd.f32 %v4346_v21, %v3876_v57  ;;  %v4728_v13 = vld [vmem:[#allocation4 + $0x188] sm:$0xff]  ;;  %v7634_v21 = vld [vmem:[#allocation17_spill] sm:$0xff] }
 0x698   : > { %4514 = vst.msk [vmem:[#allocation4 + $0x190] sm:$0xff] %vm4463_vm11, %v4450_v61  ;;  %v4448_v14 = vadd.f32 %v7530_v24, %v3885_v44 }
 0x699   : > { %v4708_v31 = vld [vmem:[#allocation4 + $0x178] sm:$0xff]  ;;  %4509 = vst.msk [vmem:[#allocation4 + $0x168] sm:$0xff] %vm4463_vm11, %v4445_v1 }
 0x69a   : > { %v4705_v55 = vld [vmem:[#allocation4 + $0x160] sm:$0xff]  ;;  %4512 = vst.msk [vmem:[#allocation4 + $0x180] sm:$0xff] %vm4463_vm11, %v4448_v14 }
 0x69b   : > { %v4711_v0 = vmax.f32 %v4705_v55, %v4708_v31  ;;  %v3893_v56 = vpop.f32.mrf.mxu3 }
 0x69c   : > { %v3894_v6 = vadd.f32 %v3893_v56, %v7240_v33  ;;  %v7635_v56 = vld [vmem:[#allocation18_spill] sm:$0xff] }
 0x69d   : > { %4714 = vst.msk [vmem:[#allocation5 + $0x10] sm:$0xff] %vm4463_vm11, %v4711_v0 }
 0x69e   : > { %v4451_v37 = vadd.f32 %v4364_v2, %v3894_v6  ;;  %v4376_v45 = vpop.f32.mrf.mxu2 }
 0x69f   : > { %v4729_v20 = vld [vmem:[#allocation4 + $0x190] sm:$0xff] }
 0x6a0   : > { %v4706_v36 = vld [vmem:[#allocation4 + $0x168] sm:$0xff]  ;;  %4515 = vst.msk [vmem:[#allocation4 + $0x198] sm:$0xff] %vm4463_vm11, %v4451_v37 }
 0x6a1   : > { %v4709_v54 = vmax.f32 %v4703_v23, %v4706_v36  ;;  %v4727_v43 = vld [vmem:[#allocation4 + $0x180] sm:$0xff] }
 0x6a3   : > { %4712 = vst.msk [vmem:[#allocation5] sm:$0xff] %vm4463_vm11, %v4709_v54  ;;  %v3896_v24 = vpop.f32.mrf.mxu3 }
 0x6a4   : > { %v4716_v62 = vld [vmem:[#allocation5 + $0x10] ss:$2 sm:$0xf]  ;;  %v4718_v35 = vld [vmem:[#allocation5 + $0x11] ss:$2 sm:$0xf]  ;;  %v3897_v39 = vadd.f32 %v3896_v24, %v7247_v32 }
 0x6a5   : > { %v4720_v5 = vmax.f32 %v4716_v62, %v4718_v35 }
 0x6a6   : > { %v4452_v18 = vadd.f32 %v4367_v47, %v3897_v39  ;;  %v4379_v51 = vpop.f32.mrf.mxu2 }
 0x6a7   : > { %v4722_v33 = vadd.f32 %v7371_v16, %v4720_v5  ;;  %v4730_v15 = vld [vmem:[#allocation4 + $0x198] sm:$0xff] }
 0x6a8   : > { %v4733_v60 = vmax.f32 %v4727_v43, %v4730_v15  ;;  %4516 = vst.msk [vmem:[#allocation4 + $0x1a0] sm:$0xff] %vm4463_vm11, %v4452_v18 }
 0x6a9   : > { %v4724_v46 = vmax.f32 %v4722_v33, 0.0 }
 0x6aa   : > { %v4715_v8 = vld [vmem:[#allocation5] ss:$2 sm:$0xff]  ;;  %v4717_v7 = vld [vmem:[#allocation5 + $0x1] ss:$2 sm:$0xff] }
 0x6ab   : > { %4726 = vst.msk [vmem:[%s7382_s29 + $0x4e] sm:$0x3] %vm4557_vm12, %v4724_v46  ;;  %v4719_v11 = vmax.f32 %v4715_v8, %v4717_v7  ;;  %v3899_v30 = vpop.f32.mrf.mxu3 }
 0x6ac   : > { %4736 = vst.msk [vmem:[#allocation5] sm:$0xff] %vm4463_vm11, %v4733_v60  ;;  %v3900_v32 = vadd.f32 %v3899_v30, %v7251_v63 }
 0x6ad   : > { %v4721_v59 = vadd.f32 %v7371_v16, %v4719_v11 }
 0x6ae   : > { %v4453_v17 = vadd.f32 %v4370_v42, %v3900_v32  ;;  %v4382_v55 = vpop.f32.mrf.mxu2  ;;  %v7636_v42 = vld [vmem:[#allocation19_spill] sm:$0xff] }
 0x6af   : > { %v4723_v25 = vmax.f32 %v4721_v59, 0.0  ;;  %v4731_v34 = vld [vmem:[#allocation4 + $0x1a0] sm:$0xff] }
 0x6b0   : > { %v4734_v3 = vmax.f32 %v4728_v13, %v4731_v34  ;;  %4517 = vst.msk [vmem:[#allocation4 + $0x1a8] sm:$0xff] %vm4463_vm11, %v4453_v17 }
 0x6b1   : > { %4725 = vst.msk [vmem:[%s7382_s29 + $0x46] sm:$0xff] %vm4463_vm11, %v4723_v25 }
 0x6b2   : > { %4737 = vst.msk [vmem:[#allocation5 + $0x8] sm:$0xff] %vm4463_vm11, %v4734_v3 }
 0x6b3   : > { %v3902_v58 = vpop.f32.mrf.mxu3 }
 0x6b4   : > { %v3903_v29 = vadd.f32 %v3902_v58, %v7254_v19 }
 0x6b6   : > { %v4454_v38 = vadd.f32 %v4373_v10, %v3903_v29  ;;  %v3086_v2 = vpop.permute.xlu2 %3085  ;;  %v3084_v63 = vpop.permute.xlu1 %3083 }
 0x6b7   : > { %v4732_v22 = vld [vmem:[#allocation4 + $0x1a8] sm:$0xff]  ;;  %3226 = vst.msk [vmem:[#allocation3 + $0x218] sm:$0xff] %vm3158_vm10, %v3086_v2 }
 0x6b8   : > { %v4735_v12 = vmax.f32 %v4729_v20, %v4732_v22  ;;  %4518 = vst.msk [vmem:[#allocation4 + $0x1b0] sm:$0xff] %vm4463_vm11, %v4454_v38 }
 0x6b9   : > { %v4739_v40 = vld [vmem:[#allocation5] ss:$2 sm:$0xff]  ;;  %v4741_v53 = vld [vmem:[#allocation5 + $0x1] ss:$2 sm:$0xff]  ;;  %3225 = vst.msk [vmem:[#allocation3 + $0x210] sm:$0xff] %vm3158_vm10, %v3084_v63 }
 0x6ba   : > { %v4743_v27 = vmax.f32 %v4739_v40, %v4741_v53  ;;  %4738 = vst.msk [vmem:[#allocation5 + $0x10] sm:$0xff] %vm4463_vm11, %v4735_v12 }
 0x6bb   : > { %v3905_v19 = vpop.f32.mrf.mxu3 }
 0x6bc   : > { %v4745_v49 = vadd.f32 %v7371_v16, %v4743_v27  ;;  %v3906_v41 = vadd.f32 %v3905_v19, %v7633_v48 }
 0x6be   : > { %v4747_v52 = vmax.f32 %v4745_v49, 0.0  ;;  %v4455_v28 = vadd.f32 %v4376_v45, %v3906_v41  ;;  %v3990_v31 = vld [vmem:[#allocation3 + $0x218] sm:$0xff] }
 0x6bf   : > { %v4751_v35 = vld [vmem:[#allocation4 + $0x1b0] sm:$0xff] }
 0x6c0   : > { %4749 = vst.msk [vmem:[%s7382_s29 + $0x50] sm:$0xff] %vm4463_vm11, %v4747_v52  ;;  %v3989_v4 = vld [vmem:[#allocation3 + $0x210] sm:$0xff] }
 0x6c1   : > { %v4740_v26 = vld [vmem:[#allocation5 + $0x10] ss:$2 sm:$0xf]  ;;  %v4742_v57 = vld [vmem:[#allocation5 + $0x11] ss:$2 sm:$0xf]  ;;  %5182 = vmatmul.msk.f32.gmra.mxu2 %vm299_vm2, %v3989_v4 }
 0x6c2   : > { %v4744_v50 = vmax.f32 %v4740_v26, %v4742_v57  ;;  %4519 = vst.msk [vmem:[#allocation4 + $0x1b8] sm:$0xff] %vm4463_vm11, %v4455_v28 }
 0x6c3   : > { %v3908_v61 = vpop.f32.mrf.mxu3 }
 0x6c4   : > { %v4746_v44 = vadd.f32 %v7371_v16, %v4744_v50  ;;  %v3909_v47 = vadd.f32 %v3908_v61, %v7634_v21  ;;  %v4385_v16 = vpop.f32.mrf.mxu2 }
 0x6c6   : > { %v4748_v1 = vmax.f32 %v4746_v44, 0.0  ;;  %v4456_v14 = vadd.f32 %v4379_v51, %v3909_v47 }
 0x6c8   : > { %4750 = vst.msk [vmem:[%s7382_s29 + $0x58] sm:$0x3] %vm4557_vm12, %v4748_v1 }
 0x6c9   : > { %4520 = vst.msk [vmem:[#allocation4 + $0x1c0] sm:$0xff] %vm4463_vm11, %v4456_v14  ;;  %5183 = vmatmul.msk.f32.gmra.mxu2 %vm299_vm2, %v3990_v31  ;;  %v4752_v60 = vld [vmem:[#allocation4 + $0x1b8] sm:$0xff] }
 0x6cb   : > { %v3911_v0 = vpop.f32.mrf.mxu3 }
 0x6cc   : > { %v3912_v6 = vadd.f32 %v3911_v0, %v7635_v56  ;;  %v4388_v43 = vpop.f32.mrf.mxu2 }
 0x6ce   : > { %v4457_v37 = vadd.f32 %v4382_v55, %v3912_v6  ;;  %v3088_v23 = vpop.permute.xlu0 %3087 }
 0x6cf   : > { %3227 = vst.msk [vmem:[#allocation3 + $0x220] sm:$0xff] %vm3158_vm10, %v3088_v23 }
 0x6d0   : > { %4521 = vst.msk [vmem:[#allocation4 + $0x1c8] sm:$0xff] %vm4463_vm11, %v4457_v37  ;;  %v4753_v7 = vld [vmem:[#allocation4 + $0x1c0] sm:$0xff] }
 0x6d3   : > { %v3914_v36 = vpop.f32.mrf.mxu3 }
 0x6d4   : > { %v3915_v54 = vadd.f32 %v3914_v36, %v7636_v42 }
 0x6d6   : > { %v4458_v24 = vadd.f32 %v4385_v16, %v3915_v54  ;;  %v3991_v62 = vld [vmem:[#allocation3 + $0x220] sm:$0xff] }
 0x6d7   : > { %v4754_v39 = vld [vmem:[#allocation4 + $0x1c8] sm:$0xff]  ;;  %5184 = vmatmul.msk.f32.gmra.mxu2 %vm299_vm2, %v3991_v62 }
 0x6d8   : > { %v4757_v5 = vmax.f32 %v4751_v35, %v4754_v39  ;;  %4522 = vst.msk [vmem:[#allocation4 + $0x1d0] sm:$0xff] %vm4463_vm11, %v4458_v24 }
 0x6da   : > { %4760 = vst.msk [vmem:[#allocation5] sm:$0xff] %vm4463_vm11, %v4757_v5 }
 0x6db   : > { %v3917_v18 = vpop.f32.mrf.mxu3 }
 0x6dc   : > { %v3918_v33 = vadd.f32 %v3917_v18, %v7284_v9  ;;  %v5343_v9 = vld [vmem:[#allocation11] ss:$0 sm:$0xff] }
 0x6de   : > { %v4459_v15 = vadd.f32 %v4388_v43, %v3918_v33 }
 0x6df   : > { %v4755_v46 = vld [vmem:[#allocation4 + $0x1d0] sm:$0xff] }
 0x6e0   : > { %v4758_v8 = vmax.f32 %v4752_v60, %v4755_v46  ;;  %4523 = vst.msk [vmem:[#allocation4 + $0x1d8] sm:$0xff] %vm4463_vm11, %v4459_v15 }
 0x6e2   : > { %4761 = vst.msk [vmem:[#allocation5 + $0x8] sm:$0xff] %vm4463_vm11, %v4758_v8 }
 0x6e3   : > { %v3920_v45 = vpop.f32.mrf.mxu3 }
 0x6e7   : > { %v4756_v10 = vld [vmem:[#allocation4 + $0x1d8] sm:$0xff] }
 0x6e8   : > { %v4759_v11 = vmax.f32 %v4753_v7, %v4756_v10 }
 0x6e9   : > { %v4763_v30 = vld [vmem:[#allocation5] ss:$2 sm:$0xff]  ;;  %v4765_v32 = vld [vmem:[#allocation5 + $0x1] ss:$2 sm:$0xff] }
 0x6ea   : > { %v4767_v59 = vmax.f32 %v4763_v30, %v4765_v32  ;;  %4762 = vst.msk [vmem:[#allocation5 + $0x10] sm:$0xff] %vm4463_vm11, %v4759_v11 }
 0x6eb   : > { %v3923_v2 = vpop.f32.mrf.mxu3 }
 0x6ec   : > { %v4769_v17 = vadd.f32 %v5343_v9, %v4767_v59 }
 0x6ee   : > { %v4771_v13 = vmax.f32 %v4769_v17, 0.0 }
 0x6f0   : > { %4773 = vst.msk [vmem:[%s7382_s29 + $0x5a] sm:$0xff] %vm4463_vm11, %v4771_v13 }
 0x6f1   : > { %v4764_v25 = vld [vmem:[#allocation5 + $0x10] ss:$2 sm:$0xf]  ;;  %v4766_v34 = vld [vmem:[#allocation5 + $0x11] ss:$2 sm:$0xf] }
 0x6f2   : > { %v4768_v3 = vmax.f32 %v4764_v25, %v4766_v34 }
 0x6f3   : > { %v3926_v20 = vpop.f32.mrf.mxu3 }
 0x6f4   : > { %v4770_v58 = vadd.f32 %v5343_v9, %v4768_v3 }
 0x6f6   : > { %v4772_v29 = vmax.f32 %v4770_v58, 0.0 }
 0x6f8   : > { %4774 = vst.msk [vmem:[%s7382_s29 + $0x62] sm:$0x3] %vm4557_vm12, %v4772_v29 }
 0x744   : > { %v4391_v38 = vpop.f32.mrf.mxu2 }
 0x74c   : > { %v4394_v63 = vpop.f32.mrf.mxu2 }
 0x75a   : > { %v4397_v22 = vpop.f32.mrf.mxu2 }
 0x75b PF: > { %s7637_s22 = smov %s5608_s18  ;;  %p17_p4 = scmp.ge.s32.totalorder %s5608_s18, 4  }
 0x75c   : > { %s7638_s18 = smov %s5498_s19  ;;  %s7639_s19 = smov %s5502_s20 }
 0x75d   : > { %s7640_s20 = smov %s5620_s26  ;;  %s7641_s21 = smov %s7637_s22 }
 0x75e   :  { %19 = sbr.rel (!%p17_p4) target bundleno = 5 (0x5), region = 119 }
 0x763   :  { %4796 = vsyncpa [#allocation7], 1 }
 0x764   :  { %4798 = vsyncpa [#allocation7 + $0x1], 1 }
 0x765   :  { %4799 = vsyncpa [#allocation9], 1 }
 0x766   :  { %4800 = vsyncpa [#allocation12], 1 }

</bundles_post_ra>
